<compile_context>
chip_gen: v7x
topology: tpu7x:2x2x1
jax: 0.10.0
libtpu: 0.0.40
codegen_flags: <defaults>
</compile_context>

<pallas_src>
import functools

import jax
import jax.numpy as jnp
from jax import lax
from jax.experimental import pallas as pl
from jax.experimental.pallas import tpu as pltpu

LANES = 128
C1P = 8        # conv1 out-channels (6) padded to 8 = conv2 in-channels padded
C2 = 16        # conv2 out-channels
P1 = 14        # spatial size after conv1 + pool1
NR = P1 * P1   # 196 rows: pool1 activation / conv2 full-grid, row = i*14 + j
TAIL = 4 * P1 + 4   # 60: max row shift used by the 25 conv2 taps


def _round_up(n, m):
    return (n + m - 1) // m * m


def _pad_axis(a, axis, size):
    pad = [(0, 0)] * a.ndim
    pad[axis] = (0, size - a.shape[axis])
    return jnp.pad(a, pad)


# ------------------------------- the kernel ---------------------------------

def _cnn_kernel(p_ref, w_ref, o_ref, h1_ref, c2_ref, *,
                k1p, o_w2, o_f1, o_f2, o_f3, o_b):
    """One image per grid step.

    p_ref : (4, 196, k1p)  conv1 im2col patches, one block per 2x2-pool candidate
    w_ref : (rows, 128)    packed weights: [w1 | conv2 taps | fc1 blocks | fc2 | fc3 | biases]
    o_ref : (1, 8, 128)    logits broadcast over 8 rows (lane-dense output)
    h1_ref: (256, 8)       VMEM scratch: pool1 output (rows 0..195) + zeroed tail
    c2_ref: (200, 128)     VMEM scratch: conv2 accumulated over the full 14x14 grid
    """
    f32 = jnp.float32

    # ---- stage 1: conv1(3x3, pad1) + bias + ReLU + 2x2 maxpool --------------
    w1 = w_ref[pl.ds(0, k1p), :]                                   # (k1p, 128)
    b1 = w_ref[pl.ds(o_b, 1), :]                                   # (1, 128)
    m = jnp.dot(p_ref[0], w1, preferred_element_type=f32)
    for k in range(1, 4):                      # running max over the 4 candidates
        m = jnp.maximum(m, jnp.dot(p_ref[k], w1, preferred_element_type=f32))
    a1 = jnp.maximum(m + b1, 0.0)                                  # (196, 128); lanes >= 6 are 0

    # stash the 14x14x6 pool1 output in VMEM (row = i*14 + j); zero the shift-overrun tail
    h1_ref[pl.ds(NR, TAIL), :] = jnp.zeros((TAIL, C1P), f32)
    h1_ref[pl.ds(0, NR), :] = a1[:, :C1P]

    # ---- stage 2: conv2(5x5, valid) as 25 shifted, accumulated matmuls ------
    # acc[row = oi*14+oj] is the conv2 output at (oi, oj); only oi,oj <= 9 is
    # ever read downstream, so the wrapped rows are harmless.
    acc = None
    for ky in range(5):
        for kx in range(5):
            t = ky * 5 + kx
            lhs = h1_ref[pl.ds(ky * P1 + kx, NR), :]               # (196, 8)
            wt = w_ref[pl.ds(o_w2 + t * C1P, C1P), :]              # (8, 128)
            d = jnp.dot(lhs, wt, preferred_element_type=f32)
            acc = d if acc is None else acc + d
    c2_ref[pl.ds(0, NR), :] = acc                                  # raw conv2 (bias/relu later)

    # ---- stage 3: bias + ReLU + 2x2 maxpool + Linear(400,120)/(120,84)/(84,n) ----
    b2 = w_ref[pl.ds(o_b + 8, 1), :]                               # (1, 128)
    y = w_ref[pl.ds(o_b + 16, 1), :]                               # fc1 accumulator, seeded with fb1
    for pi in range(5):
        va = c2_ref[pl.ds((2 * pi) * P1, 10), :]                   # conv2 rows (2pi,   0..9)
        vb = c2_ref[pl.ds((2 * pi + 1) * P1, 10), :]               # conv2 rows (2pi+1, 0..9)
        v = jnp.maximum(va, vb)                                    # (10, 128) vertical max
        s = None
        for pj in range(5):
            pr = jnp.maximum(v[2 * pj:2 * pj + 1, :],
                             v[2 * pj + 1:2 * pj + 2, :])          # horizontal max -> pooled (1,128)
            a2 = jnp.maximum(pr + b2, 0.0)                         # relu(max + b2)
            wb = w_ref[pl.ds(o_f1 + (pi * 5 + pj) * C2, C2), :]    # (16, 128) fc1 block of this pos
            d = jnp.dot(a2[:, :C2], wb, preferred_element_type=f32)
            s = d if s is None else s + d                          # 5-long chain per pi
        y = y + s                                                  # 2-level (5x5) reduction

    y = jnp.dot(y, w_ref[pl.ds(o_f2, 128), :], preferred_element_type=f32) \
        + w_ref[pl.ds(o_b + 24, 1), :]
    y = jnp.dot(y, w_ref[pl.ds(o_f3, 128), :], preferred_element_type=f32) \
        + w_ref[pl.ds(o_b + 32, 1), :]
    o_ref[0] = jnp.broadcast_to(y, (8, LANES))


# ------------------------------ host-side glue ------------------------------

def cnn_forward(x, p):
    """Forward pass of Cnn. x: NCHW (B, in_dim, 28, 28)."""
    B, cin, H, W = x.shape
    assert H == 28 and W == 28, "fc.view(B, 400) implies 28x28 inputs"
    n_class = p['fw3'].shape[1]
    k1 = 9 * cin
    k1p = _round_up(k1, 8)

    # conv1 im2col patches split into the four 2x2-pool candidates, per image.
    xn = jnp.transpose(x, (0, 2, 3, 1))                            # NHWC (free for cin=1)
    xn = jnp.pad(xn, ((0, 0), (1, 1), (1, 1), (0, 0)))             # padding = 1
    cols = [xn[:, ky:ky + 28, kx:kx + 28, :] for ky in range(3) for kx in range(3)]
    pf = jnp.stack(cols, axis=3).reshape(B, 28, 28, k1)            # features (ky, kx, ci)
    cands = [pf[:, di::2, dj::2, :].reshape(B, NR, k1)
             for di in (0, 1) for dj in (0, 1)]
    p1 = jnp.stack(cands, axis=1)                                  # (B, 4, 196, k1)
    p1 = _pad_axis(p1, 3, k1p).reshape(B * 4, NR, k1p)

    # ---- packed weight slab: [w1 | conv2 taps | fc1 blocks | fc2 | fc3 | biases] ----
    w1m = jnp.transpose(p['w1'], (2, 3, 1, 0)).reshape(k1, 6)      # rows (ky,kx,ci)
    w1m = _pad_axis(_pad_axis(w1m, 0, k1p), 1, LANES)              # (k1p, 128)
    w2m = jnp.transpose(p['w2'], (2, 3, 1, 0))                     # (5,5,6,16) = (ky,kx,ci,co)
    w2m = _pad_axis(w2m, 2, C1P).reshape(25 * C1P, C2)             # (200, 16), rows (ky,kx,ci)
    w2m = _pad_axis(w2m, 1, LANES)                                 # (200, 128)
    # fc1 rows in PyTorch NCHW-flatten order c*25 + pos; regroup into per-position blocks
    wf1 = p['fw1'].reshape(C2, 25, 120).transpose(1, 0, 2).reshape(25 * C2, 120)
    wf1 = _pad_axis(wf1, 1, LANES)                                 # (400, 128)
    wf2 = _pad_axis(_pad_axis(p['fw2'], 0, LANES), 1, LANES)       # (128, 128)
    wf3 = _pad_axis(_pad_axis(p['fw3'], 0, LANES), 1, LANES)       # (128, 128)
    bias = jnp.zeros((40, LANES), jnp.float32)                     # one 8-row-aligned slot each
    bias = bias.at[0, :6].set(p['b1'])
    bias = bias.at[8, :C2].set(p['b2'])
    bias = bias.at[16, :120].set(p['fb1'])
    bias = bias.at[24, :84].set(p['fb2'])
    bias = bias.at[32, :n_class].set(p['fb3'])

    o_w2 = k1p
    o_f1 = o_w2 + 25 * C1P
    o_f2 = o_f1 + 25 * C2
    o_f3 = o_f2 + LANES
    o_b = o_f3 + LANES
    wcat = jnp.concatenate([w1m, w2m, wf1, wf2, wf3, bias], axis=0)
    rows = o_b + 40

    kernel = functools.partial(_cnn_kernel, k1p=k1p, o_w2=o_w2, o_f1=o_f1,
                               o_f2=o_f2, o_f3=o_f3, o_b=o_b)
    out = pl.pallas_call(
        kernel,
        out_shape=jax.ShapeDtypeStruct((B, 8, LANES), jnp.float32),
        grid_spec=pltpu.PrefetchScalarGridSpec(
            num_scalar_prefetch=0,
            grid=(B,),                                             # one image per grid step
            in_specs=[
                pl.BlockSpec((4, NR, k1p), lambda b: (b, 0, 0)),   # this image's 4 candidates
                pl.BlockSpec((rows, LANES), lambda b: (0, 0)),     # weight slab, fetched once
            ],
            out_specs=pl.BlockSpec((1, 8, LANES), lambda b: (b, 0, 0)),
            scratch_shapes=[
                pltpu.VMEM((NR + TAIL, C1P), jnp.float32),         # pool1 output + zero tail
                pltpu.VMEM((200, LANES), jnp.float32),             # conv2 full-grid result
            ],
        ),
        compiler_params=pltpu.CompilerParams(
            dimension_semantics=("parallel",),                     # megacore on v7x
            vmem_limit_bytes=32 * 1024 * 1024,
        ),
    )(p1, wcat)
    return out[:, 0, :n_class]


# --------------------------- pure-JAX reference ------------------------------

def reference_forward(x, p):
    hp = lax.Precision.HIGHEST
    dn = lax.conv_dimension_numbers(x.shape, p['w1'].shape, ('NCHW', 'OIHW', 'NCHW'))
    y = lax.conv_general_dilated(x, p['w1'], (1, 1), ((1, 1), (1, 1)),
                                 dimension_numbers=dn, precision=hp)
    y = jnp.maximum(y + p['b1'][None, :, None, None], 0.0)
    y = lax.reduce_window(y, -jnp.inf, lax.max, (1, 1, 2, 2), (1, 1, 2, 2), 'VALID')
    dn2 = lax.conv_dimension_numbers(y.shape, p['w2'].shape, ('NCHW', 'OIHW', 'NCHW'))
    y = lax.conv_general_dilated(y, p['w2'], (1, 1), ((0, 0), (0, 0)),
                                 dimension_numbers=dn2, precision=hp)
    y = jnp.maximum(y + p['b2'][None, :, None, None], 0.0)
    y = lax.reduce_window(y, -jnp.inf, lax.max, (1, 1, 2, 2), (1, 1, 2, 2), 'VALID')
    y = y.reshape(y.shape[0], 400)
    y = jnp.dot(y, p['fw1'], precision=hp) + p['fb1']
    y = jnp.dot(y, p['fw2'], precision=hp) + p['fb2']
    y = jnp.dot(y, p['fw3'], precision=hp) + p['fb3']
    return y


if __name__ == "__main__":
    B, in_dim, n_class = 2, 1, 10   # forward() implies 28x28 inputs (16*5*5 = 400)
    key = jax.random.PRNGKey(0)
    ks = jax.random.split(key, 11)
    params = dict(
        w1=jax.random.normal(ks[0], (6, in_dim, 3, 3), jnp.float32) * 0.2,
        b1=jax.random.normal(ks[1], (6,), jnp.float32) * 0.1,
        w2=jax.random.normal(ks[2], (16, 6, 5, 5), jnp.float32) * 0.1,
        b2=jax.random.normal(ks[3], (16,), jnp.float32) * 0.1,
        fw1=jax.random.normal(ks[4], (400, 120), jnp.float32) * 0.05,
        fb1=jax.random.normal(ks[5], (120,), jnp.float32) * 0.1,
        fw2=jax.random.normal(ks[6], (120, 84), jnp.float32) * 0.05,
        fb2=jax.random.normal(ks[7], (84,), jnp.float32) * 0.1,
        fw3=jax.random.normal(ks[8], (84, n_class), jnp.float32) * 0.05,
        fb3=jax.random.normal(ks[9], (n_class,), jnp.float32) * 0.1,
    )
    x = jax.random.normal(ks[10], (B, in_dim, 28, 28), jnp.float32)

    out = jax.block_until_ready(jax.jit(cnn_forward)(x, params))
    assert out.shape == (B, n_class), out.shape

    ref = jax.block_until_ready(reference_forward(x, params))
    assert bool(jnp.allclose(out, ref, atol=2e-3, rtol=2e-3)), "mismatch vs reference"

    print("KERNEL_OK")
</pallas_src>

<mosaic_0001>
module attributes {stable_mosaic.version = 11 : i64} {
  func.func @_cnn_kernel(%arg0: i32, %arg1: memref<4x196x16xf32, #tpu.memory_space<vmem>>, %arg2: memref<912x128xf32, #tpu.memory_space<vmem>>, %arg3: memref<1x8x128xf32, #tpu.memory_space<vmem>>, %arg4: memref<256x8xf32, #tpu.memory_space<vmem>>, %arg5: memref<200x128xf32, #tpu.memory_space<vmem>>) attributes {dimension_semantics = [#tpu.dimension_semantics<parallel>], iteration_bounds = array<i64: 2>, scalar_prefetch = 0 : i64, scratch_operands = 2 : i64, tpu.core_type = #tpu.core_type<tc>, window_params = [{transform_indices = @transform_0, window_bounds = array<i64: 4, 196, 16>}, {pipeline_mode = #tpu.pipeline_mode<synchronous>, transform_indices = @transform_1, window_bounds = array<i64: 912, 128>}, {transform_indices = @transform_2, window_bounds = array<i64: 1, 8, 128>}]} {
    %c0 = arith.constant 0 : index
    %c0_0 = arith.constant 0 : index
    %0 = vector.load %arg2[%c0, %c0_0] : memref<912x128xf32, #tpu.memory_space<vmem>>, vector<16x128xf32>
    %c872 = arith.constant 872 : index
    %c0_1 = arith.constant 0 : index
    %1 = vector.load %arg2[%c872, %c0_1] : memref<912x128xf32, #tpu.memory_space<vmem>>, vector<1x128xf32>
    %c0_2 = arith.constant 0 : index
    %c0_3 = arith.constant 0 : index
    %c0_4 = arith.constant 0 : index
    %2 = vector.load %arg1[%c0_2, %c0_3, %c0_4] : memref<4x196x16xf32, #tpu.memory_space<vmem>>, vector<1x196x16xf32>
    %3 = vector.shape_cast %2 : vector<1x196x16xf32> to vector<196x16xf32>
    %cst = arith.constant dense<0.000000e+00> : vector<196x128xf32>
    %4 = tpu.matmul %3, %0, %cst {dimension_numbers = #tpu.dot_dimension_numbers<[1], [0], [0], [1], [0, 0, 1, 1], [], []>} : vector<196x16xf32>, vector<16x128xf32>, vector<196x128xf32> -> vector<196x128xf32>
    %c1 = arith.constant 1 : index
    %c0_5 = arith.constant 0 : index
    %c0_6 = arith.constant 0 : index
    %5 = vector.load %arg1[%c1, %c0_5, %c0_6] : memref<4x196x16xf32, #tpu.memory_space<vmem>>, vector<1x196x16xf32>
    %6 = vector.shape_cast %5 : vector<1x196x16xf32> to vector<196x16xf32>
    %cst_7 = arith.constant dense<0.000000e+00> : vector<196x128xf32>
    %7 = tpu.matmul %6, %0, %cst_7 {dimension_numbers = #tpu.dot_dimension_numbers<[1], [0], [0], [1], [0, 0, 1, 1], [], []>} : vector<196x16xf32>, vector<16x128xf32>, vector<196x128xf32> -> vector<196x128xf32>
    %8 = arith.maximumf %4, %7 : vector<196x128xf32>
    %c2 = arith.constant 2 : index
    %c0_8 = arith.constant 0 : index
    %c0_9 = arith.constant 0 : index
    %9 = vector.load %arg1[%c2, %c0_8, %c0_9] : memref<4x196x16xf32, #tpu.memory_space<vmem>>, vector<1x196x16xf32>
    %10 = vector.shape_cast %9 : vector<1x196x16xf32> to vector<196x16xf32>
    %cst_10 = arith.constant dense<0.000000e+00> : vector<196x128xf32>
    %11 = tpu.matmul %10, %0, %cst_10 {dimension_numbers = #tpu.dot_dimension_numbers<[1], [0], [0], [1], [0, 0, 1, 1], [], []>} : vector<196x16xf32>, vector<16x128xf32>, vector<196x128xf32> -> vector<196x128xf32>
    %12 = arith.maximumf %8, %11 : vector<196x128xf32>
    %c3 = arith.constant 3 : index
    %c0_11 = arith.constant 0 : index
    %c0_12 = arith.constant 0 : index
    %13 = vector.load %arg1[%c3, %c0_11, %c0_12] : memref<4x196x16xf32, #tpu.memory_space<vmem>>, vector<1x196x16xf32>
    %14 = vector.shape_cast %13 : vector<1x196x16xf32> to vector<196x16xf32>
    %cst_13 = arith.constant dense<0.000000e+00> : vector<196x128xf32>
    %15 = tpu.matmul %14, %0, %cst_13 {dimension_numbers = #tpu.dot_dimension_numbers<[1], [0], [0], [1], [0, 0, 1, 1], [], []>} : vector<196x16xf32>, vector<16x128xf32>, vector<196x128xf32> -> vector<196x128xf32>
    %16 = arith.maximumf %12, %15 : vector<196x128xf32>
    %17 = vector.broadcast %1 : vector<1x128xf32> to vector<196x128xf32>
    %18 = arith.addf %16, %17 : vector<196x128xf32>
    %cst_14 = arith.constant 0.000000e+00 : f32
    %19 = vector.broadcast %cst_14 : f32 to vector<196x128xf32>
    %20 = arith.maximumf %18, %19 : vector<196x128xf32>
    %cst_15 = arith.constant 0.000000e+00 : f32
    %21 = vector.broadcast %cst_15 : f32 to vector<60x8xf32>
    %c196 = arith.constant 196 : index
    %c0_16 = arith.constant 0 : index
    %22 = vector.load %arg4[%c196, %c0_16] : memref<256x8xf32, #tpu.memory_space<vmem>>, vector<60x8xf32>
    tpu.vector_store %arg4[%c196, %c0_16], %21 {strides = array<i32>} : memref<256x8xf32, #tpu.memory_space<vmem>>, vector<60x8xf32>,
    %23 = vector.extract_strided_slice %20 {offsets = [0, 0], sizes = [196, 8], strides = [1, 1]} : vector<196x128xf32> to vector<196x8xf32>
    %c0_17 = arith.constant 0 : index
    %c0_18 = arith.constant 0 : index
    %24 = vector.load %arg4[%c0_17, %c0_18] : memref<256x8xf32, #tpu.memory_space<vmem>>, vector<196x8xf32>
    tpu.vector_store %arg4[%c0_17, %c0_18], %23 {strides = array<i32>} : memref<256x8xf32, #tpu.memory_space<vmem>>, vector<196x8xf32>,
    %c0_19 = arith.constant 0 : index
    %c0_20 = arith.constant 0 : index
    %25 = vector.load %arg4[%c0_19, %c0_20] : memref<256x8xf32, #tpu.memory_space<vmem>>, vector<196x8xf32>
    %c16 = arith.constant 16 : index
    %c0_21 = arith.constant 0 : index
    %26 = vector.load %arg2[%c16, %c0_21] : memref<912x128xf32, #tpu.memory_space<vmem>>, vector<8x128xf32>
    %cst_22 = arith.constant dense<0.000000e+00> : vector<196x128xf32>
    %27 = tpu.matmul %25, %26, %cst_22 {dimension_numbers = #tpu.dot_dimension_numbers<[1], [0], [0], [1], [0, 0, 1, 1], [], []>} : vector<196x8xf32>, vector<8x128xf32>, vector<196x128xf32> -> vector<196x128xf32>
    %c1_23 = arith.constant 1 : index
    %c0_24 = arith.constant 0 : index
    %28 = vector.load %arg4[%c1_23, %c0_24] : memref<256x8xf32, #tpu.memory_space<vmem>>, vector<196x8xf32>
    %c24 = arith.constant 24 : index
    %c0_25 = arith.constant 0 : index
    %29 = vector.load %arg2[%c24, %c0_25] : memref<912x128xf32, #tpu.memory_space<vmem>>, vector<8x128xf32>
    %cst_26 = arith.constant dense<0.000000e+00> : vector<196x128xf32>
    %30 = tpu.matmul %28, %29, %cst_26 {dimension_numbers = #tpu.dot_dimension_numbers<[1], [0], [0], [1], [0, 0, 1, 1], [], []>} : vector<196x8xf32>, vector<8x128xf32>, vector<196x128xf32> -> vector<196x128xf32>
    %31 = arith.addf %27, %30 : vector<196x128xf32>
    %c2_27 = arith.constant 2 : index
    %c0_28 = arith.constant 0 : index
    %32 = vector.load %arg4[%c2_27, %c0_28] : memref<256x8xf32, #tpu.memory_space<vmem>>, vector<196x8xf32>
    %c32 = arith.constant 32 : index
    %c0_29 = arith.constant 0 : index
    %33 = vector.load %arg2[%c32, %c0_29] : memref<912x128xf32, #tpu.memory_space<vmem>>, vector<8x128xf32>
    %cst_30 = arith.constant dense<0.000000e+00> : vector<196x128xf32>
    %34 = tpu.matmul %32, %33, %cst_30 {dimension_numbers = #tpu.dot_dimension_numbers<[1], [0], [0], [1], [0, 0, 1, 1], [], []>} : vector<196x8xf32>, vector<8x128xf32>, vector<196x128xf32> -> vector<196x128xf32>
    %35 = arith.addf %31, %34 : vector<196x128xf32>
    %c3_31 = arith.constant 3 : index
    %c0_32 = arith.constant 0 : index
    %36 = vector.load %arg4[%c3_31, %c0_32] : memref<256x8xf32, #tpu.memory_space<vmem>>, vector<196x8xf32>
    %c40 = arith.constant 40 : index
    %c0_33 = arith.constant 0 : index
    %37 = vector.load %arg2[%c40, %c0_33] : memref<912x128xf32, #tpu.memory_space<vmem>>, vector<8x128xf32>
    %cst_34 = arith.constant dense<0.000000e+00> : vector<196x128xf32>
    %38 = tpu.matmul %36, %37, %cst_34 {dimension_numbers = #tpu.dot_dimension_numbers<[1], [0], [0], [1], [0, 0, 1, 1], [], []>} : vector<196x8xf32>, vector<8x128xf32>, vector<196x128xf32> -> vector<196x128xf32>
    %39 = arith.addf %35, %38 : vector<196x128xf32>
    %c4 = arith.constant 4 : index
    %c0_35 = arith.constant 0 : index
    %40 = vector.load %arg4[%c4, %c0_35] : memref<256x8xf32, #tpu.memory_space<vmem>>, vector<196x8xf32>
    %c48 = arith.constant 48 : index
    %c0_36 = arith.constant 0 : index
    %41 = vector.load %arg2[%c48, %c0_36] : memref<912x128xf32, #tpu.memory_space<vmem>>, vector<8x128xf32>
    %cst_37 = arith.constant dense<0.000000e+00> : vector<196x128xf32>
    %42 = tpu.matmul %40, %41, %cst_37 {dimension_numbers = #tpu.dot_dimension_numbers<[1], [0], [0], [1], [0, 0, 1, 1], [], []>} : vector<196x8xf32>, vector<8x128xf32>, vector<196x128xf32> -> vector<196x128xf32>
    %43 = arith.addf %39, %42 : vector<196x128xf32>
    %c14 = arith.constant 14 : index
    %c0_38 = arith.constant 0 : index
    %44 = vector.load %arg4[%c14, %c0_38] : memref<256x8xf32, #tpu.memory_space<vmem>>, vector<196x8xf32>
    %c56 = arith.constant 56 : index
    %c0_39 = arith.constant 0 : index
    %45 = vector.load %arg2[%c56, %c0_39] : memref<912x128xf32, #tpu.memory_space<vmem>>, vector<8x128xf32>
    %cst_40 = arith.constant dense<0.000000e+00> : vector<196x128xf32>
    %46 = tpu.matmul %44, %45, %cst_40 {dimension_numbers = #tpu.dot_dimension_numbers<[1], [0], [0], [1], [0, 0, 1, 1], [], []>} : vector<196x8xf32>, vector<8x128xf32>, vector<196x128xf32> -> vector<196x128xf32>
    %47 = arith.addf %43, %46 : vector<196x128xf32>
    %c15 = arith.constant 15 : index
    %c0_41 = arith.constant 0 : index
    %48 = vector.load %arg4[%c15, %c0_41] : memref<256x8xf32, #tpu.memory_space<vmem>>, vector<196x8xf32>
    %c64 = arith.constant 64 : index
    %c0_42 = arith.constant 0 : index
    %49 = vector.load %arg2[%c64, %c0_42] : memref<912x128xf32, #tpu.memory_space<vmem>>, vector<8x128xf32>
    %cst_43 = arith.constant dense<0.000000e+00> : vector<196x128xf32>
    %50 = tpu.matmul %48, %49, %cst_43 {dimension_numbers = #tpu.dot_dimension_numbers<[1], [0], [0], [1], [0, 0, 1, 1], [], []>} : vector<196x8xf32>, vector<8x128xf32>, vector<196x128xf32> -> vector<196x128xf32>
    %51 = arith.addf %47, %50 : vector<196x128xf32>
    %c16_44 = arith.constant 16 : index
    %c0_45 = arith.constant 0 : index
    %52 = vector.load %arg4[%c16_44, %c0_45] : memref<256x8xf32, #tpu.memory_space<vmem>>, vector<196x8xf32>
    %c72 = arith.constant 72 : index
    %c0_46 = arith.constant 0 : index
    %53 = vector.load %arg2[%c72, %c0_46] : memref<912x128xf32, #tpu.memory_space<vmem>>, vector<8x128xf32>
    %cst_47 = arith.constant dense<0.000000e+00> : vector<196x128xf32>
    %54 = tpu.matmul %52, %53, %cst_47 {dimension_numbers = #tpu.dot_dimension_numbers<[1], [0], [0], [1], [0, 0, 1, 1], [], []>} : vector<196x8xf32>, vector<8x128xf32>, vector<196x128xf32> -> vector<196x128xf32>
    %55 = arith.addf %51, %54 : vector<196x128xf32>
    %c17 = arith.constant 17 : index
    %c0_48 = arith.constant 0 : index
    %56 = vector.load %arg4[%c17, %c0_48] : memref<256x8xf32, #tpu.memory_space<vmem>>, vector<196x8xf32>
    %c80 = arith.constant 80 : index
    %c0_49 = arith.constant 0 : index
    %57 = vector.load %arg2[%c80, %c0_49] : memref<912x128xf32, #tpu.memory_space<vmem>>, vector<8x128xf32>
    %cst_50 = arith.constant dense<0.000000e+00> : vector<196x128xf32>
    %58 = tpu.matmul %56, %57, %cst_50 {dimension_numbers = #tpu.dot_dimension_numbers<[1], [0], [0], [1], [0, 0, 1, 1], [], []>} : vector<196x8xf32>, vector<8x128xf32>, vector<196x128xf32> -> vector<196x128xf32>
    %59 = arith.addf %55, %58 : vector<196x128xf32>
    %c18 = arith.constant 18 : index
    %c0_51 = arith.constant 0 : index
    %60 = vector.load %arg4[%c18, %c0_51] : memref<256x8xf32, #tpu.memory_space<vmem>>, vector<196x8xf32>
    %c88 = arith.constant 88 : index
    %c0_52 = arith.constant 0 : index
    %61 = vector.load %arg2[%c88, %c0_52] : memref<912x128xf32, #tpu.memory_space<vmem>>, vector<8x128xf32>
    %cst_53 = arith.constant dense<0.000000e+00> : vector<196x128xf32>
    %62 = tpu.matmul %60, %61, %cst_53 {dimension_numbers = #tpu.dot_dimension_numbers<[1], [0], [0], [1], [0, 0, 1, 1], [], []>} : vector<196x8xf32>, vector<8x128xf32>, vector<196x128xf32> -> vector<196x128xf32>
    %63 = arith.addf %59, %62 : vector<196x128xf32>
    %c28 = arith.constant 28 : index
    %c0_54 = arith.constant 0 : index
    %64 = vector.load %arg4[%c28, %c0_54] : memref<256x8xf32, #tpu.memory_space<vmem>>, vector<196x8xf32>
    %c96 = arith.constant 96 : index
    %c0_55 = arith.constant 0 : index
    %65 = vector.load %arg2[%c96, %c0_55] : memref<912x128xf32, #tpu.memory_space<vmem>>, vector<8x128xf32>
    %cst_56 = arith.constant dense<0.000000e+00> : vector<196x128xf32>
    %66 = tpu.matmul %64, %65, %cst_56 {dimension_numbers = #tpu.dot_dimension_numbers<[1], [0], [0], [1], [0, 0, 1, 1], [], []>} : vector<196x8xf32>, vector<8x128xf32>, vector<196x128xf32> -> vector<196x128xf32>
    %67 = arith.addf %63, %66 : vector<196x128xf32>
    %c29 = arith.constant 29 : index
    %c0_57 = arith.constant 0 : index
    %68 = vector.load %arg4[%c29, %c0_57] : memref<256x8xf32, #tpu.memory_space<vmem>>, vector<196x8xf32>
    %c104 = arith.constant 104 : index
    %c0_58 = arith.constant 0 : index
    %69 = vector.load %arg2[%c104, %c0_58] : memref<912x128xf32, #tpu.memory_space<vmem>>, vector<8x128xf32>
    %cst_59 = arith.constant dense<0.000000e+00> : vector<196x128xf32>
    %70 = tpu.matmul %68, %69, %cst_59 {dimension_numbers = #tpu.dot_dimension_numbers<[1], [0], [0], [1], [0, 0, 1, 1], [], []>} : vector<196x8xf32>, vector<8x128xf32>, vector<196x128xf32> -> vector<196x128xf32>
    %71 = arith.addf %67, %70 : vector<196x128xf32>
    %c30 = arith.constant 30 : index
    %c0_60 = arith.constant 0 : index
    %72 = vector.load %arg4[%c30, %c0_60] : memref<256x8xf32, #tpu.memory_space<vmem>>, vector<196x8xf32>
    %c112 = arith.constant 112 : index
    %c0_61 = arith.constant 0 : index
    %73 = vector.load %arg2[%c112, %c0_61] : memref<912x128xf32, #tpu.memory_space<vmem>>, vector<8x128xf32>
    %cst_62 = arith.constant dense<0.000000e+00> : vector<196x128xf32>
    %74 = tpu.matmul %72, %73, %cst_62 {dimension_numbers = #tpu.dot_dimension_numbers<[1], [0], [0], [1], [0, 0, 1, 1], [], []>} : vector<196x8xf32>, vector<8x128xf32>, vector<196x128xf32> -> vector<196x128xf32>
    %75 = arith.addf %71, %74 : vector<196x128xf32>
    %c31 = arith.constant 31 : index
    %c0_63 = arith.constant 0 : index
    %76 = vector.load %arg4[%c31, %c0_63] : memref<256x8xf32, #tpu.memory_space<vmem>>, vector<196x8xf32>
    %c120 = arith.constant 120 : index
    %c0_64 = arith.constant 0 : index
    %77 = vector.load %arg2[%c120, %c0_64] : memref<912x128xf32, #tpu.memory_space<vmem>>, vector<8x128xf32>
    %cst_65 = arith.constant dense<0.000000e+00> : vector<196x128xf32>
    %78 = tpu.matmul %76, %77, %cst_65 {dimension_numbers = #tpu.dot_dimension_numbers<[1], [0], [0], [1], [0, 0, 1, 1], [], []>} : vector<196x8xf32>, vector<8x128xf32>, vector<196x128xf32> -> vector<196x128xf32>
    %79 = arith.addf %75, %78 : vector<196x128xf32>
    %c32_66 = arith.constant 32 : index
    %c0_67 = arith.constant 0 : index
    %80 = vector.load %arg4[%c32_66, %c0_67] : memref<256x8xf32, #tpu.memory_space<vmem>>, vector<196x8xf32>
    %c128 = arith.constant 128 : index
    %c0_68 = arith.constant 0 : index
    %81 = vector.load %arg2[%c128, %c0_68] : memref<912x128xf32, #tpu.memory_space<vmem>>, vector<8x128xf32>
    %cst_69 = arith.constant dense<0.000000e+00> : vector<196x128xf32>
    %82 = tpu.matmul %80, %81, %cst_69 {dimension_numbers = #tpu.dot_dimension_numbers<[1], [0], [0], [1], [0, 0, 1, 1], [], []>} : vector<196x8xf32>, vector<8x128xf32>, vector<196x128xf32> -> vector<196x128xf32>
    %83 = arith.addf %79, %82 : vector<196x128xf32>
    %c42 = arith.constant 42 : index
    %c0_70 = arith.constant 0 : index
    %84 = vector.load %arg4[%c42, %c0_70] : memref<256x8xf32, #tpu.memory_space<vmem>>, vector<196x8xf32>
    %c136 = arith.constant 136 : index
    %c0_71 = arith.constant 0 : index
    %85 = vector.load %arg2[%c136, %c0_71] : memref<912x128xf32, #tpu.memory_space<vmem>>, vector<8x128xf32>
    %cst_72 = arith.constant dense<0.000000e+00> : vector<196x128xf32>
    %86 = tpu.matmul %84, %85, %cst_72 {dimension_numbers = #tpu.dot_dimension_numbers<[1], [0], [0], [1], [0, 0, 1, 1], [], []>} : vector<196x8xf32>, vector<8x128xf32>, vector<196x128xf32> -> vector<196x128xf32>
    %87 = arith.addf %83, %86 : vector<196x128xf32>
    %c43 = arith.constant 43 : index
    %c0_73 = arith.constant 0 : index
    %88 = vector.load %arg4[%c43, %c0_73] : memref<256x8xf32, #tpu.memory_space<vmem>>, vector<196x8xf32>
    %c144 = arith.constant 144 : index
    %c0_74 = arith.constant 0 : index
    %89 = vector.load %arg2[%c144, %c0_74] : memref<912x128xf32, #tpu.memory_space<vmem>>, vector<8x128xf32>
    %cst_75 = arith.constant dense<0.000000e+00> : vector<196x128xf32>
    %90 = tpu.matmul %88, %89, %cst_75 {dimension_numbers = #tpu.dot_dimension_numbers<[1], [0], [0], [1], [0, 0, 1, 1], [], []>} : vector<196x8xf32>, vector<8x128xf32>, vector<196x128xf32> -> vector<196x128xf32>
    %91 = arith.addf %87, %90 : vector<196x128xf32>
    %c44 = arith.constant 44 : index
    %c0_76 = arith.constant 0 : index
    %92 = vector.load %arg4[%c44, %c0_76] : memref<256x8xf32, #tpu.memory_space<vmem>>, vector<196x8xf32>
    %c152 = arith.constant 152 : index
    %c0_77 = arith.constant 0 : index
    %93 = vector.load %arg2[%c152, %c0_77] : memref<912x128xf32, #tpu.memory_space<vmem>>, vector<8x128xf32>
    %cst_78 = arith.constant dense<0.000000e+00> : vector<196x128xf32>
    %94 = tpu.matmul %92, %93, %cst_78 {dimension_numbers = #tpu.dot_dimension_numbers<[1], [0], [0], [1], [0, 0, 1, 1], [], []>} : vector<196x8xf32>, vector<8x128xf32>, vector<196x128xf32> -> vector<196x128xf32>
    %95 = arith.addf %91, %94 : vector<196x128xf32>
    %c45 = arith.constant 45 : index
    %c0_79 = arith.constant 0 : index
    %96 = vector.load %arg4[%c45, %c0_79] : memref<256x8xf32, #tpu.memory_space<vmem>>, vector<196x8xf32>
    %c160 = arith.constant 160 : index
    %c0_80 = arith.constant 0 : index
    %97 = vector.load %arg2[%c160, %c0_80] : memref<912x128xf32, #tpu.memory_space<vmem>>, vector<8x128xf32>
    %cst_81 = arith.constant dense<0.000000e+00> : vector<196x128xf32>
    %98 = tpu.matmul %96, %97, %cst_81 {dimension_numbers = #tpu.dot_dimension_numbers<[1], [0], [0], [1], [0, 0, 1, 1], [], []>} : vector<196x8xf32>, vector<8x128xf32>, vector<196x128xf32> -> vector<196x128xf32>
    %99 = arith.addf %95, %98 : vector<196x128xf32>
    %c46 = arith.constant 46 : index
    %c0_82 = arith.constant 0 : index
    %100 = vector.load %arg4[%c46, %c0_82] : memref<256x8xf32, #tpu.memory_space<vmem>>, vector<196x8xf32>
    %c168 = arith.constant 168 : index
    %c0_83 = arith.constant 0 : index
    %101 = vector.load %arg2[%c168, %c0_83] : memref<912x128xf32, #tpu.memory_space<vmem>>, vector<8x128xf32>
    %cst_84 = arith.constant dense<0.000000e+00> : vector<196x128xf32>
    %102 = tpu.matmul %100, %101, %cst_84 {dimension_numbers = #tpu.dot_dimension_numbers<[1], [0], [0], [1], [0, 0, 1, 1], [], []>} : vector<196x8xf32>, vector<8x128xf32>, vector<196x128xf32> -> vector<196x128xf32>
    %103 = arith.addf %99, %102 : vector<196x128xf32>
    %c56_85 = arith.constant 56 : index
    %c0_86 = arith.constant 0 : index
    %104 = vector.load %arg4[%c56_85, %c0_86] : memref<256x8xf32, #tpu.memory_space<vmem>>, vector<196x8xf32>
    %c176 = arith.constant 176 : index
    %c0_87 = arith.constant 0 : index
    %105 = vector.load %arg2[%c176, %c0_87] : memref<912x128xf32, #tpu.memory_space<vmem>>, vector<8x128xf32>
    %cst_88 = arith.constant dense<0.000000e+00> : vector<196x128xf32>
    %106 = tpu.matmul %104, %105, %cst_88 {dimension_numbers = #tpu.dot_dimension_numbers<[1], [0], [0], [1], [0, 0, 1, 1], [], []>} : vector<196x8xf32>, vector<8x128xf32>, vector<196x128xf32> -> vector<196x128xf32>
    %107 = arith.addf %103, %106 : vector<196x128xf32>
    %c57 = arith.constant 57 : index
    %c0_89 = arith.constant 0 : index
    %108 = vector.load %arg4[%c57, %c0_89] : memref<256x8xf32, #tpu.memory_space<vmem>>, vector<196x8xf32>
    %c184 = arith.constant 184 : index
    %c0_90 = arith.constant 0 : index
    %109 = vector.load %arg2[%c184, %c0_90] : memref<912x128xf32, #tpu.memory_space<vmem>>, vector<8x128xf32>
    %cst_91 = arith.constant dense<0.000000e+00> : vector<196x128xf32>
    %110 = tpu.matmul %108, %109, %cst_91 {dimension_numbers = #tpu.dot_dimension_numbers<[1], [0], [0], [1], [0, 0, 1, 1], [], []>} : vector<196x8xf32>, vector<8x128xf32>, vector<196x128xf32> -> vector<196x128xf32>
    %111 = arith.addf %107, %110 : vector<196x128xf32>
    %c58 = arith.constant 58 : index
    %c0_92 = arith.constant 0 : index
    %112 = vector.load %arg4[%c58, %c0_92] : memref<256x8xf32, #tpu.memory_space<vmem>>, vector<196x8xf32>
    %c192 = arith.constant 192 : index
    %c0_93 = arith.constant 0 : index
    %113 = vector.load %arg2[%c192, %c0_93] : memref<912x128xf32, #tpu.memory_space<vmem>>, vector<8x128xf32>
    %cst_94 = arith.constant dense<0.000000e+00> : vector<196x128xf32>
    %114 = tpu.matmul %112, %113, %cst_94 {dimension_numbers = #tpu.dot_dimension_numbers<[1], [0], [0], [1], [0, 0, 1, 1], [], []>} : vector<196x8xf32>, vector<8x128xf32>, vector<196x128xf32> -> vector<196x128xf32>
    %115 = arith.addf %111, %114 : vector<196x128xf32>
    %c59 = arith.constant 59 : index
    %c0_95 = arith.constant 0 : index
    %116 = vector.load %arg4[%c59, %c0_95] : memref<256x8xf32, #tpu.memory_space<vmem>>, vector<196x8xf32>
    %c200 = arith.constant 200 : index
    %c0_96 = arith.constant 0 : index
    %117 = vector.load %arg2[%c200, %c0_96] : memref<912x128xf32, #tpu.memory_space<vmem>>, vector<8x128xf32>
    %cst_97 = arith.constant dense<0.000000e+00> : vector<196x128xf32>
    %118 = tpu.matmul %116, %117, %cst_97 {dimension_numbers = #tpu.dot_dimension_numbers<[1], [0], [0], [1], [0, 0, 1, 1], [], []>} : vector<196x8xf32>, vector<8x128xf32>, vector<196x128xf32> -> vector<196x128xf32>
    %119 = arith.addf %115, %118 : vector<196x128xf32>
    %c60 = arith.constant 60 : index
    %c0_98 = arith.constant 0 : index
    %120 = vector.load %arg4[%c60, %c0_98] : memref<256x8xf32, #tpu.memory_space<vmem>>, vector<196x8xf32>
    %c208 = arith.constant 208 : index
    %c0_99 = arith.constant 0 : index
    %121 = vector.load %arg2[%c208, %c0_99] : memref<912x128xf32, #tpu.memory_space<vmem>>, vector<8x128xf32>
    %cst_100 = arith.constant dense<0.000000e+00> : vector<196x128xf32>
    %122 = tpu.matmul %120, %121, %cst_100 {dimension_numbers = #tpu.dot_dimension_numbers<[1], [0], [0], [1], [0, 0, 1, 1], [], []>} : vector<196x8xf32>, vector<8x128xf32>, vector<196x128xf32> -> vector<196x128xf32>
    %123 = arith.addf %119, %122 : vector<196x128xf32>
    %c0_101 = arith.constant 0 : index
    %c0_102 = arith.constant 0 : index
    %124 = vector.load %arg5[%c0_101, %c0_102] : memref<200x128xf32, #tpu.memory_space<vmem>>, vector<196x128xf32>
    tpu.vector_store %arg5[%c0_101, %c0_102], %123 {strides = array<i32>} : memref<200x128xf32, #tpu.memory_space<vmem>>, vector<196x128xf32>,
    %c880 = arith.constant 880 : index
    %c0_103 = arith.constant 0 : index
    %125 = vector.load %arg2[%c880, %c0_103] : memref<912x128xf32, #tpu.memory_space<vmem>>, vector<1x128xf32>
    %c888 = arith.constant 888 : index
    %c0_104 = arith.constant 0 : index
    %126 = vector.load %arg2[%c888, %c0_104] : memref<912x128xf32, #tpu.memory_space<vmem>>, vector<1x128xf32>
    %c0_105 = arith.constant 0 : index
    %c0_106 = arith.constant 0 : index
    %127 = vector.load %arg5[%c0_105, %c0_106] : memref<200x128xf32, #tpu.memory_space<vmem>>, vector<10x128xf32>
    %c14_107 = arith.constant 14 : index
    %c0_108 = arith.constant 0 : index
    %128 = vector.load %arg5[%c14_107, %c0_108] : memref<200x128xf32, #tpu.memory_space<vmem>>, vector<10x128xf32>
    %129 = arith.maximumf %127, %128 : vector<10x128xf32>
    %130 = vector.extract_strided_slice %129 {offsets = [0, 0], sizes = [1, 128], strides = [1, 1]} : vector<10x128xf32> to vector<1x128xf32>
    %131 = vector.extract_strided_slice %129 {offsets = [1, 0], sizes = [1, 128], strides = [1, 1]} : vector<10x128xf32> to vector<1x128xf32>
    %132 = arith.maximumf %130, %131 : vector<1x128xf32>
    %133 = arith.addf %132, %125 : vector<1x128xf32>
    %cst_109 = arith.constant 0.000000e+00 : f32
    %134 = vector.broadcast %cst_109 : f32 to vector<1x128xf32>
    %135 = arith.maximumf %133, %134 : vector<1x128xf32>
    %c216 = arith.constant 216 : index
    %c0_110 = arith.constant 0 : index
    %136 = vector.load %arg2[%c216, %c0_110] : memref<912x128xf32, #tpu.memory_space<vmem>>, vector<16x128xf32>
    %137 = vector.extract_strided_slice %135 {offsets = [0, 0], sizes = [1, 16], strides = [1, 1]} : vector<1x128xf32> to vector<1x16xf32>
    %cst_111 = arith.constant dense<0.000000e+00> : vector<1x128xf32>
    %138 = tpu.matmul %137, %136, %cst_111 {dimension_numbers = #tpu.dot_dimension_numbers<[1], [0], [0], [1], [0, 0, 1, 1], [], []>} : vector<1x16xf32>, vector<16x128xf32>, vector<1x128xf32> -> vector<1x128xf32>
    %139 = vector.extract_strided_slice %129 {offsets = [2, 0], sizes = [1, 128], strides = [1, 1]} : vector<10x128xf32> to vector<1x128xf32>
    %140 = vector.extract_strided_slice %129 {offsets = [3, 0], sizes = [1, 128], strides = [1, 1]} : vector<10x128xf32> to vector<1x128xf32>
    %141 = arith.maximumf %139, %140 : vector<1x128xf32>
    %142 = arith.addf %141, %125 : vector<1x128xf32>
    %cst_112 = arith.constant 0.000000e+00 : f32
    %143 = vector.broadcast %cst_112 : f32 to vector<1x128xf32>
    %144 = arith.maximumf %142, %143 : vector<1x128xf32>
    %c232 = arith.constant 232 : index
    %c0_113 = arith.constant 0 : index
    %145 = vector.load %arg2[%c232, %c0_113] : memref<912x128xf32, #tpu.memory_space<vmem>>, vector<16x128xf32>
    %146 = vector.extract_strided_slice %144 {offsets = [0, 0], sizes = [1, 16], strides = [1, 1]} : vector<1x128xf32> to vector<1x16xf32>
    %cst_114 = arith.constant dense<0.000000e+00> : vector<1x128xf32>
    %147 = tpu.matmul %146, %145, %cst_114 {dimension_numbers = #tpu.dot_dimension_numbers<[1], [0], [0], [1], [0, 0, 1, 1], [], []>} : vector<1x16xf32>, vector<16x128xf32>, vector<1x128xf32> -> vector<1x128xf32>
    %148 = arith.addf %138, %147 : vector<1x128xf32>
    %149 = vector.extract_strided_slice %129 {offsets = [4, 0], sizes = [1, 128], strides = [1, 1]} : vector<10x128xf32> to vector<1x128xf32>
    %150 = vector.extract_strided_slice %129 {offsets = [5, 0], sizes = [1, 128], strides = [1, 1]} : vector<10x128xf32> to vector<1x128xf32>
    %151 = arith.maximumf %149, %150 : vector<1x128xf32>
    %152 = arith.addf %151, %125 : vector<1x128xf32>
    %cst_115 = arith.constant 0.000000e+00 : f32
    %153 = vector.broadcast %cst_115 : f32 to vector<1x128xf32>
    %154 = arith.maximumf %152, %153 : vector<1x128xf32>
    %c248 = arith.constant 248 : index
    %c0_116 = arith.constant 0 : index
    %155 = vector.load %arg2[%c248, %c0_116] : memref<912x128xf32, #tpu.memory_space<vmem>>, vector<16x128xf32>
    %156 = vector.extract_strided_slice %154 {offsets = [0, 0], sizes = [1, 16], strides = [1, 1]} : vector<1x128xf32> to vector<1x16xf32>
    %cst_117 = arith.constant dense<0.000000e+00> : vector<1x128xf32>
    %157 = tpu.matmul %156, %155, %cst_117 {dimension_numbers = #tpu.dot_dimension_numbers<[1], [0], [0], [1], [0, 0, 1, 1], [], []>} : vector<1x16xf32>, vector<16x128xf32>, vector<1x128xf32> -> vector<1x128xf32>
    %158 = arith.addf %148, %157 : vector<1x128xf32>
    %159 = vector.extract_strided_slice %129 {offsets = [6, 0], sizes = [1, 128], strides = [1, 1]} : vector<10x128xf32> to vector<1x128xf32>
    %160 = vector.extract_strided_slice %129 {offsets = [7, 0], sizes = [1, 128], strides = [1, 1]} : vector<10x128xf32> to vector<1x128xf32>
    %161 = arith.maximumf %159, %160 : vector<1x128xf32>
    %162 = arith.addf %161, %125 : vector<1x128xf32>
    %cst_118 = arith.constant 0.000000e+00 : f32
    %163 = vector.broadcast %cst_118 : f32 to vector<1x128xf32>
    %164 = arith.maximumf %162, %163 : vector<1x128xf32>
    %c264 = arith.constant 264 : index
    %c0_119 = arith.constant 0 : index
    %165 = vector.load %arg2[%c264, %c0_119] : memref<912x128xf32, #tpu.memory_space<vmem>>, vector<16x128xf32>
    %166 = vector.extract_strided_slice %164 {offsets = [0, 0], sizes = [1, 16], strides = [1, 1]} : vector<1x128xf32> to vector<1x16xf32>
    %cst_120 = arith.constant dense<0.000000e+00> : vector<1x128xf32>
    %167 = tpu.matmul %166, %165, %cst_120 {dimension_numbers = #tpu.dot_dimension_numbers<[1], [0], [0], [1], [0, 0, 1, 1], [], []>} : vector<1x16xf32>, vector<16x128xf32>, vector<1x128xf32> -> vector<1x128xf32>
    %168 = arith.addf %158, %167 : vector<1x128xf32>
    %169 = vector.extract_strided_slice %129 {offsets = [8, 0], sizes = [1, 128], strides = [1, 1]} : vector<10x128xf32> to vector<1x128xf32>
    %170 = vector.extract_strided_slice %129 {offsets = [9, 0], sizes = [1, 128], strides = [1, 1]} : vector<10x128xf32> to vector<1x128xf32>
    %171 = arith.maximumf %169, %170 : vector<1x128xf32>
    %172 = arith.addf %171, %125 : vector<1x128xf32>
    %cst_121 = arith.constant 0.000000e+00 : f32
    %173 = vector.broadcast %cst_121 : f32 to vector<1x128xf32>
    %174 = arith.maximumf %172, %173 : vector<1x128xf32>
    %c280 = arith.constant 280 : index
    %c0_122 = arith.constant 0 : index
    %175 = vector.load %arg2[%c280, %c0_122] : memref<912x128xf32, #tpu.memory_space<vmem>>, vector<16x128xf32>
    %176 = vector.extract_strided_slice %174 {offsets = [0, 0], sizes = [1, 16], strides = [1, 1]} : vector<1x128xf32> to vector<1x16xf32>
    %cst_123 = arith.constant dense<0.000000e+00> : vector<1x128xf32>
    %177 = tpu.matmul %176, %175, %cst_123 {dimension_numbers = #tpu.dot_dimension_numbers<[1], [0], [0], [1], [0, 0, 1, 1], [], []>} : vector<1x16xf32>, vector<16x128xf32>, vector<1x128xf32> -> vector<1x128xf32>
    %178 = arith.addf %168, %177 : vector<1x128xf32>
    %179 = arith.addf %126, %178 : vector<1x128xf32>
    %c28_124 = arith.constant 28 : index
    %c0_125 = arith.constant 0 : index
    %180 = vector.load %arg5[%c28_124, %c0_125] : memref<200x128xf32, #tpu.memory_space<vmem>>, vector<10x128xf32>
    %c42_126 = arith.constant 42 : index
    %c0_127 = arith.constant 0 : index
    %181 = vector.load %arg5[%c42_126, %c0_127] : memref<200x128xf32, #tpu.memory_space<vmem>>, vector<10x128xf32>
    %182 = arith.maximumf %180, %181 : vector<10x128xf32>
    %183 = vector.extract_strided_slice %182 {offsets = [0, 0], sizes = [1, 128], strides = [1, 1]} : vector<10x128xf32> to vector<1x128xf32>
    %184 = vector.extract_strided_slice %182 {offsets = [1, 0], sizes = [1, 128], strides = [1, 1]} : vector<10x128xf32> to vector<1x128xf32>
    %185 = arith.maximumf %183, %184 : vector<1x128xf32>
    %186 = arith.addf %185, %125 : vector<1x128xf32>
    %cst_128 = arith.constant 0.000000e+00 : f32
    %187 = vector.broadcast %cst_128 : f32 to vector<1x128xf32>
    %188 = arith.maximumf %186, %187 : vector<1x128xf32>
    %c296 = arith.constant 296 : index
    %c0_129 = arith.constant 0 : index
    %189 = vector.load %arg2[%c296, %c0_129] : memref<912x128xf32, #tpu.memory_space<vmem>>, vector<16x128xf32>
    %190 = vector.extract_strided_slice %188 {offsets = [0, 0], sizes = [1, 16], strides = [1, 1]} : vector<1x128xf32> to vector<1x16xf32>
    %cst_130 = arith.constant dense<0.000000e+00> : vector<1x128xf32>
    %191 = tpu.matmul %190, %189, %cst_130 {dimension_numbers = #tpu.dot_dimension_numbers<[1], [0], [0], [1], [0, 0, 1, 1], [], []>} : vector<1x16xf32>, vector<16x128xf32>, vector<1x128xf32> -> vector<1x128xf32>
    %192 = vector.extract_strided_slice %182 {offsets = [2, 0], sizes = [1, 128], strides = [1, 1]} : vector<10x128xf32> to vector<1x128xf32>
    %193 = vector.extract_strided_slice %182 {offsets = [3, 0], sizes = [1, 128], strides = [1, 1]} : vector<10x128xf32> to vector<1x128xf32>
    %194 = arith.maximumf %192, %193 : vector<1x128xf32>
    %195 = arith.addf %194, %125 : vector<1x128xf32>
    %cst_131 = arith.constant 0.000000e+00 : f32
    %196 = vector.broadcast %cst_131 : f32 to vector<1x128xf32>
    %197 = arith.maximumf %195, %196 : vector<1x128xf32>
    %c312 = arith.constant 312 : index
    %c0_132 = arith.constant 0 : index
    %198 = vector.load %arg2[%c312, %c0_132] : memref<912x128xf32, #tpu.memory_space<vmem>>, vector<16x128xf32>
    %199 = vector.extract_strided_slice %197 {offsets = [0, 0], sizes = [1, 16], strides = [1, 1]} : vector<1x128xf32> to vector<1x16xf32>
    %cst_133 = arith.constant dense<0.000000e+00> : vector<1x128xf32>
    %200 = tpu.matmul %199, %198, %cst_133 {dimension_numbers = #tpu.dot_dimension_numbers<[1], [0], [0], [1], [0, 0, 1, 1], [], []>} : vector<1x16xf32>, vector<16x128xf32>, vector<1x128xf32> -> vector<1x128xf32>
    %201 = arith.addf %191, %200 : vector<1x128xf32>
    %202 = vector.extract_strided_slice %182 {offsets = [4, 0], sizes = [1, 128], strides = [1, 1]} : vector<10x128xf32> to vector<1x128xf32>
    %203 = vector.extract_strided_slice %182 {offsets = [5, 0], sizes = [1, 128], strides = [1, 1]} : vector<10x128xf32> to vector<1x128xf32>
    %204 = arith.maximumf %202, %203 : vector<1x128xf32>
    %205 = arith.addf %204, %125 : vector<1x128xf32>
    %cst_134 = arith.constant 0.000000e+00 : f32
    %206 = vector.broadcast %cst_134 : f32 to vector<1x128xf32>
    %207 = arith.maximumf %205, %206 : vector<1x128xf32>
    %c328 = arith.constant 328 : index
    %c0_135 = arith.constant 0 : index
    %208 = vector.load %arg2[%c328, %c0_135] : memref<912x128xf32, #tpu.memory_space<vmem>>, vector<16x128xf32>
    %209 = vector.extract_strided_slice %207 {offsets = [0, 0], sizes = [1, 16], strides = [1, 1]} : vector<1x128xf32> to vector<1x16xf32>
    %cst_136 = arith.constant dense<0.000000e+00> : vector<1x128xf32>
    %210 = tpu.matmul %209, %208, %cst_136 {dimension_numbers = #tpu.dot_dimension_numbers<[1], [0], [0], [1], [0, 0, 1, 1], [], []>} : vector<1x16xf32>, vector<16x128xf32>, vector<1x128xf32> -> vector<1x128xf32>
    %211 = arith.addf %201, %210 : vector<1x128xf32>
    %212 = vector.extract_strided_slice %182 {offsets = [6, 0], sizes = [1, 128], strides = [1, 1]} : vector<10x128xf32> to vector<1x128xf32>
    %213 = vector.extract_strided_slice %182 {offsets = [7, 0], sizes = [1, 128], strides = [1, 1]} : vector<10x128xf32> to vector<1x128xf32>
    %214 = arith.maximumf %212, %213 : vector<1x128xf32>
    %215 = arith.addf %214, %125 : vector<1x128xf32>
    %cst_137 = arith.constant 0.000000e+00 : f32
    %216 = vector.broadcast %cst_137 : f32 to vector<1x128xf32>
    %217 = arith.maximumf %215, %216 : vector<1x128xf32>
    %c344 = arith.constant 344 : index
    %c0_138 = arith.constant 0 : index
    %218 = vector.load %arg2[%c344, %c0_138] : memref<912x128xf32, #tpu.memory_space<vmem>>, vector<16x128xf32>
    %219 = vector.extract_strided_slice %217 {offsets = [0, 0], sizes = [1, 16], strides = [1, 1]} : vector<1x128xf32> to vector<1x16xf32>
    %cst_139 = arith.constant dense<0.000000e+00> : vector<1x128xf32>
    %220 = tpu.matmul %219, %218, %cst_139 {dimension_numbers = #tpu.dot_dimension_numbers<[1], [0], [0], [1], [0, 0, 1, 1], [], []>} : vector<1x16xf32>, vector<16x128xf32>, vector<1x128xf32> -> vector<1x128xf32>
    %221 = arith.addf %211, %220 : vector<1x128xf32>
    %222 = vector.extract_strided_slice %182 {offsets = [8, 0], sizes = [1, 128], strides = [1, 1]} : vector<10x128xf32> to vector<1x128xf32>
    %223 = vector.extract_strided_slice %182 {offsets = [9, 0], sizes = [1, 128], strides = [1, 1]} : vector<10x128xf32> to vector<1x128xf32>
    %224 = arith.maximumf %222, %223 : vector<1x128xf32>
    %225 = arith.addf %224, %125 : vector<1x128xf32>
    %cst_140 = arith.constant 0.000000e+00 : f32
    %226 = vector.broadcast %cst_140 : f32 to vector<1x128xf32>
    %227 = arith.maximumf %225, %226 : vector<1x128xf32>
    %c360 = arith.constant 360 : index
    %c0_141 = arith.constant 0 : index
    %228 = vector.load %arg2[%c360, %c0_141] : memref<912x128xf32, #tpu.memory_space<vmem>>, vector<16x128xf32>
    %229 = vector.extract_strided_slice %227 {offsets = [0, 0], sizes = [1, 16], strides = [1, 1]} : vector<1x128xf32> to vector<1x16xf32>
    %cst_142 = arith.constant dense<0.000000e+00> : vector<1x128xf32>
    %230 = tpu.matmul %229, %228, %cst_142 {dimension_numbers = #tpu.dot_dimension_numbers<[1], [0], [0], [1], [0, 0, 1, 1], [], []>} : vector<1x16xf32>, vector<16x128xf32>, vector<1x128xf32> -> vector<1x128xf32>
    %231 = arith.addf %221, %230 : vector<1x128xf32>
    %232 = arith.addf %179, %231 : vector<1x128xf32>
    %c56_143 = arith.constant 56 : index
    %c0_144 = arith.constant 0 : index
    %233 = vector.load %arg5[%c56_143, %c0_144] : memref<200x128xf32, #tpu.memory_space<vmem>>, vector<10x128xf32>
    %c70 = arith.constant 70 : index
    %c0_145 = arith.constant 0 : index
    %234 = vector.load %arg5[%c70, %c0_145] : memref<200x128xf32, #tpu.memory_space<vmem>>, vector<10x128xf32>
    %235 = arith.maximumf %233, %234 : vector<10x128xf32>
    %236 = vector.extract_strided_slice %235 {offsets = [0, 0], sizes = [1, 128], strides = [1, 1]} : vector<10x128xf32> to vector<1x128xf32>
    %237 = vector.extract_strided_slice %235 {offsets = [1, 0], sizes = [1, 128], strides = [1, 1]} : vector<10x128xf32> to vector<1x128xf32>
    %238 = arith.maximumf %236, %237 : vector<1x128xf32>
    %239 = arith.addf %238, %125 : vector<1x128xf32>
    %cst_146 = arith.constant 0.000000e+00 : f32
    %240 = vector.broadcast %cst_146 : f32 to vector<1x128xf32>
    %241 = arith.maximumf %239, %240 : vector<1x128xf32>
    %c376 = arith.constant 376 : index
    %c0_147 = arith.constant 0 : index
    %242 = vector.load %arg2[%c376, %c0_147] : memref<912x128xf32, #tpu.memory_space<vmem>>, vector<16x128xf32>
    %243 = vector.extract_strided_slice %241 {offsets = [0, 0], sizes = [1, 16], strides = [1, 1]} : vector<1x128xf32> to vector<1x16xf32>
    %cst_148 = arith.constant dense<0.000000e+00> : vector<1x128xf32>
    %244 = tpu.matmul %243, %242, %cst_148 {dimension_numbers = #tpu.dot_dimension_numbers<[1], [0], [0], [1], [0, 0, 1, 1], [], []>} : vector<1x16xf32>, vector<16x128xf32>, vector<1x128xf32> -> vector<1x128xf32>
    %245 = vector.extract_strided_slice %235 {offsets = [2, 0], sizes = [1, 128], strides = [1, 1]} : vector<10x128xf32> to vector<1x128xf32>
    %246 = vector.extract_strided_slice %235 {offsets = [3, 0], sizes = [1, 128], strides = [1, 1]} : vector<10x128xf32> to vector<1x128xf32>
    %247 = arith.maximumf %245, %246 : vector<1x128xf32>
    %248 = arith.addf %247, %125 : vector<1x128xf32>
    %cst_149 = arith.constant 0.000000e+00 : f32
    %249 = vector.broadcast %cst_149 : f32 to vector<1x128xf32>
    %250 = arith.maximumf %248, %249 : vector<1x128xf32>
    %c392 = arith.constant 392 : index
    %c0_150 = arith.constant 0 : index
    %251 = vector.load %arg2[%c392, %c0_150] : memref<912x128xf32, #tpu.memory_space<vmem>>, vector<16x128xf32>
    %252 = vector.extract_strided_slice %250 {offsets = [0, 0], sizes = [1, 16], strides = [1, 1]} : vector<1x128xf32> to vector<1x16xf32>
    %cst_151 = arith.constant dense<0.000000e+00> : vector<1x128xf32>
    %253 = tpu.matmul %252, %251, %cst_151 {dimension_numbers = #tpu.dot_dimension_numbers<[1], [0], [0], [1], [0, 0, 1, 1], [], []>} : vector<1x16xf32>, vector<16x128xf32>, vector<1x128xf32> -> vector<1x128xf32>
    %254 = arith.addf %244, %253 : vector<1x128xf32>
    %255 = vector.extract_strided_slice %235 {offsets = [4, 0], sizes = [1, 128], strides = [1, 1]} : vector<10x128xf32> to vector<1x128xf32>
    %256 = vector.extract_strided_slice %235 {offsets = [5, 0], sizes = [1, 128], strides = [1, 1]} : vector<10x128xf32> to vector<1x128xf32>
    %257 = arith.maximumf %255, %256 : vector<1x128xf32>
    %258 = arith.addf %257, %125 : vector<1x128xf32>
    %cst_152 = arith.constant 0.000000e+00 : f32
    %259 = vector.broadcast %cst_152 : f32 to vector<1x128xf32>
    %260 = arith.maximumf %258, %259 : vector<1x128xf32>
    %c408 = arith.constant 408 : index
    %c0_153 = arith.constant 0 : index
    %261 = vector.load %arg2[%c408, %c0_153] : memref<912x128xf32, #tpu.memory_space<vmem>>, vector<16x128xf32>
    %262 = vector.extract_strided_slice %260 {offsets = [0, 0], sizes = [1, 16], strides = [1, 1]} : vector<1x128xf32> to vector<1x16xf32>
    %cst_154 = arith.constant dense<0.000000e+00> : vector<1x128xf32>
    %263 = tpu.matmul %262, %261, %cst_154 {dimension_numbers = #tpu.dot_dimension_numbers<[1], [0], [0], [1], [0, 0, 1, 1], [], []>} : vector<1x16xf32>, vector<16x128xf32>, vector<1x128xf32> -> vector<1x128xf32>
    %264 = arith.addf %254, %263 : vector<1x128xf32>
    %265 = vector.extract_strided_slice %235 {offsets = [6, 0], sizes = [1, 128], strides = [1, 1]} : vector<10x128xf32> to vector<1x128xf32>
    %266 = vector.extract_strided_slice %235 {offsets = [7, 0], sizes = [1, 128], strides = [1, 1]} : vector<10x128xf32> to vector<1x128xf32>
    %267 = arith.maximumf %265, %266 : vector<1x128xf32>
    %268 = arith.addf %267, %125 : vector<1x128xf32>
    %cst_155 = arith.constant 0.000000e+00 : f32
    %269 = vector.broadcast %cst_155 : f32 to vector<1x128xf32>
    %270 = arith.maximumf %268, %269 : vector<1x128xf32>
    %c424 = arith.constant 424 : index
    %c0_156 = arith.constant 0 : index
    %271 = vector.load %arg2[%c424, %c0_156] : memref<912x128xf32, #tpu.memory_space<vmem>>, vector<16x128xf32>
    %272 = vector.extract_strided_slice %270 {offsets = [0, 0], sizes = [1, 16], strides = [1, 1]} : vector<1x128xf32> to vector<1x16xf32>
    %cst_157 = arith.constant dense<0.000000e+00> : vector<1x128xf32>
    %273 = tpu.matmul %272, %271, %cst_157 {dimension_numbers = #tpu.dot_dimension_numbers<[1], [0], [0], [1], [0, 0, 1, 1], [], []>} : vector<1x16xf32>, vector<16x128xf32>, vector<1x128xf32> -> vector<1x128xf32>
    %274 = arith.addf %264, %273 : vector<1x128xf32>
    %275 = vector.extract_strided_slice %235 {offsets = [8, 0], sizes = [1, 128], strides = [1, 1]} : vector<10x128xf32> to vector<1x128xf32>
    %276 = vector.extract_strided_slice %235 {offsets = [9, 0], sizes = [1, 128], strides = [1, 1]} : vector<10x128xf32> to vector<1x128xf32>
    %277 = arith.maximumf %275, %276 : vector<1x128xf32>
    %278 = arith.addf %277, %125 : vector<1x128xf32>
    %cst_158 = arith.constant 0.000000e+00 : f32
    %279 = vector.broadcast %cst_158 : f32 to vector<1x128xf32>
    %280 = arith.maximumf %278, %279 : vector<1x128xf32>
    %c440 = arith.constant 440 : index
    %c0_159 = arith.constant 0 : index
    %281 = vector.load %arg2[%c440, %c0_159] : memref<912x128xf32, #tpu.memory_space<vmem>>, vector<16x128xf32>
    %282 = vector.extract_strided_slice %280 {offsets = [0, 0], sizes = [1, 16], strides = [1, 1]} : vector<1x128xf32> to vector<1x16xf32>
    %cst_160 = arith.constant dense<0.000000e+00> : vector<1x128xf32>
    %283 = tpu.matmul %282, %281, %cst_160 {dimension_numbers = #tpu.dot_dimension_numbers<[1], [0], [0], [1], [0, 0, 1, 1], [], []>} : vector<1x16xf32>, vector<16x128xf32>, vector<1x128xf32> -> vector<1x128xf32>
    %284 = arith.addf %274, %283 : vector<1x128xf32>
    %285 = arith.addf %232, %284 : vector<1x128xf32>
    %c84 = arith.constant 84 : index
    %c0_161 = arith.constant 0 : index
    %286 = vector.load %arg5[%c84, %c0_161] : memref<200x128xf32, #tpu.memory_space<vmem>>, vector<10x128xf32>
    %c98 = arith.constant 98 : index
    %c0_162 = arith.constant 0 : index
    %287 = vector.load %arg5[%c98, %c0_162] : memref<200x128xf32, #tpu.memory_space<vmem>>, vector<10x128xf32>
    %288 = arith.maximumf %286, %287 : vector<10x128xf32>
    %289 = vector.extract_strided_slice %288 {offsets = [0, 0], sizes = [1, 128], strides = [1, 1]} : vector<10x128xf32> to vector<1x128xf32>
    %290 = vector.extract_strided_slice %288 {offsets = [1, 0], sizes = [1, 128], strides = [1, 1]} : vector<10x128xf32> to vector<1x128xf32>
    %291 = arith.maximumf %289, %290 : vector<1x128xf32>
    %292 = arith.addf %291, %125 : vector<1x128xf32>
    %cst_163 = arith.constant 0.000000e+00 : f32
    %293 = vector.broadcast %cst_163 : f32 to vector<1x128xf32>
    %294 = arith.maximumf %292, %293 : vector<1x128xf32>
    %c456 = arith.constant 456 : index
    %c0_164 = arith.constant 0 : index
    %295 = vector.load %arg2[%c456, %c0_164] : memref<912x128xf32, #tpu.memory_space<vmem>>, vector<16x128xf32>
    %296 = vector.extract_strided_slice %294 {offsets = [0, 0], sizes = [1, 16], strides = [1, 1]} : vector<1x128xf32> to vector<1x16xf32>
    %cst_165 = arith.constant dense<0.000000e+00> : vector<1x128xf32>
    %297 = tpu.matmul %296, %295, %cst_165 {dimension_numbers = #tpu.dot_dimension_numbers<[1], [0], [0], [1], [0, 0, 1, 1], [], []>} : vector<1x16xf32>, vector<16x128xf32>, vector<1x128xf32> -> vector<1x128xf32>
    %298 = vector.extract_strided_slice %288 {offsets = [2, 0], sizes = [1, 128], strides = [1, 1]} : vector<10x128xf32> to vector<1x128xf32>
    %299 = vector.extract_strided_slice %288 {offsets = [3, 0], sizes = [1, 128], strides = [1, 1]} : vector<10x128xf32> to vector<1x128xf32>
    %300 = arith.maximumf %298, %299 : vector<1x128xf32>
    %301 = arith.addf %300, %125 : vector<1x128xf32>
    %cst_166 = arith.constant 0.000000e+00 : f32
    %302 = vector.broadcast %cst_166 : f32 to vector<1x128xf32>
    %303 = arith.maximumf %301, %302 : vector<1x128xf32>
    %c472 = arith.constant 472 : index
    %c0_167 = arith.constant 0 : index
    %304 = vector.load %arg2[%c472, %c0_167] : memref<912x128xf32, #tpu.memory_space<vmem>>, vector<16x128xf32>
    %305 = vector.extract_strided_slice %303 {offsets = [0, 0], sizes = [1, 16], strides = [1, 1]} : vector<1x128xf32> to vector<1x16xf32>
    %cst_168 = arith.constant dense<0.000000e+00> : vector<1x128xf32>
    %306 = tpu.matmul %305, %304, %cst_168 {dimension_numbers = #tpu.dot_dimension_numbers<[1], [0], [0], [1], [0, 0, 1, 1], [], []>} : vector<1x16xf32>, vector<16x128xf32>, vector<1x128xf32> -> vector<1x128xf32>
    %307 = arith.addf %297, %306 : vector<1x128xf32>
    %308 = vector.extract_strided_slice %288 {offsets = [4, 0], sizes = [1, 128], strides = [1, 1]} : vector<10x128xf32> to vector<1x128xf32>
    %309 = vector.extract_strided_slice %288 {offsets = [5, 0], sizes = [1, 128], strides = [1, 1]} : vector<10x128xf32> to vector<1x128xf32>
    %310 = arith.maximumf %308, %309 : vector<1x128xf32>
    %311 = arith.addf %310, %125 : vector<1x128xf32>
    %cst_169 = arith.constant 0.000000e+00 : f32
    %312 = vector.broadcast %cst_169 : f32 to vector<1x128xf32>
    %313 = arith.maximumf %311, %312 : vector<1x128xf32>
    %c488 = arith.constant 488 : index
    %c0_170 = arith.constant 0 : index
    %314 = vector.load %arg2[%c488, %c0_170] : memref<912x128xf32, #tpu.memory_space<vmem>>, vector<16x128xf32>
    %315 = vector.extract_strided_slice %313 {offsets = [0, 0], sizes = [1, 16], strides = [1, 1]} : vector<1x128xf32> to vector<1x16xf32>
    %cst_171 = arith.constant dense<0.000000e+00> : vector<1x128xf32>
    %316 = tpu.matmul %315, %314, %cst_171 {dimension_numbers = #tpu.dot_dimension_numbers<[1], [0], [0], [1], [0, 0, 1, 1], [], []>} : vector<1x16xf32>, vector<16x128xf32>, vector<1x128xf32> -> vector<1x128xf32>
    %317 = arith.addf %307, %316 : vector<1x128xf32>
    %318 = vector.extract_strided_slice %288 {offsets = [6, 0], sizes = [1, 128], strides = [1, 1]} : vector<10x128xf32> to vector<1x128xf32>
    %319 = vector.extract_strided_slice %288 {offsets = [7, 0], sizes = [1, 128], strides = [1, 1]} : vector<10x128xf32> to vector<1x128xf32>
    %320 = arith.maximumf %318, %319 : vector<1x128xf32>
    %321 = arith.addf %320, %125 : vector<1x128xf32>
    %cst_172 = arith.constant 0.000000e+00 : f32
    %322 = vector.broadcast %cst_172 : f32 to vector<1x128xf32>
    %323 = arith.maximumf %321, %322 : vector<1x128xf32>
    %c504 = arith.constant 504 : index
    %c0_173 = arith.constant 0 : index
    %324 = vector.load %arg2[%c504, %c0_173] : memref<912x128xf32, #tpu.memory_space<vmem>>, vector<16x128xf32>
    %325 = vector.extract_strided_slice %323 {offsets = [0, 0], sizes = [1, 16], strides = [1, 1]} : vector<1x128xf32> to vector<1x16xf32>
    %cst_174 = arith.constant dense<0.000000e+00> : vector<1x128xf32>
    %326 = tpu.matmul %325, %324, %cst_174 {dimension_numbers = #tpu.dot_dimension_numbers<[1], [0], [0], [1], [0, 0, 1, 1], [], []>} : vector<1x16xf32>, vector<16x128xf32>, vector<1x128xf32> -> vector<1x128xf32>
    %327 = arith.addf %317, %326 : vector<1x128xf32>
    %328 = vector.extract_strided_slice %288 {offsets = [8, 0], sizes = [1, 128], strides = [1, 1]} : vector<10x128xf32> to vector<1x128xf32>
    %329 = vector.extract_strided_slice %288 {offsets = [9, 0], sizes = [1, 128], strides = [1, 1]} : vector<10x128xf32> to vector<1x128xf32>
    %330 = arith.maximumf %328, %329 : vector<1x128xf32>
    %331 = arith.addf %330, %125 : vector<1x128xf32>
    %cst_175 = arith.constant 0.000000e+00 : f32
    %332 = vector.broadcast %cst_175 : f32 to vector<1x128xf32>
    %333 = arith.maximumf %331, %332 : vector<1x128xf32>
    %c520 = arith.constant 520 : index
    %c0_176 = arith.constant 0 : index
    %334 = vector.load %arg2[%c520, %c0_176] : memref<912x128xf32, #tpu.memory_space<vmem>>, vector<16x128xf32>
    %335 = vector.extract_strided_slice %333 {offsets = [0, 0], sizes = [1, 16], strides = [1, 1]} : vector<1x128xf32> to vector<1x16xf32>
    %cst_177 = arith.constant dense<0.000000e+00> : vector<1x128xf32>
    %336 = tpu.matmul %335, %334, %cst_177 {dimension_numbers = #tpu.dot_dimension_numbers<[1], [0], [0], [1], [0, 0, 1, 1], [], []>} : vector<1x16xf32>, vector<16x128xf32>, vector<1x128xf32> -> vector<1x128xf32>
    %337 = arith.addf %327, %336 : vector<1x128xf32>
    %338 = arith.addf %285, %337 : vector<1x128xf32>
    %c112_178 = arith.constant 112 : index
    %c0_179 = arith.constant 0 : index
    %339 = vector.load %arg5[%c112_178, %c0_179] : memref<200x128xf32, #tpu.memory_space<vmem>>, vector<10x128xf32>
    %c126 = arith.constant 126 : index
    %c0_180 = arith.constant 0 : index
    %340 = vector.load %arg5[%c126, %c0_180] : memref<200x128xf32, #tpu.memory_space<vmem>>, vector<10x128xf32>
    %341 = arith.maximumf %339, %340 : vector<10x128xf32>
    %342 = vector.extract_strided_slice %341 {offsets = [0, 0], sizes = [1, 128], strides = [1, 1]} : vector<10x128xf32> to vector<1x128xf32>
    %343 = vector.extract_strided_slice %341 {offsets = [1, 0], sizes = [1, 128], strides = [1, 1]} : vector<10x128xf32> to vector<1x128xf32>
    %344 = arith.maximumf %342, %343 : vector<1x128xf32>
    %345 = arith.addf %344, %125 : vector<1x128xf32>
    %cst_181 = arith.constant 0.000000e+00 : f32
    %346 = vector.broadcast %cst_181 : f32 to vector<1x128xf32>
    %347 = arith.maximumf %345, %346 : vector<1x128xf32>
    %c536 = arith.constant 536 : index
    %c0_182 = arith.constant 0 : index
    %348 = vector.load %arg2[%c536, %c0_182] : memref<912x128xf32, #tpu.memory_space<vmem>>, vector<16x128xf32>
    %349 = vector.extract_strided_slice %347 {offsets = [0, 0], sizes = [1, 16], strides = [1, 1]} : vector<1x128xf32> to vector<1x16xf32>
    %cst_183 = arith.constant dense<0.000000e+00> : vector<1x128xf32>
    %350 = tpu.matmul %349, %348, %cst_183 {dimension_numbers = #tpu.dot_dimension_numbers<[1], [0], [0], [1], [0, 0, 1, 1], [], []>} : vector<1x16xf32>, vector<16x128xf32>, vector<1x128xf32> -> vector<1x128xf32>
    %351 = vector.extract_strided_slice %341 {offsets = [2, 0], sizes = [1, 128], strides = [1, 1]} : vector<10x128xf32> to vector<1x128xf32>
    %352 = vector.extract_strided_slice %341 {offsets = [3, 0], sizes = [1, 128], strides = [1, 1]} : vector<10x128xf32> to vector<1x128xf32>
    %353 = arith.maximumf %351, %352 : vector<1x128xf32>
    %354 = arith.addf %353, %125 : vector<1x128xf32>
    %cst_184 = arith.constant 0.000000e+00 : f32
    %355 = vector.broadcast %cst_184 : f32 to vector<1x128xf32>
    %356 = arith.maximumf %354, %355 : vector<1x128xf32>
    %c552 = arith.constant 552 : index
    %c0_185 = arith.constant 0 : index
    %357 = vector.load %arg2[%c552, %c0_185] : memref<912x128xf32, #tpu.memory_space<vmem>>, vector<16x128xf32>
    %358 = vector.extract_strided_slice %356 {offsets = [0, 0], sizes = [1, 16], strides = [1, 1]} : vector<1x128xf32> to vector<1x16xf32>
    %cst_186 = arith.constant dense<0.000000e+00> : vector<1x128xf32>
    %359 = tpu.matmul %358, %357, %cst_186 {dimension_numbers = #tpu.dot_dimension_numbers<[1], [0], [0], [1], [0, 0, 1, 1], [], []>} : vector<1x16xf32>, vector<16x128xf32>, vector<1x128xf32> -> vector<1x128xf32>
    %360 = arith.addf %350, %359 : vector<1x128xf32>
    %361 = vector.extract_strided_slice %341 {offsets = [4, 0], sizes = [1, 128], strides = [1, 1]} : vector<10x128xf32> to vector<1x128xf32>
    %362 = vector.extract_strided_slice %341 {offsets = [5, 0], sizes = [1, 128], strides = [1, 1]} : vector<10x128xf32> to vector<1x128xf32>
    %363 = arith.maximumf %361, %362 : vector<1x128xf32>
    %364 = arith.addf %363, %125 : vector<1x128xf32>
    %cst_187 = arith.constant 0.000000e+00 : f32
    %365 = vector.broadcast %cst_187 : f32 to vector<1x128xf32>
    %366 = arith.maximumf %364, %365 : vector<1x128xf32>
    %c568 = arith.constant 568 : index
    %c0_188 = arith.constant 0 : index
    %367 = vector.load %arg2[%c568, %c0_188] : memref<912x128xf32, #tpu.memory_space<vmem>>, vector<16x128xf32>
    %368 = vector.extract_strided_slice %366 {offsets = [0, 0], sizes = [1, 16], strides = [1, 1]} : vector<1x128xf32> to vector<1x16xf32>
    %cst_189 = arith.constant dense<0.000000e+00> : vector<1x128xf32>
    %369 = tpu.matmul %368, %367, %cst_189 {dimension_numbers = #tpu.dot_dimension_numbers<[1], [0], [0], [1], [0, 0, 1, 1], [], []>} : vector<1x16xf32>, vector<16x128xf32>, vector<1x128xf32> -> vector<1x128xf32>
    %370 = arith.addf %360, %369 : vector<1x128xf32>
    %371 = vector.extract_strided_slice %341 {offsets = [6, 0], sizes = [1, 128], strides = [1, 1]} : vector<10x128xf32> to vector<1x128xf32>
    %372 = vector.extract_strided_slice %341 {offsets = [7, 0], sizes = [1, 128], strides = [1, 1]} : vector<10x128xf32> to vector<1x128xf32>
    %373 = arith.maximumf %371, %372 : vector<1x128xf32>
    %374 = arith.addf %373, %125 : vector<1x128xf32>
    %cst_190 = arith.constant 0.000000e+00 : f32
    %375 = vector.broadcast %cst_190 : f32 to vector<1x128xf32>
    %376 = arith.maximumf %374, %375 : vector<1x128xf32>
    %c584 = arith.constant 584 : index
    %c0_191 = arith.constant 0 : index
    %377 = vector.load %arg2[%c584, %c0_191] : memref<912x128xf32, #tpu.memory_space<vmem>>, vector<16x128xf32>
    %378 = vector.extract_strided_slice %376 {offsets = [0, 0], sizes = [1, 16], strides = [1, 1]} : vector<1x128xf32> to vector<1x16xf32>
    %cst_192 = arith.constant dense<0.000000e+00> : vector<1x128xf32>
    %379 = tpu.matmul %378, %377, %cst_192 {dimension_numbers = #tpu.dot_dimension_numbers<[1], [0], [0], [1], [0, 0, 1, 1], [], []>} : vector<1x16xf32>, vector<16x128xf32>, vector<1x128xf32> -> vector<1x128xf32>
    %380 = arith.addf %370, %379 : vector<1x128xf32>
    %381 = vector.extract_strided_slice %341 {offsets = [8, 0], sizes = [1, 128], strides = [1, 1]} : vector<10x128xf32> to vector<1x128xf32>
    %382 = vector.extract_strided_slice %341 {offsets = [9, 0], sizes = [1, 128], strides = [1, 1]} : vector<10x128xf32> to vector<1x128xf32>
    %383 = arith.maximumf %381, %382 : vector<1x128xf32>
    %384 = arith.addf %383, %125 : vector<1x128xf32>
    %cst_193 = arith.constant 0.000000e+00 : f32
    %385 = vector.broadcast %cst_193 : f32 to vector<1x128xf32>
    %386 = arith.maximumf %384, %385 : vector<1x128xf32>
    %c600 = arith.constant 600 : index
    %c0_194 = arith.constant 0 : index
    %387 = vector.load %arg2[%c600, %c0_194] : memref<912x128xf32, #tpu.memory_space<vmem>>, vector<16x128xf32>
    %388 = vector.extract_strided_slice %386 {offsets = [0, 0], sizes = [1, 16], strides = [1, 1]} : vector<1x128xf32> to vector<1x16xf32>
    %cst_195 = arith.constant dense<0.000000e+00> : vector<1x128xf32>
    %389 = tpu.matmul %388, %387, %cst_195 {dimension_numbers = #tpu.dot_dimension_numbers<[1], [0], [0], [1], [0, 0, 1, 1], [], []>} : vector<1x16xf32>, vector<16x128xf32>, vector<1x128xf32> -> vector<1x128xf32>
    %390 = arith.addf %380, %389 : vector<1x128xf32>
    %391 = arith.addf %338, %390 : vector<1x128xf32>
    %c616 = arith.constant 616 : index
    %c0_196 = arith.constant 0 : index
    %392 = vector.load %arg2[%c616, %c0_196] : memref<912x128xf32, #tpu.memory_space<vmem>>, vector<128x128xf32>
    %cst_197 = arith.constant dense<0.000000e+00> : vector<1x128xf32>
    %393 = tpu.matmul %391, %392, %cst_197 {dimension_numbers = #tpu.dot_dimension_numbers<[1], [0], [0], [1], [0, 0, 1, 1], [], []>} : vector<1x128xf32>, vector<128x128xf32>, vector<1x128xf32> -> vector<1x128xf32>
    %c896 = arith.constant 896 : index
    %c0_198 = arith.constant 0 : index
    %394 = vector.load %arg2[%c896, %c0_198] : memref<912x128xf32, #tpu.memory_space<vmem>>, vector<1x128xf32>
    %395 = arith.addf %393, %394 : vector<1x128xf32>
    %c744 = arith.constant 744 : index
    %c0_199 = arith.constant 0 : index
    %396 = vector.load %arg2[%c744, %c0_199] : memref<912x128xf32, #tpu.memory_space<vmem>>, vector<128x128xf32>
    %cst_200 = arith.constant dense<0.000000e+00> : vector<1x128xf32>
    %397 = tpu.matmul %395, %396, %cst_200 {dimension_numbers = #tpu.dot_dimension_numbers<[1], [0], [0], [1], [0, 0, 1, 1], [], []>} : vector<1x128xf32>, vector<128x128xf32>, vector<1x128xf32> -> vector<1x128xf32>
    %c904 = arith.constant 904 : index
    %c0_201 = arith.constant 0 : index
    %398 = vector.load %arg2[%c904, %c0_201] : memref<912x128xf32, #tpu.memory_space<vmem>>, vector<1x128xf32>
    %399 = arith.addf %397, %398 : vector<1x128xf32>
    %400 = vector.shape_cast %399 : vector<1x128xf32> to vector<1x128xf32>
    %401 = vector.broadcast %400 : vector<1x128xf32> to vector<8x128xf32>
    %c0_202 = arith.constant 0 : index
    %c0_203 = arith.constant 0 : index
    %c0_204 = arith.constant 0 : index
    %402 = vector.load %arg3[%c0_202, %c0_203, %c0_204] : memref<1x8x128xf32, #tpu.memory_space<vmem>>, vector<1x8x128xf32>
    %403 = vector.shape_cast %402 : vector<1x8x128xf32> to vector<8x128xf32>
    %404 = vector.shape_cast %401 : vector<8x128xf32> to vector<1x8x128xf32>
    tpu.vector_store %arg3[%c0_202, %c0_203, %c0_204], %404 {strides = array<i32>} : memref<1x8x128xf32, #tpu.memory_space<vmem>>, vector<1x8x128xf32>,
    return
  }
  func.func @transform_0(%arg0: i32) -> (i32, i32, i32) {
    %c0_i32 = arith.constant 0 : i32
    %c0_i32_0 = arith.constant 0 : i32
    %c0_i32_1 = arith.constant 0 : i32
    return %arg0, %c0_i32, %c0_i32_0 : i32, i32, i32
  }
  func.func @transform_1(%arg0: i32) -> (i32, i32) {
    %c0_i32 = arith.constant 0 : i32
    %c0_i32_0 = arith.constant 0 : i32
    %c0_i32_1 = arith.constant 0 : i32
    return %c0_i32, %c0_i32_0 : i32, i32
  }
  func.func @transform_2(%arg0: i32) -> (i32, i32, i32) {
    %c0_i32 = arith.constant 0 : i32
    %c0_i32_0 = arith.constant 0 : i32
    %c0_i32_1 = arith.constant 0 : i32
    return %arg0, %c0_i32, %c0_i32_0 : i32, i32, i32
  }
}

</mosaic_0001>

<bundles_post_ra>
// kernel: cnn_forward.1
= control target key start
LH: loop header
LB: loop body
LE: loop exit
PB: predicated region body
PF: predicated region fallthrough
CT: control target
= control target key end

     0   :  { %s17213_s9 = smov 0   ;;  %s21162_s0 = inlined_call_operand.vmem [shape: f32[8,196,16], index: 0, kind: input, shape index: {}]   ;;  %s21163_s1 = inlined_call_operand.vmem [shape: f32[912,128], index: 1, kind: input, shape index: {}]   ;;  %s21164_s2 = inlined_call_operand.vmem [shape: f32[2,8,128], index: 2, kind: output, shape index: {}]  }
   0x1 LB: > { %s17219_s10 = sadd.s32 4294967295, %s17193_s9   ;;  %p11628_p0 = scmp.ge.s32.totalorder %s17193_s9, 1  ;;  %s17193_s9 = sphi %s17213_s9, %s12_s9  }
   0x2   : > { %p114_p1 = scmp.lt.s32.totalorder %s17193_s9, 3 }
   0x4   : > { %p115_p2 = pnand %p11628_p0, %p114_p1 }
   0x6   : > { %118 = sbr.rel (%p115_p2) target bundleno = 3075 (0xc03), region = 28 }
   0xd   : > { %v147_v0 = vld [vmem:[%s21163_s1] sm:$0xff]  ;;  %v148_v1 = vld [vmem:[%s21163_s1 + $0x8] sm:$0xff]  ;;  %s11629_s15 = sshll.u32 %s17219_s10, 2  ;;  %v21165_v2 = vmov 0.0|0.0   ;;  %vm17196_vm0 = vmmov 0   ;;  %v21167_v4 = vmov 0.0  }
   0xe   : > { %15813 = vmatprep.subr.bf16.mxu1 %v21165_v2  ;;  %v17231_v3 = vpack.c.bf16 %v148_v1, %v147_v0  ;;  %13331 = vmatprep.mubr.msk.f32.mxu1 %vm17196_vm0, %v21167_v4  ;;  %p137_p3 = scmp.lt.s32.totalorder %s11629_s15, 7  ;;  %vm175_vm1 = vcmask 130048   ;;  %vm1443_vm2 = vcmask 64512   ;;  %vm1451_vm3 = vcmask 60416   ;;  %p143_p4 = scmp.lt.s32.totalorder %s17219_s10, 1 }
   0xf   : > { %14336 = vmatprep.subr.mxu0 %v21167_v4  ;;  %14338 = vmatprep.mubr.msk.f32.mxu0 %vm17196_vm0, %v21167_v4  ;;  %1444 = vst.msk [vmem:[#allocation2 + $0xc4] sm:$0xff] %vm1443_vm2, %v21167_v4  ;;  %1445 = vst.msk [vmem:[#allocation2 + $0xcc] sm:$0xff] %vm1443_vm2, %v21167_v4 }
  0x10   : > { %15815 = vmatpush3.bf16.msra.mxu1 %v17231_v3  ;;  %s21328_s15 = smov (!%p137_p3, %s11629_s15), 7  ;;  %1446 = vst.msk [vmem:[#allocation2 + $0xd4] sm:$0xff] %vm1443_vm2, %v21167_v4  ;;  %1447 = vst.msk [vmem:[#allocation2 + $0xdc] sm:$0xff] %vm1443_vm2, %v21167_v4  ;;  %s21330_s10 = smov (!%p143_p4, %s17219_s10), 1 }
  0x11   : > { %15816 = vmatprep.subr.bf16.mxu1 %v21165_v2  ;;  %s17174_s16 = smul.u32 200, %s21328_s15  ;;  %1448 = vst.msk [vmem:[#allocation2 + $0xe4] sm:$0xff] %vm1443_vm2, %v21167_v4  ;;  %1449 = vst.msk [vmem:[#allocation2 + $0xec] sm:$0xff] %vm1443_vm2, %v21167_v4  ;;  %s11631_s12 = sshll.u32 %s21330_s10, 3 }
  0x12   : > { %1450 = vst.msk [vmem:[#allocation2 + $0xf4] sm:$0xff] %vm1443_vm2, %v21167_v4  ;;  %s146_s15 = scalar_lea.vmem %s21164_s2, %s11631_s12 }
  0x13   : > { %s17243_s19 = scalar_lea.vmem %s21162_s0, %s17174_s16 }
  0x14   : > { %v150_v5 = vld [vmem:[%s17243_s19] sm:$0xff]  ;;  %v151_v6 = vld [vmem:[%s17243_s19 + $0x8] sm:$0xff]  ;;  %v152_v7 = vld [vmem:[%s17243_s19 + $0x10] sm:$0xff] }
  0x15   : > { %13332 = vmatmul.mubr.msk.f32.vlgmr.msra.gmra.mrb[0].mxu1 %vm175_vm1, %v150_v5  ;;  %v153_v8 = vld [vmem:[%s17243_s19 + $0x18] sm:$0xff]  ;;  %v154_v9 = vld [vmem:[%s17243_s19 + $0x20] sm:$0xff]  ;;  %v155_v10 = vld [vmem:[%s17243_s19 + $0x28] sm:$0xff] }
  0x16   : > { %15818 = vmatpush3.bf16.msra.mxu1 %v17231_v3  ;;  %13334 = vmatprep.mubr.msk.f32.mxu1 %vm17196_vm0, %v21167_v4  ;;  %v156_v11 = vld [vmem:[%s17243_s19 + $0x30] sm:$0xff]  ;;  %v157_v12 = vld [vmem:[%s17243_s19 + $0x38] sm:$0xff]  ;;  %v158_v13 = vld [vmem:[%s17243_s19 + $0x40] sm:$0xff] }
  0x17   : > { %15819 = vmatprep.subr.bf16.mxu1 %v21165_v2  ;;  %v159_v14 = vld [vmem:[%s17243_s19 + $0x48] sm:$0xff]  ;;  %v160_v15 = vld [vmem:[%s17243_s19 + $0x50] sm:$0xff]  ;;  %v161_v16 = vld [vmem:[%s17243_s19 + $0x58] sm:$0xff] }
  0x18   : > { %v162_v17 = vld [vmem:[%s17243_s19 + $0x60] sm:$0xff]  ;;  %v163_v18 = vld [vmem:[%s17243_s19 + $0x68] sm:$0xff]  ;;  %v164_v19 = vld [vmem:[%s17243_s19 + $0x70] sm:$0xff] }
  0x19   : > { %13335 = vmatmul.mubr.msk.f32.gmra.mrb[2].mxu1 %vm175_vm1, %v151_v6  ;;  %v165_v20 = vld [vmem:[%s17243_s19 + $0x78] sm:$0xff]  ;;  %v166_v21 = vld [vmem:[%s17243_s19 + $0x80] sm:$0xff]  ;;  %v167_v22 = vld [vmem:[%s17243_s19 + $0x88] sm:$0xff] }
  0x1a   : > { %13337 = vmatprep.mubr.msk.f32.mxu1 %vm17196_vm0, %v21167_v4  ;;  %v168_v23 = vld [vmem:[%s17243_s19 + $0x90] sm:$0xff]  ;;  %v169_v24 = vld [vmem:[%s17243_s19 + $0x98] sm:$0xff]  ;;  %v170_v25 = vld [vmem:[%s17243_s19 + $0xa0] sm:$0xff] }
  0x1b   : > { %v171_v26 = vld [vmem:[%s17243_s19 + $0xa8] sm:$0xff]  ;;  %v172_v27 = vld [vmem:[%s17243_s19 + $0xb0] sm:$0xff]  ;;  %v173_v28 = vld [vmem:[%s17243_s19 + $0xb8] sm:$0xff] }
  0x1c   : > { %v174_v29 = vld [vmem:[%s17243_s19 + $0xc0] sm:$0xf]  ;;  %v11657_v30 = vld [vmem:[%s17243_s19 + $0xc8] sm:$0xff]  ;;  %v11658_v31 = vld [vmem:[%s17243_s19 + $0xd0] sm:$0xff] }
  0x1d   : > { %13338 = vmatmul.mubr.msk.f32.gmra.mrb[4].mxu1 %vm175_vm1, %v152_v7  ;;  %v11659_v32 = vld [vmem:[%s17243_s19 + $0xd8] sm:$0xff]  ;;  %v11660_v33 = vld [vmem:[%s17243_s19 + $0xe0] sm:$0xff]  ;;  %v11661_v34 = vld [vmem:[%s17243_s19 + $0xe8] sm:$0xff] }
  0x1e   : > { %13340 = vmatprep.mubr.msk.f32.mxu1 %vm17196_vm0, %v21167_v4  ;;  %v11662_v35 = vld [vmem:[%s17243_s19 + $0xf0] sm:$0xff]  ;;  %v11663_v36 = vld [vmem:[%s17243_s19 + $0xf8] sm:$0xff]  ;;  %v11664_v37 = vld [vmem:[%s17243_s19 + $0x100] sm:$0xff] }
  0x1f   : > { %v11665_v38 = vld [vmem:[%s17243_s19 + $0x108] sm:$0xff]  ;;  %v11666_v39 = vld [vmem:[%s17243_s19 + $0x110] sm:$0xff]  ;;  %v11667_v40 = vld [vmem:[%s17243_s19 + $0x118] sm:$0xff] }
  0x20   : > { %v11668_v41 = vld [vmem:[%s17243_s19 + $0x120] sm:$0xff]  ;;  %v11669_v42 = vld [vmem:[%s17243_s19 + $0x128] sm:$0xff]  ;;  %v11670_v43 = vld [vmem:[%s17243_s19 + $0x130] sm:$0xff] }
  0x21   : > { %13341 = vmatmul.mubr.msk.f32.gmra.mrb[6].mxu1 %vm175_vm1, %v153_v8  ;;  %v11671_v44 = vld [vmem:[%s17243_s19 + $0x138] sm:$0xff]  ;;  %v11672_v45 = vld [vmem:[%s17243_s19 + $0x140] sm:$0xff]  ;;  %v11673_v46 = vld [vmem:[%s17243_s19 + $0x148] sm:$0xff] }
  0x22   : > { %13343 = vmatprep.mubr.msk.f32.mxu1 %vm17196_vm0, %v21167_v4  ;;  %v11674_v47 = vld [vmem:[%s17243_s19 + $0x150] sm:$0xff]  ;;  %v11675_v48 = vld [vmem:[%s17243_s19 + $0x158] sm:$0xff]  ;;  %v11676_v49 = vld [vmem:[%s17243_s19 + $0x160] sm:$0xff] }
  0x23   : > { %v11677_v50 = vld [vmem:[%s17243_s19 + $0x168] sm:$0xff]  ;;  %v11678_v51 = vld [vmem:[%s17243_s19 + $0x170] sm:$0xff]  ;;  %v11679_v52 = vld [vmem:[%s17243_s19 + $0x178] sm:$0xff] }
  0x24   : > { %v11680_v53 = vld [vmem:[%s17243_s19 + $0x180] sm:$0xff]  ;;  %v11681_v54 = vld [vmem:[%s17243_s19 + $0x188] sm:$0xf]  ;;  %v11707_v55 = vld [vmem:[%s17243_s19 + $0x190] sm:$0xff] }
  0x25   : > { %13344 = vmatmul.mubr.msk.f32.gmra.mrb[8].mxu1 %vm175_vm1, %v154_v9  ;;  %v11708_v56 = vld [vmem:[%s17243_s19 + $0x198] sm:$0xff]  ;;  %v11709_v57 = vld [vmem:[%s17243_s19 + $0x1a0] sm:$0xff]  ;;  %v11710_v58 = vld [vmem:[%s17243_s19 + $0x1a8] sm:$0xff] }
  0x26   : > { %13346 = vmatprep.mubr.msk.f32.mxu1 %vm17196_vm0, %v21167_v4  ;;  %v11711_v61 = vld [vmem:[%s17243_s19 + $0x1b0] sm:$0xff]  ;;  %v11712_v0 = vld [vmem:[%s17243_s19 + $0x1b8] sm:$0xff]  ;;  %v11713_v5 = vld [vmem:[%s17243_s19 + $0x1c0] sm:$0xff] }
  0x27   : > { %v11714_v8 = vld [vmem:[%s17243_s19 + $0x1c8] sm:$0xff] }
  0x29   : > { %13347 = vmatmul.mubr.msk.f32.gmra.mrb[10].mxu1 %vm175_vm1, %v155_v10 }
  0x2a   : > { %13349 = vmatprep.mubr.msk.f32.mxu1 %vm17196_vm0, %v21167_v4 }
  0x2d   : > { %13350 = vmatmul.mubr.msk.f32.gmra.mrb[12].mxu1 %vm175_vm1, %v156_v11  ;;  %v11715_v11 = vld [vmem:[%s17243_s19 + $0x1d0] sm:$0xff] }
  0x2e   : > { %13352 = vmatprep.mubr.msk.f32.mxu1 %vm17196_vm0, %v21167_v4 }
  0x31   : > { %13353 = vmatmul.mubr.msk.f32.gmra.mrb[14].mxu1 %vm175_vm1, %v157_v12 }
  0x32   : > { %13355 = vmatprep.mubr.msk.f32.mxu1 %vm17196_vm0, %v21167_v4 }
  0x35   : > { %13356 = vmatmul.mubr.msk.f32.gmra.mrb[16].mxu1 %vm175_vm1, %v158_v13 }
  0x36   : > { %13358 = vmatprep.mubr.msk.f32.mxu1 %vm17196_vm0, %v21167_v4 }
  0x39   : > { %13359 = vmatmul.mubr.msk.f32.gmra.mrb[18].mxu1 %vm175_vm1, %v159_v14  ;;  %v11716_v14 = vld [vmem:[%s17243_s19 + $0x1d8] sm:$0xff] }
  0x3a   : > { %13361 = vmatprep.mubr.msk.f32.mxu1 %vm17196_vm0, %v21167_v4 }
  0x3d   : > { %13362 = vmatmul.mubr.msk.f32.gmra.mrb[20].mxu1 %vm175_vm1, %v160_v15 }
  0x3e   : > { %13364 = vmatprep.mubr.msk.f32.mxu1 %vm17196_vm0, %v21167_v4 }
  0x41   : > { %13365 = vmatmul.mubr.msk.f32.gmra.mrb[22].mxu1 %vm175_vm1, %v161_v16 }
  0x42   : > { %13367 = vmatprep.mubr.msk.f32.mxu1 %vm17196_vm0, %v21167_v4 }
  0x45   : > { %13368 = vmatmul.mubr.msk.f32.gmra.mrb[24].mxu1 %vm175_vm1, %v162_v17  ;;  %v11717_v17 = vld [vmem:[%s17243_s19 + $0x1e0] sm:$0xff] }
  0x46   : > { %13370 = vmatprep.mubr.msk.f32.mxu1 %vm17196_vm0, %v21167_v4 }
  0x49   : > { %13371 = vmatmul.mubr.msk.f32.gmra.mrb[26].mxu1 %vm175_vm1, %v163_v18 }
  0x4a   : > { %13373 = vmatprep.mubr.msk.f32.mxu1 %vm17196_vm0, %v21167_v4 }
  0x4d   : > { %13374 = vmatmul.mubr.msk.f32.gmra.mrb[28].mxu1 %vm175_vm1, %v164_v19 }
  0x4e   : > { %13376 = vmatprep.mubr.msk.f32.mxu1 %vm17196_vm0, %v21167_v4 }
  0x51   : > { %13377 = vmatmul.mubr.msk.f32.gmra.mrb[30].mxu1 %vm175_vm1, %v165_v20  ;;  %v11718_v20 = vld [vmem:[%s17243_s19 + $0x1e8] sm:$0xff] }
  0x52   : > { %13379 = vmatprep.mubr.msk.f32.mxu1 %vm17196_vm0, %v21167_v4 }
  0x55   : > { %13380 = vmatmul.mubr.msk.f32.gmra.mrb[32].mxu1 %vm175_vm1, %v166_v21 }
  0x56   : > { %13382 = vmatprep.mubr.msk.f32.mxu1 %vm17196_vm0, %v21167_v4 }
  0x59   : > { %13383 = vmatmul.mubr.msk.f32.gmra.mrb[34].mxu1 %vm175_vm1, %v167_v22 }
  0x5a   : > { %13385 = vmatprep.mubr.msk.f32.mxu1 %vm17196_vm0, %v21167_v4 }
  0x5d   : > { %13386 = vmatmul.mubr.msk.f32.gmra.mrb[36].mxu1 %vm175_vm1, %v168_v23  ;;  %v11719_v23 = vld [vmem:[%s17243_s19 + $0x1f0] sm:$0xff] }
  0x5e   : > { %13388 = vmatprep.mubr.msk.f32.mxu1 %vm17196_vm0, %v21167_v4 }
  0x61   : > { %13389 = vmatmul.mubr.msk.f32.gmra.mrb[38].mxu1 %vm175_vm1, %v169_v24 }
  0x62   : > { %13391 = vmatprep.mubr.msk.f32.mxu1 %vm17196_vm0, %v21167_v4 }
  0x65   : > { %13392 = vmatmul.mubr.msk.f32.gmra.mrb[40].mxu1 %vm175_vm1, %v170_v25 }
  0x66   : > { %13394 = vmatprep.mubr.msk.f32.mxu1 %vm17196_vm0, %v21167_v4 }
  0x69   : > { %13395 = vmatmul.mubr.msk.f32.gmra.mrb[42].mxu1 %vm175_vm1, %v171_v26  ;;  %v11720_v26 = vld [vmem:[%s17243_s19 + $0x1f8] sm:$0xff] }
  0x6a   : > { %13397 = vmatprep.mubr.msk.f32.mxu1 %vm17196_vm0, %v21167_v4 }
  0x6d   : > { %13398 = vmatmul.mubr.msk.f32.gmra.mrb[44].mxu1 %vm175_vm1, %v172_v27 }
  0x6e   : > { %13400 = vmatprep.mubr.msk.f32.mxu1 %vm17196_vm0, %v21167_v4 }
  0x71   : > { %13401 = vmatmul.mubr.msk.f32.gmra.mrb[46].mxu1 %vm175_vm1, %v173_v28 }
  0x72   : > { %13403 = vmatprep.mubr.msk.f32.mxu1 %vm17196_vm0, %v21167_v4 }
  0x75   : > { %13404 = vmatmul.mubr.msk.f32.gmra.mrb[48].mxu1 %vm175_vm1, %v174_v29  ;;  %v11721_v29 = vld [vmem:[%s17243_s19 + $0x200] sm:$0xff] }
  0x76   : > { %13410 = vmatprep.mubr.msk.f32.mxu1 %vm17196_vm0, %v21167_v4 }
  0x79   : > { %13411 = vmatmul.mubr.msk.f32.vlgmr.msra.gmra.mrb[50].mxu1 %vm175_vm1, %v11657_v30 }
  0x7a   : > { %15821 = vmatpush3.bf16.msra.mxu1 %v17231_v3  ;;  %13413 = vmatprep.mubr.msk.f32.mxu1 %vm17196_vm0, %v21167_v4 }
  0x7b   : > { %15822 = vmatprep.subr.bf16.mxu1 %v21165_v2 }
  0x7d   : > { %13414 = vmatmul.mubr.msk.f32.gmra.mrb[52].mxu1 %vm175_vm1, %v11658_v31 }
  0x7e   : > { %13416 = vmatprep.mubr.msk.f32.mxu1 %vm17196_vm0, %v21167_v4 }
  0x81   : > { %13417 = vmatmul.mubr.msk.f32.gmra.mrb[54].mxu1 %vm175_vm1, %v11659_v32  ;;  %v11722_v32 = vld [vmem:[%s17243_s19 + $0x208] sm:$0xff] }
  0x82   : > { %13419 = vmatprep.mubr.msk.f32.mxu1 %vm17196_vm0, %v21167_v4 }
  0x85   : > { %13420 = vmatmul.mubr.msk.f32.gmra.mrb[56].mxu1 %vm175_vm1, %v11660_v33 }
  0x86   : > { %13422 = vmatprep.mubr.msk.f32.mxu1 %vm17196_vm0, %v21167_v4 }
  0x89   : > { %13423 = vmatmul.mubr.msk.f32.gmra.mrb[58].mxu1 %vm175_vm1, %v11661_v34 }
  0x8a   : > { %13425 = vmatprep.mubr.msk.f32.mxu1 %vm17196_vm0, %v21167_v4 }
  0x8d   : > { %13426 = vmatmul.mubr.msk.f32.gmra.mrb[60].mxu1 %vm175_vm1, %v11662_v35  ;;  %v11723_v35 = vld [vmem:[%s17243_s19 + $0x210] sm:$0xff] }
  0x8e   : > { %13428 = vmatprep.mubr.msk.f32.mxu1 %vm17196_vm0, %v21167_v4 }
  0x91   : > { %13429 = vmatmul.mubr.msk.f32.gmra.mrb[62].mxu1 %vm175_vm1, %v11663_v36 }
  0x92   : > { %13431 = vmatprep.mubr.msk.f32.mxu1 %vm17196_vm0, %v21167_v4 }
  0x95   : > { %13432 = vmatmul.mubr.msk.f32.gmra.mrb[64].mxu1 %vm175_vm1, %v11664_v37 }
  0x96   : > { %13434 = vmatprep.mubr.msk.f32.mxu1 %vm17196_vm0, %v21167_v4 }
  0x99   : > { %13435 = vmatmul.mubr.msk.f32.gmra.mrb[66].mxu1 %vm175_vm1, %v11665_v38  ;;  %v11724_v38 = vld [vmem:[%s17243_s19 + $0x218] sm:$0xff] }
  0x9a   : > { %13437 = vmatprep.mubr.msk.f32.mxu1 %vm17196_vm0, %v21167_v4 }
  0x9d   : > { %13438 = vmatmul.mubr.msk.f32.gmra.mrb[68].mxu1 %vm175_vm1, %v11666_v39 }
  0x9e   : > { %13440 = vmatprep.mubr.msk.f32.mxu1 %vm17196_vm0, %v21167_v4 }
  0xa1   : > { %13441 = vmatmul.mubr.msk.f32.gmra.mrb[70].mxu1 %vm175_vm1, %v11667_v40 }
  0xa2   : > { %13443 = vmatprep.mubr.msk.f32.mxu1 %vm17196_vm0, %v21167_v4 }
  0xa5   : > { %13444 = vmatmul.mubr.msk.f32.gmra.mrb[72].mxu1 %vm175_vm1, %v11668_v41  ;;  %v11725_v41 = vld [vmem:[%s17243_s19 + $0x220] sm:$0xff] }
  0xa6   : > { %13446 = vmatprep.mubr.msk.f32.mxu1 %vm17196_vm0, %v21167_v4 }
  0xa9   : > { %13447 = vmatmul.mubr.msk.f32.gmra.mrb[74].mxu1 %vm175_vm1, %v11669_v42 }
  0xaa   : > { %13449 = vmatprep.mubr.msk.f32.mxu1 %vm17196_vm0, %v21167_v4 }
  0xad   : > { %13450 = vmatmul.mubr.msk.f32.gmra.mrb[76].mxu1 %vm175_vm1, %v11670_v43 }
  0xae   : > { %13452 = vmatprep.mubr.msk.f32.mxu1 %vm17196_vm0, %v21167_v4 }
  0xb1   : > { %13453 = vmatmul.mubr.msk.f32.gmra.mrb[78].mxu1 %vm175_vm1, %v11671_v44  ;;  %v11726_v44 = vld [vmem:[%s17243_s19 + $0x228] sm:$0xff] }
  0xb2   : > { %13455 = vmatprep.mubr.msk.f32.mxu1 %vm17196_vm0, %v21167_v4 }
  0xb5   : > { %13456 = vmatmul.mubr.msk.f32.gmra.mrb[80].mxu1 %vm175_vm1, %v11672_v45 }
  0xb6   : > { %13458 = vmatprep.mubr.msk.f32.mxu1 %vm17196_vm0, %v21167_v4 }
  0xb9   : > { %13459 = vmatmul.mubr.msk.f32.gmra.mrb[82].mxu1 %vm175_vm1, %v11673_v46 }
  0xba   : > { %13461 = vmatprep.mubr.msk.f32.mxu1 %vm17196_vm0, %v21167_v4 }
  0xbd   : > { %13462 = vmatmul.mubr.msk.f32.gmra.mrb[84].mxu1 %vm175_vm1, %v11674_v47  ;;  %v11727_v47 = vld [vmem:[%s17243_s19 + $0x230] sm:$0xff] }
  0xbe   : > { %13464 = vmatprep.mubr.msk.f32.mxu1 %vm17196_vm0, %v21167_v4 }
  0xc1   : > { %13465 = vmatmul.mubr.msk.f32.gmra.mrb[86].mxu1 %vm175_vm1, %v11675_v48 }
  0xc2   : > { %13467 = vmatprep.mubr.msk.f32.mxu1 %vm17196_vm0, %v21167_v4 }
  0xc5   : > { %13468 = vmatmul.mubr.msk.f32.gmra.mrb[88].mxu1 %vm175_vm1, %v11676_v49 }
  0xc6   : > { %13470 = vmatprep.mubr.msk.f32.mxu1 %vm17196_vm0, %v21167_v4 }
  0xc9   : > { %13471 = vmatmul.mubr.msk.f32.gmra.mrb[90].mxu1 %vm175_vm1, %v11677_v50  ;;  %v11728_v50 = vld [vmem:[%s17243_s19 + $0x238] sm:$0xff] }
  0xca   : > { %13473 = vmatprep.mubr.msk.f32.mxu1 %vm17196_vm0, %v21167_v4 }
  0xcd   : > { %13474 = vmatmul.mubr.msk.f32.gmra.mrb[92].mxu1 %vm175_vm1, %v11678_v51 }
  0xce   : > { %13476 = vmatprep.mubr.msk.f32.mxu1 %vm17196_vm0, %v21167_v4 }
  0xd1   : > { %13477 = vmatmul.mubr.msk.f32.gmra.mrb[94].mxu1 %vm175_vm1, %v11679_v52 }
  0xd2   : > { %13479 = vmatprep.mubr.msk.f32.mxu1 %vm17196_vm0, %v21167_v4 }
  0xd5   : > { %13480 = vmatmul.mubr.msk.f32.gmra.mrb[96].mxu1 %vm175_vm1, %v11680_v53  ;;  %v11729_v53 = vld [vmem:[%s17243_s19 + $0x240] sm:$0xff] }
  0xd6   : > { %13482 = vmatprep.mubr.msk.f32.mxu1 %vm17196_vm0, %v21167_v4 }
  0xd9   : > { %13483 = vmatmul.mubr.msk.f32.gmra.mrb[98].mxu1 %vm175_vm1, %v11681_v54 }
  0xda   : > { %13489 = vmatprep.mubr.msk.f32.mxu1 %vm17196_vm0, %v21167_v4 }
  0xdd   : > { %13490 = vmatmul.mubr.msk.f32.vlgmr.msra.gmra.mrb[100].mxu1 %vm175_vm1, %v11707_v55 }
  0xde   : > { %15824 = vmatpush3.bf16.msra.mxu1 %v17231_v3  ;;  %13492 = vmatprep.mubr.msk.f32.mxu1 %vm17196_vm0, %v21167_v4 }
  0xdf   : > { %13643 = vmatprep.subr.mxu1 %v21167_v4 }
  0xe1   : > { %13493 = vmatmul.mubr.msk.f32.gmra.mrb[102].mxu1 %vm175_vm1, %v11708_v56  ;;  %v11730_v56 = vld [vmem:[%s17243_s19 + $0x248] sm:$0xff] }
  0xe2   : > { %13495 = vmatprep.mubr.msk.f32.mxu1 %vm17196_vm0, %v21167_v4 }
  0xe5   : > { %13496 = vmatmul.mubr.msk.f32.gmra.mrb[104].mxu1 %vm175_vm1, %v11709_v57 }
  0xe6   : > { %13498 = vmatprep.mubr.msk.f32.mxu1 %vm17196_vm0, %v21167_v4 }
  0xe8   : > { %v17464_v59 = vpop.f32.mrb[0].mxu1 }
  0xe9   : > { %v13333_v60 = vpop.f32.mrb[1].mxu1  ;;  %13499 = vmatmul.mubr.msk.f32.gmra.mrb[106].mxu1 %vm175_vm1, %v11710_v58 }
  0xea   : > { %13501 = vmatprep.mubr.msk.f32.mxu1 %vm17196_vm0, %v21167_v4  ;;  %v11731_v60 = vld [vmem:[%s17243_s19 + $0x250] sm:$0xf] }
  0xec   : > { %v17470_v62 = vpop.f32.mrb[2].mxu1 }
  0xed   : > { %v13336_v63 = vpop.f32.mrb[3].mxu1  ;;  %13502 = vmatmul.mubr.msk.f32.gmra.mrb[108].mxu1 %vm175_vm1, %v11711_v61 }
  0xee   : > { %13504 = vmatprep.mubr.msk.f32.mxu1 %vm17196_vm0, %v21167_v4 }
  0xf0   : > { %v17476_v1 = vpop.f32.mrb[4].mxu1 }
  0xf1   : > { %v13339_v3 = vpop.f32.mrb[5].mxu1  ;;  %13505 = vmatmul.mubr.msk.f32.gmra.mrb[110].mxu1 %vm175_vm1, %v11712_v0  ;;  %v11757_v0 = vld [vmem:[%s17243_s19 + $0x258] sm:$0xff] }
  0xf2   : > { %13507 = vmatprep.mubr.msk.f32.mxu1 %vm17196_vm0, %v21167_v4 }
  0xf4   : > { %v17482_v6 = vpop.f32.mrb[6].mxu1 }
  0xf5   : > { %v13342_v7 = vpop.f32.mrb[7].mxu1  ;;  %13508 = vmatmul.mubr.msk.f32.gmra.mrb[112].mxu1 %vm175_vm1, %v11713_v5 }
  0xf6   : > { %13510 = vmatprep.mubr.msk.f32.mxu1 %vm17196_vm0, %v21167_v4  ;;  %v11758_v7 = vld [vmem:[%s17243_s19 + $0x260] sm:$0xff] }
  0xf8   : > { %v17488_v9 = vpop.f32.mrb[8].mxu1 }
  0xf9   : > { %v13345_v10 = vpop.f32.mrb[9].mxu1  ;;  %13511 = vmatmul.mubr.msk.f32.gmra.mrb[114].mxu1 %vm175_vm1, %v11714_v8 }
  0xfa   : > { %13513 = vmatprep.mubr.msk.f32.mxu1 %vm17196_vm0, %v21167_v4 }
  0xfc   : > { %v17494_v12 = vpop.f32.mrb[10].mxu1 }
  0xfd   : > { %v13348_v13 = vpop.f32.mrb[11].mxu1  ;;  %13514 = vmatmul.mubr.msk.f32.gmra.mrb[116].mxu1 %vm175_vm1, %v11715_v11  ;;  %v11759_v11 = vld [vmem:[%s17243_s19 + $0x268] sm:$0xff] }
  0xfe   : > { %13516 = vmatprep.mubr.msk.f32.mxu1 %vm17196_vm0, %v21167_v4 }
 0x100   : > { %v17500_v15 = vpop.f32.mrb[12].mxu1 }
 0x101   : > { %v13351_v16 = vpop.f32.mrb[13].mxu1  ;;  %13517 = vmatmul.mubr.msk.f32.gmra.mrb[118].mxu1 %vm175_vm1, %v11716_v14 }
 0x102   : > { %13519 = vmatprep.mubr.msk.f32.mxu1 %vm17196_vm0, %v21167_v4  ;;  %v11760_v16 = vld [vmem:[%s17243_s19 + $0x270] sm:$0xff] }
 0x104   : > { %v17506_v18 = vpop.f32.mrb[14].mxu1 }
 0x105   : > { %v13354_v19 = vpop.f32.mrb[15].mxu1  ;;  %13520 = vmatmul.mubr.msk.f32.gmra.mrb[120].mxu1 %vm175_vm1, %v11717_v17 }
 0x106   : > { %13522 = vmatprep.mubr.msk.f32.mxu1 %vm17196_vm0, %v21167_v4 }
 0x108   : > { %v17512_v21 = vpop.f32.mrb[16].mxu1 }
 0x109   : > { %v13357_v22 = vpop.f32.mrb[17].mxu1  ;;  %13523 = vmatmul.mubr.msk.f32.gmra.mrb[122].mxu1 %vm175_vm1, %v11718_v20 }
 0x10a   : > { %13525 = vmatprep.mubr.msk.f32.mxu1 %vm17196_vm0, %v21167_v4  ;;  %v11761_v22 = vld [vmem:[%s17243_s19 + $0x278] sm:$0xff] }
 0x10c   : > { %v17518_v24 = vpop.f32.mrb[18].mxu1 }
 0x10d   : > { %v13360_v25 = vpop.f32.mrb[19].mxu1  ;;  %13526 = vmatmul.mubr.msk.f32.gmra.mrb[124].mxu1 %vm175_vm1, %v11719_v23 }
 0x10e   : > { %13528 = vmatprep.mubr.msk.f32.mxu1 %vm17196_vm0, %v21167_v4 }
 0x110   : > { %v17524_v27 = vpop.f32.mrb[20].mxu1 }
 0x111   : > { %v13363_v28 = vpop.f32.mrb[21].mxu1  ;;  %13529 = vmatmul.mubr.msk.f32.gmra.mrb[126].mxu1 %vm175_vm1, %v11720_v26 }
 0x112   : > { %13531 = vmatprep.mubr.msk.f32.mxu1 %vm17196_vm0, %v21167_v4  ;;  %v11762_v28 = vld [vmem:[%s17243_s19 + $0x280] sm:$0xff] }
 0x114   : > { %v17530_v30 = vpop.f32.mrb[22].mxu1 }
 0x115   : > { %v13366_v31 = vpop.f32.mrb[23].mxu1  ;;  %13532 = vmatmul.mubr.msk.f32.gmra.mrb[128].mxu1 %vm175_vm1, %v11721_v29 }
 0x116   : > { %13534 = vmatprep.mubr.msk.f32.mxu1 %vm17196_vm0, %v21167_v4 }
 0x118   : > { %v17536_v33 = vpop.f32.mrb[24].mxu1 }
 0x119   : > { %v13369_v34 = vpop.f32.mrb[25].mxu1  ;;  %13535 = vmatmul.mubr.msk.f32.gmra.mrb[130].mxu1 %vm175_vm1, %v11722_v32 }
 0x11a   : > { %13537 = vmatprep.mubr.msk.f32.mxu1 %vm17196_vm0, %v21167_v4  ;;  %v11763_v34 = vld [vmem:[%s17243_s19 + $0x288] sm:$0xff] }
 0x11c   : > { %v17542_v36 = vpop.f32.mrb[26].mxu1 }
 0x11d   : > { %v13372_v37 = vpop.f32.mrb[27].mxu1  ;;  %13538 = vmatmul.mubr.msk.f32.gmra.mrb[132].mxu1 %vm175_vm1, %v11723_v35 }
 0x11e   : > { %13540 = vmatprep.mubr.msk.f32.mxu1 %vm17196_vm0, %v21167_v4 }
 0x120   : > { %v17548_v39 = vpop.f32.mrb[28].mxu1 }
 0x121   : > { %v13375_v40 = vpop.f32.mrb[29].mxu1  ;;  %13541 = vmatmul.mubr.msk.f32.gmra.mrb[134].mxu1 %vm175_vm1, %v11724_v38 }
 0x122   : > { %13543 = vmatprep.mubr.msk.f32.mxu1 %vm17196_vm0, %v21167_v4  ;;  %v11764_v40 = vld [vmem:[%s17243_s19 + $0x290] sm:$0xff] }
 0x124   : > { %v17554_v42 = vpop.f32.mrb[30].mxu1 }
 0x125   : > { %v13378_v43 = vpop.f32.mrb[31].mxu1  ;;  %13544 = vmatmul.mubr.msk.f32.gmra.mrb[136].mxu1 %vm175_vm1, %v11725_v41 }
 0x126   : > { %13546 = vmatprep.mubr.msk.f32.mxu1 %vm17196_vm0, %v21167_v4 }
 0x128   : > { %v17560_v45 = vpop.f32.mrb[32].mxu1 }
 0x129   : > { %v13381_v46 = vpop.f32.mrb[33].mxu1  ;;  %13547 = vmatmul.mubr.msk.f32.gmra.mrb[138].mxu1 %vm175_vm1, %v11726_v44 }
 0x12a   : > { %13549 = vmatprep.mubr.msk.f32.mxu1 %vm17196_vm0, %v21167_v4  ;;  %v11765_v46 = vld [vmem:[%s17243_s19 + $0x298] sm:$0xff] }
 0x12c   : > { %v17566_v48 = vpop.f32.mrb[34].mxu1 }
 0x12d   : > { %v13384_v49 = vpop.f32.mrb[35].mxu1  ;;  %13550 = vmatmul.mubr.msk.f32.gmra.mrb[140].mxu1 %vm175_vm1, %v11727_v47 }
 0x12e   : > { %13552 = vmatprep.mubr.msk.f32.mxu1 %vm17196_vm0, %v21167_v4 }
 0x130   : > { %v17572_v51 = vpop.f32.mrb[36].mxu1 }
 0x131   : > { %v13387_v52 = vpop.f32.mrb[37].mxu1  ;;  %13553 = vmatmul.mubr.msk.f32.gmra.mrb[142].mxu1 %vm175_vm1, %v11728_v50 }
 0x132   : > { %13555 = vmatprep.mubr.msk.f32.mxu1 %vm17196_vm0, %v21167_v4  ;;  %v11766_v52 = vld [vmem:[%s17243_s19 + $0x2a0] sm:$0xff] }
 0x134   : > { %v17578_v54 = vpop.f32.mrb[38].mxu1 }
 0x135   : > { %v13390_v55 = vpop.f32.mrb[39].mxu1  ;;  %13556 = vmatmul.mubr.msk.f32.gmra.mrb[144].mxu1 %vm175_vm1, %v11729_v53 }
 0x136   : > { %13558 = vmatprep.mubr.msk.f32.mxu1 %vm17196_vm0, %v21167_v4 }
 0x138   : > { %v17584_v57 = vpop.f32.mrb[40].mxu1 }
 0x139   : > { %v13393_v58 = vpop.f32.mrb[41].mxu1  ;;  %13559 = vmatmul.mubr.msk.f32.gmra.mrb[146].mxu1 %vm175_vm1, %v11730_v56 }
 0x13a   : > { %13561 = vmatprep.mubr.msk.f32.mxu1 %vm17196_vm0, %v21167_v4  ;;  %v11767_v58 = vld [vmem:[%s17243_s19 + $0x2a8] sm:$0xff] }
 0x13c   : > { %v17590_v61 = vpop.f32.mrb[42].mxu1 }
 0x13d   : > { %v13396_v63 = vpop.f32.mrb[43].mxu1  ;;  %13562 = vmatmul.mubr.msk.f32.gmra.mrb[148].mxu1 %vm175_vm1, %v11731_v60 }
 0x13e   : > { %13568 = vmatprep.mubr.msk.f32.mxu1 %vm17196_vm0, %v21167_v4 }
 0x140   : > { %v17596_v3 = vpop.f32.mrb[44].mxu1 }
 0x141   : > { %v13399_v5 = vpop.f32.mrb[45].mxu1  ;;  %13569 = vmatmul.mubr.msk.f32.vlgmr.msra.gmra.mrb[150].mxu1 %vm175_vm1, %v11757_v0 }
 0x142   : > { %13571 = vmatprep.mubr.msk.f32.mxu1 %vm17196_vm0, %v21167_v4  ;;  %v11768_v5 = vld [vmem:[%s17243_s19 + $0x2b0] sm:$0xff] }
 0x144   : > { %v17602_v8 = vpop.f32.mrb[46].mxu1 }
 0x145   : > { %v13402_v10 = vpop.f32.mrb[47].mxu1  ;;  %13572 = vmatmul.mubr.msk.f32.gmra.mrb[152].mxu1 %vm175_vm1, %v11758_v7 }
 0x146   : > { %13574 = vmatprep.mubr.msk.f32.mxu1 %vm17196_vm0, %v21167_v4 }
 0x148   : > { %v17608_v13 = vpop.f32.mrb[48].mxu1 }
 0x149   : > { %v13405_v14 = vpop.f32.mrb[49].mxu1  ;;  %13575 = vmatmul.mubr.msk.f32.gmra.mrb[154].mxu1 %vm175_vm1, %v11759_v11 }
 0x14a   : > { %13577 = vmatprep.mubr.msk.f32.mxu1 %vm17196_vm0, %v21167_v4  ;;  %v11769_v14 = vld [vmem:[%s17243_s19 + $0x2b8] sm:$0xff] }
 0x14c   : > { %v17614_v17 = vpop.f32.mrb[50].mxu1 }
 0x14d   : > { %v732_v19 = vmax.f32 %v17464_v59, %v17614_v17  ;;  %v13412_v20 = vpop.f32.mrb[51].mxu1  ;;  %13578 = vmatmul.mubr.msk.f32.gmra.mrb[156].mxu1 %vm175_vm1, %v11760_v16 }
 0x14e   : > { %13580 = vmatprep.mubr.msk.f32.mxu1 %vm17196_vm0, %v21167_v4 }
 0x150   : > { %v17622_v23 = vpop.f32.mrb[52].mxu1 }
 0x151   : > { %v733_v25 = vmax.f32 %v17470_v62, %v17622_v23  ;;  %v13415_v26 = vpop.f32.mrb[53].mxu1  ;;  %13581 = vmatmul.mubr.msk.f32.gmra.mrb[158].mxu1 %vm175_vm1, %v11761_v22 }
 0x152   : > { %13583 = vmatprep.mubr.msk.f32.mxu1 %vm17196_vm0, %v21167_v4  ;;  %v11770_v26 = vld [vmem:[%s17243_s19 + $0x2c0] sm:$0xff] }
 0x154   : > { %v17630_v29 = vpop.f32.mrb[54].mxu1 }
 0x155   : > { %v734_v31 = vmax.f32 %v17476_v1, %v17630_v29  ;;  %v13418_v32 = vpop.f32.mrb[55].mxu1  ;;  %13584 = vmatmul.mubr.msk.f32.gmra.mrb[160].mxu1 %vm175_vm1, %v11762_v28 }
 0x156   : > { %13586 = vmatprep.mubr.msk.f32.mxu1 %vm17196_vm0, %v21167_v4 }
 0x158   : > { %v17638_v35 = vpop.f32.mrb[56].mxu1 }
 0x159   : > { %v735_v37 = vmax.f32 %v17482_v6, %v17638_v35  ;;  %v13421_v38 = vpop.f32.mrb[57].mxu1  ;;  %13587 = vmatmul.mubr.msk.f32.gmra.mrb[162].mxu1 %vm175_vm1, %v11763_v34 }
 0x15a   : > { %13589 = vmatprep.mubr.msk.f32.mxu1 %vm17196_vm0, %v21167_v4  ;;  %v11771_v38 = vld [vmem:[%s17243_s19 + $0x2c8] sm:$0xff] }
 0x15c   : > { %v17646_v41 = vpop.f32.mrb[58].mxu1 }
 0x15d   : > { %v13424_v44 = vpop.f32.mrb[59].mxu1  ;;  %13590 = vmatmul.mubr.msk.f32.gmra.mrb[164].mxu1 %vm175_vm1, %v11764_v40  ;;  %v21214_v62 = vmax.f32 %v17488_v9, %v17646_v41 }
 0x15e   : > { %13592 = vmatprep.mubr.msk.f32.mxu1 %vm17196_vm0, %v21167_v4 }
 0x160   : > { %v17654_v47 = vpop.f32.mrb[60].mxu1 }
 0x161   : > { %v13427_v50 = vpop.f32.mrb[61].mxu1  ;;  %13593 = vmatmul.mubr.msk.f32.gmra.mrb[166].mxu1 %vm175_vm1, %v11765_v46  ;;  %v21215_v1 = vmax.f32 %v17494_v12, %v17654_v47 }
 0x162   : > { %13595 = vmatprep.mubr.msk.f32.mxu1 %vm17196_vm0, %v21167_v4  ;;  %v11772_v50 = vld [vmem:[%s17243_s19 + $0x2d0] sm:$0xff] }
 0x164   : > { %v17662_v53 = vpop.f32.mrb[62].mxu1 }
 0x165   : > { %v13430_v56 = vpop.f32.mrb[63].mxu1  ;;  %13596 = vmatmul.mubr.msk.f32.gmra.mrb[168].mxu1 %vm175_vm1, %v11766_v52  ;;  %v21216_v6 = vmax.f32 %v17500_v15, %v17662_v53 }
 0x166   : > { %13598 = vmatprep.mubr.msk.f32.mxu1 %vm17196_vm0, %v21167_v4 }
 0x168   : > { %v17670_v60 = vpop.f32.mrb[64].mxu1 }
 0x169   : > { %v13433_v0 = vpop.f32.mrb[65].mxu1  ;;  %13599 = vmatmul.mubr.msk.f32.gmra.mrb[170].mxu1 %vm175_vm1, %v11767_v58  ;;  %v21217_v9 = vmax.f32 %v17506_v18, %v17670_v60 }
 0x16a   : > { %13601 = vmatprep.mubr.msk.f32.mxu1 %vm17196_vm0, %v21167_v4  ;;  %v11773_v0 = vld [vmem:[%s17243_s19 + $0x2d8] sm:$0xff] }
 0x16c   : > { %v17678_v7 = vpop.f32.mrb[66].mxu1 }
 0x16d   : > { %v13436_v11 = vpop.f32.mrb[67].mxu1  ;;  %13602 = vmatmul.mubr.msk.f32.gmra.mrb[172].mxu1 %vm175_vm1, %v11768_v5  ;;  %v21218_v12 = vmax.f32 %v17512_v21, %v17678_v7 }
 0x16e   : > { %13604 = vmatprep.mubr.msk.f32.mxu1 %vm17196_vm0, %v21167_v4 }
 0x170   : > { %v17686_v16 = vpop.f32.mrb[68].mxu1 }
 0x171   : > { %v13439_v22 = vpop.f32.mrb[69].mxu1  ;;  %13605 = vmatmul.mubr.msk.f32.gmra.mrb[174].mxu1 %vm175_vm1, %v11769_v14  ;;  %v21219_v15 = vmax.f32 %v17518_v24, %v17686_v16 }
 0x172   : > { %13607 = vmatprep.mubr.msk.f32.mxu1 %vm17196_vm0, %v21167_v4  ;;  %v11774_v22 = vld [vmem:[%s17243_s19 + $0x2e0] sm:$0xff] }
 0x174   : > { %v17694_v28 = vpop.f32.mrb[70].mxu1 }
 0x175   : > { %v13442_v34 = vpop.f32.mrb[71].mxu1  ;;  %13608 = vmatmul.mubr.msk.f32.gmra.mrb[176].mxu1 %vm175_vm1, %v11770_v26  ;;  %v21220_v18 = vmax.f32 %v17524_v27, %v17694_v28 }
 0x176   : > { %13610 = vmatprep.mubr.msk.f32.mxu1 %vm17196_vm0, %v21167_v4 }
 0x178   : > { %v17702_v40 = vpop.f32.mrb[72].mxu1 }
 0x179   : > { %v13445_v46 = vpop.f32.mrb[73].mxu1  ;;  %13611 = vmatmul.mubr.msk.f32.gmra.mrb[178].mxu1 %vm175_vm1, %v11771_v38  ;;  %v21221_v21 = vmax.f32 %v17530_v30, %v17702_v40 }
 0x17a   : > { %13613 = vmatprep.mubr.msk.f32.mxu1 %vm17196_vm0, %v21167_v4  ;;  %v11775_v46 = vld [vmem:[%s17243_s19 + $0x2e8] sm:$0xff] }
 0x17c   : > { %v17710_v52 = vpop.f32.mrb[74].mxu1 }
 0x17d   : > { %v13448_v58 = vpop.f32.mrb[75].mxu1  ;;  %13614 = vmatmul.mubr.msk.f32.gmra.mrb[180].mxu1 %vm175_vm1, %v11772_v50  ;;  %v21222_v24 = vmax.f32 %v17536_v33, %v17710_v52 }
 0x17e   : > { %13616 = vmatprep.mubr.msk.f32.mxu1 %vm17196_vm0, %v21167_v4  ;;  %v11777_v58 = vld [vmem:[%s17243_s19 + $0x2f8] sm:$0xff] }
 0x180   : > { %v17718_v5 = vpop.f32.mrb[76].mxu1 }
 0x181   : > { %v13451_v14 = vpop.f32.mrb[77].mxu1  ;;  %13617 = vmatmul.mubr.msk.f32.gmra.mrb[182].mxu1 %vm175_vm1, %v11773_v0  ;;  %v21223_v27 = vmax.f32 %v17542_v36, %v17718_v5 }
 0x182   : > { %13619 = vmatprep.mubr.msk.f32.mxu1 %vm17196_vm0, %v21167_v4  ;;  %v11776_v14 = vld [vmem:[%s17243_s19 + $0x2f0] sm:$0xff] }
 0x184   : > { %v17726_v26 = vpop.f32.mrb[78].mxu1 }
 0x185   : > { %v13454_v38 = vpop.f32.mrb[79].mxu1  ;;  %13620 = vmatmul.mubr.msk.f32.gmra.mrb[184].mxu1 %vm175_vm1, %v11774_v22  ;;  %v11778_v22 = vld [vmem:[%s17243_s19 + $0x300] sm:$0xff]  ;;  %v21224_v30 = vmax.f32 %v17548_v39, %v17726_v26 }
 0x186   : > { %13622 = vmatprep.mubr.msk.f32.mxu1 %vm17196_vm0, %v21167_v4 }
 0x188   : > { %v17734_v50 = vpop.f32.mrb[80].mxu1 }
 0x189   : > { %v13457_v0 = vpop.f32.mrb[81].mxu1  ;;  %13623 = vmatmul.mubr.msk.f32.gmra.mrb[186].mxu1 %vm175_vm1, %v11775_v46  ;;  %v11779_v46 = vld [vmem:[%s17243_s19 + $0x308] sm:$0xff]  ;;  %v21225_v33 = vmax.f32 %v17554_v42, %v17734_v50 }
 0x18a   : > { %13625 = vmatprep.mubr.msk.f32.mxu1 %vm17196_vm0, %v21167_v4 }
 0x18c   : > { %v17742_v38 = vpop.f32.mrb[82].mxu1 }
 0x18d   : > { %v13460_v2 = vpop.f32.mrb[83].mxu1  ;;  %13626 = vmatmul.mubr.msk.f32.gmra.mrb[188].mxu1 %vm175_vm1, %v11776_v14  ;;  %v21226_v36 = vmax.f32 %v17560_v45, %v17742_v38 }
 0x18e   : > { %13628 = vmatprep.mubr.msk.f32.mxu1 %vm17196_vm0, %v21167_v4 }
 0x190   : > { %v17750_v0 = vpop.f32.mrb[84].mxu1 }
 0x191   : > { %v13463_v34 = vpop.f32.mrb[85].mxu1  ;;  %13629 = vmatmul.mubr.msk.f32.gmra.mrb[190].mxu1 %vm175_vm1, %v11777_v58  ;;  %v11781_v58 = vld [vmem:[%s17243_s19 + $0x318] sm:$0xf]  ;;  %v21227_v39 = vmax.f32 %v17566_v48, %v17750_v0 }
 0x192   : > { %13631 = vmatprep.mubr.msk.f32.mxu1 %vm17196_vm0, %v21167_v4 }
 0x194   : > { %v17758_v2 = vpop.f32.mrb[86].mxu1 }
 0x195   : > { %v13466_v11 = vpop.f32.mrb[87].mxu1  ;;  %13632 = vmatmul.mubr.msk.f32.gmra.mrb[192].mxu1 %vm175_vm1, %v11778_v22  ;;  %v1529_v22 = vld [vmem:[%s21163_s1 + $0x18] sm:$0xff]  ;;  %v21228_v42 = vmax.f32 %v17572_v51, %v17758_v2 }
 0x196   : > { %13634 = vmatprep.mubr.msk.f32.mxu1 %vm17196_vm0, %v21167_v4  ;;  %v11780_v11 = vld [vmem:[%s17243_s19 + $0x310] sm:$0xff]  ;;  %13644 = vmatpush3.msra.mxu1 %v1529_v22 }
 0x197   : > { %13720 = vmatprep.subr.mxu1 %v21167_v4 }
 0x198   : > { %v17766_v34 = vpop.f32.mrb[88].mxu1 }
 0x199   : > { %v13469_v56 = vpop.f32.mrb[89].mxu1  ;;  %13635 = vmatmul.mubr.msk.f32.gmra.mrb[194].mxu1 %vm175_vm1, %v11779_v46  ;;  %v21230_v38 = vmax.f32 %v17578_v54, %v17766_v34 }
 0x19a   : > { %13637 = vmatprep.mubr.msk.f32.mxu1 %vm17196_vm0, %v21167_v4 }
 0x19c   : > { %v17788_v56 = vpop.f32.mrb[90].mxu1 }
 0x19d   : > { %v13472_v46 = vpop.f32.mrb[91].mxu1  ;;  %13638 = vmatmul.mubr.msk.f32.gmra.mrb[196].mxu1 %vm175_vm1, %v11780_v11 }
 0x19e   : > { %13640 = vmatprep.mubr.msk.f32.mxu1 %vm17196_vm0, %v21167_v4 }
 0x1a0   : > { %v17796_v14 = vpop.f32.mrb[92].mxu1 }
 0x1a1   : > { %v13475_v32 = vpop.f32.mrb[93].mxu1  ;;  %13641 = vmatmul.mubr.msk.f32.gmra.mrb[198].mxu1 %vm175_vm1, %v11781_v58 }
 0x1a2   : > { %13645 = vmatprep.mubr.msk.f32.mxu1 %vm17196_vm0, %v21167_v4 }
 0x1a4   : > { %v17803_v20 = vpop.f32.mrb[94].mxu1 }
 0x1a5   : > { %v13478_v46 = vpop.f32.mrb[95].mxu1  ;;  %v21233_v54 = vmax.f32 %v17596_v3, %v17803_v20  ;;  %v17953_v3 = vld [vmem:[%s21163_s1 + $0x368] ss:$0 sm:$0xff] }
 0x1a6   : > { %v4297_v46 = vld [vmem:[%s21163_s1 + $0x58] sm:$0xff] }
 0x1a7   : > { %14337 = vmatpush3.msra.mxu0 %v4297_v46 }
 0x1a8   : > { %v17811_v44 = vpop.f32.mrb[96].mxu1  ;;  %14413 = vmatprep.subr.mxu0 %v21167_v4 }
 0x1a9   : > { %v13481_v58 = vpop.f32.mrb[97].mxu1 }
 0x1ac   : > { %v17815_v10 = vpop.f32.mrb[98].mxu1 }
 0x1ad   : > { %v13484_v11 = vpop.f32.mrb[99].mxu1 }
 0x1b0   : > { %v924_v22 = vpop.f32.mrb[100].mxu1 }
 0x1b1   : > { %v17826_v55 = vmax.f32 %v732_v19, %v924_v22  ;;  %v13491_v58 = vpop.f32.mrb[101].mxu1 }
 0x1b4   : > { %v929_v32 = vpop.f32.mrb[102].mxu1 }
 0x1b5   : > { %v17831_v63 = vmax.f32 %v733_v25, %v929_v32  ;;  %v13494_v11 = vpop.f32.mrb[103].mxu1 }
 0x1b8   : > { %v934_v49 = vpop.f32.mrb[104].mxu1 }
 0x1b9   : > { %v17836_v46 = vmax.f32 %v734_v31, %v934_v49  ;;  %v13497_v4 = vpop.f32.mrb[105].mxu1 }
 0x1bc   : > { %v939_v43 = vpop.f32.mrb[106].mxu1 }
 0x1bd   : > { %v17841_v59 = vmax.f32 %v735_v37, %v939_v43  ;;  %v13500_v17 = vpop.f32.mrb[107].mxu1 }
 0x1c0   : > { %v944_v19 = vpop.f32.mrb[108].mxu1 }
 0x1c1   : > { %v17846_v23 = vmax.f32 %v21214_v62, %v944_v19  ;;  %v13503_v25 = vpop.f32.mrb[109].mxu1 }
 0x1c4   : > { %v949_v32 = vpop.f32.mrb[110].mxu1 }
 0x1c5   : > { %v17851_v29 = vmax.f32 %v21215_v1, %v949_v32  ;;  %v13506_v4 = vpop.f32.mrb[111].mxu1 }
 0x1c8   : > { %v954_v31 = vpop.f32.mrb[112].mxu1 }
 0x1c9   : > { %v17856_v35 = vmax.f32 %v21216_v6, %v954_v31  ;;  %v13509_v37 = vpop.f32.mrb[113].mxu1 }
 0x1cc   : > { %v959_v43 = vpop.f32.mrb[114].mxu1 }
 0x1cd   : > { %v17861_v41 = vmax.f32 %v21217_v9, %v959_v43  ;;  %v13512_v49 = vpop.f32.mrb[115].mxu1 }
 0x1d0   : > { %v964_v22 = vpop.f32.mrb[116].mxu1 }
 0x1d1   : > { %v17866_v47 = vmax.f32 %v21218_v12, %v964_v22  ;;  %v13515_v58 = vpop.f32.mrb[117].mxu1 }
 0x1d4   : > { %v969_v11 = vpop.f32.mrb[118].mxu1 }
 0x1d5   : > { %v17871_v53 = vmax.f32 %v21219_v15, %v969_v11  ;;  %v13518_v17 = vpop.f32.mrb[119].mxu1 }
 0x1d8   : > { %v974_v19 = vpop.f32.mrb[120].mxu1 }
 0x1d9   : > { %v17876_v60 = vmax.f32 %v21220_v18, %v974_v19  ;;  %v13521_v62 = vpop.f32.mrb[121].mxu1  ;;  %v21229_v19 = vmov 0.0  }
 0x1da   : > { %1452 = vst.msk [vmem:[#allocation2 + $0xfc] sm:$0xf] %vm1451_vm3, %v21229_v19  ;;  %v21231_v62 = vmax.f32 %v17584_v57, %v17788_v56  ;;  %v21234_v57 = vmax.f32 %v17602_v8, %v17811_v44 }
 0x1dc   : > { %v979_v25 = vpop.f32.mrb[122].mxu1 }
 0x1dd   : > { %v17881_v7 = vmax.f32 %v21221_v21, %v979_v25  ;;  %v13524_v32 = vpop.f32.mrb[123].mxu1  ;;  %v21232_v21 = vmax.f32 %v17590_v61, %v17796_v14  ;;  %v21235_v61 = vmax.f32 %v17608_v13, %v17815_v10 }
 0x1e0   : > { %v984_v1 = vpop.f32.mrb[124].mxu1 }
 0x1e1   : > { %v17886_v16 = vmax.f32 %v21222_v24, %v984_v1  ;;  %v13527_v4 = vpop.f32.mrb[125].mxu1 }
 0x1e4   : > { %v989_v31 = vpop.f32.mrb[126].mxu1 }
 0x1e5   : > { %v17891_v28 = vmax.f32 %v21223_v27, %v989_v31  ;;  %v13530_v6 = vpop.f32.mrb[127].mxu1 }
 0x1e8   : > { %v994_v37 = vpop.f32.mrb[128].mxu1 }
 0x1e9   : > { %v17896_v40 = vmax.f32 %v21224_v30, %v994_v37  ;;  %v13533_v43 = vpop.f32.mrb[129].mxu1 }
 0x1ec   : > { %v999_v9 = vpop.f32.mrb[130].mxu1 }
 0x1ed   : > { %v17901_v52 = vmax.f32 %v21225_v33, %v999_v9  ;;  %v13536_v49 = vpop.f32.mrb[131].mxu1 }
 0x1f0   : > { %v1004_v22 = vpop.f32.mrb[132].mxu1 }
 0x1f1   : > { %v17906_v5 = vmax.f32 %v21226_v36, %v1004_v22  ;;  %v13539_v12 = vpop.f32.mrb[133].mxu1 }
 0x1f4   : > { %v1009_v58 = vpop.f32.mrb[134].mxu1 }
 0x1f5   : > { %v17911_v26 = vmax.f32 %v21227_v39, %v1009_v58  ;;  %v13542_v11 = vpop.f32.mrb[135].mxu1 }
 0x1f8   : > { %v1014_v15 = vpop.f32.mrb[136].mxu1 }
 0x1f9   : > { %v17916_v50 = vmax.f32 %v21228_v42, %v1014_v15  ;;  %v13545_v17 = vpop.f32.mrb[137].mxu1 }
 0x1fc   : > { %v1019_v45 = vpop.f32.mrb[138].mxu1 }
 0x1fd   : > { %v17923_v18 = vmax.f32 %v21230_v38, %v1019_v45  ;;  %v13548_v48 = vpop.f32.mrb[139].mxu1 }
 0x200   : > { %v1024_v0 = vpop.f32.mrb[140].mxu1 }
 0x201   : > { %v17928_v25 = vmax.f32 %v21231_v62, %v1024_v0  ;;  %v13551_v51 = vpop.f32.mrb[141].mxu1 }
 0x204   : > { %v1029_v2 = vpop.f32.mrb[142].mxu1 }
 0x205   : > { %v17933_v32 = vmax.f32 %v21232_v21, %v1029_v2  ;;  %v13554_v1 = vpop.f32.mrb[143].mxu1 }
 0x208   : > { %v1034_v24 = vpop.f32.mrb[144].mxu1 }
 0x209   : > { %v17938_v34 = vmax.f32 %v21233_v54, %v1034_v24  ;;  %v13557_v4 = vpop.f32.mrb[145].mxu1 }
 0x20c   : > { %v1039_v31 = vpop.f32.mrb[146].mxu1 }
 0x20d   : > { %v17943_v56 = vmax.f32 %v21234_v57, %v1039_v31  ;;  %v13560_v27 = vpop.f32.mrb[147].mxu1 }
 0x210   : > { %v1044_v6 = vpop.f32.mrb[148].mxu1 }
 0x211   : > { %v17948_v14 = vmax.f32 %v21235_v61, %v1044_v6  ;;  %v13563_v37 = vpop.f32.mrb[149].mxu1 }
 0x214   : > { %v1240_v20 = vpop.f32.mrb[150].mxu1 }
 0x215   : > { %v1364_v30 = vmax.f32 %v17826_v55, %v1240_v20  ;;  %v13570_v43 = vpop.f32.mrb[151].mxu1 }
 0x217   : > { %v1393_v8 = vadd.f32 %v17953_v3, %v1364_v30 }
 0x218   : > { %v1245_v44 = vpop.f32.mrb[152].mxu1 }
 0x219   : > { %v1418_v9 = vmax.f32 %v1393_v8, 0.0  ;;  %v1365_v33 = vmax.f32 %v17831_v63, %v1245_v44  ;;  %v13573_v49 = vpop.f32.mrb[153].mxu1 }
 0x21b   : > { %1453 = vst.msk [vmem:[#allocation2] sm:$0xff] %vm1443_vm2, %v1418_v9  ;;  %v1394_v13 = vadd.f32 %v17953_v3, %v1365_v33 }
 0x21c   : > { %v1250_v10 = vpop.f32.mrb[154].mxu1 }
 0x21d   : > { %v1419_v22 = vmax.f32 %v1394_v13, 0.0  ;;  %v1366_v36 = vmax.f32 %v17836_v46, %v1250_v10  ;;  %v13576_v12 = vpop.f32.mrb[155].mxu1  ;;  %v1503_v46 = vld [vmem:[%s21163_s1 + $0x10] sm:$0xff] }
 0x21f   : > { %1454 = vst.msk [vmem:[#allocation2 + $0x8] sm:$0xff] %vm1443_vm2, %v1419_v22  ;;  %v1395_v55 = vadd.f32 %v17953_v3, %v1366_v36 }
 0x220   : > { %v1255_v58 = vpop.f32.mrb[156].mxu1 }
 0x221   : > { %v1420_v39 = vmax.f32 %v1395_v55, 0.0  ;;  %v1367_v11 = vmax.f32 %v17841_v59, %v1255_v58  ;;  %v13579_v15 = vpop.f32.mrb[157].mxu1 }
 0x223   : > { %1455 = vst.msk [vmem:[#allocation2 + $0x10] sm:$0xff] %vm1443_vm2, %v1420_v39  ;;  %v1396_v63 = vadd.f32 %v17953_v3, %v1367_v11 }
 0x224   : > { %v1260_v42 = vpop.f32.mrb[158].mxu1 }
 0x225   : > { %v1421_v17 = vmax.f32 %v1396_v63, 0.0  ;;  %v1368_v45 = vmax.f32 %v17846_v23, %v1260_v42  ;;  %v13582_v38 = vpop.f32.mrb[159].mxu1 }
 0x226   : > { %v1504_v48 = vld [vmem:[#allocation2 + $0x1] sm:$0xff] }
 0x227   : > { %1456 = vst.msk [vmem:[#allocation2 + $0x18] sm:$0xff] %vm1443_vm2, %v1421_v17  ;;  %v1397_v0 = vadd.f32 %v17953_v3, %v1368_v45  ;;  %13646 = vmatmul.mubr.msk.f32.vlgmr.msra.gmra.mrb[200].mxu1 %vm1443_vm2, %v1504_v48 }
 0x228   : > { %v1265_v59 = vpop.f32.mrb[160].mxu1  ;;  %13648 = vmatprep.mubr.msk.f32.mxu1 %vm17196_vm0, %v21229_v19  ;;  %13721 = vmatpush3.msra.mxu1 %v1503_v46 }
 0x229   : > { %v1422_v62 = vmax.f32 %v1397_v0, 0.0  ;;  %v1369_v23 = vmax.f32 %v17851_v29, %v1265_v59  ;;  %v13585_v51 = vpop.f32.mrb[161].mxu1  ;;  %13797 = vmatprep.subr.mxu1 %v21229_v19  ;;  %v4613_v29 = vld [vmem:[%s21163_s1 + $0x60] sm:$0xff] }
 0x22a   : > { %v1505_v2 = vld [vmem:[#allocation2 + $0x9] sm:$0xff] }
 0x22b   : > { %1457 = vst.msk [vmem:[#allocation2 + $0x20] sm:$0xff] %vm1443_vm2, %v1422_v62  ;;  %v1398_v21 = vadd.f32 %v17953_v3, %v1369_v23  ;;  %13649 = vmatmul.mubr.msk.f32.gmra.mrb[202].mxu1 %vm1443_vm2, %v1505_v2 }
 0x22c   : > { %v1270_v1 = vpop.f32.mrb[162].mxu1  ;;  %13651 = vmatprep.mubr.msk.f32.mxu1 %vm17196_vm0, %v21229_v19 }
 0x22d   : > { %v1423_v24 = vmax.f32 %v1398_v21, 0.0  ;;  %v1370_v54 = vmax.f32 %v17856_v35, %v1270_v1  ;;  %v13588_v4 = vpop.f32.mrb[163].mxu1 }
 0x22e   : > { %v1506_v31 = vld [vmem:[#allocation2 + $0x11] sm:$0xff] }
 0x22f   : > { %v17986_v57 = vld [vmem:[#allocation2 + $0x12] sm:$0xff]  ;;  %1458 = vst.msk [vmem:[#allocation2 + $0x28] sm:$0xff] %vm1443_vm2, %v1423_v24  ;;  %v1399_v27 = vadd.f32 %v17953_v3, %v1370_v54  ;;  %13652 = vmatmul.mubr.msk.f32.gmra.mrb[204].mxu1 %vm1443_vm2, %v1506_v31 }
 0x230   : > { %14339 = vmatmul.mubr.msk.f32.vlgmr.msra.gmra.mrb[0].mxu0 %vm1443_vm2, %v17986_v57  ;;  %v1275_v6 = vpop.f32.mrb[164].mxu1  ;;  %13654 = vmatprep.mubr.msk.f32.mxu1 %vm17196_vm0, %v21229_v19 }
 0x231   : > { %14414 = vmatpush3.msra.mxu0 %v4613_v29  ;;  %v1424_v35 = vmax.f32 %v1399_v27, 0.0  ;;  %v1371_v61 = vmax.f32 %v17861_v41, %v1275_v6  ;;  %v13591_v37 = vpop.f32.mrb[165].mxu1  ;;  %14341 = vmatprep.mubr.msk.f32.mxu0 %vm17196_vm0, %v21229_v19 }
 0x232   : > { %14490 = vmatprep.subr.mxu0 %v21229_v19  ;;  %v1507_v20 = vld [vmem:[#allocation2 + $0x19] sm:$0xff] }
 0x233   : > { %v17999_v30 = vld [vmem:[#allocation2 + $0x1a] sm:$0xff]  ;;  %1459 = vst.msk [vmem:[#allocation2 + $0x30] sm:$0xff] %vm1443_vm2, %v1424_v35  ;;  %v1400_v43 = vadd.f32 %v17953_v3, %v1371_v61  ;;  %13655 = vmatmul.mubr.msk.f32.gmra.mrb[206].mxu1 %vm1443_vm2, %v1507_v20 }
 0x234   : > { %14342 = vmatmul.mubr.msk.f32.gmra.mrb[2].mxu0 %vm1443_vm2, %v17999_v30  ;;  %v1280_v8 = vpop.f32.mrb[166].mxu1  ;;  %13657 = vmatprep.mubr.msk.f32.mxu1 %vm17196_vm0, %v21229_v19 }
 0x235   : > { %14344 = vmatprep.mubr.msk.f32.mxu0 %vm17196_vm0, %v21229_v19  ;;  %v1425_v41 = vmax.f32 %v1400_v43, 0.0  ;;  %v1372_v44 = vmax.f32 %v17866_v47, %v1280_v8  ;;  %v13594_v9 = vpop.f32.mrb[167].mxu1 }
 0x236   : > { %v1508_v33 = vld [vmem:[#allocation2 + $0x21] sm:$0xff] }
 0x237   : > { %v18011_v49 = vld [vmem:[#allocation2 + $0x22] sm:$0xff]  ;;  %1460 = vst.msk [vmem:[#allocation2 + $0x38] sm:$0xff] %vm1443_vm2, %v1425_v41  ;;  %v1401_v13 = vadd.f32 %v17953_v3, %v1372_v44  ;;  %13658 = vmatmul.mubr.msk.f32.gmra.mrb[208].mxu1 %vm1443_vm2, %v1508_v33 }
 0x238   : > { %14345 = vmatmul.mubr.msk.f32.gmra.mrb[4].mxu0 %vm1443_vm2, %v18011_v49  ;;  %v1285_v10 = vpop.f32.mrb[168].mxu1  ;;  %13660 = vmatprep.mubr.msk.f32.mxu1 %vm17196_vm0, %v21229_v19  ;;  %v4929_v9 = vld [vmem:[%s21163_s1 + $0x68] sm:$0xff] }
 0x239   : > { %14347 = vmatprep.mubr.msk.f32.mxu0 %vm17196_vm0, %v21229_v19  ;;  %v1426_v47 = vmax.f32 %v1401_v13, 0.0  ;;  %v1373_v22 = vmax.f32 %v17871_v53, %v1285_v10  ;;  %v13597_v36 = vpop.f32.mrb[169].mxu1  ;;  %v4588_v13 = vld [vmem:[#allocation2 + $0x1c] sm:$0xff] }
 0x23a   : > { %v1509_v12 = vld [vmem:[#allocation2 + $0x29] sm:$0xff] }
 0x23b   : > { %v18023_v55 = vld [vmem:[#allocation2 + $0x2a] sm:$0xff]  ;;  %1461 = vst.msk [vmem:[#allocation2 + $0x40] sm:$0xff] %vm1443_vm2, %v1426_v47  ;;  %v1402_v58 = vadd.f32 %v17953_v3, %v1373_v22  ;;  %13661 = vmatmul.mubr.msk.f32.gmra.mrb[210].mxu1 %vm1443_vm2, %v1509_v12 }
 0x23c   : > { %14348 = vmatmul.mubr.msk.f32.gmra.mrb[6].mxu0 %vm1443_vm2, %v18023_v55  ;;  %v1290_v39 = vpop.f32.mrb[170].mxu1  ;;  %13663 = vmatprep.mubr.msk.f32.mxu1 %vm17196_vm0, %v21229_v19 }
 0x23d   : > { %14350 = vmatprep.mubr.msk.f32.mxu0 %vm17196_vm0, %v21229_v19  ;;  %v1427_v53 = vmax.f32 %v1402_v58, 0.0  ;;  %v1374_v11 = vmax.f32 %v17876_v60, %v1290_v39  ;;  %v13600_v15 = vpop.f32.mrb[171].mxu1  ;;  %v4589_v58 = vld [vmem:[#allocation2 + $0x24] sm:$0xff] }
 0x23e   : > { %v1510_v63 = vld [vmem:[#allocation2 + $0x31] sm:$0xff] }
 0x23f   : > { %v18035_v42 = vld [vmem:[#allocation2 + $0x32] sm:$0xff]  ;;  %1462 = vst.msk [vmem:[#allocation2 + $0x48] sm:$0xff] %vm1443_vm2, %v1427_v53  ;;  %v1403_v17 = vadd.f32 %v17953_v3, %v1374_v11  ;;  %13664 = vmatmul.mubr.msk.f32.gmra.mrb[212].mxu1 %vm1443_vm2, %v1510_v63 }
 0x240   : > { %14351 = vmatmul.mubr.msk.f32.gmra.mrb[8].mxu0 %vm1443_vm2, %v18035_v42  ;;  %v1295_v45 = vpop.f32.mrb[172].mxu1  ;;  %13666 = vmatprep.mubr.msk.f32.mxu1 %vm17196_vm0, %v21229_v19 }
 0x241   : > { %14353 = vmatprep.mubr.msk.f32.mxu0 %vm17196_vm0, %v21229_v19  ;;  %v1428_v60 = vmax.f32 %v1403_v17, 0.0  ;;  %v1375_v38 = vmax.f32 %v17881_v7, %v1295_v45  ;;  %v13603_v46 = vpop.f32.mrb[173].mxu1  ;;  %v4590_v17 = vld [vmem:[#allocation2 + $0x2c] sm:$0xff] }
 0x242   : > { %v1511_v48 = vld [vmem:[#allocation2 + $0x39] sm:$0xff] }
 0x243   : > { %v18047_v0 = vld [vmem:[#allocation2 + $0x3a] sm:$0xff]  ;;  %1463 = vst.msk [vmem:[#allocation2 + $0x50] sm:$0xff] %vm1443_vm2, %v1428_v60  ;;  %v1404_v59 = vadd.f32 %v17953_v3, %v1375_v38  ;;  %13667 = vmatmul.mubr.msk.f32.gmra.mrb[214].mxu1 %vm1443_vm2, %v1511_v48 }
 0x244   : > { %14354 = vmatmul.mubr.msk.f32.gmra.mrb[10].mxu0 %vm1443_vm2, %v18047_v0  ;;  %v1300_v62 = vpop.f32.mrb[174].mxu1  ;;  %13669 = vmatprep.mubr.msk.f32.mxu1 %vm17196_vm0, %v21229_v19 }
 0x245   : > { %14356 = vmatprep.mubr.msk.f32.mxu0 %vm17196_vm0, %v21229_v19  ;;  %v1429_v7 = vmax.f32 %v1404_v59, 0.0  ;;  %v1376_v23 = vmax.f32 %v17886_v16, %v1300_v62  ;;  %v13606_v51 = vpop.f32.mrb[175].mxu1  ;;  %v4591_v59 = vld [vmem:[#allocation2 + $0x34] sm:$0xff] }
 0x246   : > { %v1512_v2 = vld [vmem:[#allocation2 + $0x41] sm:$0xff] }
 0x247   : > { %v18059_v21 = vld [vmem:[#allocation2 + $0x42] sm:$0xff]  ;;  %1464 = vst.msk [vmem:[#allocation2 + $0x58] sm:$0xff] %vm1443_vm2, %v1429_v7  ;;  %v1405_v1 = vadd.f32 %v17953_v3, %v1376_v23  ;;  %13670 = vmatmul.mubr.msk.f32.gmra.mrb[216].mxu1 %vm1443_vm2, %v1512_v2 }
 0x248   : > { %14357 = vmatmul.mubr.msk.f32.gmra.mrb[12].mxu0 %vm1443_vm2, %v18059_v21  ;;  %v1305_v24 = vpop.f32.mrb[176].mxu1  ;;  %13672 = vmatprep.mubr.msk.f32.mxu1 %vm17196_vm0, %v21229_v19 }
 0x249   : > { %14359 = vmatprep.mubr.msk.f32.mxu0 %vm17196_vm0, %v21229_v19  ;;  %v1430_v16 = vmax.f32 %v1405_v1, 0.0  ;;  %v1377_v54 = vmax.f32 %v17891_v28, %v1305_v24  ;;  %v13609_v4 = vpop.f32.mrb[177].mxu1  ;;  %v4592_v1 = vld [vmem:[#allocation2 + $0x3c] sm:$0xff] }
 0x24a   : > { %v1513_v29 = vld [vmem:[#allocation2 + $0x49] sm:$0xff] }
 0x24b   : > { %v18071_v31 = vld [vmem:[#allocation2 + $0x4a] sm:$0xff]  ;;  %1465 = vst.msk [vmem:[#allocation2 + $0x60] sm:$0xff] %vm1443_vm2, %v1430_v16  ;;  %v1406_v27 = vadd.f32 %v17953_v3, %v1377_v54  ;;  %13673 = vmatmul.mubr.msk.f32.gmra.mrb[218].mxu1 %vm1443_vm2, %v1513_v29 }
 0x24c   : > { %14360 = vmatmul.mubr.msk.f32.gmra.mrb[14].mxu0 %vm1443_vm2, %v18071_v31  ;;  %v1310_v6 = vpop.f32.mrb[178].mxu1  ;;  %13675 = vmatprep.mubr.msk.f32.mxu1 %vm17196_vm0, %v21229_v19 }
 0x24d   : > { %14362 = vmatprep.mubr.msk.f32.mxu0 %vm17196_vm0, %v21229_v19  ;;  %v1431_v28 = vmax.f32 %v1406_v27, 0.0  ;;  %v1378_v35 = vmax.f32 %v17896_v40, %v1310_v6  ;;  %v13612_v61 = vpop.f32.mrb[179].mxu1  ;;  %v4593_v27 = vld [vmem:[#allocation2 + $0x44] sm:$0xff] }
 0x24e   : > { %v1514_v37 = vld [vmem:[#allocation2 + $0x51] sm:$0xff] }
 0x24f   : > { %v18083_v20 = vld [vmem:[#allocation2 + $0x52] sm:$0xff]  ;;  %1466 = vst.msk [vmem:[#allocation2 + $0x68] sm:$0xff] %vm1443_vm2, %v1431_v28  ;;  %v1407_v43 = vadd.f32 %v17953_v3, %v1378_v35  ;;  %13676 = vmatmul.mubr.msk.f32.gmra.mrb[220].mxu1 %vm1443_vm2, %v1514_v37 }
 0x250   : > { %14363 = vmatmul.mubr.msk.f32.gmra.mrb[16].mxu0 %vm1443_vm2, %v18083_v20  ;;  %v1315_v8 = vpop.f32.mrb[180].mxu1  ;;  %13678 = vmatprep.mubr.msk.f32.mxu1 %vm17196_vm0, %v21229_v19 }
 0x251   : > { %14415 = vmatprep.mubr.msk.f32.mxu0 %vm17196_vm0, %v21229_v19  ;;  %v1432_v40 = vmax.f32 %v1407_v43, 0.0  ;;  %v1379_v41 = vmax.f32 %v17901_v52, %v1315_v8  ;;  %v13615_v44 = vpop.f32.mrb[181].mxu1  ;;  %v4594_v43 = vld [vmem:[#allocation2 + $0x4c] sm:$0xff] }
 0x252   : > { %v1515_v33 = vld [vmem:[#allocation2 + $0x59] sm:$0xff] }
 0x253   : > { %1467 = vst.msk [vmem:[#allocation2 + $0x70] sm:$0xff] %vm1443_vm2, %v1432_v40  ;;  %v1408_v10 = vadd.f32 %v17953_v3, %v1379_v41  ;;  %13679 = vmatmul.mubr.msk.f32.gmra.mrb[222].mxu1 %vm1443_vm2, %v1515_v33  ;;  %v4595_v33 = vld [vmem:[#allocation2 + $0x54] sm:$0xff] }
 0x254   : > { %14416 = vmatmul.mubr.msk.f32.vlgmr.msra.gmra.mrb[0].mxu0 %vm1443_vm2, %v4588_v13  ;;  %v1320_v47 = vpop.f32.mrb[182].mxu1  ;;  %13681 = vmatprep.mubr.msk.f32.mxu1 %vm17196_vm0, %v21229_v19 }
 0x255   : > { %14491 = vmatpush3.msra.mxu0 %v4929_v9  ;;  %v1433_v52 = vmax.f32 %v1408_v10, 0.0  ;;  %v1380_v22 = vmax.f32 %v17906_v5, %v1320_v47  ;;  %14418 = vmatprep.mubr.msk.f32.mxu0 %vm17196_vm0, %v21229_v19  ;;  %v13618_v36 = vpop.f32.mrb[183].mxu1 }
 0x256   : > { %14567 = vmatprep.subr.mxu0 %v21229_v19  ;;  %v1516_v12 = vld [vmem:[#allocation2 + $0x61] sm:$0xff] }
 0x257   : > { %1468 = vst.msk [vmem:[#allocation2 + $0x78] sm:$0xff] %vm1443_vm2, %v1433_v52  ;;  %v1409_v39 = vadd.f32 %v17953_v3, %v1380_v22  ;;  %13682 = vmatmul.mubr.msk.f32.gmra.mrb[224].mxu1 %vm1443_vm2, %v1516_v12  ;;  %v4596_v36 = vld [vmem:[#allocation2 + $0x5c] sm:$0xff] }
 0x258   : > { %14419 = vmatmul.mubr.msk.f32.gmra.mrb[2].mxu0 %vm1443_vm2, %v4589_v58  ;;  %v1325_v53 = vpop.f32.mrb[184].mxu1  ;;  %13684 = vmatprep.mubr.msk.f32.mxu1 %vm17196_vm0, %v21229_v19 }
 0x259   : > { %14421 = vmatprep.mubr.msk.f32.mxu0 %vm17196_vm0, %v21229_v19  ;;  %v1434_v5 = vmax.f32 %v1409_v39, 0.0  ;;  %v1381_v11 = vmax.f32 %v17911_v26, %v1325_v53  ;;  %v13621_v15 = vpop.f32.mrb[185].mxu1 }
 0x25a   : > { %v1517_v63 = vld [vmem:[#allocation2 + $0x69] sm:$0xff] }
 0x25b   : > { %1469 = vst.msk [vmem:[#allocation2 + $0x80] sm:$0xff] %vm1443_vm2, %v1434_v5  ;;  %v1410_v45 = vadd.f32 %v17953_v3, %v1381_v11  ;;  %13685 = vmatmul.mubr.msk.f32.gmra.mrb[226].mxu1 %vm1443_vm2, %v1517_v63  ;;  %v4597_v11 = vld [vmem:[#allocation2 + $0x64] sm:$0xff] }
 0x25c   : > { %14422 = vmatmul.mubr.msk.f32.gmra.mrb[4].mxu0 %vm1443_vm2, %v4590_v17  ;;  %v1330_v60 = vpop.f32.mrb[186].mxu1  ;;  %13687 = vmatprep.mubr.msk.f32.mxu1 %vm17196_vm0, %v21229_v19 }
 0x25d   : > { %14424 = vmatprep.mubr.msk.f32.mxu0 %vm17196_vm0, %v21229_v19  ;;  %v1435_v38 = vmax.f32 %v1410_v45, 0.0  ;;  %v1382_v26 = vmax.f32 %v17916_v50, %v1330_v60  ;;  %v13624_v46 = vpop.f32.mrb[187].mxu1 }
 0x25e   : > { %v1518_v48 = vld [vmem:[#allocation2 + $0x71] sm:$0xff] }
 0x25f   : > { %1470 = vst.msk [vmem:[#allocation2 + $0x88] sm:$0xff] %vm1443_vm2, %v1435_v38  ;;  %v1411_v62 = vadd.f32 %v17953_v3, %v1382_v26  ;;  %13688 = vmatmul.mubr.msk.f32.gmra.mrb[228].mxu1 %vm1443_vm2, %v1518_v48  ;;  %v4599_v45 = vld [vmem:[#allocation2 + $0x74] sm:$0xff]  ;;  %v1478_v48 = vld [vmem:[#allocation2] sm:$0xff] }
 0x260   : > { %14425 = vmatmul.mubr.msk.f32.gmra.mrb[6].mxu0 %vm1443_vm2, %v4591_v59  ;;  %v1335_v7 = vpop.f32.mrb[188].mxu1  ;;  %13690 = vmatprep.mubr.msk.f32.mxu1 %vm17196_vm0, %v21229_v19 }
 0x261   : > { %14427 = vmatprep.mubr.msk.f32.mxu0 %vm17196_vm0, %v21229_v19  ;;  %v1436_v23 = vmax.f32 %v1411_v62, 0.0  ;;  %v1383_v50 = vmax.f32 %v17923_v18, %v1335_v7  ;;  %v13627_v51 = vpop.f32.mrb[189].mxu1  ;;  %v2085_v62 = vld [vmem:[%s21163_s1 + $0x20] sm:$0xff]  ;;  %v1479_v7 = vld [vmem:[#allocation2 + $0x8] sm:$0xff] }
 0x262   : > { %v1519_v2 = vld [vmem:[#allocation2 + $0x79] sm:$0xff] }
 0x263   : > { %1471 = vst.msk [vmem:[#allocation2 + $0x90] sm:$0xff] %vm1443_vm2, %v1436_v23  ;;  %v1412_v24 = vadd.f32 %v17953_v3, %v1383_v50  ;;  %13691 = vmatmul.mubr.msk.f32.gmra.mrb[230].mxu1 %vm1443_vm2, %v1519_v2  ;;  %v4600_v38 = vld [vmem:[#allocation2 + $0x7c] sm:$0xff]  ;;  %v1480_v50 = vld [vmem:[#allocation2 + $0x10] sm:$0xff] }
 0x264   : > { %14428 = vmatmul.mubr.msk.f32.gmra.mrb[8].mxu0 %vm1443_vm2, %v4592_v1  ;;  %v1340_v16 = vpop.f32.mrb[190].mxu1  ;;  %13693 = vmatprep.mubr.msk.f32.mxu1 %vm17196_vm0, %v21229_v19  ;;  %v1481_v2 = vld [vmem:[#allocation2 + $0x18] sm:$0xff] }
 0x265   : > { %14430 = vmatprep.mubr.msk.f32.mxu0 %vm17196_vm0, %v21229_v19  ;;  %v1437_v54 = vmax.f32 %v1412_v24, 0.0  ;;  %v1384_v18 = vmax.f32 %v17928_v25, %v1340_v16  ;;  %v13630_v4 = vpop.f32.mrb[191].mxu1  ;;  %v1482_v24 = vld [vmem:[#allocation2 + $0x20] sm:$0xff] }
 0x266   : > { %v1520_v29 = vld [vmem:[#allocation2 + $0x81] sm:$0xff]  ;;  %v1484_v4 = vld [vmem:[#allocation2 + $0x30] sm:$0xff] }
 0x267   : > { %1472 = vst.msk [vmem:[#allocation2 + $0x98] sm:$0xff] %vm1443_vm2, %v1437_v54  ;;  %v1413_v6 = vadd.f32 %v17953_v3, %v1384_v18  ;;  %13694 = vmatmul.mubr.msk.f32.gmra.mrb[232].mxu1 %vm1443_vm2, %v1520_v29  ;;  %v4601_v46 = vld [vmem:[#allocation2 + $0x84] sm:$0xff] }
 0x268   : > { %14431 = vmatmul.mubr.msk.f32.gmra.mrb[10].mxu0 %vm1443_vm2, %v4593_v27  ;;  %v1345_v28 = vpop.f32.mrb[192].mxu1  ;;  %13696 = vmatprep.mubr.msk.f32.mxu1 %vm17196_vm0, %v21229_v19  ;;  %v1483_v54 = vld [vmem:[#allocation2 + $0x28] sm:$0xff] }
 0x269   : > { %14433 = vmatprep.mubr.msk.f32.mxu0 %vm17196_vm0, %v21229_v19  ;;  %v1438_v35 = vmax.f32 %v1413_v6, 0.0  ;;  %v1385_v25 = vmax.f32 %v17933_v32, %v1345_v28  ;;  %v13633_v61 = vpop.f32.mrb[193].mxu1  ;;  %v4609_v27 = vld [vmem:[#allocation2 + $0xc4] sm:$0xff]  ;;  %v1485_v6 = vld [vmem:[#allocation2 + $0x38] sm:$0xff]  ;;  %v4610_v28 = vld [vmem:[#allocation2 + $0xcc] sm:$0xff] }
 0x26a   : > { %v1521_v37 = vld [vmem:[#allocation2 + $0x89] sm:$0xff] }
 0x26b   : > { %1473 = vst.msk [vmem:[#allocation2 + $0xa0] sm:$0xff] %vm1443_vm2, %v1438_v35  ;;  %v1414_v8 = vadd.f32 %v17953_v3, %v1385_v25  ;;  %13697 = vmatmul.mubr.msk.f32.gmra.mrb[234].mxu1 %vm1443_vm2, %v1521_v37  ;;  %v4602_v59 = vld [vmem:[#allocation2 + $0x8c] sm:$0xff]  ;;  %v1486_v35 = vld [vmem:[#allocation2 + $0x40] sm:$0xff]  ;;  %v4611_v25 = vld [vmem:[#allocation2 + $0xd4] sm:$0xff] }
 0x26c   : > { %14434 = vmatmul.mubr.msk.f32.gmra.mrb[12].mxu0 %vm1443_vm2, %v4594_v43  ;;  %v1350_v40 = vpop.f32.mrb[194].mxu1  ;;  %13699 = vmatprep.mubr.msk.f32.mxu1 %vm17196_vm0, %v21229_v19  ;;  %v1487_v61 = vld [vmem:[#allocation2 + $0x48] sm:$0xff]  ;;  %v4612_v37 = vld [vmem:[#allocation2 + $0xdc] sm:$0xf]  ;;  %v1488_v43 = vld [vmem:[#allocation2 + $0x50] sm:$0xff] }
 0x26d   : > { %14436 = vmatprep.mubr.msk.f32.mxu0 %vm17196_vm0, %v21229_v19  ;;  %v1439_v41 = vmax.f32 %v1414_v8, 0.0  ;;  %v1386_v32 = vmax.f32 %v17938_v34, %v1350_v40  ;;  %v13636_v44 = vpop.f32.mrb[195].mxu1  ;;  %v5245_v8 = vld [vmem:[%s21163_s1 + $0x70] sm:$0xff]  ;;  %v1489_v40 = vld [vmem:[#allocation2 + $0x58] sm:$0xff] }
 0x26e   : > { %v1522_v9 = vld [vmem:[#allocation2 + $0x91] sm:$0xff]  ;;  %v4905_v44 = vld [vmem:[#allocation2 + $0x25] sm:$0xff] }
 0x26f   : > { %1474 = vst.msk [vmem:[#allocation2 + $0xa8] sm:$0xff] %vm1443_vm2, %v1439_v41  ;;  %v1415_v13 = vadd.f32 %v17953_v3, %v1386_v32  ;;  %13700 = vmatmul.mubr.msk.f32.gmra.mrb[236].mxu1 %vm1443_vm2, %v1522_v9  ;;  %v4603_v23 = vld [vmem:[#allocation2 + $0x94] sm:$0xff]  ;;  %v4904_v41 = vld [vmem:[#allocation2 + $0x1d] sm:$0xff]  ;;  %v18302_v9 = vld [vmem:[#allocation2 + $0x68] sm:$0xff] }
 0x270   : > { %14437 = vmatmul.mubr.msk.f32.gmra.mrb[14].mxu0 %vm1443_vm2, %v4595_v33  ;;  %v1355_v10 = vpop.f32.mrb[196].mxu1  ;;  %13702 = vmatprep.mubr.msk.f32.mxu1 %vm17196_vm0, %v21229_v19  ;;  %v18293_v32 = vld [vmem:[#allocation2 + $0x60] sm:$0xff]  ;;  %v4906_v33 = vld [vmem:[#allocation2 + $0x2d] sm:$0xff] }
 0x271   : > { %14439 = vmatprep.mubr.msk.f32.mxu0 %vm17196_vm0, %v21229_v19  ;;  %v1440_v47 = vmax.f32 %v1415_v13, 0.0  ;;  %v1387_v34 = vmax.f32 %v17943_v56, %v1355_v10  ;;  %v13639_v52 = vpop.f32.mrb[197].mxu1  ;;  %v18311_v13 = vld [vmem:[#allocation2 + $0x70] sm:$0xff] }
 0x272   : > { %v1523_v22 = vld [vmem:[#allocation2 + $0x99] sm:$0xff] }
 0x273   : > { %1475 = vst.msk [vmem:[#allocation2 + $0xb0] sm:$0xff] %vm1443_vm2, %v1440_v47  ;;  %v1416_v12 = vadd.f32 %v17953_v3, %v1387_v34  ;;  %13703 = vmatmul.mubr.msk.f32.gmra.mrb[238].mxu1 %vm1443_vm2, %v1523_v22  ;;  %v4604_v51 = vld [vmem:[#allocation2 + $0x9c] sm:$0xff]  ;;  %v4909_v22 = vld [vmem:[#allocation2 + $0x45] sm:$0xff] }
 0x274   : > { %14440 = vmatmul.mubr.msk.f32.gmra.mrb[16].mxu0 %vm1443_vm2, %v4596_v36  ;;  %v1360_v58 = vpop.f32.mrb[198].mxu1  ;;  %13705 = vmatprep.mubr.msk.f32.mxu1 %vm17196_vm0, %v21229_v19  ;;  %v4907_v10 = vld [vmem:[#allocation2 + $0x35] sm:$0xff]  ;;  %v4908_v34 = vld [vmem:[#allocation2 + $0x3d] sm:$0xff]  ;;  %v18338_v36 = vld [vmem:[#allocation2 + $0x88] sm:$0xff] }
 0x275   : > { %14442 = vmatprep.mubr.msk.f32.mxu0 %vm17196_vm0, %v21229_v19  ;;  %v1441_v39 = vmax.f32 %v1416_v12, 0.0  ;;  %v1388_v56 = vmax.f32 %v17948_v14, %v1360_v58  ;;  %v13642_v53 = vpop.f32.mrb[199].mxu1  ;;  %v4598_v14 = vld [vmem:[#allocation2 + $0x6c] sm:$0xff]  ;;  %v18320_v47 = vld [vmem:[#allocation2 + $0x78] sm:$0xff]  ;;  %v18329_v52 = vld [vmem:[#allocation2 + $0x80] sm:$0xff] }
 0x276   : > { %v1524_v5 = vld [vmem:[#allocation2 + $0xa1] sm:$0xff]  ;;  %v4910_v12 = vld [vmem:[#allocation2 + $0x4d] sm:$0xff] }
 0x277   : > { %1476 = vst.msk [vmem:[#allocation2 + $0xb8] sm:$0xff] %vm1443_vm2, %v1441_v39  ;;  %v1417_v15 = vadd.f32 %v17953_v3, %v1388_v56  ;;  %13706 = vmatmul.mubr.msk.f32.gmra.mrb[240].mxu1 %vm1443_vm2, %v1524_v5  ;;  %v4605_v1 = vld [vmem:[#allocation2 + $0xa4] sm:$0xff]  ;;  %v1496_v58 = vld [vmem:[#allocation2 + $0x90] sm:$0xff]  ;;  %v1497_v56 = vld [vmem:[#allocation2 + $0x98] sm:$0xff] }
 0x278   : > { %14443 = vmatmul.mubr.msk.f32.gmra.mrb[18].mxu0 %vm1443_vm2, %v4597_v11  ;;  %13708 = vmatprep.mubr.msk.f32.mxu1 %vm17196_vm0, %v21229_v19  ;;  %v4911_v39 = vld [vmem:[#allocation2 + $0x55] sm:$0xff]  ;;  %v4912_v53 = vld [vmem:[#allocation2 + $0x5d] sm:$0xff]  ;;  %v4913_v11 = vld [vmem:[#allocation2 + $0x65] sm:$0xff] }
 0x279   : > { %14445 = vmatprep.mubr.msk.f32.mxu0 %vm17196_vm0, %v21229_v19  ;;  %v1442_v63 = vmax.f32 %v1417_v15, 0.0  ;;  %v1498_v5 = vld [vmem:[#allocation2 + $0xa0] sm:$0xff]  ;;  %v1499_v15 = vld [vmem:[#allocation2 + $0xa8] sm:$0xff] }
 0x27a   : > { %v1525_v17 = vld [vmem:[#allocation2 + $0xa9] sm:$0xff] }
 0x27b   : > { %1477 = vst.msk [vmem:[#allocation2 + $0xc0] sm:$0xf] %vm1451_vm3, %v1442_v63  ;;  %13709 = vmatmul.mubr.msk.f32.gmra.mrb[242].mxu1 %vm1443_vm2, %v1525_v17  ;;  %v4606_v16 = vld [vmem:[#allocation2 + $0xac] sm:$0xff] }
 0x27c   : > { %14446 = vmatmul.mubr.msk.f32.gmra.mrb[20].mxu0 %vm1443_vm2, %v4598_v14  ;;  %13711 = vmatprep.mubr.msk.f32.mxu1 %vm17196_vm0, %v21229_v19  ;;  %v4914_v63 = vld [vmem:[#allocation2 + $0x6d] sm:$0xff]  ;;  %v4915_v14 = vld [vmem:[#allocation2 + $0x75] sm:$0xff] }
 0x27d   : > { %14448 = vmatprep.mubr.msk.f32.mxu0 %vm17196_vm0, %v21229_v19  ;;  %v1500_v17 = vld [vmem:[#allocation2 + $0xb0] sm:$0xff] }
 0x27e   : > { %v1526_v3 = vld [vmem:[#allocation2 + $0xb1] sm:$0xff] }
 0x27f   : > { %13712 = vmatmul.mubr.msk.f32.gmra.mrb[244].mxu1 %vm1443_vm2, %v1526_v3  ;;  %v4607_v18 = vld [vmem:[#allocation2 + $0xb4] sm:$0xff] }
 0x280   : > { %14449 = vmatmul.mubr.msk.f32.gmra.mrb[22].mxu0 %vm1443_vm2, %v4599_v45  ;;  %13714 = vmatprep.mubr.msk.f32.mxu1 %vm17196_vm0, %v21229_v19  ;;  %v1501_v3 = vld [vmem:[#allocation2 + $0xb8] sm:$0xff] }
 0x281   : > { %14451 = vmatprep.mubr.msk.f32.mxu0 %vm17196_vm0, %v21229_v19  ;;  %v4916_v45 = vld [vmem:[#allocation2 + $0x7d] sm:$0xff] }
 0x282   : > { %v1527_v60 = vld [vmem:[#allocation2 + $0xb9] sm:$0xff]  ;;  %v1528_v26 = vld [vmem:[#allocation2 + $0xc1] sm:$0xf] }
 0x283   : > { %13715 = vmatmul.mubr.msk.f32.gmra.mrb[246].mxu1 %vm1443_vm2, %v1527_v60  ;;  %v4608_v29 = vld [vmem:[#allocation2 + $0xbc] sm:$0xff] }
 0x284   : > { %14452 = vmatmul.mubr.msk.f32.gmra.mrb[24].mxu0 %vm1443_vm2, %v4600_v38  ;;  %13717 = vmatprep.mubr.msk.f32.mxu1 %vm17196_vm0, %v21229_v19  ;;  %v1502_v60 = vld [vmem:[#allocation2 + $0xc0] sm:$0xf]  ;;  %v4917_v38 = vld [vmem:[#allocation2 + $0x85] sm:$0xff] }
 0x285   : > { %14454 = vmatprep.mubr.msk.f32.mxu0 %vm17196_vm0, %v21229_v19 }
 0x287   : > { %13718 = vmatmul.mubr.msk.f32.gmra.mrb[248].mxu1 %vm1443_vm2, %v1528_v26  ;;  %v2060_v26 = vld [vmem:[#allocation2 + $0x2] sm:$0xff] }
 0x288   : > { %14455 = vmatmul.mubr.msk.f32.gmra.mrb[26].mxu0 %vm1443_vm2, %v4601_v46  ;;  %13722 = vmatprep.mubr.msk.f32.mxu1 %vm17196_vm0, %v21229_v19  ;;  %v4918_v46 = vld [vmem:[#allocation2 + $0x8d] sm:$0xff] }
 0x289   : > { %14457 = vmatprep.mubr.msk.f32.mxu0 %vm17196_vm0, %v21229_v19 }
 0x28b   : > { %13723 = vmatmul.mubr.msk.f32.vlgmr.msra.gmra.mrb[200].mxu1 %vm1443_vm2, %v1478_v48  ;;  %v2401_v48 = vld [vmem:[%s21163_s1 + $0x28] sm:$0xff] }
 0x28c   : > { %14458 = vmatmul.mubr.msk.f32.gmra.mrb[28].mxu0 %vm1443_vm2, %v4602_v59  ;;  %13725 = vmatprep.mubr.msk.f32.mxu1 %vm17196_vm0, %v21229_v19  ;;  %v2061_v59 = vld [vmem:[#allocation2 + $0xa] sm:$0xff] }
 0x28d   : > { %14460 = vmatprep.mubr.msk.f32.mxu0 %vm17196_vm0, %v21229_v19  ;;  %13798 = vmatpush3.msra.mxu1 %v2085_v62  ;;  %v4919_v62 = vld [vmem:[#allocation2 + $0x95] sm:$0xff] }
 0x28e   : > { %13874 = vmatprep.subr.mxu1 %v21229_v19 }
 0x28f   : > { %13726 = vmatmul.mubr.msk.f32.gmra.mrb[202].mxu1 %vm1443_vm2, %v1479_v7  ;;  %v4920_v7 = vld [vmem:[#allocation2 + $0x9d] sm:$0xff] }
 0x290   : > { %14461 = vmatmul.mubr.msk.f32.gmra.mrb[30].mxu0 %vm1443_vm2, %v4603_v23  ;;  %13728 = vmatprep.mubr.msk.f32.mxu1 %vm17196_vm0, %v21229_v19  ;;  %v4921_v23 = vld [vmem:[#allocation2 + $0xa5] sm:$0xff] }
 0x291   : > { %14463 = vmatprep.mubr.msk.f32.mxu0 %vm17196_vm0, %v21229_v19 }
 0x293   : > { %13729 = vmatmul.mubr.msk.f32.gmra.mrb[204].mxu1 %vm1443_vm2, %v1480_v50  ;;  %v18471_v50 = vld [vmem:[#allocation2 + $0x5a] sm:$0xff] }
 0x294   : > { %14464 = vmatmul.mubr.msk.f32.gmra.mrb[32].mxu0 %vm1443_vm2, %v4604_v51  ;;  %13731 = vmatprep.mubr.msk.f32.mxu1 %vm17196_vm0, %v21229_v19  ;;  %v18473_v51 = vld [vmem:[#allocation2 + $0x1e] sm:$0xff] }
 0x295   : > { %14466 = vmatprep.mubr.msk.f32.mxu0 %vm17196_vm0, %v21229_v19 }
 0x297   : > { %13732 = vmatmul.mubr.msk.f32.gmra.mrb[206].mxu1 %vm1443_vm2, %v1481_v2  ;;  %v18486_v2 = vld [vmem:[#allocation2 + $0x26] sm:$0xff] }
 0x298   : > { %14467 = vmatmul.mubr.msk.f32.gmra.mrb[34].mxu0 %vm1443_vm2, %v4605_v1  ;;  %13734 = vmatprep.mubr.msk.f32.mxu1 %vm17196_vm0, %v21229_v19  ;;  %v18496_v1 = vld [vmem:[#allocation2 + $0x6a] sm:$0xff] }
 0x299   : > { %14469 = vmatprep.mubr.msk.f32.mxu0 %vm17196_vm0, %v21229_v19 }
 0x29b   : > { %13735 = vmatmul.mubr.msk.f32.gmra.mrb[208].mxu1 %vm1443_vm2, %v1482_v24  ;;  %v18498_v24 = vld [vmem:[#allocation2 + $0x2e] sm:$0xff] }
 0x29c   : > { %14470 = vmatmul.mubr.msk.f32.gmra.mrb[36].mxu0 %vm1443_vm2, %v4606_v16  ;;  %13737 = vmatprep.mubr.msk.f32.mxu1 %vm17196_vm0, %v21229_v19  ;;  %v18508_v16 = vld [vmem:[#allocation2 + $0x72] sm:$0xff] }
 0x29d   : > { %14472 = vmatprep.mubr.msk.f32.mxu0 %vm17196_vm0, %v21229_v19 }
 0x29f   : > { %13738 = vmatmul.mubr.msk.f32.gmra.mrb[210].mxu1 %vm1443_vm2, %v1483_v54  ;;  %v18510_v54 = vld [vmem:[#allocation2 + $0x36] sm:$0xff] }
 0x2a0   : > { %14473 = vmatmul.mubr.msk.f32.gmra.mrb[38].mxu0 %vm1443_vm2, %v4607_v18  ;;  %13740 = vmatprep.mubr.msk.f32.mxu1 %vm17196_vm0, %v21229_v19  ;;  %v18520_v18 = vld [vmem:[#allocation2 + $0x7a] sm:$0xff] }
 0x2a1   : > { %14475 = vmatprep.mubr.msk.f32.mxu0 %vm17196_vm0, %v21229_v19 }
 0x2a3   : > { %13741 = vmatmul.mubr.msk.f32.gmra.mrb[212].mxu1 %vm1443_vm2, %v1484_v4  ;;  %v18522_v4 = vld [vmem:[#allocation2 + $0x3e] sm:$0xff] }
 0x2a4   : > { %14476 = vmatmul.mubr.msk.f32.gmra.mrb[40].mxu0 %vm1443_vm2, %v4608_v29  ;;  %13743 = vmatprep.mubr.msk.f32.mxu1 %vm17196_vm0, %v21229_v19  ;;  %v18532_v29 = vld [vmem:[#allocation2 + $0x82] sm:$0xff] }
 0x2a5   : > { %14478 = vmatprep.mubr.msk.f32.mxu0 %vm17196_vm0, %v21229_v19 }
 0x2a7   : > { %13744 = vmatmul.mubr.msk.f32.gmra.mrb[214].mxu1 %vm1443_vm2, %v1485_v6  ;;  %v18544_v6 = vld [vmem:[#allocation2 + $0x8a] sm:$0xff] }
 0x2a8   : > { %14479 = vmatmul.mubr.msk.f32.gmra.mrb[42].mxu0 %vm1443_vm2, %v4609_v27  ;;  %13746 = vmatprep.mubr.msk.f32.mxu1 %vm17196_vm0, %v21229_v19  ;;  %v18534_v27 = vld [vmem:[#allocation2 + $0x46] sm:$0xff] }
 0x2a9   : > { %14481 = vmatprep.mubr.msk.f32.mxu0 %vm17196_vm0, %v21229_v19 }
 0x2ab   : > { %13747 = vmatmul.mubr.msk.f32.gmra.mrb[216].mxu1 %vm1443_vm2, %v1486_v35  ;;  %v18556_v35 = vld [vmem:[#allocation2 + $0x92] sm:$0xff] }
 0x2ac   : > { %14482 = vmatmul.mubr.msk.f32.gmra.mrb[44].mxu0 %vm1443_vm2, %v4610_v28  ;;  %13749 = vmatprep.mubr.msk.f32.mxu1 %vm17196_vm0, %v21229_v19  ;;  %v18546_v28 = vld [vmem:[#allocation2 + $0x4e] sm:$0xff] }
 0x2ad   : > { %14484 = vmatprep.mubr.msk.f32.mxu0 %vm17196_vm0, %v21229_v19 }
 0x2af   : > { %13750 = vmatmul.mubr.msk.f32.gmra.mrb[218].mxu1 %vm1443_vm2, %v1487_v61  ;;  %v18568_v61 = vld [vmem:[#allocation2 + $0x9a] sm:$0xff] }
 0x2b0   : > { %14485 = vmatmul.mubr.msk.f32.gmra.mrb[46].mxu0 %vm1443_vm2, %v4611_v25  ;;  %13752 = vmatprep.mubr.msk.f32.mxu1 %vm17196_vm0, %v21229_v19  ;;  %v18558_v25 = vld [vmem:[#allocation2 + $0x56] sm:$0xff] }
 0x2b1   : > { %14487 = vmatprep.mubr.msk.f32.mxu0 %vm17196_vm0, %v21229_v19 }
 0x2b3   : > { %13753 = vmatmul.mubr.msk.f32.gmra.mrb[220].mxu1 %vm1443_vm2, %v1488_v43  ;;  %v18580_v43 = vld [vmem:[#allocation2 + $0xa2] sm:$0xff] }
 0x2b4   : > { %14488 = vmatmul.mubr.msk.f32.gmra.mrb[48].mxu0 %vm1443_vm2, %v4612_v37  ;;  %13755 = vmatprep.mubr.msk.f32.mxu1 %vm17196_vm0, %v21229_v19  ;;  %v18570_v37 = vld [vmem:[#allocation2 + $0x5e] sm:$0xff] }
 0x2b5   : > { %14492 = vmatprep.mubr.msk.f32.mxu0 %vm17196_vm0, %v21229_v19 }
 0x2b7   : > { %13756 = vmatmul.mubr.msk.f32.gmra.mrb[222].mxu1 %vm1443_vm2, %v1489_v40  ;;  %v18592_v40 = vld [vmem:[#allocation2 + $0xaa] sm:$0xff] }
 0x2b8   : > { %14493 = vmatmul.mubr.msk.f32.vlgmr.msra.gmra.mrb[0].mxu0 %vm1443_vm2, %v4904_v41  ;;  %13758 = vmatprep.mubr.msk.f32.mxu1 %vm17196_vm0, %v21229_v19  ;;  %v18594_v41 = vld [vmem:[#allocation2 + $0x6e] sm:$0xff] }
 0x2b9   : > { %14568 = vmatpush3.msra.mxu0 %v5245_v8  ;;  %14495 = vmatprep.mubr.msk.f32.mxu0 %vm17196_vm0, %v21229_v19  ;;  %v18582_v8 = vld [vmem:[#allocation2 + $0x66] sm:$0xff] }
 0x2ba   : > { %14644 = vmatprep.subr.mxu0 %v21229_v19 }
 0x2bb   : > { %13759 = vmatmul.mubr.msk.f32.gmra.mrb[224].mxu1 %vm1443_vm2, %v18293_v32 }
 0x2bc   : > { %14496 = vmatmul.mubr.msk.f32.gmra.mrb[2].mxu0 %vm1443_vm2, %v4905_v44  ;;  %13761 = vmatprep.mubr.msk.f32.mxu1 %vm17196_vm0, %v21229_v19  ;;  %v18604_v44 = vld [vmem:[#allocation2 + $0xb2] sm:$0xff] }
 0x2bd   : > { %14498 = vmatprep.mubr.msk.f32.mxu0 %vm17196_vm0, %v21229_v19 }
 0x2bf   : > { %13762 = vmatmul.mubr.msk.f32.gmra.mrb[226].mxu1 %vm1443_vm2, %v18302_v9 }
 0x2c0   : > { %14499 = vmatmul.mubr.msk.f32.gmra.mrb[4].mxu0 %vm1443_vm2, %v4906_v33  ;;  %13764 = vmatprep.mubr.msk.f32.mxu1 %vm17196_vm0, %v21229_v19  ;;  %v18606_v33 = vld [vmem:[#allocation2 + $0x76] sm:$0xff] }
 0x2c1   : > { %14501 = vmatprep.mubr.msk.f32.mxu0 %vm17196_vm0, %v21229_v19 }
 0x2c3   : > { %13765 = vmatmul.mubr.msk.f32.gmra.mrb[228].mxu1 %vm1443_vm2, %v18311_v13 }
 0x2c4   : > { %14502 = vmatmul.mubr.msk.f32.gmra.mrb[6].mxu0 %vm1443_vm2, %v4907_v10  ;;  %13767 = vmatprep.mubr.msk.f32.mxu1 %vm17196_vm0, %v21229_v19  ;;  %v18616_v10 = vld [vmem:[#allocation2 + $0xba] sm:$0xff] }
 0x2c5   : > { %14504 = vmatprep.mubr.msk.f32.mxu0 %vm17196_vm0, %v21229_v19 }
 0x2c7   : > { %13768 = vmatmul.mubr.msk.f32.gmra.mrb[230].mxu1 %vm1443_vm2, %v18320_v47 }
 0x2c8   : > { %14505 = vmatmul.mubr.msk.f32.gmra.mrb[8].mxu0 %vm1443_vm2, %v4908_v34  ;;  %13770 = vmatprep.mubr.msk.f32.mxu1 %vm17196_vm0, %v21229_v19  ;;  %v18618_v34 = vld [vmem:[#allocation2 + $0x7e] sm:$0xff] }
 0x2c9   : > { %14507 = vmatprep.mubr.msk.f32.mxu0 %vm17196_vm0, %v21229_v19 }
 0x2cb   : > { %13771 = vmatmul.mubr.msk.f32.gmra.mrb[232].mxu1 %vm1443_vm2, %v18329_v52 }
 0x2cc   : > { %14508 = vmatmul.mubr.msk.f32.gmra.mrb[10].mxu0 %vm1443_vm2, %v4909_v22  ;;  %13773 = vmatprep.mubr.msk.f32.mxu1 %vm17196_vm0, %v21229_v19  ;;  %v2084_v22 = vld [vmem:[#allocation2 + $0xc2] sm:$0xf] }
 0x2cd   : > { %14510 = vmatprep.mubr.msk.f32.mxu0 %vm17196_vm0, %v21229_v19 }
 0x2cf   : > { %13774 = vmatmul.mubr.msk.f32.gmra.mrb[234].mxu1 %vm1443_vm2, %v18338_v36 }
 0x2d0   : > { %14511 = vmatmul.mubr.msk.f32.gmra.mrb[12].mxu0 %vm1443_vm2, %v4910_v12  ;;  %13776 = vmatprep.mubr.msk.f32.mxu1 %vm17196_vm0, %v21229_v19  ;;  %v18628_v12 = vld [vmem:[#allocation2 + $0x86] sm:$0xff] }
 0x2d1   : > { %14513 = vmatprep.mubr.msk.f32.mxu0 %vm17196_vm0, %v21229_v19 }
 0x2d3   : > { %13777 = vmatmul.mubr.msk.f32.gmra.mrb[236].mxu1 %vm1443_vm2, %v1496_v58  ;;  %v2376_v58 = vld [vmem:[#allocation2 + $0x3] sm:$0xff] }
 0x2d4   : > { %14514 = vmatmul.mubr.msk.f32.gmra.mrb[14].mxu0 %vm1443_vm2, %v4911_v39  ;;  %13779 = vmatprep.mubr.msk.f32.mxu1 %vm17196_vm0, %v21229_v19  ;;  %v18637_v39 = vld [vmem:[#allocation2 + $0x8e] sm:$0xff] }
 0x2d5   : > { %14516 = vmatprep.mubr.msk.f32.mxu0 %vm17196_vm0, %v21229_v19 }
 0x2d7   : > { %13780 = vmatmul.mubr.msk.f32.gmra.mrb[238].mxu1 %vm1443_vm2, %v1497_v56  ;;  %v2717_v56 = vld [vmem:[%s21163_s1 + $0x30] sm:$0xff] }
 0x2d8   : > { %14517 = vmatmul.mubr.msk.f32.gmra.mrb[16].mxu0 %vm1443_vm2, %v4912_v53  ;;  %13782 = vmatprep.mubr.msk.f32.mxu1 %vm17196_vm0, %v21229_v19  ;;  %v2377_v53 = vld [vmem:[#allocation2 + $0xb] sm:$0xff] }
 0x2d9   : > { %14519 = vmatprep.mubr.msk.f32.mxu0 %vm17196_vm0, %v21229_v19 }
 0x2db   : > { %13783 = vmatmul.mubr.msk.f32.gmra.mrb[240].mxu1 %vm1443_vm2, %v1498_v5  ;;  %v18649_v5 = vld [vmem:[#allocation2 + $0x96] sm:$0xff] }
 0x2dc   : > { %14520 = vmatmul.mubr.msk.f32.gmra.mrb[18].mxu0 %vm1443_vm2, %v4913_v11  ;;  %13785 = vmatprep.mubr.msk.f32.mxu1 %vm17196_vm0, %v21229_v19  ;;  %v2378_v11 = vld [vmem:[#allocation2 + $0x13] sm:$0xff] }
 0x2dd   : > { %14522 = vmatprep.mubr.msk.f32.mxu0 %vm17196_vm0, %v21229_v19 }
 0x2df   : > { %13786 = vmatmul.mubr.msk.f32.gmra.mrb[242].mxu1 %vm1443_vm2, %v1499_v15  ;;  %v18659_v15 = vld [vmem:[#allocation2 + $0x9e] sm:$0xff] }
 0x2e0   : > { %14523 = vmatmul.mubr.msk.f32.gmra.mrb[20].mxu0 %vm1443_vm2, %v4914_v63  ;;  %13788 = vmatprep.mubr.msk.f32.mxu1 %vm17196_vm0, %v21229_v19  ;;  %v2379_v63 = vld [vmem:[#allocation2 + $0x1b] sm:$0xff] }
 0x2e1   : > { %14525 = vmatprep.mubr.msk.f32.mxu0 %vm17196_vm0, %v21229_v19 }
 0x2e3   : > { %13789 = vmatmul.mubr.msk.f32.gmra.mrb[244].mxu1 %vm1443_vm2, %v1500_v17  ;;  %v18668_v17 = vld [vmem:[#allocation2 + $0xa6] sm:$0xff] }
 0x2e4   : > { %14526 = vmatmul.mubr.msk.f32.gmra.mrb[22].mxu0 %vm1443_vm2, %v4915_v14  ;;  %13791 = vmatprep.mubr.msk.f32.mxu1 %vm17196_vm0, %v21229_v19  ;;  %v2380_v14 = vld [vmem:[#allocation2 + $0x23] sm:$0xff] }
 0x2e5   : > { %14528 = vmatprep.mubr.msk.f32.mxu0 %vm17196_vm0, %v21229_v19 }
 0x2e7   : > { %13792 = vmatmul.mubr.msk.f32.gmra.mrb[246].mxu1 %vm1443_vm2, %v1501_v3  ;;  %v18677_v3 = vld [vmem:[#allocation2 + $0xae] sm:$0xff] }
 0x2e8   : > { %14529 = vmatmul.mubr.msk.f32.gmra.mrb[24].mxu0 %vm1443_vm2, %v4916_v45  ;;  %13794 = vmatprep.mubr.msk.f32.mxu1 %vm17196_vm0, %v21229_v19  ;;  %v18686_v45 = vld [vmem:[#allocation2 + $0x2b] sm:$0xff] }
 0x2e9   : > { %14531 = vmatprep.mubr.msk.f32.mxu0 %vm17196_vm0, %v21229_v19 }
 0x2eb   : > { %13795 = vmatmul.mubr.msk.f32.gmra.mrb[248].mxu1 %vm1443_vm2, %v1502_v60  ;;  %v18688_v60 = vld [vmem:[#allocation2 + $0xb6] sm:$0xff] }
 0x2ec   : > { %14532 = vmatmul.mubr.msk.f32.gmra.mrb[26].mxu0 %vm1443_vm2, %v4917_v38  ;;  %13799 = vmatprep.mubr.msk.f32.mxu1 %vm17196_vm0, %v21229_v19  ;;  %v18698_v38 = vld [vmem:[#allocation2 + $0x33] sm:$0xff] }
 0x2ed   : > { %14534 = vmatprep.mubr.msk.f32.mxu0 %vm17196_vm0, %v21229_v19 }
 0x2ef   : > { %13800 = vmatmul.mubr.msk.f32.vlgmr.msra.gmra.mrb[200].mxu1 %vm1443_vm2, %v2060_v26  ;;  %v18700_v26 = vld [vmem:[#allocation2 + $0xbe] sm:$0xff] }
 0x2f0   : > { %14535 = vmatmul.mubr.msk.f32.gmra.mrb[28].mxu0 %vm1443_vm2, %v4918_v46  ;;  %13802 = vmatprep.mubr.msk.f32.mxu1 %vm17196_vm0, %v21229_v19  ;;  %v18710_v46 = vld [vmem:[#allocation2 + $0xc6] sm:$0xff] }
 0x2f1   : > { %14537 = vmatprep.mubr.msk.f32.mxu0 %vm17196_vm0, %v21229_v19  ;;  %13875 = vmatpush3.msra.mxu1 %v2401_v48  ;;  %v18712_v48 = vld [vmem:[#allocation2 + $0x3b] sm:$0xff] }
 0x2f2   : > { %13951 = vmatprep.subr.mxu1 %v21229_v19 }
 0x2f3   : > { %13803 = vmatmul.mubr.msk.f32.gmra.mrb[202].mxu1 %vm1443_vm2, %v2061_v59  ;;  %v5242_v59 = vld [vmem:[#allocation2 + $0xce] sm:$0xff] }
 0x2f4   : > { %14538 = vmatmul.mubr.msk.f32.gmra.mrb[30].mxu0 %vm1443_vm2, %v4919_v62  ;;  %13805 = vmatprep.mubr.msk.f32.mxu1 %vm17196_vm0, %v21229_v19  ;;  %v18722_v62 = vld [vmem:[#allocation2 + $0x43] sm:$0xff] }
 0x2f5   : > { %14540 = vmatprep.mubr.msk.f32.mxu0 %vm17196_vm0, %v21229_v19 }
 0x2f7   : > { %13806 = vmatmul.mubr.msk.f32.gmra.mrb[204].mxu1 %vm1443_vm2, %v17986_v57  ;;  %v4922_v57 = vld [vmem:[#allocation2 + $0xad] sm:$0xff] }
 0x2f8   : > { %14541 = vmatmul.mubr.msk.f32.gmra.mrb[32].mxu0 %vm1443_vm2, %v4920_v7  ;;  %13808 = vmatprep.mubr.msk.f32.mxu1 %vm17196_vm0, %v21229_v19  ;;  %v5243_v7 = vld [vmem:[#allocation2 + $0xd6] sm:$0xff] }
 0x2f9   : > { %14543 = vmatprep.mubr.msk.f32.mxu0 %vm17196_vm0, %v21229_v19 }
 0x2fb   : > { %13809 = vmatmul.mubr.msk.f32.gmra.mrb[206].mxu1 %vm1443_vm2, %v17999_v30  ;;  %v4923_v30 = vld [vmem:[#allocation2 + $0xb5] sm:$0xff] }
 0x2fc   : > { %14544 = vmatmul.mubr.msk.f32.gmra.mrb[34].mxu0 %vm1443_vm2, %v4921_v23  ;;  %13811 = vmatprep.mubr.msk.f32.mxu1 %vm17196_vm0, %v21229_v19  ;;  %v18731_v23 = vld [vmem:[#allocation2 + $0x4b] sm:$0xff] }
 0x2fd   : > { %14546 = vmatprep.mubr.msk.f32.mxu0 %vm17196_vm0, %v21229_v19  ;;  %21236 = vst [vmem:[#allocation4_spill] sm:$0xff] %v18731_v23 }
 0x2ff   : > { %13812 = vmatmul.mubr.msk.f32.gmra.mrb[208].mxu1 %vm1443_vm2, %v18011_v49  ;;  %v4924_v49 = vld [vmem:[#allocation2 + $0xbd] sm:$0xff] }
 0x300   : > { %14547 = vmatmul.mubr.msk.f32.gmra.mrb[36].mxu0 %vm1443_vm2, %v4922_v57  ;;  %13814 = vmatprep.mubr.msk.f32.mxu1 %vm17196_vm0, %v21229_v19  ;;  %v5244_v57 = vld [vmem:[#allocation2 + $0xde] sm:$0xf] }
 0x301   : > { %14549 = vmatprep.mubr.msk.f32.mxu0 %vm17196_vm0, %v21229_v19 }
 0x303   : > { %13815 = vmatmul.mubr.msk.f32.gmra.mrb[210].mxu1 %vm1443_vm2, %v18023_v55  ;;  %v4925_v55 = vld [vmem:[#allocation2 + $0xc5] sm:$0xff] }
 0x304   : > { %14550 = vmatmul.mubr.msk.f32.gmra.mrb[38].mxu0 %vm1443_vm2, %v4923_v30  ;;  %13817 = vmatprep.mubr.msk.f32.mxu1 %vm17196_vm0, %v21229_v19  ;;  %v18740_v30 = vld [vmem:[#allocation2 + $0x53] sm:$0xff] }
 0x305   : > { %14552 = vmatprep.mubr.msk.f32.mxu0 %vm17196_vm0, %v21229_v19  ;;  %21237 = vst [vmem:[#allocation5_spill] sm:$0xff] %v18740_v30 }
 0x307   : > { %13818 = vmatmul.mubr.msk.f32.gmra.mrb[212].mxu1 %vm1443_vm2, %v18035_v42  ;;  %v4926_v42 = vld [vmem:[#allocation2 + $0xcd] sm:$0xff] }
 0x308   : > { %14553 = vmatmul.mubr.msk.f32.gmra.mrb[40].mxu0 %vm1443_vm2, %v4924_v49  ;;  %13820 = vmatprep.mubr.msk.f32.mxu1 %vm17196_vm0, %v21229_v19  ;;  %v5877_v49 = vld [vmem:[%s21163_s1 + $0x80] sm:$0xff] }
 0x309   : > { %14555 = vmatprep.mubr.msk.f32.mxu0 %vm17196_vm0, %v21229_v19 }
 0x30b   : > { %13821 = vmatmul.mubr.msk.f32.gmra.mrb[214].mxu1 %vm1443_vm2, %v18047_v0  ;;  %v4927_v0 = vld [vmem:[#allocation2 + $0xd5] sm:$0xff] }
 0x30c   : > { %14556 = vmatmul.mubr.msk.f32.gmra.mrb[42].mxu0 %vm1443_vm2, %v4925_v55  ;;  %13823 = vmatprep.mubr.msk.f32.mxu1 %vm17196_vm0, %v21229_v19  ;;  %v18752_v55 = vld [vmem:[#allocation2 + $0x5b] sm:$0xff] }
 0x30d   : > { %14558 = vmatprep.mubr.msk.f32.mxu0 %vm17196_vm0, %v21229_v19  ;;  %21238 = vst [vmem:[#allocation6_spill] sm:$0xff] %v18752_v55 }
 0x30f   : > { %13824 = vmatmul.mubr.msk.f32.gmra.mrb[216].mxu1 %vm1443_vm2, %v18059_v21  ;;  %v4928_v21 = vld [vmem:[#allocation2 + $0xdd] sm:$0xf] }
 0x310   : > { %14559 = vmatmul.mubr.msk.f32.gmra.mrb[44].mxu0 %vm1443_vm2, %v4926_v42  ;;  %13826 = vmatprep.mubr.msk.f32.mxu1 %vm17196_vm0, %v21229_v19  ;;  %v18754_v42 = vld [vmem:[#allocation2 + $0x1f] sm:$0xff] }
 0x311   : > { %14561 = vmatprep.mubr.msk.f32.mxu0 %vm17196_vm0, %v21229_v19 }
 0x313   : > { %13827 = vmatmul.mubr.msk.f32.gmra.mrb[218].mxu1 %vm1443_vm2, %v18071_v31  ;;  %v5561_v31 = vld [vmem:[%s21163_s1 + $0x78] sm:$0xff] }
 0x314   : > { %14562 = vmatmul.mubr.msk.f32.gmra.mrb[46].mxu0 %vm1443_vm2, %v4927_v0  ;;  %13829 = vmatprep.mubr.msk.f32.mxu1 %vm17196_vm0, %v21229_v19  ;;  %v18765_v0 = vld [vmem:[#allocation2 + $0x63] sm:$0xff] }
 0x315   : > { %14564 = vmatprep.mubr.msk.f32.mxu0 %vm17196_vm0, %v21229_v19  ;;  %21239 = vst [vmem:[#allocation7_spill] sm:$0xff] %v18765_v0 }
 0x317   : > { %13830 = vmatmul.mubr.msk.f32.gmra.mrb[220].mxu1 %vm1443_vm2, %v18083_v20  ;;  %v18484_v20 = vld [vmem:[#allocation2 + $0x62] sm:$0xff] }
 0x318   : > { %14565 = vmatmul.mubr.msk.f32.gmra.mrb[48].mxu0 %vm1443_vm2, %v4928_v21  ;;  %13832 = vmatprep.mubr.msk.f32.mxu1 %vm17196_vm0, %v21229_v19  ;;  %v18767_v21 = vld [vmem:[#allocation2 + $0x27] sm:$0xff] }
 0x319   : > { %14569 = vmatprep.mubr.msk.f32.mxu0 %vm17196_vm0, %v21229_v19 }
 0x31b   : > { %13833 = vmatmul.mubr.msk.f32.gmra.mrb[222].mxu1 %vm1443_vm2, %v18471_v50 }
 0x31c   : > { %14570 = vmatmul.mubr.msk.f32.vlgmr.msra.gmra.mrb[0].mxu0 %vm1443_vm2, %v18473_v51  ;;  %13835 = vmatprep.mubr.msk.f32.mxu1 %vm17196_vm0, %v21229_v19 }
 0x31d   : > { %14645 = vmatpush3.msra.mxu0 %v5561_v31  ;;  %14572 = vmatprep.mubr.msk.f32.mxu0 %vm17196_vm0, %v21229_v19  ;;  %v18777_v31 = vld [vmem:[#allocation2 + $0x6b] sm:$0xff] }
 0x31e   : > { %14721 = vmatprep.subr.mxu0 %v21229_v19  ;;  %21240 = vst [vmem:[#allocation8_spill] sm:$0xff] %v18777_v31 }
 0x31f   : > { %13836 = vmatmul.mubr.msk.f32.gmra.mrb[224].mxu1 %vm1443_vm2, %v18484_v20 }
 0x320   : > { %14573 = vmatmul.mubr.msk.f32.gmra.mrb[2].mxu0 %vm1443_vm2, %v18486_v2  ;;  %13838 = vmatprep.mubr.msk.f32.mxu1 %vm17196_vm0, %v21229_v19 }
 0x321   : > { %14575 = vmatprep.mubr.msk.f32.mxu0 %vm17196_vm0, %v21229_v19 }
 0x323   : > { %13839 = vmatmul.mubr.msk.f32.gmra.mrb[226].mxu1 %vm1443_vm2, %v18496_v1 }
 0x324   : > { %14576 = vmatmul.mubr.msk.f32.gmra.mrb[4].mxu0 %vm1443_vm2, %v18498_v24  ;;  %13841 = vmatprep.mubr.msk.f32.mxu1 %vm17196_vm0, %v21229_v19 }
 0x325   : > { %14578 = vmatprep.mubr.msk.f32.mxu0 %vm17196_vm0, %v21229_v19 }
 0x327   : > { %13842 = vmatmul.mubr.msk.f32.gmra.mrb[228].mxu1 %vm1443_vm2, %v18508_v16 }
 0x328   : > { %14579 = vmatmul.mubr.msk.f32.gmra.mrb[6].mxu0 %vm1443_vm2, %v18510_v54  ;;  %13844 = vmatprep.mubr.msk.f32.mxu1 %vm17196_vm0, %v21229_v19 }
 0x329   : > { %14581 = vmatprep.mubr.msk.f32.mxu0 %vm17196_vm0, %v21229_v19 }
 0x32b   : > { %13845 = vmatmul.mubr.msk.f32.gmra.mrb[230].mxu1 %vm1443_vm2, %v18520_v18 }
 0x32c   : > { %14582 = vmatmul.mubr.msk.f32.gmra.mrb[8].mxu0 %vm1443_vm2, %v18522_v4  ;;  %13847 = vmatprep.mubr.msk.f32.mxu1 %vm17196_vm0, %v21229_v19 }
 0x32d   : > { %14584 = vmatprep.mubr.msk.f32.mxu0 %vm17196_vm0, %v21229_v19 }
 0x32f   : > { %13848 = vmatmul.mubr.msk.f32.gmra.mrb[232].mxu1 %vm1443_vm2, %v18532_v29 }
 0x330   : > { %14585 = vmatmul.mubr.msk.f32.gmra.mrb[10].mxu0 %vm1443_vm2, %v18534_v27  ;;  %13850 = vmatprep.mubr.msk.f32.mxu1 %vm17196_vm0, %v21229_v19 }
 0x331   : > { %14587 = vmatprep.mubr.msk.f32.mxu0 %vm17196_vm0, %v21229_v19 }
 0x333   : > { %13851 = vmatmul.mubr.msk.f32.gmra.mrb[234].mxu1 %vm1443_vm2, %v18544_v6 }
 0x334   : > { %14588 = vmatmul.mubr.msk.f32.gmra.mrb[12].mxu0 %vm1443_vm2, %v18546_v28  ;;  %13853 = vmatprep.mubr.msk.f32.mxu1 %vm17196_vm0, %v21229_v19 }
 0x335   : > { %14590 = vmatprep.mubr.msk.f32.mxu0 %vm17196_vm0, %v21229_v19 }
 0x337   : > { %13854 = vmatmul.mubr.msk.f32.gmra.mrb[236].mxu1 %vm1443_vm2, %v18556_v35 }
 0x338   : > { %14591 = vmatmul.mubr.msk.f32.gmra.mrb[14].mxu0 %vm1443_vm2, %v18558_v25  ;;  %13856 = vmatprep.mubr.msk.f32.mxu1 %vm17196_vm0, %v21229_v19 }
 0x339   : > { %14593 = vmatprep.mubr.msk.f32.mxu0 %vm17196_vm0, %v21229_v19 }
 0x33b   : > { %13857 = vmatmul.mubr.msk.f32.gmra.mrb[238].mxu1 %vm1443_vm2, %v18568_v61 }
 0x33c   : > { %14594 = vmatmul.mubr.msk.f32.gmra.mrb[16].mxu0 %vm1443_vm2, %v18570_v37  ;;  %13859 = vmatprep.mubr.msk.f32.mxu1 %vm17196_vm0, %v21229_v19 }
 0x33d   : > { %14596 = vmatprep.mubr.msk.f32.mxu0 %vm17196_vm0, %v21229_v19 }
 0x33f   : > { %13860 = vmatmul.mubr.msk.f32.gmra.mrb[240].mxu1 %vm1443_vm2, %v18580_v43 }
 0x340   : > { %14597 = vmatmul.mubr.msk.f32.gmra.mrb[18].mxu0 %vm1443_vm2, %v18582_v8  ;;  %13862 = vmatprep.mubr.msk.f32.mxu1 %vm17196_vm0, %v21229_v19 }
 0x341   : > { %14599 = vmatprep.mubr.msk.f32.mxu0 %vm17196_vm0, %v21229_v19 }
 0x343   : > { %13863 = vmatmul.mubr.msk.f32.gmra.mrb[242].mxu1 %vm1443_vm2, %v18592_v40 }
 0x344   : > { %14600 = vmatmul.mubr.msk.f32.gmra.mrb[20].mxu0 %vm1443_vm2, %v18594_v41  ;;  %13865 = vmatprep.mubr.msk.f32.mxu1 %vm17196_vm0, %v21229_v19 }
 0x345   : > { %14602 = vmatprep.mubr.msk.f32.mxu0 %vm17196_vm0, %v21229_v19 }
 0x347   : > { %13866 = vmatmul.mubr.msk.f32.gmra.mrb[244].mxu1 %vm1443_vm2, %v18604_v44 }
 0x348   : > { %14603 = vmatmul.mubr.msk.f32.gmra.mrb[22].mxu0 %vm1443_vm2, %v18606_v33  ;;  %13868 = vmatprep.mubr.msk.f32.mxu1 %vm17196_vm0, %v21229_v19 }
 0x349   : > { %14605 = vmatprep.mubr.msk.f32.mxu0 %vm17196_vm0, %v21229_v19 }
 0x34b   : > { %13869 = vmatmul.mubr.msk.f32.gmra.mrb[246].mxu1 %vm1443_vm2, %v18616_v10 }
 0x34c   : > { %14606 = vmatmul.mubr.msk.f32.gmra.mrb[24].mxu0 %vm1443_vm2, %v18618_v34  ;;  %13871 = vmatprep.mubr.msk.f32.mxu1 %vm17196_vm0, %v21229_v19 }
 0x34d   : > { %14608 = vmatprep.mubr.msk.f32.mxu0 %vm17196_vm0, %v21229_v19 }
 0x34f   : > { %13872 = vmatmul.mubr.msk.f32.gmra.mrb[248].mxu1 %vm1443_vm2, %v2084_v22  ;;  %v18779_v22 = vld [vmem:[#allocation2 + $0x2f] sm:$0xff] }
 0x350   : > { %14609 = vmatmul.mubr.msk.f32.gmra.mrb[26].mxu0 %vm1443_vm2, %v18628_v12  ;;  %13876 = vmatprep.mubr.msk.f32.mxu1 %vm17196_vm0, %v21229_v19 }
 0x351   : > { %14611 = vmatprep.mubr.msk.f32.mxu0 %vm17196_vm0, %v21229_v19 }
 0x353   : > { %13877 = vmatmul.mubr.msk.f32.vlgmr.msra.gmra.mrb[200].mxu1 %vm1443_vm2, %v2376_v58  ;;  %v18789_v58 = vld [vmem:[#allocation2 + $0x73] sm:$0xff] }
 0x354   : > { %14612 = vmatmul.mubr.msk.f32.gmra.mrb[28].mxu0 %vm1443_vm2, %v18637_v39  ;;  %13879 = vmatprep.mubr.msk.f32.mxu1 %vm17196_vm0, %v21229_v19  ;;  %21241 = vst [vmem:[#allocation9_spill] sm:$0xff] %v18789_v58 }
 0x355   : > { %14614 = vmatprep.mubr.msk.f32.mxu0 %vm17196_vm0, %v21229_v19  ;;  %13952 = vmatpush3.msra.mxu1 %v2717_v56  ;;  %v18791_v56 = vld [vmem:[#allocation2 + $0x37] sm:$0xff] }
 0x356   : > { %14028 = vmatprep.subr.mxu1 %v21229_v19 }
 0x357   : > { %13880 = vmatmul.mubr.msk.f32.gmra.mrb[202].mxu1 %vm1443_vm2, %v2377_v53  ;;  %v18801_v53 = vld [vmem:[#allocation2 + $0x7b] sm:$0xff] }
 0x358   : > { %14615 = vmatmul.mubr.msk.f32.gmra.mrb[30].mxu0 %vm1443_vm2, %v18649_v5  ;;  %13882 = vmatprep.mubr.msk.f32.mxu1 %vm17196_vm0, %v21229_v19  ;;  %21242 = vst [vmem:[#allocation10_spill] sm:$0xff] %v18801_v53 }
 0x359   : > { %14617 = vmatprep.mubr.msk.f32.mxu0 %vm17196_vm0, %v21229_v19 }
 0x35b   : > { %13883 = vmatmul.mubr.msk.f32.gmra.mrb[204].mxu1 %vm1443_vm2, %v2378_v11  ;;  %v18803_v11 = vld [vmem:[#allocation2 + $0x3f] sm:$0xff] }
 0x35c   : > { %14618 = vmatmul.mubr.msk.f32.gmra.mrb[32].mxu0 %vm1443_vm2, %v18659_v15  ;;  %13885 = vmatprep.mubr.msk.f32.mxu1 %vm17196_vm0, %v21229_v19 }
 0x35d   : > { %14620 = vmatprep.mubr.msk.f32.mxu0 %vm17196_vm0, %v21229_v19 }
 0x35f   : > { %13886 = vmatmul.mubr.msk.f32.gmra.mrb[206].mxu1 %vm1443_vm2, %v2379_v63  ;;  %v18813_v63 = vld [vmem:[#allocation2 + $0x83] sm:$0xff] }
 0x360   : > { %14621 = vmatmul.mubr.msk.f32.gmra.mrb[34].mxu0 %vm1443_vm2, %v18668_v17  ;;  %13888 = vmatprep.mubr.msk.f32.mxu1 %vm17196_vm0, %v21229_v19  ;;  %21243 = vst [vmem:[#allocation11_spill] sm:$0xff] %v18813_v63 }
 0x361   : > { %14623 = vmatprep.mubr.msk.f32.mxu0 %vm17196_vm0, %v21229_v19 }
 0x363   : > { %13889 = vmatmul.mubr.msk.f32.gmra.mrb[208].mxu1 %vm1443_vm2, %v2380_v14  ;;  %v18815_v14 = vld [vmem:[#allocation2 + $0x47] sm:$0xff] }
 0x364   : > { %14624 = vmatmul.mubr.msk.f32.gmra.mrb[36].mxu0 %vm1443_vm2, %v18677_v3  ;;  %13891 = vmatprep.mubr.msk.f32.mxu1 %vm17196_vm0, %v21229_v19 }
 0x365   : > { %14626 = vmatprep.mubr.msk.f32.mxu0 %vm17196_vm0, %v21229_v19 }
 0x367   : > { %13892 = vmatmul.mubr.msk.f32.gmra.mrb[210].mxu1 %vm1443_vm2, %v18686_v45 }
 0x368   : > { %14627 = vmatmul.mubr.msk.f32.gmra.mrb[38].mxu0 %vm1443_vm2, %v18688_v60  ;;  %13894 = vmatprep.mubr.msk.f32.mxu1 %vm17196_vm0, %v21229_v19 }
 0x369   : > { %14629 = vmatprep.mubr.msk.f32.mxu0 %vm17196_vm0, %v21229_v19 }
 0x36b   : > { %13895 = vmatmul.mubr.msk.f32.gmra.mrb[212].mxu1 %vm1443_vm2, %v18698_v38 }
 0x36c   : > { %14630 = vmatmul.mubr.msk.f32.gmra.mrb[40].mxu0 %vm1443_vm2, %v18700_v26  ;;  %13897 = vmatprep.mubr.msk.f32.mxu1 %vm17196_vm0, %v21229_v19 }
 0x36d   : > { %14632 = vmatprep.mubr.msk.f32.mxu0 %vm17196_vm0, %v21229_v19 }
 0x36f   : > { %13898 = vmatmul.mubr.msk.f32.gmra.mrb[214].mxu1 %vm1443_vm2, %v18712_v48 }
 0x370   : > { %14633 = vmatmul.mubr.msk.f32.gmra.mrb[42].mxu0 %vm1443_vm2, %v18710_v46  ;;  %13900 = vmatprep.mubr.msk.f32.mxu1 %vm17196_vm0, %v21229_v19 }
 0x371   : > { %14635 = vmatprep.mubr.msk.f32.mxu0 %vm17196_vm0, %v21229_v19 }
 0x373   : > { %13901 = vmatmul.mubr.msk.f32.gmra.mrb[216].mxu1 %vm1443_vm2, %v18722_v62 }
 0x374   : > { %14636 = vmatmul.mubr.msk.f32.gmra.mrb[44].mxu0 %vm1443_vm2, %v5242_v59  ;;  %13903 = vmatprep.mubr.msk.f32.mxu1 %vm17196_vm0, %v21229_v19  ;;  %v18825_v59 = vld [vmem:[#allocation2 + $0x8b] sm:$0xff] }
 0x375   : > { %14638 = vmatprep.mubr.msk.f32.mxu0 %vm17196_vm0, %v21229_v19  ;;  %21244 = vst [vmem:[#allocation12_spill] sm:$0xff] %v18825_v59 }
 0x377   : > { %13904 = vmatmul.mubr.msk.f32.gmra.mrb[218].mxu1 %vm1443_vm2, %v18731_v23  ;;  %v3033_v23 = vld [vmem:[%s21163_s1 + $0x38] sm:$0xff] }
 0x378   : > { %14639 = vmatmul.mubr.msk.f32.gmra.mrb[46].mxu0 %vm1443_vm2, %v5243_v7  ;;  %13906 = vmatprep.mubr.msk.f32.mxu1 %vm17196_vm0, %v21229_v19  ;;  %v18827_v7 = vld [vmem:[#allocation2 + $0x4f] sm:$0xff] }
 0x379   : > { %14641 = vmatprep.mubr.msk.f32.mxu0 %vm17196_vm0, %v21229_v19 }
 0x37b   : > { %13907 = vmatmul.mubr.msk.f32.gmra.mrb[220].mxu1 %vm1443_vm2, %v18740_v30  ;;  %v18918_v30 = vld [vmem:[#allocation2 + $0x8f] sm:$0xff] }
 0x37c   : > { %14642 = vmatmul.mubr.msk.f32.gmra.mrb[48].mxu0 %vm1443_vm2, %v5244_v57  ;;  %13909 = vmatprep.mubr.msk.f32.mxu1 %vm17196_vm0, %v21229_v19  ;;  %v18837_v57 = vld [vmem:[#allocation2 + $0x93] sm:$0xff]  ;;  %21252 = vst [vmem:[#allocation20_spill] sm:$0xff] %v18918_v30 }
 0x37d   : > { %14646 = vmatprep.mubr.msk.f32.mxu0 %vm17196_vm0, %v21229_v19  ;;  %21245 = vst [vmem:[#allocation13_spill] sm:$0xff] %v18837_v57 }
 0x37f   : > { %13910 = vmatmul.mubr.msk.f32.gmra.mrb[222].mxu1 %vm1443_vm2, %v18752_v55  ;;  %v18909_v55 = vld [vmem:[#allocation2 + $0x87] sm:$0xff] }
 0x380   : > { %14647 = vmatmul.mubr.msk.f32.vlgmr.msra.gmra.mrb[0].mxu0 %vm1443_vm2, %v18754_v42  ;;  %13912 = vmatprep.mubr.msk.f32.mxu1 %vm17196_vm0, %v21229_v19  ;;  %21251 = vst [vmem:[#allocation19_spill] sm:$0xff] %v18909_v55 }
 0x381   : > { %14722 = vmatpush3.msra.mxu0 %v5877_v49  ;;  %14649 = vmatprep.mubr.msk.f32.mxu0 %vm17196_vm0, %v21229_v19  ;;  %v18839_v49 = vld [vmem:[#allocation2 + $0x57] sm:$0xff] }
 0x382   : > { %14798 = vmatprep.subr.mxu0 %v21229_v19 }
 0x383   : > { %13913 = vmatmul.mubr.msk.f32.gmra.mrb[224].mxu1 %vm1443_vm2, %v18765_v0  ;;  %v18899_v0 = vld [vmem:[#allocation2 + $0x7f] sm:$0xff] }
 0x384   : > { %14650 = vmatmul.mubr.msk.f32.gmra.mrb[2].mxu0 %vm1443_vm2, %v18767_v21  ;;  %13915 = vmatprep.mubr.msk.f32.mxu1 %vm17196_vm0, %v21229_v19 }
 0x385   : > { %14652 = vmatprep.mubr.msk.f32.mxu0 %vm17196_vm0, %v21229_v19 }
 0x387   : > { %13916 = vmatmul.mubr.msk.f32.gmra.mrb[226].mxu1 %vm1443_vm2, %v18777_v31  ;;  %v18887_v31 = vld [vmem:[#allocation2 + $0x77] sm:$0xff] }
 0x388   : > { %14653 = vmatmul.mubr.msk.f32.gmra.mrb[4].mxu0 %vm1443_vm2, %v18779_v22  ;;  %13918 = vmatprep.mubr.msk.f32.mxu1 %vm17196_vm0, %v21229_v19 }
 0x389   : > { %14655 = vmatprep.mubr.msk.f32.mxu0 %vm17196_vm0, %v21229_v19 }
 0x38b   : > { %13919 = vmatmul.mubr.msk.f32.gmra.mrb[228].mxu1 %vm1443_vm2, %v18789_v58  ;;  %v18875_v58 = vld [vmem:[#allocation2 + $0x6f] sm:$0xff] }
 0x38c   : > { %14656 = vmatmul.mubr.msk.f32.gmra.mrb[6].mxu0 %vm1443_vm2, %v18791_v56  ;;  %13921 = vmatprep.mubr.msk.f32.mxu1 %vm17196_vm0, %v21229_v19 }
 0x38d   : > { %14658 = vmatprep.mubr.msk.f32.mxu0 %vm17196_vm0, %v21229_v19 }
 0x38f   : > { %13922 = vmatmul.mubr.msk.f32.gmra.mrb[230].mxu1 %vm1443_vm2, %v18801_v53  ;;  %v18863_v53 = vld [vmem:[#allocation2 + $0x67] sm:$0xff] }
 0x390   : > { %14659 = vmatmul.mubr.msk.f32.gmra.mrb[8].mxu0 %vm1443_vm2, %v18803_v11  ;;  %13924 = vmatprep.mubr.msk.f32.mxu1 %vm17196_vm0, %v21229_v19 }
 0x391   : > { %14661 = vmatprep.mubr.msk.f32.mxu0 %vm17196_vm0, %v21229_v19 }
 0x393   : > { %13925 = vmatmul.mubr.msk.f32.gmra.mrb[232].mxu1 %vm1443_vm2, %v18813_v63  ;;  %v18851_v63 = vld [vmem:[#allocation2 + $0x5f] sm:$0xff] }
 0x394   : > { %14662 = vmatmul.mubr.msk.f32.gmra.mrb[10].mxu0 %vm1443_vm2, %v18815_v14  ;;  %13927 = vmatprep.mubr.msk.f32.mxu1 %vm17196_vm0, %v21229_v19 }
 0x395   : > { %14664 = vmatprep.mubr.msk.f32.mxu0 %vm17196_vm0, %v21229_v19 }
 0x397   : > { %13928 = vmatmul.mubr.msk.f32.gmra.mrb[234].mxu1 %vm1443_vm2, %v18825_v59  ;;  %v18849_v59 = vld [vmem:[#allocation2 + $0x9b] sm:$0xff] }
 0x398   : > { %14665 = vmatmul.mubr.msk.f32.gmra.mrb[12].mxu0 %vm1443_vm2, %v18827_v7  ;;  %13930 = vmatprep.mubr.msk.f32.mxu1 %vm17196_vm0, %v21229_v19  ;;  %21246 = vst [vmem:[#allocation14_spill] sm:$0xff] %v18849_v59 }
 0x399   : > { %14667 = vmatprep.mubr.msk.f32.mxu0 %vm17196_vm0, %v21229_v19 }
 0x39b   : > { %13931 = vmatmul.mubr.msk.f32.gmra.mrb[236].mxu1 %vm1443_vm2, %v18837_v57  ;;  %v18861_v57 = vld [vmem:[#allocation2 + $0xa3] sm:$0xff] }
 0x39c   : > { %14668 = vmatmul.mubr.msk.f32.gmra.mrb[14].mxu0 %vm1443_vm2, %v18839_v49  ;;  %13933 = vmatprep.mubr.msk.f32.mxu1 %vm17196_vm0, %v21229_v19  ;;  %21247 = vst [vmem:[#allocation15_spill] sm:$0xff] %v18861_v57 }
 0x39d   : > { %14670 = vmatprep.mubr.msk.f32.mxu0 %vm17196_vm0, %v21229_v19 }
 0x39f   : > { %13934 = vmatmul.mubr.msk.f32.gmra.mrb[238].mxu1 %vm1443_vm2, %v18849_v59  ;;  %v18873_v59 = vld [vmem:[#allocation2 + $0xab] sm:$0xff] }
 0x3a0   : > { %14671 = vmatmul.mubr.msk.f32.gmra.mrb[16].mxu0 %vm1443_vm2, %v18851_v63  ;;  %13936 = vmatprep.mubr.msk.f32.mxu1 %vm17196_vm0, %v21229_v19  ;;  %21248 = vst [vmem:[#allocation16_spill] sm:$0xff] %v18873_v59 }
 0x3a1   : > { %14673 = vmatprep.mubr.msk.f32.mxu0 %vm17196_vm0, %v21229_v19 }
 0x3a3   : > { %13937 = vmatmul.mubr.msk.f32.gmra.mrb[240].mxu1 %vm1443_vm2, %v18861_v57  ;;  %v18885_v57 = vld [vmem:[#allocation2 + $0xb3] sm:$0xff] }
 0x3a4   : > { %14674 = vmatmul.mubr.msk.f32.gmra.mrb[18].mxu0 %vm1443_vm2, %v18863_v53  ;;  %13939 = vmatprep.mubr.msk.f32.mxu1 %vm17196_vm0, %v21229_v19  ;;  %21249 = vst [vmem:[#allocation17_spill] sm:$0xff] %v18885_v57 }
 0x3a5   : > { %14676 = vmatprep.mubr.msk.f32.mxu0 %vm17196_vm0, %v21229_v19 }
 0x3a7   : > { %13940 = vmatmul.mubr.msk.f32.gmra.mrb[242].mxu1 %vm1443_vm2, %v18873_v59  ;;  %v18897_v59 = vld [vmem:[#allocation2 + $0xbb] sm:$0xff] }
 0x3a8   : > { %14677 = vmatmul.mubr.msk.f32.gmra.mrb[20].mxu0 %vm1443_vm2, %v18875_v58  ;;  %13942 = vmatprep.mubr.msk.f32.mxu1 %vm17196_vm0, %v21229_v19  ;;  %21250 = vst [vmem:[#allocation18_spill] sm:$0xff] %v18897_v59 }
 0x3a9   : > { %14679 = vmatprep.mubr.msk.f32.mxu0 %vm17196_vm0, %v21229_v19 }
 0x3ab   : > { %13943 = vmatmul.mubr.msk.f32.gmra.mrb[244].mxu1 %vm1443_vm2, %v18885_v57  ;;  %v2400_v57 = vld [vmem:[#allocation2 + $0xc3] sm:$0xf] }
 0x3ac   : > { %14680 = vmatmul.mubr.msk.f32.gmra.mrb[22].mxu0 %vm1443_vm2, %v18887_v31  ;;  %13945 = vmatprep.mubr.msk.f32.mxu1 %vm17196_vm0, %v21229_v19 }
 0x3ad   : > { %14682 = vmatprep.mubr.msk.f32.mxu0 %vm17196_vm0, %v21229_v19 }
 0x3af   : > { %13946 = vmatmul.mubr.msk.f32.gmra.mrb[246].mxu1 %vm1443_vm2, %v18897_v59  ;;  %v2692_v59 = vld [vmem:[#allocation2 + $0x4] sm:$0xff] }
 0x3b0   : > { %14683 = vmatmul.mubr.msk.f32.gmra.mrb[24].mxu0 %vm1443_vm2, %v18899_v0  ;;  %13948 = vmatprep.mubr.msk.f32.mxu1 %vm17196_vm0, %v21229_v19 }
 0x3b1   : > { %14685 = vmatprep.mubr.msk.f32.mxu0 %vm17196_vm0, %v21229_v19 }
 0x3b3   : > { %13949 = vmatmul.mubr.msk.f32.gmra.mrb[248].mxu1 %vm1443_vm2, %v2400_v57  ;;  %v2693_v57 = vld [vmem:[#allocation2 + $0xc] sm:$0xff] }
 0x3b4   : > { %14686 = vmatmul.mubr.msk.f32.gmra.mrb[26].mxu0 %vm1443_vm2, %v18909_v55  ;;  %13953 = vmatprep.mubr.msk.f32.mxu1 %vm17196_vm0, %v21229_v19  ;;  %v18930_v55 = vld [vmem:[#allocation2 + $0x97] sm:$0xff] }
 0x3b5   : > { %14688 = vmatprep.mubr.msk.f32.mxu0 %vm17196_vm0, %v21229_v19  ;;  %21253 = vst [vmem:[#allocation21_spill] sm:$0xff] %v18930_v55 }
 0x3b7   : > { %13954 = vmatmul.mubr.msk.f32.vlgmr.msra.gmra.mrb[200].mxu1 %vm1443_vm2, %v2692_v59  ;;  %v2694_v59 = vld [vmem:[#allocation2 + $0x14] sm:$0xff] }
 0x3b8   : > { %14689 = vmatmul.mubr.msk.f32.gmra.mrb[28].mxu0 %vm1443_vm2, %v18918_v30  ;;  %13956 = vmatprep.mubr.msk.f32.mxu1 %vm17196_vm0, %v21229_v19  ;;  %v18940_v30 = vld [vmem:[#allocation2 + $0x9f] sm:$0xff] }
 0x3b9   : > { %14691 = vmatprep.mubr.msk.f32.mxu0 %vm17196_vm0, %v21229_v19  ;;  %14029 = vmatpush3.msra.mxu1 %v3033_v23  ;;  %21254 = vst [vmem:[#allocation22_spill] sm:$0xff] %v18940_v30  ;;  %v2695_v23 = vld [vmem:[#allocation2 + $0x1c] sm:$0xff] }
 0x3ba   : > { %14105 = vmatprep.subr.mxu1 %v21229_v19 }
 0x3bb   : > { %13957 = vmatmul.mubr.msk.f32.gmra.mrb[202].mxu1 %vm1443_vm2, %v2693_v57  ;;  %v18949_v57 = vld [vmem:[#allocation2 + $0xa7] sm:$0xff] }
 0x3bc   : > { %14692 = vmatmul.mubr.msk.f32.gmra.mrb[30].mxu0 %vm1443_vm2, %v18930_v55  ;;  %13959 = vmatprep.mubr.msk.f32.mxu1 %vm17196_vm0, %v21229_v19  ;;  %21255 = vst [vmem:[#allocation23_spill] sm:$0xff] %v18949_v57  ;;  %v19035_v55 = vld [vmem:[#allocation2 + $0x20] sm:$0xff] }
 0x3bd   : > { %14694 = vmatprep.mubr.msk.f32.mxu0 %vm17196_vm0, %v21229_v19 }
 0x3bf   : > { %13960 = vmatmul.mubr.msk.f32.gmra.mrb[204].mxu1 %vm1443_vm2, %v2694_v59  ;;  %v2696_v59 = vld [vmem:[#allocation2 + $0x24] sm:$0xff] }
 0x3c0   : > { %14695 = vmatmul.mubr.msk.f32.gmra.mrb[32].mxu0 %vm1443_vm2, %v18940_v30  ;;  %13962 = vmatprep.mubr.msk.f32.mxu1 %vm17196_vm0, %v21229_v19  ;;  %v18958_v30 = vld [vmem:[#allocation2 + $0xaf] sm:$0xff] }
 0x3c1   : > { %14697 = vmatprep.mubr.msk.f32.mxu0 %vm17196_vm0, %v21229_v19  ;;  %21256 = vst [vmem:[#allocation24_spill] sm:$0xff] %v18958_v30 }
 0x3c3   : > { %13963 = vmatmul.mubr.msk.f32.gmra.mrb[206].mxu1 %vm1443_vm2, %v2695_v23  ;;  %v18967_v23 = vld [vmem:[#allocation2 + $0x2c] sm:$0xff] }
 0x3c4   : > { %14698 = vmatmul.mubr.msk.f32.gmra.mrb[34].mxu0 %vm1443_vm2, %v18949_v57  ;;  %13965 = vmatprep.mubr.msk.f32.mxu1 %vm17196_vm0, %v21229_v19  ;;  %21257 = vst [vmem:[#allocation25_spill] sm:$0xff] %v18967_v23  ;;  %v18969_v57 = vld [vmem:[#allocation2 + $0xb7] sm:$0xff] }
 0x3c5   : > { %14700 = vmatprep.mubr.msk.f32.mxu0 %vm17196_vm0, %v21229_v19  ;;  %21258 = vst [vmem:[#allocation26_spill] sm:$0xff] %v18969_v57 }
 0x3c7   : > { %13966 = vmatmul.mubr.msk.f32.gmra.mrb[208].mxu1 %vm1443_vm2, %v2696_v59  ;;  %v18979_v59 = vld [vmem:[#allocation2 + $0x34] sm:$0xff] }
 0x3c8   : > { %14701 = vmatmul.mubr.msk.f32.gmra.mrb[36].mxu0 %vm1443_vm2, %v18958_v30  ;;  %13968 = vmatprep.mubr.msk.f32.mxu1 %vm17196_vm0, %v21229_v19  ;;  %21259 = vst [vmem:[#allocation27_spill] sm:$0xff] %v18979_v59  ;;  %v18981_v30 = vld [vmem:[#allocation2 + $0xbf] sm:$0xff] }
 0x3c9   : > { %14703 = vmatprep.mubr.msk.f32.mxu0 %vm17196_vm0, %v21229_v19  ;;  %21260 = vst [vmem:[#allocation28_spill] sm:$0xff] %v18981_v30 }
 0x3cb   : > { %13969 = vmatmul.mubr.msk.f32.gmra.mrb[210].mxu1 %vm1443_vm2, %v18967_v23  ;;  %v18991_v23 = vld [vmem:[#allocation2 + $0xc7] sm:$0xff] }
 0x3cc   : > { %14704 = vmatmul.mubr.msk.f32.gmra.mrb[38].mxu0 %vm1443_vm2, %v18969_v57  ;;  %13971 = vmatprep.mubr.msk.f32.mxu1 %vm17196_vm0, %v21229_v19  ;;  %21261 = vst [vmem:[#allocation29_spill] sm:$0xff] %v18991_v23  ;;  %v18993_v57 = vld [vmem:[#allocation2 + $0x3c] sm:$0xff] }
 0x3cd   : > { %14706 = vmatprep.mubr.msk.f32.mxu0 %vm17196_vm0, %v21229_v19  ;;  %21262 = vst [vmem:[#allocation30_spill] sm:$0xff] %v18993_v57 }
 0x3cf   : > { %13972 = vmatmul.mubr.msk.f32.gmra.mrb[212].mxu1 %vm1443_vm2, %v18979_v59  ;;  %v5558_v59 = vld [vmem:[#allocation2 + $0xcf] sm:$0xff] }
 0x3d0   : > { %14707 = vmatmul.mubr.msk.f32.gmra.mrb[40].mxu0 %vm1443_vm2, %v18981_v30  ;;  %13974 = vmatprep.mubr.msk.f32.mxu1 %vm17196_vm0, %v21229_v19  ;;  %v19003_v30 = vld [vmem:[#allocation2 + $0x44] sm:$0xff] }
 0x3d1   : > { %14709 = vmatprep.mubr.msk.f32.mxu0 %vm17196_vm0, %v21229_v19  ;;  %21263 = vst [vmem:[#allocation31_spill] sm:$0xff] %v19003_v30 }
 0x3d3   : > { %13975 = vmatmul.mubr.msk.f32.gmra.mrb[214].mxu1 %vm1443_vm2, %v18993_v57  ;;  %v5559_v57 = vld [vmem:[#allocation2 + $0xd7] sm:$0xff] }
 0x3d4   : > { %14710 = vmatmul.mubr.msk.f32.gmra.mrb[42].mxu0 %vm1443_vm2, %v18991_v23  ;;  %13977 = vmatprep.mubr.msk.f32.mxu1 %vm17196_vm0, %v21229_v19  ;;  %v19012_v23 = vld [vmem:[#allocation2 + $0x4c] sm:$0xff] }
 0x3d5   : > { %14712 = vmatprep.mubr.msk.f32.mxu0 %vm17196_vm0, %v21229_v19  ;;  %21264 = vst [vmem:[#allocation32_spill] sm:$0xff] %v19012_v23 }
 0x3d7   : > { %13978 = vmatmul.mubr.msk.f32.gmra.mrb[216].mxu1 %vm1443_vm2, %v19003_v30  ;;  %v19021_v30 = vld [vmem:[#allocation2 + $0x54] sm:$0xff] }
 0x3d8   : > { %14713 = vmatmul.mubr.msk.f32.gmra.mrb[44].mxu0 %vm1443_vm2, %v5558_v59  ;;  %13980 = vmatprep.mubr.msk.f32.mxu1 %vm17196_vm0, %v21229_v19  ;;  %v5560_v59 = vld [vmem:[#allocation2 + $0xdf] sm:$0xf]  ;;  %21265 = vst [vmem:[#allocation33_spill] sm:$0xff] %v19021_v30 }
 0x3d9   : > { %14715 = vmatprep.mubr.msk.f32.mxu0 %vm17196_vm0, %v21229_v19 }
 0x3db   : > { %13981 = vmatmul.mubr.msk.f32.gmra.mrb[218].mxu1 %vm1443_vm2, %v19012_v23  ;;  %v19033_v23 = vld [vmem:[#allocation2 + $0x5c] sm:$0xff] }
 0x3dc   : > { %14716 = vmatmul.mubr.msk.f32.gmra.mrb[46].mxu0 %vm1443_vm2, %v5559_v57  ;;  %13983 = vmatprep.mubr.msk.f32.mxu1 %vm17196_vm0, %v21229_v19  ;;  %v6193_v57 = vld [vmem:[%s21163_s1 + $0x88] sm:$0xff]  ;;  %21266 = vst [vmem:[#allocation34_spill] sm:$0xff] %v19033_v23 }
 0x3dd   : > { %14718 = vmatprep.mubr.msk.f32.mxu0 %vm17196_vm0, %v21229_v19 }
 0x3df   : > { %13984 = vmatmul.mubr.msk.f32.gmra.mrb[220].mxu1 %vm1443_vm2, %v19021_v30  ;;  %v19048_v30 = vld [vmem:[#allocation2 + $0x28] sm:$0xff] }
 0x3e0   : > { %14719 = vmatmul.mubr.msk.f32.gmra.mrb[48].mxu0 %vm1443_vm2, %v5560_v59  ;;  %13986 = vmatprep.mubr.msk.f32.mxu1 %vm17196_vm0, %v21229_v19  ;;  %v19046_v59 = vld [vmem:[#allocation2 + $0x64] sm:$0xff]  ;;  %21268 = vst [vmem:[#allocation36_spill] sm:$0xff] %v19048_v30 }
 0x3e1   : > { %14723 = vmatprep.mubr.msk.f32.mxu0 %vm17196_vm0, %v21229_v19  ;;  %21267 = vst [vmem:[#allocation35_spill] sm:$0xff] %v19046_v59 }
 0x3e3   : > { %13987 = vmatmul.mubr.msk.f32.gmra.mrb[222].mxu1 %vm1443_vm2, %v19033_v23  ;;  %v19060_v23 = vld [vmem:[#allocation2 + $0x30] sm:$0xff] }
 0x3e4   : > { %14724 = vmatmul.mubr.msk.f32.vlgmr.msra.gmra.mrb[0].mxu0 %vm1443_vm2, %v19035_v55  ;;  %13989 = vmatprep.mubr.msk.f32.mxu1 %vm17196_vm0, %v21229_v19  ;;  %21270 = vst [vmem:[#allocation38_spill] sm:$0xff] %v19060_v23 }
 0x3e5   : > { %14799 = vmatpush3.msra.mxu0 %v6193_v57  ;;  %14726 = vmatprep.mubr.msk.f32.mxu0 %vm17196_vm0, %v21229_v19  ;;  %v19058_v57 = vld [vmem:[#allocation2 + $0x6c] sm:$0xff] }
 0x3e6   : > { %14875 = vmatprep.subr.mxu0 %v21229_v19  ;;  %21269 = vst [vmem:[#allocation37_spill] sm:$0xff] %v19058_v57 }
 0x3e7   : > { %13990 = vmatmul.mubr.msk.f32.gmra.mrb[224].mxu1 %vm1443_vm2, %v19046_v59  ;;  %v19070_v59 = vld [vmem:[#allocation2 + $0x74] sm:$0xff] }
 0x3e8   : > { %14727 = vmatmul.mubr.msk.f32.gmra.mrb[2].mxu0 %vm1443_vm2, %v19048_v30  ;;  %13992 = vmatprep.mubr.msk.f32.mxu1 %vm17196_vm0, %v21229_v19  ;;  %21271 = vst [vmem:[#allocation39_spill] sm:$0xff] %v19070_v59  ;;  %v19072_v30 = vld [vmem:[#allocation2 + $0x38] sm:$0xff] }
 0x3e9   : > { %14729 = vmatprep.mubr.msk.f32.mxu0 %vm17196_vm0, %v21229_v19  ;;  %21272 = vst [vmem:[#allocation40_spill] sm:$0xff] %v19072_v30 }
 0x3eb   : > { %13993 = vmatmul.mubr.msk.f32.gmra.mrb[226].mxu1 %vm1443_vm2, %v19058_v57  ;;  %v19082_v57 = vld [vmem:[#allocation2 + $0x7c] sm:$0xff] }
 0x3ec   : > { %14730 = vmatmul.mubr.msk.f32.gmra.mrb[4].mxu0 %vm1443_vm2, %v19060_v23  ;;  %13995 = vmatprep.mubr.msk.f32.mxu1 %vm17196_vm0, %v21229_v19  ;;  %21273 = vst [vmem:[#allocation41_spill] sm:$0xff] %v19082_v57  ;;  %v19084_v23 = vld [vmem:[#allocation2 + $0x40] sm:$0xff] }
 0x3ed   : > { %14732 = vmatprep.mubr.msk.f32.mxu0 %vm17196_vm0, %v21229_v19  ;;  %21274 = vst [vmem:[#allocation42_spill] sm:$0xff] %v19084_v23 }
 0x3ef   : > { %13996 = vmatmul.mubr.msk.f32.gmra.mrb[228].mxu1 %vm1443_vm2, %v19070_v59  ;;  %v19094_v59 = vld [vmem:[#allocation2 + $0x84] sm:$0xff] }
 0x3f0   : > { %14733 = vmatmul.mubr.msk.f32.gmra.mrb[6].mxu0 %vm1443_vm2, %v19072_v30  ;;  %13998 = vmatprep.mubr.msk.f32.mxu1 %vm17196_vm0, %v21229_v19  ;;  %21275 = vst [vmem:[#allocation43_spill] sm:$0xff] %v19094_v59  ;;  %v19096_v30 = vld [vmem:[#allocation2 + $0x48] sm:$0xff] }
 0x3f1   : > { %14735 = vmatprep.mubr.msk.f32.mxu0 %vm17196_vm0, %v21229_v19  ;;  %21276 = vst [vmem:[#allocation44_spill] sm:$0xff] %v19096_v30 }
 0x3f3   : > { %13999 = vmatmul.mubr.msk.f32.gmra.mrb[230].mxu1 %vm1443_vm2, %v19082_v57  ;;  %v19106_v57 = vld [vmem:[#allocation2 + $0x8c] sm:$0xff] }
 0x3f4   : > { %14736 = vmatmul.mubr.msk.f32.gmra.mrb[8].mxu0 %vm1443_vm2, %v19084_v23  ;;  %14001 = vmatprep.mubr.msk.f32.mxu1 %vm17196_vm0, %v21229_v19  ;;  %21277 = vst [vmem:[#allocation45_spill] sm:$0xff] %v19106_v57  ;;  %v19108_v23 = vld [vmem:[#allocation2 + $0x50] sm:$0xff] }
 0x3f5   : > { %14738 = vmatprep.mubr.msk.f32.mxu0 %vm17196_vm0, %v21229_v19 }
 0x3f7   : > { %14002 = vmatmul.mubr.msk.f32.gmra.mrb[232].mxu1 %vm1443_vm2, %v19094_v59  ;;  %v19118_v59 = vld [vmem:[#allocation2 + $0x94] sm:$0xff] }
 0x3f8   : > { %14739 = vmatmul.mubr.msk.f32.gmra.mrb[10].mxu0 %vm1443_vm2, %v19096_v30  ;;  %14004 = vmatprep.mubr.msk.f32.mxu1 %vm17196_vm0, %v21229_v19  ;;  %21278 = vst [vmem:[#allocation46_spill] sm:$0xff] %v19118_v59  ;;  %v19120_v30 = vld [vmem:[#allocation2 + $0x58] sm:$0xff] }
 0x3f9   : > { %14741 = vmatprep.mubr.msk.f32.mxu0 %vm17196_vm0, %v21229_v19 }
 0x3fb   : > { %14005 = vmatmul.mubr.msk.f32.gmra.mrb[234].mxu1 %vm1443_vm2, %v19106_v57  ;;  %v19130_v57 = vld [vmem:[#allocation2 + $0x9c] sm:$0xff] }
 0x3fc   : > { %14742 = vmatmul.mubr.msk.f32.gmra.mrb[12].mxu0 %vm1443_vm2, %v19108_v23  ;;  %14007 = vmatprep.mubr.msk.f32.mxu1 %vm17196_vm0, %v21229_v19 }
 0x3fd   : > { %14744 = vmatprep.mubr.msk.f32.mxu0 %vm17196_vm0, %v21229_v19 }
 0x3ff   : > { %14008 = vmatmul.mubr.msk.f32.gmra.mrb[236].mxu1 %vm1443_vm2, %v19118_v59  ;;  %v19140_v59 = vld [vmem:[#allocation2 + $0xa4] sm:$0xff] }
 0x400   : > { %14745 = vmatmul.mubr.msk.f32.gmra.mrb[14].mxu0 %vm1443_vm2, %v19120_v30  ;;  %14010 = vmatprep.mubr.msk.f32.mxu1 %vm17196_vm0, %v21229_v19 }
 0x401   : > { %14747 = vmatprep.mubr.msk.f32.mxu0 %vm17196_vm0, %v21229_v19 }
 0x403   : > { %14011 = vmatmul.mubr.msk.f32.gmra.mrb[238].mxu1 %vm1443_vm2, %v19130_v57 }
 0x404   : > { %14748 = vmatmul.mubr.msk.f32.gmra.mrb[16].mxu0 %vm1443_vm2, %v18293_v32  ;;  %14013 = vmatprep.mubr.msk.f32.mxu1 %vm17196_vm0, %v21229_v19  ;;  %v19150_v32 = vld [vmem:[#allocation2 + $0xac] sm:$0xff] }
 0x405   : > { %14750 = vmatprep.mubr.msk.f32.mxu0 %vm17196_vm0, %v21229_v19 }
 0x407   : > { %14014 = vmatmul.mubr.msk.f32.gmra.mrb[240].mxu1 %vm1443_vm2, %v19140_v59 }
 0x408   : > { %14751 = vmatmul.mubr.msk.f32.gmra.mrb[18].mxu0 %vm1443_vm2, %v18302_v9  ;;  %14016 = vmatprep.mubr.msk.f32.mxu1 %vm17196_vm0, %v21229_v19  ;;  %v19160_v9 = vld [vmem:[#allocation2 + $0xb4] sm:$0xff] }
 0x409   : > { %14753 = vmatprep.mubr.msk.f32.mxu0 %vm17196_vm0, %v21229_v19  ;;  %21279 = vst [vmem:[#allocation47_spill] sm:$0xff] %v19160_v9 }
 0x40b   : > { %14017 = vmatmul.mubr.msk.f32.gmra.mrb[242].mxu1 %vm1443_vm2, %v19150_v32 }
 0x40c   : > { %14754 = vmatmul.mubr.msk.f32.gmra.mrb[20].mxu0 %vm1443_vm2, %v18311_v13  ;;  %14019 = vmatprep.mubr.msk.f32.mxu1 %vm17196_vm0, %v21229_v19  ;;  %v19170_v13 = vld [vmem:[#allocation2 + $0xbc] sm:$0xff] }
 0x40d   : > { %14756 = vmatprep.mubr.msk.f32.mxu0 %vm17196_vm0, %v21229_v19  ;;  %21280 = vst [vmem:[#allocation48_spill] sm:$0xff] %v19170_v13 }
 0x40f   : > { %14020 = vmatmul.mubr.msk.f32.gmra.mrb[244].mxu1 %vm1443_vm2, %v19160_v9  ;;  %v3349_v9 = vld [vmem:[%s21163_s1 + $0x40] sm:$0xff] }
 0x410   : > { %14757 = vmatmul.mubr.msk.f32.gmra.mrb[22].mxu0 %vm1443_vm2, %v18320_v47  ;;  %14022 = vmatprep.mubr.msk.f32.mxu1 %vm17196_vm0, %v21229_v19  ;;  %v2716_v47 = vld [vmem:[#allocation2 + $0xc4] sm:$0xf] }
 0x411   : > { %14759 = vmatprep.mubr.msk.f32.mxu0 %vm17196_vm0, %v21229_v19 }
 0x413   : > { %14023 = vmatmul.mubr.msk.f32.gmra.mrb[246].mxu1 %vm1443_vm2, %v19170_v13  ;;  %v3008_v13 = vld [vmem:[#allocation2 + $0xe] sm:$0xff] }
 0x414   : > { %14760 = vmatmul.mubr.msk.f32.gmra.mrb[24].mxu0 %vm1443_vm2, %v18329_v52  ;;  %14025 = vmatprep.mubr.msk.f32.mxu1 %vm17196_vm0, %v21229_v19  ;;  %v19187_v52 = vld [vmem:[#allocation2 + $0x90] sm:$0xff] }
 0x415   : > { %14762 = vmatprep.mubr.msk.f32.mxu0 %vm17196_vm0, %v21229_v19 }
 0x417   : > { %14026 = vmatmul.mubr.msk.f32.gmra.mrb[248].mxu1 %vm1443_vm2, %v2716_v47  ;;  %v19199_v47 = vld [vmem:[#allocation2 + $0x98] sm:$0xff] }
 0x418   : > { %14763 = vmatmul.mubr.msk.f32.gmra.mrb[26].mxu0 %vm1443_vm2, %v18338_v36  ;;  %14030 = vmatprep.mubr.msk.f32.mxu1 %vm17196_vm0, %v21229_v19  ;;  %v3009_v36 = vld [vmem:[#allocation2 + $0x16] sm:$0xff] }
 0x419   : > { %14765 = vmatprep.mubr.msk.f32.mxu0 %vm17196_vm0, %v21229_v19 }
 0x41b   : > { %14031 = vmatmul.mubr.msk.f32.vlgmr.msra.gmra.mrb[200].mxu1 %vm1443_vm2, %v3008_v13  ;;  %v19209_v13 = vld [vmem:[#allocation2 + $0xa0] sm:$0xff] }
 0x41c   : > { %14766 = vmatmul.mubr.msk.f32.gmra.mrb[28].mxu0 %vm1443_vm2, %v19187_v52  ;;  %14033 = vmatprep.mubr.msk.f32.mxu1 %vm17196_vm0, %v21229_v19 }
 0x41d   : > { %14768 = vmatprep.mubr.msk.f32.mxu0 %vm17196_vm0, %v21229_v19  ;;  %14106 = vmatpush3.msra.mxu1 %v3349_v9  ;;  %v19219_v9 = vld [vmem:[#allocation2 + $0xa8] sm:$0xff] }
 0x41e   : > { %14182 = vmatprep.subr.mxu1 %v21229_v19 }
 0x41f   : > { %14034 = vmatmul.mubr.msk.f32.gmra.mrb[202].mxu1 %vm1443_vm2, %v3009_v36  ;;  %v6168_v36 = vld [vmem:[#allocation2 + $0x2a] sm:$0xff] }
 0x420   : > { %14769 = vmatmul.mubr.msk.f32.gmra.mrb[30].mxu0 %vm1443_vm2, %v19199_v47  ;;  %14036 = vmatprep.mubr.msk.f32.mxu1 %vm17196_vm0, %v21229_v19 }
 0x421   : > { %14771 = vmatprep.mubr.msk.f32.mxu0 %vm17196_vm0, %v21229_v19 }
 0x423   : > { %14037 = vmatmul.mubr.msk.f32.gmra.mrb[204].mxu1 %vm1443_vm2, %v18473_v51  ;;  %v19229_v51 = vld [vmem:[#allocation2 + $0xb0] sm:$0xff] }
 0x424   : > { %14772 = vmatmul.mubr.msk.f32.gmra.mrb[32].mxu0 %vm1443_vm2, %v19209_v13  ;;  %14039 = vmatprep.mubr.msk.f32.mxu1 %vm17196_vm0, %v21229_v19 }
 0x425   : > { %14774 = vmatprep.mubr.msk.f32.mxu0 %vm17196_vm0, %v21229_v19 }
 0x427   : > { %14040 = vmatmul.mubr.msk.f32.gmra.mrb[206].mxu1 %vm1443_vm2, %v18486_v2  ;;  %v19239_v2 = vld [vmem:[#allocation2 + $0xb8] sm:$0xff] }
 0x428   : > { %14775 = vmatmul.mubr.msk.f32.gmra.mrb[34].mxu0 %vm1443_vm2, %v19219_v9  ;;  %14042 = vmatprep.mubr.msk.f32.mxu1 %vm17196_vm0, %v21229_v19 }
 0x429   : > { %14777 = vmatprep.mubr.msk.f32.mxu0 %vm17196_vm0, %v21229_v19 }
 0x42b   : > { %14043 = vmatmul.mubr.msk.f32.gmra.mrb[208].mxu1 %vm1443_vm2, %v18498_v24  ;;  %v19249_v24 = vld [vmem:[#allocation2 + $0xc0] sm:$0xff] }
 0x42c   : > { %14778 = vmatmul.mubr.msk.f32.gmra.mrb[36].mxu0 %vm1443_vm2, %v19229_v51  ;;  %14045 = vmatprep.mubr.msk.f32.mxu1 %vm17196_vm0, %v21229_v19 }
 0x42d   : > { %14780 = vmatprep.mubr.msk.f32.mxu0 %vm17196_vm0, %v21229_v19 }
 0x42f   : > { %14046 = vmatmul.mubr.msk.f32.gmra.mrb[210].mxu1 %vm1443_vm2, %v18510_v54  ;;  %v19259_v54 = vld [vmem:[#allocation2 + $0xc8] sm:$0xff] }
 0x430   : > { %14781 = vmatmul.mubr.msk.f32.gmra.mrb[38].mxu0 %vm1443_vm2, %v19239_v2  ;;  %14048 = vmatprep.mubr.msk.f32.mxu1 %vm17196_vm0, %v21229_v19 }
 0x431   : > { %14783 = vmatprep.mubr.msk.f32.mxu0 %vm17196_vm0, %v21229_v19 }
 0x433   : > { %14049 = vmatmul.mubr.msk.f32.gmra.mrb[212].mxu1 %vm1443_vm2, %v18522_v4  ;;  %v5874_v4 = vld [vmem:[#allocation2 + $0xd0] sm:$0xff] }
 0x434   : > { %14784 = vmatmul.mubr.msk.f32.gmra.mrb[40].mxu0 %vm1443_vm2, %v19249_v24  ;;  %14051 = vmatprep.mubr.msk.f32.mxu1 %vm17196_vm0, %v21229_v19 }
 0x435   : > { %14786 = vmatprep.mubr.msk.f32.mxu0 %vm17196_vm0, %v21229_v19 }
 0x437   : > { %14052 = vmatmul.mubr.msk.f32.gmra.mrb[214].mxu1 %vm1443_vm2, %v18534_v27  ;;  %v5875_v27 = vld [vmem:[#allocation2 + $0xd8] sm:$0xff] }
 0x438   : > { %14787 = vmatmul.mubr.msk.f32.gmra.mrb[42].mxu0 %vm1443_vm2, %v19259_v54  ;;  %14054 = vmatprep.mubr.msk.f32.mxu1 %vm17196_vm0, %v21229_v19 }
 0x439   : > { %14789 = vmatprep.mubr.msk.f32.mxu0 %vm17196_vm0, %v21229_v19 }
 0x43b   : > { %14055 = vmatmul.mubr.msk.f32.gmra.mrb[216].mxu1 %vm1443_vm2, %v18546_v28  ;;  %v5876_v28 = vld [vmem:[#allocation2 + $0xe0] sm:$0xf] }
 0x43c   : > { %14790 = vmatmul.mubr.msk.f32.gmra.mrb[44].mxu0 %vm1443_vm2, %v5874_v4  ;;  %14057 = vmatprep.mubr.msk.f32.mxu1 %vm17196_vm0, %v21229_v19  ;;  %v21306_v4 = vld [vmem:[#allocation18_spill] sm:$0xff] }
 0x43d   : > { %14792 = vmatprep.mubr.msk.f32.mxu0 %vm17196_vm0, %v21229_v19 }
 0x43f   : > { %14058 = vmatmul.mubr.msk.f32.gmra.mrb[218].mxu1 %vm1443_vm2, %v18558_v25  ;;  %v6509_v25 = vld [vmem:[%s21163_s1 + $0x90] sm:$0xff] }
 0x440   : > { %14793 = vmatmul.mubr.msk.f32.gmra.mrb[46].mxu0 %vm1443_vm2, %v5875_v27  ;;  %14060 = vmatprep.mubr.msk.f32.mxu1 %vm17196_vm0, %v21229_v19  ;;  %v6503_v27 = vld [vmem:[#allocation2 + $0xc3] sm:$0xff] }
 0x441   : > { %14795 = vmatprep.mubr.msk.f32.mxu0 %vm17196_vm0, %v21229_v19 }
 0x443   : > { %14061 = vmatmul.mubr.msk.f32.gmra.mrb[220].mxu1 %vm1443_vm2, %v18570_v37  ;;  %v6169_v37 = vld [vmem:[#allocation2 + $0x32] sm:$0xff] }
 0x444   : > { %14796 = vmatmul.mubr.msk.f32.gmra.mrb[48].mxu0 %vm1443_vm2, %v5876_v28  ;;  %14063 = vmatprep.mubr.msk.f32.mxu1 %vm17196_vm0, %v21229_v19  ;;  %v21307_v28 = vld [vmem:[#allocation40_spill] sm:$0xff] }
 0x445   : > { %14800 = vmatprep.mubr.msk.f32.mxu0 %vm17196_vm0, %v21229_v19 }
 0x447   : > { %14064 = vmatmul.mubr.msk.f32.gmra.mrb[222].mxu1 %vm1443_vm2, %v18582_v8  ;;  %v6170_v8 = vld [vmem:[#allocation2 + $0x3a] sm:$0xff] }
 0x448   : > { %14801 = vmatmul.mubr.msk.f32.vlgmr.msra.gmra.mrb[0].mxu0 %vm1443_vm2, %v6168_v36  ;;  %14066 = vmatprep.mubr.msk.f32.mxu1 %vm17196_vm0, %v21229_v19  ;;  %v21308_v36 = vld [vmem:[#allocation42_spill] sm:$0xff] }
 0x449   : > { %14876 = vmatpush3.msra.mxu0 %v6509_v25  ;;  %14803 = vmatprep.mubr.msk.f32.mxu0 %vm17196_vm0, %v21229_v19  ;;  %v6504_v25 = vld [vmem:[#allocation2 + $0xcb] sm:$0xff] }
 0x44a   : > { %14952 = vmatprep.subr.mxu0 %v21229_v19 }
 0x44b   : > { %14067 = vmatmul.mubr.msk.f32.gmra.mrb[224].mxu1 %vm1443_vm2, %v18594_v41  ;;  %v6171_v41 = vld [vmem:[#allocation2 + $0x42] sm:$0xff] }
 0x44c   : > { %14804 = vmatmul.mubr.msk.f32.gmra.mrb[2].mxu0 %vm1443_vm2, %v6169_v37  ;;  %14069 = vmatprep.mubr.msk.f32.mxu1 %vm17196_vm0, %v21229_v19  ;;  %v6505_v37 = vld [vmem:[#allocation2 + $0xd3] sm:$0xff] }
 0x44d   : > { %14806 = vmatprep.mubr.msk.f32.mxu0 %vm17196_vm0, %v21229_v19 }
 0x44f   : > { %14070 = vmatmul.mubr.msk.f32.gmra.mrb[226].mxu1 %vm1443_vm2, %v18606_v33  ;;  %v6172_v33 = vld [vmem:[#allocation2 + $0x4a] sm:$0xff] }
 0x450   : > { %14807 = vmatmul.mubr.msk.f32.gmra.mrb[4].mxu0 %vm1443_vm2, %v6170_v8  ;;  %14072 = vmatprep.mubr.msk.f32.mxu1 %vm17196_vm0, %v21229_v19  ;;  %v21309_v8 = vld [vmem:[#allocation44_spill] sm:$0xff] }
 0x451   : > { %14809 = vmatprep.mubr.msk.f32.mxu0 %vm17196_vm0, %v21229_v19 }
 0x453   : > { %14073 = vmatmul.mubr.msk.f32.gmra.mrb[228].mxu1 %vm1443_vm2, %v18618_v34  ;;  %v6173_v34 = vld [vmem:[#allocation2 + $0x52] sm:$0xff] }
 0x454   : > { %14810 = vmatmul.mubr.msk.f32.gmra.mrb[6].mxu0 %vm1443_vm2, %v6171_v41  ;;  %14075 = vmatprep.mubr.msk.f32.mxu1 %vm17196_vm0, %v21229_v19  ;;  %v6506_v41 = vld [vmem:[#allocation2 + $0xdb] sm:$0xff] }
 0x455   : > { %14812 = vmatprep.mubr.msk.f32.mxu0 %vm17196_vm0, %v21229_v19 }
 0x457   : > { %14076 = vmatmul.mubr.msk.f32.gmra.mrb[230].mxu1 %vm1443_vm2, %v18628_v12  ;;  %v21283_v12 = vld [vmem:[#allocation20_spill] sm:$0xff] }
 0x458   : > { %14813 = vmatmul.mubr.msk.f32.gmra.mrb[8].mxu0 %vm1443_vm2, %v6172_v33  ;;  %14078 = vmatprep.mubr.msk.f32.mxu1 %vm17196_vm0, %v21229_v19  ;;  %v6507_v33 = vld [vmem:[#allocation2 + $0xe3] sm:$0xff] }
 0x459   : > { %14815 = vmatprep.mubr.msk.f32.mxu0 %vm17196_vm0, %v21229_v19 }
 0x45b   : > { %14079 = vmatmul.mubr.msk.f32.gmra.mrb[232].mxu1 %vm1443_vm2, %v18637_v39  ;;  %v21284_v39 = vld [vmem:[#allocation5_spill] sm:$0xff] }
 0x45c   : > { %14816 = vmatmul.mubr.msk.f32.gmra.mrb[10].mxu0 %vm1443_vm2, %v6173_v34  ;;  %14081 = vmatprep.mubr.msk.f32.mxu1 %vm17196_vm0, %v21229_v19  ;;  %v19675_v34 = vld [vmem:[#allocation2 + $0x60] sm:$0xff] }
 0x45d   : > { %14818 = vmatprep.mubr.msk.f32.mxu0 %vm17196_vm0, %v21229_v19 }
 0x45f   : > { %14082 = vmatmul.mubr.msk.f32.gmra.mrb[234].mxu1 %vm1443_vm2, %v18649_v5  ;;  %v21285_v5 = vld [vmem:[#allocation21_spill] sm:$0xff] }
 0x460   : > { %14819 = vmatmul.mubr.msk.f32.gmra.mrb[12].mxu0 %vm1443_vm2, %v18471_v50  ;;  %14084 = vmatprep.mubr.msk.f32.mxu1 %vm17196_vm0, %v21229_v19  ;;  %v3032_v50 = vld [vmem:[#allocation2 + $0xce] sm:$0xf] }
 0x461   : > { %14821 = vmatprep.mubr.msk.f32.mxu0 %vm17196_vm0, %v21229_v19 }
 0x463   : > { %14085 = vmatmul.mubr.msk.f32.gmra.mrb[236].mxu1 %vm1443_vm2, %v18659_v15  ;;  %v21286_v15 = vld [vmem:[#allocation6_spill] sm:$0xff] }
 0x464   : > { %14822 = vmatmul.mubr.msk.f32.gmra.mrb[14].mxu0 %vm1443_vm2, %v18484_v20  ;;  %14087 = vmatprep.mubr.msk.f32.mxu1 %vm17196_vm0, %v21229_v19  ;;  %v3324_v20 = vld [vmem:[#allocation2 + $0xf] sm:$0xff] }
 0x465   : > { %14824 = vmatprep.mubr.msk.f32.mxu0 %vm17196_vm0, %v21229_v19 }
 0x467   : > { %14088 = vmatmul.mubr.msk.f32.gmra.mrb[238].mxu1 %vm1443_vm2, %v18668_v17  ;;  %v21287_v17 = vld [vmem:[#allocation22_spill] sm:$0xff] }
 0x468   : > { %14825 = vmatmul.mubr.msk.f32.gmra.mrb[16].mxu0 %vm1443_vm2, %v18496_v1  ;;  %14090 = vmatprep.mubr.msk.f32.mxu1 %vm17196_vm0, %v21229_v19  ;;  %v3665_v1 = vld [vmem:[%s21163_s1 + $0x48] sm:$0xff] }
 0x469   : > { %14827 = vmatprep.mubr.msk.f32.mxu0 %vm17196_vm0, %v21229_v19 }
 0x46b   : > { %14091 = vmatmul.mubr.msk.f32.gmra.mrb[240].mxu1 %vm1443_vm2, %v18677_v3  ;;  %v21288_v3 = vld [vmem:[#allocation7_spill] sm:$0xff] }
 0x46c   : > { %14828 = vmatmul.mubr.msk.f32.gmra.mrb[18].mxu0 %vm1443_vm2, %v18508_v16  ;;  %14093 = vmatprep.mubr.msk.f32.mxu1 %vm17196_vm0, %v21229_v19  ;;  %v3325_v16 = vld [vmem:[#allocation2 + $0x17] sm:$0xff] }
 0x46d   : > { %14830 = vmatprep.mubr.msk.f32.mxu0 %vm17196_vm0, %v21229_v19 }
 0x46f   : > { %14094 = vmatmul.mubr.msk.f32.gmra.mrb[242].mxu1 %vm1443_vm2, %v18688_v60  ;;  %v21290_v60 = vld [vmem:[#allocation8_spill] sm:$0xff] }
 0x470   : > { %14831 = vmatmul.mubr.msk.f32.gmra.mrb[20].mxu0 %vm1443_vm2, %v18520_v18  ;;  %14096 = vmatprep.mubr.msk.f32.mxu1 %vm17196_vm0, %v21229_v19  ;;  %v6187_v18 = vld [vmem:[#allocation2 + $0xc2] sm:$0xff] }
 0x471   : > { %14833 = vmatprep.mubr.msk.f32.mxu0 %vm17196_vm0, %v21229_v19 }
 0x473   : > { %14097 = vmatmul.mubr.msk.f32.gmra.mrb[244].mxu1 %vm1443_vm2, %v18700_v26  ;;  %v21292_v26 = vld [vmem:[#allocation9_spill] sm:$0xff] }
 0x474   : > { %14834 = vmatmul.mubr.msk.f32.gmra.mrb[22].mxu0 %vm1443_vm2, %v18532_v29  ;;  %14099 = vmatprep.mubr.msk.f32.mxu1 %vm17196_vm0, %v21229_v19  ;;  %v6188_v29 = vld [vmem:[#allocation2 + $0xca] sm:$0xff] }
 0x475   : > { %14836 = vmatprep.mubr.msk.f32.mxu0 %vm17196_vm0, %v21229_v19 }
 0x477   : > { %14100 = vmatmul.mubr.msk.f32.gmra.mrb[246].mxu1 %vm1443_vm2, %v18710_v46  ;;  %v21293_v46 = vld [vmem:[#allocation26_spill] sm:$0xff] }
 0x478   : > { %14837 = vmatmul.mubr.msk.f32.gmra.mrb[24].mxu0 %vm1443_vm2, %v18544_v6  ;;  %14102 = vmatprep.mubr.msk.f32.mxu1 %vm17196_vm0, %v21229_v19  ;;  %v6189_v6 = vld [vmem:[#allocation2 + $0xd2] sm:$0xff] }
 0x479   : > { %14839 = vmatprep.mubr.msk.f32.mxu0 %vm17196_vm0, %v21229_v19 }
 0x47b   : > { %14103 = vmatmul.mubr.msk.f32.gmra.mrb[248].mxu1 %vm1443_vm2, %v3032_v50  ;;  %v19687_v50 = vld [vmem:[#allocation2 + $0x68] sm:$0xff] }
 0x47c   : > { %14840 = vmatmul.mubr.msk.f32.gmra.mrb[26].mxu0 %vm1443_vm2, %v18556_v35  ;;  %14107 = vmatprep.mubr.msk.f32.mxu1 %vm17196_vm0, %v21229_v19  ;;  %v6190_v35 = vld [vmem:[#allocation2 + $0xda] sm:$0xff] }
 0x47d   : > { %14842 = vmatprep.mubr.msk.f32.mxu0 %vm17196_vm0, %v21229_v19 }
 0x47f   : > { %14108 = vmatmul.mubr.msk.f32.vlgmr.msra.gmra.mrb[200].mxu1 %vm1443_vm2, %v3324_v20  ;;  %v21310_v20 = vld [vmem:[#allocation25_spill] sm:$0xff] }
 0x480   : > { %14843 = vmatmul.mubr.msk.f32.gmra.mrb[28].mxu0 %vm1443_vm2, %v18568_v61  ;;  %14110 = vmatprep.mubr.msk.f32.mxu1 %vm17196_vm0, %v21229_v19  ;;  %v6191_v61 = vld [vmem:[#allocation2 + $0xe2] sm:$0xff] }
 0x481   : > { %14845 = vmatprep.mubr.msk.f32.mxu0 %vm17196_vm0, %v21229_v19  ;;  %14183 = vmatpush3.msra.mxu1 %v3665_v1  ;;  %v19698_v1 = vld [vmem:[#allocation2 + $0x70] sm:$0xff] }
 0x482   : > { %14259 = vmatprep.subr.mxu1 %v21229_v19 }
 0x483   : > { %14111 = vmatmul.mubr.msk.f32.gmra.mrb[202].mxu1 %vm1443_vm2, %v3325_v16  ;;  %v21311_v16 = vld [vmem:[#allocation27_spill] sm:$0xff] }
 0x484   : > { %14846 = vmatmul.mubr.msk.f32.gmra.mrb[30].mxu0 %vm1443_vm2, %v18580_v43  ;;  %14113 = vmatprep.mubr.msk.f32.mxu1 %vm17196_vm0, %v21229_v19  ;;  %v6192_v43 = vld [vmem:[#allocation2 + $0xea] sm:$0xf] }
 0x485   : > { %14848 = vmatprep.mubr.msk.f32.mxu0 %vm17196_vm0, %v21229_v19 }
 0x487   : > { %14114 = vmatmul.mubr.msk.f32.gmra.mrb[204].mxu1 %vm1443_vm2, %v18754_v42  ;;  %v21296_v42 = vld [vmem:[#allocation11_spill] sm:$0xff] }
 0x488   : > { %14849 = vmatmul.mubr.msk.f32.gmra.mrb[32].mxu0 %vm1443_vm2, %v18592_v40  ;;  %14116 = vmatprep.mubr.msk.f32.mxu1 %vm17196_vm0, %v21229_v19  ;;  %v6825_v40 = vld [vmem:[%s21163_s1 + $0x98] sm:$0xff] }
 0x489   : > { %14851 = vmatprep.mubr.msk.f32.mxu0 %vm17196_vm0, %v21229_v19 }
 0x48b   : > { %14117 = vmatmul.mubr.msk.f32.gmra.mrb[206].mxu1 %vm1443_vm2, %v18767_v21  ;;  %v21298_v21 = vld [vmem:[#allocation12_spill] sm:$0xff] }
 0x48c   : > { %14852 = vmatmul.mubr.msk.f32.gmra.mrb[34].mxu0 %vm1443_vm2, %v18604_v44  ;;  %14119 = vmatprep.mubr.msk.f32.mxu1 %vm17196_vm0, %v21229_v19  ;;  %v21281_v44 = vld [vmem:[#allocation19_spill] sm:$0xff] }
 0x48d   : > { %14854 = vmatprep.mubr.msk.f32.mxu0 %vm17196_vm0, %v21229_v19 }
 0x48f   : > { %14120 = vmatmul.mubr.msk.f32.gmra.mrb[208].mxu1 %vm1443_vm2, %v18779_v22  ;;  %v21299_v22 = vld [vmem:[#allocation13_spill] sm:$0xff] }
 0x490   : > { %14855 = vmatmul.mubr.msk.f32.gmra.mrb[36].mxu0 %vm1443_vm2, %v18616_v10  ;;  %14122 = vmatprep.mubr.msk.f32.mxu1 %vm17196_vm0, %v21229_v19  ;;  %v21282_v10 = vld [vmem:[#allocation4_spill] sm:$0xff] }
 0x491   : > { %14857 = vmatprep.mubr.msk.f32.mxu0 %vm17196_vm0, %v21229_v19 }
 0x493   : > { %14123 = vmatmul.mubr.msk.f32.gmra.mrb[210].mxu1 %vm1443_vm2, %v18791_v56  ;;  %v3981_v56 = vld [vmem:[%s21163_s1 + $0x50] sm:$0xff] }
 0x494   : > { %14858 = vmatmul.mubr.msk.f32.gmra.mrb[38].mxu0 %vm1443_vm2, %v6187_v18  ;;  %14125 = vmatprep.mubr.msk.f32.mxu1 %vm17196_vm0, %v21229_v19  ;;  %v19708_v18 = vld [vmem:[#allocation2 + $0x78] sm:$0xff] }
 0x495   : > { %14860 = vmatprep.mubr.msk.f32.mxu0 %vm17196_vm0, %v21229_v19 }
 0x497   : > { %14126 = vmatmul.mubr.msk.f32.gmra.mrb[212].mxu1 %vm1443_vm2, %v18803_v11  ;;  %v3641_v11 = vld [vmem:[#allocation2 + $0x18] sm:$0xff] }
 0x498   : > { %14861 = vmatmul.mubr.msk.f32.gmra.mrb[40].mxu0 %vm1443_vm2, %v6188_v29  ;;  %14128 = vmatprep.mubr.msk.f32.mxu1 %vm17196_vm0, %v21229_v19  ;;  %v21312_v29 = vld [vmem:[#allocation30_spill] sm:$0xff] }
 0x499   : > { %14863 = vmatprep.mubr.msk.f32.mxu0 %vm17196_vm0, %v21229_v19 }
 0x49b   : > { %14129 = vmatmul.mubr.msk.f32.gmra.mrb[214].mxu1 %vm1443_vm2, %v18815_v14  ;;  %v21302_v14 = vld [vmem:[#allocation16_spill] sm:$0xff] }
 0x49c   : > { %14864 = vmatmul.mubr.msk.f32.gmra.mrb[42].mxu0 %vm1443_vm2, %v6189_v6  ;;  %14131 = vmatprep.mubr.msk.f32.mxu1 %vm17196_vm0, %v21229_v19  ;;  %v19718_v6 = vld [vmem:[#allocation2 + $0x80] sm:$0xff] }
 0x49d   : > { %14866 = vmatprep.mubr.msk.f32.mxu0 %vm17196_vm0, %v21229_v19 }
 0x49f   : > { %14132 = vmatmul.mubr.msk.f32.gmra.mrb[216].mxu1 %vm1443_vm2, %v18827_v7  ;;  %v21303_v7 = vld [vmem:[#allocation36_spill] sm:$0xff] }
 0x4a0   : > { %14867 = vmatmul.mubr.msk.f32.gmra.mrb[44].mxu0 %vm1443_vm2, %v6190_v35  ;;  %14134 = vmatprep.mubr.msk.f32.mxu1 %vm17196_vm0, %v21229_v19  ;;  %v21313_v35 = vld [vmem:[#allocation31_spill] sm:$0xff] }
 0x4a1   : > { %14869 = vmatprep.mubr.msk.f32.mxu0 %vm17196_vm0, %v21229_v19 }
 0x4a3   : > { %14135 = vmatmul.mubr.msk.f32.gmra.mrb[218].mxu1 %vm1443_vm2, %v18839_v49  ;;  %v21304_v49 = vld [vmem:[#allocation17_spill] sm:$0xff] }
 0x4a4   : > { %14870 = vmatmul.mubr.msk.f32.gmra.mrb[46].mxu0 %vm1443_vm2, %v6191_v61  ;;  %14137 = vmatprep.mubr.msk.f32.mxu1 %vm17196_vm0, %v21229_v19  ;;  %v19728_v61 = vld [vmem:[#allocation2 + $0x88] sm:$0xff] }
 0x4a5   : > { %14872 = vmatprep.mubr.msk.f32.mxu0 %vm17196_vm0, %v21229_v19 }
 0x4a7   : > { %14138 = vmatmul.mubr.msk.f32.gmra.mrb[220].mxu1 %vm1443_vm2, %v18851_v63  ;;  %v21301_v63 = vld [vmem:[#allocation15_spill] sm:$0xff] }
 0x4a8   : > { %14873 = vmatmul.mubr.msk.f32.gmra.mrb[48].mxu0 %vm1443_vm2, %v6192_v43  ;;  %14140 = vmatprep.mubr.msk.f32.mxu1 %vm17196_vm0, %v21229_v19  ;;  %v21314_v43 = vld [vmem:[#allocation32_spill] sm:$0xff] }
 0x4a9   : > { %14877 = vmatprep.mubr.msk.f32.mxu0 %vm17196_vm0, %v21229_v19 }
 0x4ab   : > { %14141 = vmatmul.mubr.msk.f32.gmra.mrb[222].mxu1 %vm1443_vm2, %v18863_v53  ;;  %v21300_v53 = vld [vmem:[#allocation14_spill] sm:$0xff] }
 0x4ac   : > { %14878 = vmatmul.mubr.msk.f32.vlgmr.msra.gmra.mrb[0].mxu0 %vm1443_vm2, %v18686_v45  ;;  %14143 = vmatprep.mubr.msk.f32.mxu1 %vm17196_vm0, %v21229_v19  ;;  %v21289_v45 = vld [vmem:[#allocation23_spill] sm:$0xff] }
 0x4ad   : > { %14953 = vmatpush3.msra.mxu0 %v6825_v40  ;;  %14880 = vmatprep.mubr.msk.f32.mxu0 %vm17196_vm0, %v21229_v19  ;;  %v21315_v40 = vld [vmem:[#allocation33_spill] sm:$0xff] }
 0x4ae   : > { %15029 = vmatprep.subr.mxu0 %v21229_v19 }
 0x4af   : > { %14144 = vmatmul.mubr.msk.f32.gmra.mrb[224].mxu1 %vm1443_vm2, %v18875_v58  ;;  %v3640_v58 = vld [vmem:[#allocation2 + $0x10] sm:$0xff] }
 0x4b0   : > { %14881 = vmatmul.mubr.msk.f32.gmra.mrb[2].mxu0 %vm1443_vm2, %v18698_v38  ;;  %14146 = vmatprep.mubr.msk.f32.mxu1 %vm17196_vm0, %v21229_v19  ;;  %v21291_v38 = vld [vmem:[#allocation24_spill] sm:$0xff] }
 0x4b1   : > { %14883 = vmatprep.mubr.msk.f32.mxu0 %vm17196_vm0, %v21229_v19 }
 0x4b3   : > { %14147 = vmatmul.mubr.msk.f32.gmra.mrb[226].mxu1 %vm1443_vm2, %v18887_v31  ;;  %v3348_v31 = vld [vmem:[#allocation2 + $0xcf] sm:$0xf] }
 0x4b4   : > { %14884 = vmatmul.mubr.msk.f32.gmra.mrb[4].mxu0 %vm1443_vm2, %v18712_v48  ;;  %14149 = vmatprep.mubr.msk.f32.mxu1 %vm17196_vm0, %v21229_v19  ;;  %v21294_v48 = vld [vmem:[#allocation10_spill] sm:$0xff] }
 0x4b5   : > { %14886 = vmatprep.mubr.msk.f32.mxu0 %vm17196_vm0, %v21229_v19 }
 0x4b7   : > { %14150 = vmatmul.mubr.msk.f32.gmra.mrb[228].mxu1 %vm1443_vm2, %v18899_v0  ;;  %v21297_v0 = vld [vmem:[#allocation29_spill] sm:$0xff] }
 0x4b8   : > { %14887 = vmatmul.mubr.msk.f32.gmra.mrb[6].mxu0 %vm1443_vm2, %v18722_v62  ;;  %14152 = vmatprep.mubr.msk.f32.mxu1 %vm17196_vm0, %v21229_v19  ;;  %v21295_v62 = vld [vmem:[#allocation28_spill] sm:$0xff] }
 0x4b9   : > { %14889 = vmatprep.mubr.msk.f32.mxu0 %vm17196_vm0, %v21229_v19 }
 0x4bb   : > { %14153 = vmatmul.mubr.msk.f32.gmra.mrb[230].mxu1 %vm1443_vm2, %v21281_v44  ;;  %v21316_v44 = vld [vmem:[#allocation34_spill] sm:$0xff] }
 0x4bc   : > { %14890 = vmatmul.mubr.msk.f32.gmra.mrb[8].mxu0 %vm1443_vm2, %v21282_v10  ;;  %14155 = vmatprep.mubr.msk.f32.mxu1 %vm17196_vm0, %v21229_v19  ;;  %v21323_v10 = vld [vmem:[#allocation46_spill] sm:$0xff] }
 0x4bd   : > { %14892 = vmatprep.mubr.msk.f32.mxu0 %vm17196_vm0, %v21229_v19 }
 0x4bf   : > { %14156 = vmatmul.mubr.msk.f32.gmra.mrb[232].mxu1 %vm1443_vm2, %v21283_v12  ;;  %v17186_v12 = vld [vmem:[%s21163_s1 + $0x58] sm:$0xff] }
 0x4c0   : > { %14893 = vmatmul.mubr.msk.f32.gmra.mrb[10].mxu0 %vm1443_vm2, %v21284_v39  ;;  %14158 = vmatprep.mubr.msk.f32.mxu1 %vm17196_vm0, %v21229_v19  ;;  %v3957_v39 = vld [vmem:[#allocation2 + $0x19] sm:$0xff] }
 0x4c1   : > { %14895 = vmatprep.mubr.msk.f32.mxu0 %vm17196_vm0, %v21229_v19 }
 0x4c3   : > { %14159 = vmatmul.mubr.msk.f32.gmra.mrb[234].mxu1 %vm1443_vm2, %v21285_v5  ;;  %v21324_v5 = vmov 0.0|0.0  }
 0x4c4   : > { %14896 = vmatmul.mubr.msk.f32.gmra.mrb[12].mxu0 %vm1443_vm2, %v21286_v15  ;;  %14161 = vmatprep.mubr.msk.f32.mxu1 %vm17196_vm0, %v21229_v19  ;;  %v3959_v15 = vld [vmem:[#allocation2 + $0x29] sm:$0xff] }
 0x4c5   : > { %14898 = vmatprep.mubr.msk.f32.mxu0 %vm17196_vm0, %v21229_v19 }
 0x4c7   : > { %14162 = vmatmul.mubr.msk.f32.gmra.mrb[236].mxu1 %vm1443_vm2, %v21287_v17  ;;  %v3960_v17 = vld [vmem:[#allocation2 + $0x31] sm:$0xff] }
 0x4c8   : > { %14899 = vmatmul.mubr.msk.f32.gmra.mrb[14].mxu0 %vm1443_vm2, %v21288_v3  ;;  %14164 = vmatprep.mubr.msk.f32.mxu1 %vm17196_vm0, %v21229_v19  ;;  %v6819_v3 = vld [vmem:[#allocation2 + $0xc4] sm:$0xff] }
 0x4c9   : > { %14901 = vmatprep.mubr.msk.f32.mxu0 %vm17196_vm0, %v21229_v19 }
 0x4cb   : > { %14165 = vmatmul.mubr.msk.f32.gmra.mrb[238].mxu1 %vm1443_vm2, %v21289_v45  ;;  %v19848_v45 = vld [vmem:[#allocation2 + $0x39] sm:$0xff] }
 0x4cc   : > { %14902 = vmatmul.mubr.msk.f32.gmra.mrb[16].mxu0 %vm1443_vm2, %v21290_v60  ;;  %14167 = vmatprep.mubr.msk.f32.mxu1 %vm17196_vm0, %v21229_v19  ;;  %v6820_v60 = vld [vmem:[#allocation2 + $0xcc] sm:$0xff] }
 0x4cd   : > { %14904 = vmatprep.mubr.msk.f32.mxu0 %vm17196_vm0, %v21229_v19 }
 0x4cf   : > { %14168 = vmatmul.mubr.msk.f32.gmra.mrb[240].mxu1 %vm1443_vm2, %v21291_v38  ;;  %v19857_v38 = vld [vmem:[#allocation2 + $0x41] sm:$0xff] }
 0x4d0   : > { %14905 = vmatmul.mubr.msk.f32.gmra.mrb[18].mxu0 %vm1443_vm2, %v21292_v26  ;;  %14170 = vmatprep.mubr.msk.f32.mxu1 %vm17196_vm0, %v21229_v19  ;;  %v6821_v26 = vld [vmem:[#allocation2 + $0xd4] sm:$0xff] }
 0x4d1   : > { %14907 = vmatprep.mubr.msk.f32.mxu0 %vm17196_vm0, %v21229_v19 }
 0x4d3   : > { %14171 = vmatmul.mubr.msk.f32.gmra.mrb[242].mxu1 %vm1443_vm2, %v21293_v46  ;;  %v19866_v46 = vld [vmem:[#allocation2 + $0x49] sm:$0xff] }
 0x4d4   : > { %14908 = vmatmul.mubr.msk.f32.gmra.mrb[20].mxu0 %vm1443_vm2, %v21294_v48  ;;  %14173 = vmatprep.mubr.msk.f32.mxu1 %vm17196_vm0, %v21229_v19  ;;  %v6822_v48 = vld [vmem:[#allocation2 + $0xdc] sm:$0xff] }
 0x4d5   : > { %14910 = vmatprep.mubr.msk.f32.mxu0 %vm17196_vm0, %v21229_v19 }
 0x4d7   : > { %14174 = vmatmul.mubr.msk.f32.gmra.mrb[244].mxu1 %vm1443_vm2, %v21295_v62  ;;  %v19875_v62 = vld [vmem:[#allocation2 + $0x51] sm:$0xff] }
 0x4d8   : > { %14911 = vmatmul.mubr.msk.f32.gmra.mrb[22].mxu0 %vm1443_vm2, %v21296_v42  ;;  %14176 = vmatprep.mubr.msk.f32.mxu1 %vm17196_vm0, %v21229_v19  ;;  %v6823_v42 = vld [vmem:[#allocation2 + $0xe4] sm:$0xff] }
 0x4d9   : > { %14913 = vmatprep.mubr.msk.f32.mxu0 %vm17196_vm0, %v21229_v19 }
 0x4db   : > { %14177 = vmatmul.mubr.msk.f32.gmra.mrb[246].mxu1 %vm1443_vm2, %v21297_v0  ;;  %v19884_v0 = vld [vmem:[#allocation2 + $0x59] sm:$0xff] }
 0x4dc   : > { %14914 = vmatmul.mubr.msk.f32.gmra.mrb[24].mxu0 %vm1443_vm2, %v21298_v21  ;;  %14179 = vmatprep.mubr.msk.f32.mxu1 %vm17196_vm0, %v21229_v19  ;;  %v6824_v21 = vld [vmem:[#allocation2 + $0xec] sm:$0xf] }
 0x4dd   : > { %14916 = vmatprep.mubr.msk.f32.mxu0 %vm17196_vm0, %v21229_v19 }
 0x4df   : > { %14180 = vmatmul.mubr.msk.f32.gmra.mrb[248].mxu1 %vm1443_vm2, %v3348_v31  ;;  %v19893_v31 = vld [vmem:[#allocation2 + $0x61] sm:$0xff] }
 0x4e0   : > { %14917 = vmatmul.mubr.msk.f32.gmra.mrb[26].mxu0 %vm1443_vm2, %v21299_v22  ;;  %14184 = vmatprep.mubr.msk.f32.mxu1 %vm17196_vm0, %v21229_v19  ;;  %v7457_v22 = vld [vmem:[%s21163_s1 + $0xa8] sm:$0xff] }
 0x4e1   : > { %14919 = vmatprep.mubr.msk.f32.mxu0 %vm17196_vm0, %v21229_v19 }
 0x4e3   : > { %14185 = vmatmul.mubr.msk.f32.vlgmr.msra.gmra.mrb[200].mxu1 %vm1443_vm2, %v3640_v58  ;;  %v19905_v58 = vld [vmem:[#allocation2 + $0x69] sm:$0xff] }
 0x4e4   : > { %14920 = vmatmul.mubr.msk.f32.gmra.mrb[28].mxu0 %vm1443_vm2, %v21300_v53  ;;  %14187 = vmatprep.mubr.msk.f32.mxu1 %vm17196_vm0, %v21229_v19  ;;  %v19915_v53 = vld [vmem:[#allocation2 + $0x71] sm:$0xff] }
 0x4e5   : > { %14922 = vmatprep.mubr.msk.f32.mxu0 %vm17196_vm0, %v21229_v19  ;;  %14260 = vmatpush3.msra.mxu1 %v3981_v56  ;;  %v7116_v56 = vld [vmem:[#allocation2 + $0x2d] sm:$0xff] }
 0x4e6   : > { %15948 = vmatprep.subr.mxu1 %v21229_v19 }
 0x4e7   : > { %14188 = vmatmul.mubr.msk.f32.gmra.mrb[202].mxu1 %vm1443_vm2, %v3641_v11  ;;  %v7117_v11 = vld [vmem:[#allocation2 + $0x35] sm:$0xff] }
 0x4e8   : > { %14923 = vmatmul.mubr.msk.f32.gmra.mrb[30].mxu0 %vm1443_vm2, %v21301_v63  ;;  %14190 = vmatprep.mubr.msk.f32.mxu1 %vm17196_vm0, %v21229_v19  ;;  %v19924_v63 = vld [vmem:[#allocation2 + $0x79] sm:$0xff] }
 0x4e9   : > { %14925 = vmatprep.mubr.msk.f32.mxu0 %vm17196_vm0, %v21229_v19 }
 0x4eb   : > { %14191 = vmatmul.mubr.msk.f32.gmra.mrb[204].mxu1 %vm1443_vm2, %v19035_v55  ;;  %v21305_v55 = vld [vmem:[#allocation38_spill] sm:$0xff] }
 0x4ec   : > { %14926 = vmatmul.mubr.msk.f32.gmra.mrb[32].mxu0 %vm1443_vm2, %v21302_v14  ;;  %14193 = vmatprep.mubr.msk.f32.mxu1 %vm17196_vm0, %v21229_v19  ;;  %v7118_v14 = vld [vmem:[#allocation2 + $0x3d] sm:$0xff] }
 0x4ed   : > { %14928 = vmatprep.mubr.msk.f32.mxu0 %vm17196_vm0, %v21229_v19 }
 0x4ef   : > { %14194 = vmatmul.mubr.msk.f32.gmra.mrb[206].mxu1 %vm1443_vm2, %v21303_v7  ;;  %v19933_v7 = vld [vmem:[#allocation2 + $0x81] sm:$0xff] }
 0x4f0   : > { %14929 = vmatmul.mubr.msk.f32.gmra.mrb[34].mxu0 %vm1443_vm2, %v21304_v49  ;;  %14196 = vmatprep.mubr.msk.f32.mxu1 %vm17196_vm0, %v21229_v19  ;;  %v7119_v49 = vld [vmem:[#allocation2 + $0x45] sm:$0xff] }
 0x4f1   : > { %14931 = vmatprep.mubr.msk.f32.mxu0 %vm17196_vm0, %v21229_v19 }
 0x4f3   : > { %14197 = vmatmul.mubr.msk.f32.gmra.mrb[208].mxu1 %vm1443_vm2, %v21305_v55  ;;  %v19942_v55 = vld [vmem:[#allocation2 + $0x89] sm:$0xff] }
 0x4f4   : > { %14932 = vmatmul.mubr.msk.f32.gmra.mrb[36].mxu0 %vm1443_vm2, %v21306_v4  ;;  %14199 = vmatprep.mubr.msk.f32.mxu1 %vm17196_vm0, %v21229_v19  ;;  %v7120_v4 = vld [vmem:[#allocation2 + $0x4d] sm:$0xff] }
 0x4f5   : > { %14934 = vmatprep.mubr.msk.f32.mxu0 %vm17196_vm0, %v21229_v19 }
 0x4f7   : > { %14200 = vmatmul.mubr.msk.f32.gmra.mrb[210].mxu1 %vm1443_vm2, %v21307_v28  ;;  %v7121_v28 = vld [vmem:[#allocation2 + $0x55] sm:$0xff] }
 0x4f8   : > { %14935 = vmatmul.mubr.msk.f32.gmra.mrb[38].mxu0 %vm1443_vm2, %v6503_v27  ;;  %14202 = vmatprep.mubr.msk.f32.mxu1 %vm17196_vm0, %v21229_v19  ;;  %v19951_v27 = vld [vmem:[#allocation2 + $0x91] sm:$0xff] }
 0x4f9   : > { %14937 = vmatprep.mubr.msk.f32.mxu0 %vm17196_vm0, %v21229_v19 }
 0x4fb   : > { %14203 = vmatmul.mubr.msk.f32.gmra.mrb[212].mxu1 %vm1443_vm2, %v21308_v36  ;;  %v7122_v36 = vld [vmem:[#allocation2 + $0x5d] sm:$0xff] }
 0x4fc   : > { %14938 = vmatmul.mubr.msk.f32.gmra.mrb[40].mxu0 %vm1443_vm2, %v6504_v25  ;;  %14205 = vmatprep.mubr.msk.f32.mxu1 %vm17196_vm0, %v21229_v19  ;;  %v19960_v25 = vld [vmem:[#allocation2 + $0x99] sm:$0xff] }
 0x4fd   : > { %14940 = vmatprep.mubr.msk.f32.mxu0 %vm17196_vm0, %v21229_v19 }
 0x4ff   : > { %14206 = vmatmul.mubr.msk.f32.gmra.mrb[214].mxu1 %vm1443_vm2, %v21309_v8  ;;  %v7123_v8 = vld [vmem:[#allocation2 + $0x65] sm:$0xff] }
 0x500   : > { %14941 = vmatmul.mubr.msk.f32.gmra.mrb[42].mxu0 %vm1443_vm2, %v6505_v37  ;;  %14208 = vmatprep.mubr.msk.f32.mxu1 %vm17196_vm0, %v21229_v19  ;;  %v19969_v37 = vld [vmem:[#allocation2 + $0xa1] sm:$0xff] }
 0x501   : > { %14943 = vmatprep.mubr.msk.f32.mxu0 %vm17196_vm0, %v21229_v19 }
 0x503   : > { %14209 = vmatmul.mubr.msk.f32.gmra.mrb[216].mxu1 %vm1443_vm2, %v19108_v23  ;;  %v6508_v23 = vld [vmem:[#allocation2 + $0xeb] sm:$0xf] }
 0x504   : > { %14944 = vmatmul.mubr.msk.f32.gmra.mrb[44].mxu0 %vm1443_vm2, %v6506_v41  ;;  %14211 = vmatprep.mubr.msk.f32.mxu1 %vm17196_vm0, %v21229_v19  ;;  %v19978_v41 = vld [vmem:[#allocation2 + $0xa9] sm:$0xff] }
 0x505   : > { %14946 = vmatprep.mubr.msk.f32.mxu0 %vm17196_vm0, %v21229_v19 }
 0x507   : > { %14212 = vmatmul.mubr.msk.f32.gmra.mrb[218].mxu1 %vm1443_vm2, %v19120_v30  ;;  %v7141_v30 = vld [vmem:[%s21163_s1 + $0xa0] sm:$0xff] }
 0x508   : > { %14947 = vmatmul.mubr.msk.f32.gmra.mrb[46].mxu0 %vm1443_vm2, %v6507_v33  ;;  %14214 = vmatprep.mubr.msk.f32.mxu1 %vm17196_vm0, %v21229_v19  ;;  %v7124_v33 = vld [vmem:[#allocation2 + $0x6d] sm:$0xff] }
 0x509   : > { %14949 = vmatprep.mubr.msk.f32.mxu0 %vm17196_vm0, %v21229_v19 }
 0x50b   : > { %14215 = vmatmul.mubr.msk.f32.gmra.mrb[220].mxu1 %vm1443_vm2, %v19675_v34 }
 0x50c   : > { %14950 = vmatmul.mubr.msk.f32.gmra.mrb[48].mxu0 %vm1443_vm2, %v6508_v23  ;;  %14217 = vmatprep.mubr.msk.f32.mxu1 %vm17196_vm0, %v21229_v19  ;;  %v19987_v23 = vld [vmem:[#allocation2 + $0xb1] sm:$0xff] }
 0x50d   : > { %14954 = vmatprep.mubr.msk.f32.mxu0 %vm17196_vm0, %v21229_v19 }
 0x50f   : > { %14218 = vmatmul.mubr.msk.f32.gmra.mrb[222].mxu1 %vm1443_vm2, %v19687_v50 }
 0x510   : > { %14955 = vmatmul.mubr.msk.f32.vlgmr.msra.gmra.mrb[0].mxu0 %vm1443_vm2, %v21310_v20  ;;  %14220 = vmatprep.mubr.msk.f32.mxu1 %vm17196_vm0, %v21229_v19  ;;  %v19996_v20 = vld [vmem:[#allocation2 + $0xb9] sm:$0xff] }
 0x511   : > { %15030 = vmatpush3.msra.mxu0 %v7141_v30  ;;  %14957 = vmatprep.mubr.msk.f32.mxu0 %vm17196_vm0, %v21229_v19  ;;  %v7125_v30 = vld [vmem:[#allocation2 + $0x75] sm:$0xff] }
 0x512   : > { %15106 = vmatprep.subr.mxu0 %v21229_v19 }
 0x513   : > { %14221 = vmatmul.mubr.msk.f32.gmra.mrb[224].mxu1 %vm1443_vm2, %v19698_v1 }
 0x514   : > { %14958 = vmatmul.mubr.msk.f32.gmra.mrb[2].mxu0 %vm1443_vm2, %v21311_v16  ;;  %14223 = vmatprep.mubr.msk.f32.mxu1 %vm17196_vm0, %v21229_v19  ;;  %v7126_v16 = vld [vmem:[#allocation2 + $0x7d] sm:$0xff] }
 0x515   : > { %14960 = vmatprep.mubr.msk.f32.mxu0 %vm17196_vm0, %v21229_v19 }
 0x517   : > { %14224 = vmatmul.mubr.msk.f32.gmra.mrb[226].mxu1 %vm1443_vm2, %v19708_v18 }
 0x518   : > { %14961 = vmatmul.mubr.msk.f32.gmra.mrb[4].mxu0 %vm1443_vm2, %v21312_v29  ;;  %14226 = vmatprep.mubr.msk.f32.mxu1 %vm17196_vm0, %v21229_v19  ;;  %v20005_v29 = vld [vmem:[#allocation2 + $0xc1] sm:$0xff] }
 0x519   : > { %14963 = vmatprep.mubr.msk.f32.mxu0 %vm17196_vm0, %v21229_v19 }
 0x51b   : > { %14227 = vmatmul.mubr.msk.f32.gmra.mrb[228].mxu1 %vm1443_vm2, %v19718_v6 }
 0x51c   : > { %14964 = vmatmul.mubr.msk.f32.gmra.mrb[6].mxu0 %vm1443_vm2, %v21313_v35  ;;  %14229 = vmatprep.mubr.msk.f32.mxu1 %vm17196_vm0, %v21229_v19  ;;  %v7127_v35 = vld [vmem:[#allocation2 + $0x85] sm:$0xff] }
 0x51d   : > { %14966 = vmatprep.mubr.msk.f32.mxu0 %vm17196_vm0, %v21229_v19 }
 0x51f   : > { %14230 = vmatmul.mubr.msk.f32.gmra.mrb[230].mxu1 %vm1443_vm2, %v19728_v61 }
 0x520   : > { %14967 = vmatmul.mubr.msk.f32.gmra.mrb[8].mxu0 %vm1443_vm2, %v21314_v43  ;;  %14232 = vmatprep.mubr.msk.f32.mxu1 %vm17196_vm0, %v21229_v19  ;;  %v20014_v43 = vld [vmem:[#allocation2 + $0xc9] sm:$0xff] }
 0x521   : > { %14969 = vmatprep.mubr.msk.f32.mxu0 %vm17196_vm0, %v21229_v19 }
 0x523   : > { %14233 = vmatmul.mubr.msk.f32.gmra.mrb[232].mxu1 %vm1443_vm2, %v19187_v52  ;;  %v21317_v52 = vld [vmem:[#allocation35_spill] sm:$0xff] }
 0x524   : > { %14970 = vmatmul.mubr.msk.f32.gmra.mrb[10].mxu0 %vm1443_vm2, %v21315_v40  ;;  %14235 = vmatprep.mubr.msk.f32.mxu1 %vm17196_vm0, %v21229_v19  ;;  %v7128_v40 = vld [vmem:[#allocation2 + $0x8d] sm:$0xff] }
 0x525   : > { %14972 = vmatprep.mubr.msk.f32.mxu0 %vm17196_vm0, %v21229_v19 }
 0x527   : > { %14236 = vmatmul.mubr.msk.f32.gmra.mrb[234].mxu1 %vm1443_vm2, %v19199_v47  ;;  %v21318_v47 = vld [vmem:[#allocation37_spill] sm:$0xff] }
 0x528   : > { %14973 = vmatmul.mubr.msk.f32.gmra.mrb[12].mxu0 %vm1443_vm2, %v21316_v44  ;;  %14238 = vmatprep.mubr.msk.f32.mxu1 %vm17196_vm0, %v21229_v19  ;;  %v3980_v44 = vld [vmem:[#allocation2 + $0xd1] sm:$0xf] }
 0x529   : > { %14975 = vmatprep.mubr.msk.f32.mxu0 %vm17196_vm0, %v21229_v19 }
 0x52b   : > { %14239 = vmatmul.mubr.msk.f32.gmra.mrb[236].mxu1 %vm1443_vm2, %v19209_v13  ;;  %v21319_v13 = vld [vmem:[#allocation39_spill] sm:$0xff] }
 0x52c   : > { %14976 = vmatmul.mubr.msk.f32.gmra.mrb[14].mxu0 %vm1443_vm2, %v21317_v52  ;;  %14241 = vmatprep.mubr.msk.f32.mxu1 %vm17196_vm0, %v21229_v19  ;;  %v7129_v52 = vld [vmem:[#allocation2 + $0x95] sm:$0xff] }
 0x52d   : > { %14978 = vmatprep.mubr.msk.f32.mxu0 %vm17196_vm0, %v21229_v19 }
 0x52f   : > { %14242 = vmatmul.mubr.msk.f32.gmra.mrb[238].mxu1 %vm1443_vm2, %v19219_v9  ;;  %v21320_v9 = vld [vmem:[#allocation41_spill] sm:$0xff] }
 0x530   : > { %14979 = vmatmul.mubr.msk.f32.gmra.mrb[16].mxu0 %vm1443_vm2, %v21318_v47  ;;  %14244 = vmatprep.mubr.msk.f32.mxu1 %vm17196_vm0, %v21229_v19  ;;  %v20029_v47 = vld [vmem:[#allocation2 + $0x5a] sm:$0xff] }
 0x531   : > { %14981 = vmatprep.mubr.msk.f32.mxu0 %vm17196_vm0, %v21229_v19 }
 0x533   : > { %14245 = vmatmul.mubr.msk.f32.gmra.mrb[240].mxu1 %vm1443_vm2, %v19229_v51  ;;  %v21321_v51 = vld [vmem:[#allocation43_spill] sm:$0xff] }
 0x534   : > { %14982 = vmatmul.mubr.msk.f32.gmra.mrb[18].mxu0 %vm1443_vm2, %v21319_v13  ;;  %14247 = vmatprep.mubr.msk.f32.mxu1 %vm17196_vm0, %v21229_v19  ;;  %v7130_v13 = vld [vmem:[#allocation2 + $0x9d] sm:$0xff] }
 0x535   : > { %14984 = vmatprep.mubr.msk.f32.mxu0 %vm17196_vm0, %v21229_v19 }
 0x537   : > { %14248 = vmatmul.mubr.msk.f32.gmra.mrb[242].mxu1 %vm1443_vm2, %v19239_v2  ;;  %v21322_v2 = vld [vmem:[#allocation45_spill] sm:$0xff] }
 0x538   : > { %14985 = vmatmul.mubr.msk.f32.gmra.mrb[20].mxu0 %vm1443_vm2, %v21320_v9  ;;  %14250 = vmatprep.mubr.msk.f32.mxu1 %vm17196_vm0, %v21229_v19  ;;  %v20038_v9 = vld [vmem:[#allocation2 + $0x62] sm:$0xff] }
 0x539   : > { %14987 = vmatprep.mubr.msk.f32.mxu0 %vm17196_vm0, %v21229_v19 }
 0x53b   : > { %14251 = vmatmul.mubr.msk.f32.gmra.mrb[244].mxu1 %vm1443_vm2, %v19249_v24  ;;  %v3664_v24 = vld [vmem:[#allocation2 + $0xd0] sm:$0xf] }
 0x53c   : > { %14988 = vmatmul.mubr.msk.f32.gmra.mrb[22].mxu0 %vm1443_vm2, %v21321_v51  ;;  %14253 = vmatprep.mubr.msk.f32.mxu1 %vm17196_vm0, %v21229_v19  ;;  %v7131_v51 = vld [vmem:[#allocation2 + $0xa5] sm:$0xff] }
 0x53d   : > { %14990 = vmatprep.mubr.msk.f32.mxu0 %vm17196_vm0, %v21229_v19 }
 0x53f   : > { %14254 = vmatmul.mubr.msk.f32.gmra.mrb[246].mxu1 %vm1443_vm2, %v19259_v54  ;;  %v3956_v54 = vld [vmem:[#allocation2 + $0x11] sm:$0xff] }
 0x540   : > { %14991 = vmatmul.mubr.msk.f32.gmra.mrb[24].mxu0 %vm1443_vm2, %v21322_v2  ;;  %14256 = vmatprep.mubr.msk.f32.mxu1 %vm17196_vm0, %v21229_v19  ;;  %v20047_v2 = vld [vmem:[#allocation2 + $0x6a] sm:$0xff] }
 0x541   : > { %14993 = vmatprep.mubr.msk.f32.mxu0 %vm17196_vm0, %v21229_v19 }
 0x543   : > { %14257 = vmatmul.mubr.msk.f32.gmra.mrb[248].mxu1 %vm1443_vm2, %v3664_v24  ;;  %v7132_v24 = vld [vmem:[#allocation2 + $0xad] sm:$0xff] }
 0x544   : > { %14994 = vmatmul.mubr.msk.f32.gmra.mrb[26].mxu0 %vm1443_vm2, %v21323_v10  ;;  %14261 = vmatprep.mubr.msk.f32.mxu1 %vm17196_vm0, %v21229_v19  ;;  %v20056_v10 = vld [vmem:[#allocation2 + $0x72] sm:$0xff] }
 0x545   : > { %14996 = vmatprep.mubr.msk.f32.mxu0 %vm17196_vm0, %v21229_v19 }
 0x547   : > { %14262 = vmatmul.mubr.msk.f32.vlgmr.msra.gmra.mrb[200].mxu1 %vm1443_vm2, %v3956_v54  ;;  %v7133_v54 = vld [vmem:[#allocation2 + $0xb5] sm:$0xff] }
 0x548   : > { %14997 = vmatmul.mubr.msk.f32.gmra.mrb[28].mxu0 %vm1443_vm2, %v19130_v57  ;;  %14264 = vmatprep.mubr.msk.f32.mxu1 %vm17196_vm0, %v21229_v19  ;;  %v3958_v57 = vld [vmem:[#allocation2 + $0x21] sm:$0xff] }
 0x549   : > { %14999 = vmatprep.mubr.msk.f32.mxu0 %vm17196_vm0, %v21229_v19  ;;  %15949 = vmatpush3.msra.mxu1 %v17186_v12  ;;  %v20065_v12 = vld [vmem:[#allocation2 + $0x7a] sm:$0xff] }
 0x54a   : > { %15825 = vmatprep.subr.bf16.mxu1 %v21324_v5 }
 0x54b   : > { %14265 = vmatmul.mubr.msk.f32.gmra.mrb[202].mxu1 %vm1443_vm2, %v3957_v39  ;;  %v7134_v39 = vld [vmem:[#allocation2 + $0xbd] sm:$0xff] }
 0x54c   : > { %15000 = vmatmul.mubr.msk.f32.gmra.mrb[30].mxu0 %vm1443_vm2, %v19140_v59  ;;  %14267 = vmatprep.mubr.msk.f32.mxu1 %vm17196_vm0, %v21229_v19  ;;  %v21325_v59 = vld [vmem:[#allocation47_spill] sm:$0xff] }
 0x54d   : > { %15002 = vmatprep.mubr.msk.f32.mxu0 %vm17196_vm0, %v21229_v19 }
 0x54f   : > { %14268 = vmatmul.mubr.msk.f32.gmra.mrb[204].mxu1 %vm1443_vm2, %v3958_v57  ;;  %v7135_v57 = vld [vmem:[#allocation2 + $0xc5] sm:$0xff] }
 0x550   : > { %15003 = vmatmul.mubr.msk.f32.gmra.mrb[32].mxu0 %vm1443_vm2, %v19150_v32  ;;  %14270 = vmatprep.mubr.msk.f32.mxu1 %vm17196_vm0, %v21229_v19  ;;  %v21326_v32 = vld [vmem:[#allocation48_spill] sm:$0xff] }
 0x551   : > { %15005 = vmatprep.mubr.msk.f32.mxu0 %vm17196_vm0, %v21229_v19 }
 0x553   : > { %14271 = vmatmul.mubr.msk.f32.gmra.mrb[206].mxu1 %vm1443_vm2, %v3959_v15  ;;  %v20074_v15 = vld [vmem:[#allocation2 + $0x82] sm:$0xff] }
 0x554   : > { %15006 = vmatmul.mubr.msk.f32.gmra.mrb[34].mxu0 %vm1443_vm2, %v21325_v59  ;;  %14273 = vmatprep.mubr.msk.f32.mxu1 %vm17196_vm0, %v21229_v19  ;;  %v7136_v59 = vld [vmem:[#allocation2 + $0xcd] sm:$0xff] }
 0x555   : > { %15008 = vmatprep.mubr.msk.f32.mxu0 %vm17196_vm0, %v21229_v19 }
 0x557   : > { %14274 = vmatmul.mubr.msk.f32.gmra.mrb[208].mxu1 %vm1443_vm2, %v3960_v17  ;;  %v20083_v17 = vld [vmem:[#allocation2 + $0x8a] sm:$0xff] }
 0x558   : > { %15009 = vmatmul.mubr.msk.f32.gmra.mrb[36].mxu0 %vm1443_vm2, %v21326_v32  ;;  %14276 = vmatprep.mubr.msk.f32.mxu1 %vm17196_vm0, %v21229_v19  ;;  %v7137_v32 = vld [vmem:[#allocation2 + $0xd5] sm:$0xff] }
 0x559   : > { %15011 = vmatprep.mubr.msk.f32.mxu0 %vm17196_vm0, %v21229_v19 }
 0x55b   : > { %14277 = vmatmul.mubr.msk.f32.gmra.mrb[210].mxu1 %vm1443_vm2, %v19848_v45 }
 0x55c   : > { %15012 = vmatmul.mubr.msk.f32.gmra.mrb[38].mxu0 %vm1443_vm2, %v6819_v3  ;;  %14279 = vmatprep.mubr.msk.f32.mxu1 %vm17196_vm0, %v21229_v19  ;;  %v20092_v3 = vld [vmem:[#allocation2 + $0x92] sm:$0xff] }
 0x55d   : > { %15014 = vmatprep.mubr.msk.f32.mxu0 %vm17196_vm0, %v21229_v19 }
 0x55f   : > { %14280 = vmatmul.mubr.msk.f32.gmra.mrb[212].mxu1 %vm1443_vm2, %v19857_v38 }
 0x560   : > { %15015 = vmatmul.mubr.msk.f32.gmra.mrb[40].mxu0 %vm1443_vm2, %v6820_v60  ;;  %14282 = vmatprep.mubr.msk.f32.mxu1 %vm17196_vm0, %v21229_v19  ;;  %v7138_v60 = vld [vmem:[#allocation2 + $0xdd] sm:$0xff] }
 0x561   : > { %15017 = vmatprep.mubr.msk.f32.mxu0 %vm17196_vm0, %v21229_v19 }
 0x563   : > { %14283 = vmatmul.mubr.msk.f32.gmra.mrb[214].mxu1 %vm1443_vm2, %v19866_v46 }
 0x564   : > { %15018 = vmatmul.mubr.msk.f32.gmra.mrb[42].mxu0 %vm1443_vm2, %v6821_v26  ;;  %14285 = vmatprep.mubr.msk.f32.mxu1 %vm17196_vm0, %v21229_v19  ;;  %v20101_v26 = vld [vmem:[#allocation2 + $0x9a] sm:$0xff] }
 0x565   : > { %15020 = vmatprep.mubr.msk.f32.mxu0 %vm17196_vm0, %v21229_v19 }
 0x567   : > { %14286 = vmatmul.mubr.msk.f32.gmra.mrb[216].mxu1 %vm1443_vm2, %v19875_v62 }
 0x568   : > { %15021 = vmatmul.mubr.msk.f32.gmra.mrb[44].mxu0 %vm1443_vm2, %v6822_v48  ;;  %14288 = vmatprep.mubr.msk.f32.mxu1 %vm17196_vm0, %v21229_v19  ;;  %v7139_v48 = vld [vmem:[#allocation2 + $0xe5] sm:$0xff] }
 0x569   : > { %15023 = vmatprep.mubr.msk.f32.mxu0 %vm17196_vm0, %v21229_v19 }
 0x56b   : > { %14289 = vmatmul.mubr.msk.f32.gmra.mrb[218].mxu1 %vm1443_vm2, %v19884_v0 }
 0x56c   : > { %15024 = vmatmul.mubr.msk.f32.gmra.mrb[46].mxu0 %vm1443_vm2, %v6823_v42  ;;  %14291 = vmatprep.mubr.msk.f32.mxu1 %vm17196_vm0, %v21229_v19  ;;  %v20110_v42 = vld [vmem:[#allocation2 + $0xa2] sm:$0xff] }
 0x56d   : > { %15026 = vmatprep.mubr.msk.f32.mxu0 %vm17196_vm0, %v21229_v19 }
 0x56f   : > { %14292 = vmatmul.mubr.msk.f32.gmra.mrb[220].mxu1 %vm1443_vm2, %v19893_v31 }
 0x570   : > { %15027 = vmatmul.mubr.msk.f32.gmra.mrb[48].mxu0 %vm1443_vm2, %v6824_v21  ;;  %14294 = vmatprep.mubr.msk.f32.mxu1 %vm17196_vm0, %v21229_v19  ;;  %v7140_v21 = vld [vmem:[#allocation2 + $0xed] sm:$0xf] }
 0x571   : > { %15031 = vmatprep.mubr.msk.f32.mxu0 %vm17196_vm0, %v21229_v19 }
 0x573   : > { %14295 = vmatmul.mubr.msk.f32.gmra.mrb[222].mxu1 %vm1443_vm2, %v19905_v58 }
 0x574   : > { %15032 = vmatmul.mubr.msk.f32.vlgmr.msra.gmra.mrb[0].mxu0 %vm1443_vm2, %v7116_v56  ;;  %14297 = vmatprep.mubr.msk.f32.mxu1 %vm17196_vm0, %v21229_v19  ;;  %v7773_v56 = vld [vmem:[%s21163_s1 + $0xb0] sm:$0xff] }
 0x575   : > { %15107 = vmatpush3.msra.mxu0 %v7457_v22  ;;  %15034 = vmatprep.mubr.msk.f32.mxu0 %vm17196_vm0, %v21229_v19  ;;  %v20119_v22 = vld [vmem:[#allocation2 + $0xaa] sm:$0xff] }
 0x576   : > { %15183 = vmatprep.subr.mxu0 %v21229_v19 }
 0x577   : > { %14298 = vmatmul.mubr.msk.f32.gmra.mrb[224].mxu1 %vm1443_vm2, %v19915_v53 }
 0x578   : > { %15035 = vmatmul.mubr.msk.f32.gmra.mrb[2].mxu0 %vm1443_vm2, %v7117_v11  ;;  %14300 = vmatprep.mubr.msk.f32.mxu1 %vm17196_vm0, %v21229_v19  ;;  %v20131_v11 = vld [vmem:[#allocation2 + $0xb2] sm:$0xff] }
 0x579   : > { %15037 = vmatprep.mubr.msk.f32.mxu0 %vm17196_vm0, %v21229_v19 }
 0x57b   : > { %14301 = vmatmul.mubr.msk.f32.gmra.mrb[226].mxu1 %vm1443_vm2, %v19924_v63 }
 0x57c   : > { %15038 = vmatmul.mubr.msk.f32.gmra.mrb[4].mxu0 %vm1443_vm2, %v7118_v14  ;;  %14303 = vmatprep.mubr.msk.f32.mxu1 %vm17196_vm0, %v21229_v19  ;;  %v7432_v14 = vld [vmem:[#allocation2 + $0x2e] sm:$0xff] }
 0x57d   : > { %15040 = vmatprep.mubr.msk.f32.mxu0 %vm17196_vm0, %v21229_v19 }
 0x57f   : > { %14304 = vmatmul.mubr.msk.f32.gmra.mrb[228].mxu1 %vm1443_vm2, %v19933_v7 }
 0x580   : > { %15041 = vmatmul.mubr.msk.f32.gmra.mrb[6].mxu0 %vm1443_vm2, %v7119_v49  ;;  %14306 = vmatprep.mubr.msk.f32.mxu1 %vm17196_vm0, %v21229_v19  ;;  %v20141_v49 = vld [vmem:[#allocation2 + $0xba] sm:$0xff] }
 0x581   : > { %15043 = vmatprep.mubr.msk.f32.mxu0 %vm17196_vm0, %v21229_v19 }
 0x583   : > { %14307 = vmatmul.mubr.msk.f32.gmra.mrb[230].mxu1 %vm1443_vm2, %v19942_v55 }
 0x584   : > { %15044 = vmatmul.mubr.msk.f32.gmra.mrb[8].mxu0 %vm1443_vm2, %v7120_v4  ;;  %14309 = vmatprep.mubr.msk.f32.mxu1 %vm17196_vm0, %v21229_v19  ;;  %v7433_v4 = vld [vmem:[#allocation2 + $0x36] sm:$0xff] }
 0x585   : > { %15046 = vmatprep.mubr.msk.f32.mxu0 %vm17196_vm0, %v21229_v19 }
 0x587   : > { %14310 = vmatmul.mubr.msk.f32.gmra.mrb[232].mxu1 %vm1443_vm2, %v19951_v27 }
 0x588   : > { %15047 = vmatmul.mubr.msk.f32.gmra.mrb[10].mxu0 %vm1443_vm2, %v7121_v28  ;;  %14312 = vmatprep.mubr.msk.f32.mxu1 %vm17196_vm0, %v21229_v19  ;;  %v20150_v28 = vld [vmem:[#allocation2 + $0xc2] sm:$0xff] }
 0x589   : > { %15049 = vmatprep.mubr.msk.f32.mxu0 %vm17196_vm0, %v21229_v19 }
 0x58b   : > { %14313 = vmatmul.mubr.msk.f32.gmra.mrb[234].mxu1 %vm1443_vm2, %v19960_v25 }
 0x58c   : > { %15050 = vmatmul.mubr.msk.f32.gmra.mrb[12].mxu0 %vm1443_vm2, %v7122_v36  ;;  %14315 = vmatprep.mubr.msk.f32.mxu1 %vm17196_vm0, %v21229_v19  ;;  %v7434_v36 = vld [vmem:[#allocation2 + $0x3e] sm:$0xff] }
 0x58d   : > { %15052 = vmatprep.mubr.msk.f32.mxu0 %vm17196_vm0, %v21229_v19 }
 0x58f   : > { %14316 = vmatmul.mubr.msk.f32.gmra.mrb[236].mxu1 %vm1443_vm2, %v19969_v37 }
 0x590   : > { %15053 = vmatmul.mubr.msk.f32.gmra.mrb[14].mxu0 %vm1443_vm2, %v7123_v8  ;;  %14318 = vmatprep.mubr.msk.f32.mxu1 %vm17196_vm0, %v21229_v19  ;;  %v20159_v8 = vld [vmem:[#allocation2 + $0xca] sm:$0xff] }
 0x591   : > { %15055 = vmatprep.mubr.msk.f32.mxu0 %vm17196_vm0, %v21229_v19 }
 0x593   : > { %14319 = vmatmul.mubr.msk.f32.gmra.mrb[238].mxu1 %vm1443_vm2, %v19978_v41 }
 0x594   : > { %15056 = vmatmul.mubr.msk.f32.gmra.mrb[16].mxu0 %vm1443_vm2, %v7124_v33  ;;  %14321 = vmatprep.mubr.msk.f32.mxu1 %vm17196_vm0, %v21229_v19  ;;  %v7435_v33 = vld [vmem:[#allocation2 + $0x46] sm:$0xff] }
 0x595   : > { %15058 = vmatprep.mubr.msk.f32.mxu0 %vm17196_vm0, %v21229_v19 }
 0x597   : > { %14322 = vmatmul.mubr.msk.f32.gmra.mrb[240].mxu1 %vm1443_vm2, %v19987_v23 }
 0x598   : > { %15059 = vmatmul.mubr.msk.f32.gmra.mrb[18].mxu0 %vm1443_vm2, %v7125_v30  ;;  %14324 = vmatprep.mubr.msk.f32.mxu1 %vm17196_vm0, %v21229_v19  ;;  %v4296_v30 = vld [vmem:[#allocation2 + $0xd2] sm:$0xf] }
 0x599   : > { %15061 = vmatprep.mubr.msk.f32.mxu0 %vm17196_vm0, %v21229_v19 }
 0x59b   : > { %14325 = vmatmul.mubr.msk.f32.gmra.mrb[242].mxu1 %vm1443_vm2, %v19996_v20 }
 0x59c   : > { %15062 = vmatmul.mubr.msk.f32.gmra.mrb[20].mxu0 %vm1443_vm2, %v7126_v16  ;;  %14327 = vmatprep.mubr.msk.f32.mxu1 %vm17196_vm0, %v21229_v19  ;;  %v7436_v16 = vld [vmem:[#allocation2 + $0x4e] sm:$0xff] }
 0x59d   : > { %15064 = vmatprep.mubr.msk.f32.mxu0 %vm17196_vm0, %v21229_v19 }
 0x59f   : > { %14328 = vmatmul.mubr.msk.f32.gmra.mrb[244].mxu1 %vm1443_vm2, %v20005_v29 }
 0x5a0   : > { %15065 = vmatmul.mubr.msk.f32.gmra.mrb[22].mxu0 %vm1443_vm2, %v7127_v35  ;;  %14330 = vmatprep.mubr.msk.f32.mxu1 %vm17196_vm0, %v21229_v19  ;;  %v7437_v35 = vld [vmem:[#allocation2 + $0x56] sm:$0xff] }
 0x5a1   : > { %15067 = vmatprep.mubr.msk.f32.mxu0 %vm17196_vm0, %v21229_v19 }
 0x5a3   : > { %14331 = vmatmul.mubr.msk.f32.gmra.mrb[246].mxu1 %vm1443_vm2, %v20014_v43 }
 0x5a4   : > { %15068 = vmatmul.mubr.msk.f32.gmra.mrb[24].mxu0 %vm1443_vm2, %v7128_v40  ;;  %14333 = vmatprep.mubr.msk.f32.mxu1 %vm17196_vm0, %v21229_v19  ;;  %v7438_v40 = vld [vmem:[#allocation2 + $0x5e] sm:$0xff] }
 0x5a5   : > { %15070 = vmatprep.mubr.msk.f32.mxu0 %vm17196_vm0, %v21229_v19 }
 0x5a7   : > { %14334 = vmatmul.mubr.msk.f32.gmra.mrb[248].mxu1 %vm1443_vm2, %v3980_v44  ;;  %v7439_v44 = vld [vmem:[#allocation2 + $0x66] sm:$0xff] }
 0x5a8   : > { %15071 = vmatmul.mubr.msk.f32.gmra.mrb[26].mxu0 %vm1443_vm2, %v7129_v52  ;;  %14365 = vmatprep.mubr.msk.f32.mxu1 %vm17196_vm0, %v21229_v19  ;;  %v7440_v52 = vld [vmem:[#allocation2 + $0x6e] sm:$0xff] }
 0x5a9   : > { %15073 = vmatprep.mubr.msk.f32.mxu0 %vm17196_vm0, %v21229_v19 }
 0x5ab   : > { %14366 = vmatmul.mubr.msk.f32.vlgmr.msra.gmra.mrb[218].mxu1 %vm1443_vm2, %v20029_v47 }
 0x5ac   : > { %15074 = vmatmul.mubr.msk.f32.gmra.mrb[28].mxu0 %vm1443_vm2, %v7130_v13  ;;  %14368 = vmatprep.mubr.msk.f32.mxu1 %vm17196_vm0, %v21229_v19  ;;  %v7441_v13 = vld [vmem:[#allocation2 + $0x76] sm:$0xff] }
 0x5ad   : > { %15076 = vmatprep.mubr.msk.f32.mxu0 %vm17196_vm0, %v21229_v19 }
 0x5af   : > { %14369 = vmatmul.mubr.msk.f32.gmra.mrb[220].mxu1 %vm1443_vm2, %v20038_v9 }
 0x5b0   : > { %15077 = vmatmul.mubr.msk.f32.gmra.mrb[30].mxu0 %vm1443_vm2, %v7131_v51  ;;  %14371 = vmatprep.mubr.msk.f32.mxu1 %vm17196_vm0, %v21229_v19  ;;  %v7442_v51 = vld [vmem:[#allocation2 + $0x7e] sm:$0xff] }
 0x5b1   : > { %15079 = vmatprep.mubr.msk.f32.mxu0 %vm17196_vm0, %v21229_v19 }
 0x5b3   : > { %14372 = vmatmul.mubr.msk.f32.gmra.mrb[222].mxu1 %vm1443_vm2, %v20047_v2 }
 0x5b4   : > { %15080 = vmatmul.mubr.msk.f32.gmra.mrb[32].mxu0 %vm1443_vm2, %v7132_v24  ;;  %14374 = vmatprep.mubr.msk.f32.mxu1 %vm17196_vm0, %v21229_v19  ;;  %v7443_v24 = vld [vmem:[#allocation2 + $0x86] sm:$0xff] }
 0x5b5   : > { %15082 = vmatprep.mubr.msk.f32.mxu0 %vm17196_vm0, %v21229_v19 }
 0x5b7   : > { %14375 = vmatmul.mubr.msk.f32.gmra.mrb[224].mxu1 %vm1443_vm2, %v20056_v10 }
 0x5b8   : > { %15083 = vmatmul.mubr.msk.f32.gmra.mrb[34].mxu0 %vm1443_vm2, %v7133_v54  ;;  %14377 = vmatprep.mubr.msk.f32.mxu1 %vm17196_vm0, %v21229_v19  ;;  %v7444_v54 = vld [vmem:[#allocation2 + $0x8e] sm:$0xff] }
 0x5b9   : > { %15085 = vmatprep.mubr.msk.f32.mxu0 %vm17196_vm0, %v21229_v19 }
 0x5bb   : > { %14378 = vmatmul.mubr.msk.f32.gmra.mrb[226].mxu1 %vm1443_vm2, %v20065_v12 }
 0x5bc   : > { %15086 = vmatmul.mubr.msk.f32.gmra.mrb[36].mxu0 %vm1443_vm2, %v7134_v39  ;;  %14380 = vmatprep.mubr.msk.f32.mxu1 %vm17196_vm0, %v21229_v19  ;;  %v7445_v39 = vld [vmem:[#allocation2 + $0x96] sm:$0xff] }
 0x5bd   : > { %15088 = vmatprep.mubr.msk.f32.mxu0 %vm17196_vm0, %v21229_v19 }
 0x5bf   : > { %14381 = vmatmul.mubr.msk.f32.gmra.mrb[228].mxu1 %vm1443_vm2, %v20074_v15 }
 0x5c0   : > { %15089 = vmatmul.mubr.msk.f32.gmra.mrb[38].mxu0 %vm1443_vm2, %v7135_v57  ;;  %14383 = vmatprep.mubr.msk.f32.mxu1 %vm17196_vm0, %v21229_v19  ;;  %v7446_v57 = vld [vmem:[#allocation2 + $0x9e] sm:$0xff] }
 0x5c1   : > { %15091 = vmatprep.mubr.msk.f32.mxu0 %vm17196_vm0, %v21229_v19 }
 0x5c3   : > { %14384 = vmatmul.mubr.msk.f32.gmra.mrb[230].mxu1 %vm1443_vm2, %v20083_v17 }
 0x5c4   : > { %15092 = vmatmul.mubr.msk.f32.gmra.mrb[40].mxu0 %vm1443_vm2, %v7136_v59  ;;  %14386 = vmatprep.mubr.msk.f32.mxu1 %vm17196_vm0, %v21229_v19  ;;  %v7447_v59 = vld [vmem:[#allocation2 + $0xa6] sm:$0xff] }
 0x5c5   : > { %15094 = vmatprep.mubr.msk.f32.mxu0 %vm17196_vm0, %v21229_v19 }
 0x5c7   : > { %14387 = vmatmul.mubr.msk.f32.gmra.mrb[232].mxu1 %vm1443_vm2, %v20092_v3 }
 0x5c8   : > { %15095 = vmatmul.mubr.msk.f32.gmra.mrb[42].mxu0 %vm1443_vm2, %v7137_v32  ;;  %14389 = vmatprep.mubr.msk.f32.mxu1 %vm17196_vm0, %v21229_v19  ;;  %v7448_v32 = vld [vmem:[#allocation2 + $0xae] sm:$0xff] }
 0x5c9   : > { %15097 = vmatprep.mubr.msk.f32.mxu0 %vm17196_vm0, %v21229_v19 }
 0x5cb   : > { %14390 = vmatmul.mubr.msk.f32.gmra.mrb[234].mxu1 %vm1443_vm2, %v20101_v26 }
 0x5cc   : > { %15098 = vmatmul.mubr.msk.f32.gmra.mrb[44].mxu0 %vm1443_vm2, %v7138_v60  ;;  %14392 = vmatprep.mubr.msk.f32.mxu1 %vm17196_vm0, %v21229_v19 }
 0x5cd   : > { %15100 = vmatprep.mubr.msk.f32.mxu0 %vm17196_vm0, %v21229_v19 }
 0x5cf   : > { %14393 = vmatmul.mubr.msk.f32.gmra.mrb[236].mxu1 %vm1443_vm2, %v20110_v42 }
 0x5d0   : > { %15101 = vmatmul.mubr.msk.f32.gmra.mrb[46].mxu0 %vm1443_vm2, %v7139_v48  ;;  %14395 = vmatprep.mubr.msk.f32.mxu1 %vm17196_vm0, %v21229_v19  ;;  %v7449_v48 = vld [vmem:[#allocation2 + $0xb6] sm:$0xff] }
 0x5d1   : > { %15103 = vmatprep.mubr.msk.f32.mxu0 %vm17196_vm0, %v21229_v19 }
 0x5d3   : > { %14396 = vmatmul.mubr.msk.f32.gmra.mrb[238].mxu1 %vm1443_vm2, %v20119_v22 }
 0x5d4   : > { %15104 = vmatmul.mubr.msk.f32.gmra.mrb[48].mxu0 %vm1443_vm2, %v7140_v21  ;;  %14398 = vmatprep.mubr.msk.f32.mxu1 %vm17196_vm0, %v21229_v19 }
 0x5d5   : > { %15108 = vmatprep.mubr.msk.f32.mxu0 %vm17196_vm0, %v21229_v19 }
 0x5d7   : > { %14399 = vmatmul.mubr.msk.f32.gmra.mrb[240].mxu1 %vm1443_vm2, %v20131_v11 }
 0x5d8   : > { %15109 = vmatmul.mubr.msk.f32.vlgmr.msra.gmra.mrb[0].mxu0 %vm1443_vm2, %v7432_v14  ;;  %14401 = vmatprep.mubr.msk.f32.mxu1 %vm17196_vm0, %v21229_v19  ;;  %v7450_v14 = vld [vmem:[#allocation2 + $0xbe] sm:$0xff] }
 0x5d9   : > { %15184 = vmatpush3.msra.mxu0 %v7773_v56  ;;  %15111 = vmatprep.mubr.msk.f32.mxu0 %vm17196_vm0, %v21229_v19 }
 0x5da   : > { %15260 = vmatprep.subr.mxu0 %v21229_v19 }
 0x5db   : > { %14402 = vmatmul.mubr.msk.f32.gmra.mrb[242].mxu1 %vm1443_vm2, %v20141_v49 }
 0x5dc   : > { %15112 = vmatmul.mubr.msk.f32.gmra.mrb[2].mxu0 %vm1443_vm2, %v7433_v4  ;;  %14404 = vmatprep.mubr.msk.f32.mxu1 %vm17196_vm0, %v21229_v19 }
 0x5dd   : > { %15114 = vmatprep.mubr.msk.f32.mxu0 %vm17196_vm0, %v21229_v19 }
 0x5df   : > { %14405 = vmatmul.mubr.msk.f32.gmra.mrb[244].mxu1 %vm1443_vm2, %v20150_v28 }
 0x5e0   : > { %15115 = vmatmul.mubr.msk.f32.gmra.mrb[4].mxu0 %vm1443_vm2, %v7434_v36  ;;  %14407 = vmatprep.mubr.msk.f32.mxu1 %vm17196_vm0, %v21229_v19  ;;  %v7451_v36 = vld [vmem:[#allocation2 + $0xc6] sm:$0xff] }
 0x5e1   : > { %15117 = vmatprep.mubr.msk.f32.mxu0 %vm17196_vm0, %v21229_v19 }
 0x5e3   : > { %14408 = vmatmul.mubr.msk.f32.gmra.mrb[246].mxu1 %vm1443_vm2, %v20159_v8 }
 0x5e4   : > { %15118 = vmatmul.mubr.msk.f32.gmra.mrb[6].mxu0 %vm1443_vm2, %v7435_v33  ;;  %14410 = vmatprep.mubr.msk.f32.mxu1 %vm17196_vm0, %v21229_v19 }
 0x5e5   : > { %15120 = vmatprep.mubr.msk.f32.mxu0 %vm17196_vm0, %v21229_v19 }
 0x5e7   : > { %14411 = vmatmul.mubr.msk.f32.gmra.mrb[248].mxu1 %vm1443_vm2, %v4296_v30 }
 0x5e8   : > { %15121 = vmatmul.mubr.msk.f32.gmra.mrb[8].mxu0 %vm1443_vm2, %v7436_v16  ;;  %15572 = vmatprep.mubr.msk.f32.mxu1 %vm17196_vm0, %v21229_v19  ;;  %v7452_v16 = vld [vmem:[#allocation2 + $0xce] sm:$0xff] }
 0x5e9   : > { %15123 = vmatprep.mubr.msk.f32.mxu0 %vm17196_vm0, %v21229_v19 }
 0x5ec   : > { %15124 = vmatmul.mubr.msk.f32.gmra.mrb[10].mxu0 %vm1443_vm2, %v7437_v35 }
 0x5ed   : > { %15126 = vmatprep.mubr.msk.f32.mxu0 %vm17196_vm0, %v21229_v19 }
 0x5f0   : > { %15127 = vmatmul.mubr.msk.f32.gmra.mrb[12].mxu0 %vm1443_vm2, %v7438_v40 }
 0x5f1   : > { %15129 = vmatprep.mubr.msk.f32.mxu0 %vm17196_vm0, %v21229_v19 }
 0x5f4   : > { %15130 = vmatmul.mubr.msk.f32.gmra.mrb[14].mxu0 %vm1443_vm2, %v7439_v44  ;;  %v7453_v44 = vld [vmem:[#allocation2 + $0xd6] sm:$0xff] }
 0x5f5   : > { %15132 = vmatprep.mubr.msk.f32.mxu0 %vm17196_vm0, %v21229_v19 }
 0x5f8   : > { %15133 = vmatmul.mubr.msk.f32.gmra.mrb[16].mxu0 %vm1443_vm2, %v7440_v52 }
 0x5f9   : > { %15135 = vmatprep.mubr.msk.f32.mxu0 %vm17196_vm0, %v21229_v19 }
 0x5fc   : > { %15136 = vmatmul.mubr.msk.f32.gmra.mrb[18].mxu0 %vm1443_vm2, %v7441_v13 }
 0x5fd   : > { %15138 = vmatprep.mubr.msk.f32.mxu0 %vm17196_vm0, %v21229_v19 }
 0x600   : > { %15139 = vmatmul.mubr.msk.f32.gmra.mrb[20].mxu0 %vm1443_vm2, %v7442_v51  ;;  %v7454_v51 = vld [vmem:[#allocation2 + $0xde] sm:$0xff] }
 0x601   : > { %15141 = vmatprep.mubr.msk.f32.mxu0 %vm17196_vm0, %v21229_v19 }
 0x604   : > { %15142 = vmatmul.mubr.msk.f32.gmra.mrb[22].mxu0 %vm1443_vm2, %v7443_v24 }
 0x605   : > { %15144 = vmatprep.mubr.msk.f32.mxu0 %vm17196_vm0, %v21229_v19 }
 0x608   : > { %15145 = vmatmul.mubr.msk.f32.gmra.mrb[24].mxu0 %vm1443_vm2, %v7444_v54 }
 0x609   : > { %15147 = vmatprep.mubr.msk.f32.mxu0 %vm17196_vm0, %v21229_v19 }
 0x60c   : > { %15148 = vmatmul.mubr.msk.f32.gmra.mrb[26].mxu0 %vm1443_vm2, %v7445_v39  ;;  %v7455_v39 = vld [vmem:[#allocation2 + $0xe6] sm:$0xff] }
 0x60d   : > { %15150 = vmatprep.mubr.msk.f32.mxu0 %vm17196_vm0, %v21229_v19 }
 0x610   : > { %15151 = vmatmul.mubr.msk.f32.gmra.mrb[28].mxu0 %vm1443_vm2, %v7446_v57 }
 0x611   : > { %15153 = vmatprep.mubr.msk.f32.mxu0 %vm17196_vm0, %v21229_v19 }
 0x614   : > { %15154 = vmatmul.mubr.msk.f32.gmra.mrb[30].mxu0 %vm1443_vm2, %v7447_v59 }
 0x615   : > { %15156 = vmatprep.mubr.msk.f32.mxu0 %vm17196_vm0, %v21229_v19 }
 0x618   : > { %15157 = vmatmul.mubr.msk.f32.gmra.mrb[32].mxu0 %vm1443_vm2, %v7448_v32  ;;  %v7456_v32 = vld [vmem:[#allocation2 + $0xee] sm:$0xf] }
 0x619   : > { %15159 = vmatprep.mubr.msk.f32.mxu0 %vm17196_vm0, %v21229_v19 }
 0x61a   : > { %v20210_v60 = vpop.f32.mrb[200].mxu1 }
 0x61b   : > { %v14263_v21 = vpop.f32.mrb[201].mxu1 }
 0x61c   : > { %15160 = vmatmul.mubr.msk.f32.gmra.mrb[34].mxu0 %vm1443_vm2, %v7449_v48 }
 0x61d   : > { %15162 = vmatprep.mubr.msk.f32.mxu0 %vm17196_vm0, %v21229_v19 }
 0x61e   : > { %v20215_v56 = vpop.f32.mrb[202].mxu1 }
 0x61f   : > { %v14266_v4 = vpop.f32.mrb[203].mxu1 }
 0x620   : > { %15163 = vmatmul.mubr.msk.f32.gmra.mrb[36].mxu0 %vm1443_vm2, %v7450_v14  ;;  %v8089_v14 = vld [vmem:[%s21163_s1 + $0xb8] sm:$0xff] }
 0x621   : > { %15165 = vmatprep.mubr.msk.f32.mxu0 %vm17196_vm0, %v21229_v19 }
 0x622   : > { %v20220_v33 = vpop.f32.mrb[204].mxu1 }
 0x623   : > { %v14269_v30 = vpop.f32.mrb[205].mxu1 }
 0x624   : > { %15166 = vmatmul.mubr.msk.f32.gmra.mrb[38].mxu0 %vm1443_vm2, %v7451_v36  ;;  %v7748_v36 = vld [vmem:[#allocation2 + $0x38] sm:$0xff] }
 0x625   : > { %15168 = vmatprep.mubr.msk.f32.mxu0 %vm17196_vm0, %v21229_v19 }
 0x626   : > { %v20225_v35 = vpop.f32.mrb[206].mxu1 }
 0x627   : > { %v14272_v40 = vpop.f32.mrb[207].mxu1 }
 0x628   : > { %15169 = vmatmul.mubr.msk.f32.gmra.mrb[40].mxu0 %vm1443_vm2, %v7452_v16  ;;  %v7749_v16 = vld [vmem:[#allocation2 + $0x40] sm:$0xff]  ;;  %v7750_v40 = vld [vmem:[#allocation2 + $0x48] sm:$0xff] }
 0x629   : > { %15171 = vmatprep.mubr.msk.f32.mxu0 %vm17196_vm0, %v21229_v19 }
 0x62a   : > { %v20230_v52 = vpop.f32.mrb[208].mxu1 }
 0x62b   : > { %v14275_v13 = vpop.f32.mrb[209].mxu1 }
 0x62c   : > { %15172 = vmatmul.mubr.msk.f32.gmra.mrb[42].mxu0 %vm1443_vm2, %v7453_v44  ;;  %v7751_v44 = vld [vmem:[#allocation2 + $0x50] sm:$0xff]  ;;  %v7752_v13 = vld [vmem:[#allocation2 + $0x58] sm:$0xff] }
 0x62d   : > { %15174 = vmatprep.mubr.msk.f32.mxu0 %vm17196_vm0, %v21229_v19 }
 0x62e   : > { %v20235_v24 = vpop.f32.mrb[210].mxu1 }
 0x62f   : > { %v14278_v54 = vpop.f32.mrb[211].mxu1 }
 0x630   : > { %15175 = vmatmul.mubr.msk.f32.gmra.mrb[44].mxu0 %vm1443_vm2, %v7454_v51  ;;  %v7765_v54 = vld [vmem:[#allocation2 + $0xc0] sm:$0xff] }
 0x631   : > { %15177 = vmatprep.mubr.msk.f32.mxu0 %vm17196_vm0, %v21229_v19 }
 0x632   : > { %v20240_v57 = vpop.f32.mrb[212].mxu1 }
 0x633   : > { %v14281_v59 = vpop.f32.mrb[213].mxu1 }
 0x634   : > { %15178 = vmatmul.mubr.msk.f32.gmra.mrb[46].mxu0 %vm1443_vm2, %v7455_v39  ;;  %v7766_v59 = vld [vmem:[#allocation2 + $0xc8] sm:$0xff] }
 0x635   : > { %15180 = vmatprep.mubr.msk.f32.mxu0 %vm17196_vm0, %v21229_v19 }
 0x636   : > { %v20245_v48 = vpop.f32.mrb[214].mxu1 }
 0x637   : > { %v14284_v21 = vpop.f32.mrb[215].mxu1 }
 0x638   : > { %15181 = vmatmul.mubr.msk.f32.gmra.mrb[48].mxu0 %vm1443_vm2, %v7456_v32 }
 0x639   : > { %15185 = vmatprep.mubr.msk.f32.mxu0 %vm17196_vm0, %v21229_v19 }
 0x63a   : > { %v20253_v4 = vpop.f32.mrb[216].mxu1 }
 0x63b   : > { %v14287_v30 = vpop.f32.mrb[217].mxu1 }
 0x63c   : > { %15186 = vmatmul.mubr.msk.f32.vlgmr.msra.gmra.mrb[0].mxu0 %vm1443_vm2, %v7748_v36 }
 0x63d   : > { %15261 = vmatpush3.msra.mxu0 %v8089_v14  ;;  %15188 = vmatprep.mubr.msk.f32.mxu0 %vm17196_vm0, %v21229_v19  ;;  %v7767_v14 = vld [vmem:[#allocation2 + $0xd0] sm:$0xff] }
 0x63e   : > { %15337 = vmatprep.subr.mxu0 %v21229_v19 }
 0x640   : > { %15189 = vmatmul.mubr.msk.f32.gmra.mrb[2].mxu0 %vm1443_vm2, %v7749_v16  ;;  %v7768_v16 = vld [vmem:[#allocation2 + $0xd8] sm:$0xff] }
 0x641   : > { %15191 = vmatprep.mubr.msk.f32.mxu0 %vm17196_vm0, %v21229_v19 }
 0x644   : > { %15192 = vmatmul.mubr.msk.f32.gmra.mrb[4].mxu0 %vm1443_vm2, %v7750_v40 }
 0x645   : > { %15194 = vmatprep.mubr.msk.f32.mxu0 %vm17196_vm0, %v21229_v19 }
 0x648   : > { %15195 = vmatmul.mubr.msk.f32.gmra.mrb[6].mxu0 %vm1443_vm2, %v7751_v44 }
 0x649   : > { %15197 = vmatprep.mubr.msk.f32.mxu0 %vm17196_vm0, %v21229_v19 }
 0x64c   : > { %15198 = vmatmul.mubr.msk.f32.gmra.mrb[8].mxu0 %vm1443_vm2, %v7752_v13  ;;  %v7769_v13 = vld [vmem:[#allocation2 + $0xe0] sm:$0xff] }
 0x64d   : > { %15200 = vmatprep.mubr.msk.f32.mxu0 %vm17196_vm0, %v21229_v19 }
 0x650   : > { %15201 = vmatmul.mubr.msk.f32.gmra.mrb[10].mxu0 %vm1443_vm2, %v19675_v34  ;;  %v7759_v34 = vld [vmem:[#allocation2 + $0x90] sm:$0xff] }
 0x651   : > { %15203 = vmatprep.mubr.msk.f32.mxu0 %vm17196_vm0, %v21229_v19 }
 0x654   : > { %15204 = vmatmul.mubr.msk.f32.gmra.mrb[12].mxu0 %vm1443_vm2, %v19687_v50  ;;  %v7760_v50 = vld [vmem:[#allocation2 + $0x98] sm:$0xff] }
 0x655   : > { %15206 = vmatprep.mubr.msk.f32.mxu0 %vm17196_vm0, %v21229_v19 }
 0x658   : > { %15207 = vmatmul.mubr.msk.f32.gmra.mrb[14].mxu0 %vm1443_vm2, %v19698_v1  ;;  %v7761_v1 = vld [vmem:[#allocation2 + $0xa0] sm:$0xff] }
 0x659   : > { %15209 = vmatprep.mubr.msk.f32.mxu0 %vm17196_vm0, %v21229_v19 }
 0x65c   : > { %15210 = vmatmul.mubr.msk.f32.gmra.mrb[16].mxu0 %vm1443_vm2, %v19708_v18  ;;  %v7762_v18 = vld [vmem:[#allocation2 + $0xa8] sm:$0xff] }
 0x65d   : > { %15212 = vmatprep.mubr.msk.f32.mxu0 %vm17196_vm0, %v21229_v19 }
 0x660   : > { %15213 = vmatmul.mubr.msk.f32.gmra.mrb[18].mxu0 %vm1443_vm2, %v19718_v6  ;;  %v7763_v6 = vld [vmem:[#allocation2 + $0xb0] sm:$0xff] }
 0x661   : > { %15215 = vmatprep.mubr.msk.f32.mxu0 %vm17196_vm0, %v21229_v19 }
 0x664   : > { %15216 = vmatmul.mubr.msk.f32.gmra.mrb[20].mxu0 %vm1443_vm2, %v19728_v61  ;;  %v7764_v61 = vld [vmem:[#allocation2 + $0xb8] sm:$0xff] }
 0x665   : > { %15218 = vmatprep.mubr.msk.f32.mxu0 %vm17196_vm0, %v21229_v19 }
 0x668   : > { %15219 = vmatmul.mubr.msk.f32.gmra.mrb[22].mxu0 %vm1443_vm2, %v7759_v34 }
 0x669   : > { %15221 = vmatprep.mubr.msk.f32.mxu0 %vm17196_vm0, %v21229_v19 }
 0x66c   : > { %15222 = vmatmul.mubr.msk.f32.gmra.mrb[24].mxu0 %vm1443_vm2, %v7760_v50 }
 0x66d   : > { %15224 = vmatprep.mubr.msk.f32.mxu0 %vm17196_vm0, %v21229_v19 }
 0x670   : > { %15225 = vmatmul.mubr.msk.f32.gmra.mrb[26].mxu0 %vm1443_vm2, %v7761_v1  ;;  %v7770_v1 = vld [vmem:[#allocation2 + $0xe8] sm:$0xff] }
 0x671   : > { %15227 = vmatprep.mubr.msk.f32.mxu0 %vm17196_vm0, %v21229_v19 }
 0x674   : > { %15228 = vmatmul.mubr.msk.f32.gmra.mrb[28].mxu0 %vm1443_vm2, %v7762_v18 }
 0x675   : > { %15230 = vmatprep.mubr.msk.f32.mxu0 %vm17196_vm0, %v21229_v19 }
 0x678   : > { %15231 = vmatmul.mubr.msk.f32.gmra.mrb[30].mxu0 %vm1443_vm2, %v7763_v6 }
 0x679   : > { %15233 = vmatprep.mubr.msk.f32.mxu0 %vm17196_vm0, %v21229_v19 }
 0x67c   : > { %15234 = vmatmul.mubr.msk.f32.gmra.mrb[32].mxu0 %vm1443_vm2, %v7764_v61  ;;  %v7771_v61 = vld [vmem:[#allocation2 + $0xf0] sm:$0xff] }
 0x67d   : > { %15236 = vmatprep.mubr.msk.f32.mxu0 %vm17196_vm0, %v21229_v19 }
 0x67e   : > { %v20313_v51 = vpop.f32.mrb[218].mxu1 }
 0x67f   : > { %v14367_v39 = vpop.f32.mrb[219].mxu1 }
 0x680   : > { %15237 = vmatmul.mubr.msk.f32.gmra.mrb[34].mxu0 %vm1443_vm2, %v7765_v54 }
 0x681   : > { %15239 = vmatprep.mubr.msk.f32.mxu0 %vm17196_vm0, %v21229_v19 }
 0x682   : > { %v20318_v32 = vpop.f32.mrb[220].mxu1 }
 0x683   : > { %v14370_v21 = vpop.f32.mrb[221].mxu1 }
 0x684   : > { %15240 = vmatmul.mubr.msk.f32.gmra.mrb[36].mxu0 %vm1443_vm2, %v7766_v59  ;;  %v7772_v59 = vld [vmem:[#allocation2 + $0xf8] sm:$0xf] }
 0x685   : > { %15242 = vmatprep.mubr.msk.f32.mxu0 %vm17196_vm0, %v21229_v19 }
 0x686   : > { %v20323_v36 = vpop.f32.mrb[222].mxu1 }
 0x687   : > { %v14373_v30 = vpop.f32.mrb[223].mxu1 }
 0x688   : > { %15243 = vmatmul.mubr.msk.f32.gmra.mrb[38].mxu0 %vm1443_vm2, %v7767_v14  ;;  %v8405_v30 = vld [vmem:[%s21163_s1 + $0xc0] sm:$0xff] }
 0x689   : > { %15245 = vmatprep.mubr.msk.f32.mxu0 %vm17196_vm0, %v21229_v19 }
 0x68a   : > { %v20328_v40 = vpop.f32.mrb[224].mxu1 }
 0x68b   : > { %v14376_v44 = vpop.f32.mrb[225].mxu1 }
 0x68c   : > { %15246 = vmatmul.mubr.msk.f32.gmra.mrb[40].mxu0 %vm1443_vm2, %v7768_v16 }
 0x68d   : > { %15248 = vmatprep.mubr.msk.f32.mxu0 %vm17196_vm0, %v21229_v19 }
 0x68e   : > { %v20333_v34 = vpop.f32.mrb[226].mxu1 }
 0x68f   : > { %v14379_v50 = vpop.f32.mrb[227].mxu1 }
 0x690   : > { %15249 = vmatmul.mubr.msk.f32.gmra.mrb[42].mxu0 %vm1443_vm2, %v7769_v13 }
 0x691   : > { %15251 = vmatprep.mubr.msk.f32.mxu0 %vm17196_vm0, %v21229_v19 }
 0x692   : > { %v20338_v18 = vpop.f32.mrb[228].mxu1 }
 0x693   : > { %v14382_v6 = vpop.f32.mrb[229].mxu1 }
 0x694   : > { %15252 = vmatmul.mubr.msk.f32.gmra.mrb[44].mxu0 %vm1443_vm2, %v7770_v1 }
 0x695   : > { %15254 = vmatprep.mubr.msk.f32.mxu0 %vm17196_vm0, %v21229_v19 }
 0x696   : > { %v20343_v54 = vpop.f32.mrb[230].mxu1 }
 0x697   : > { %v14385_v39 = vpop.f32.mrb[231].mxu1 }
 0x698   : > { %15255 = vmatmul.mubr.msk.f32.gmra.mrb[46].mxu0 %vm1443_vm2, %v7771_v61 }
 0x699   : > { %15257 = vmatprep.mubr.msk.f32.mxu0 %vm17196_vm0, %v21229_v19 }
 0x69a   : > { %v20348_v21 = vpop.f32.mrb[232].mxu1 }
 0x69b   : > { %v14388_v14 = vpop.f32.mrb[233].mxu1 }
 0x69c   : > { %15258 = vmatmul.mubr.msk.f32.gmra.mrb[48].mxu0 %vm1443_vm2, %v7772_v59 }
 0x69d   : > { %15262 = vmatprep.mubr.msk.f32.mxu0 %vm17196_vm0, %v21229_v19 }
 0x69e   : > { %v4524_v16 = vpop.f32.mrb[234].mxu1 }
 0x69f   : > { %v14391_v44 = vpop.f32.mrb[235].mxu1  ;;  %v8707_v16 = vld [vmem:[#allocation2 + $0x93] sm:$0xff] }
 0x6a0   : > { %15263 = vmatmul.mubr.msk.f32.vlgmr.msra.gmra.mrb[0].mxu0 %vm1443_vm2, %v19848_v45  ;;  %v8708_v44 = vld [vmem:[#allocation2 + $0x9b] sm:$0xff] }
 0x6a1   : > { %15338 = vmatpush3.msra.mxu0 %v8405_v30  ;;  %15265 = vmatprep.mubr.msk.f32.mxu0 %vm17196_vm0, %v21229_v19 }
 0x6a2   : > { %15414 = vmatprep.subr.mxu0 %v21229_v19  ;;  %v4529_v13 = vpop.f32.mrb[236].mxu1 }
 0x6a3   : > { %v14394_v50 = vpop.f32.mrb[237].mxu1  ;;  %v8709_v13 = vld [vmem:[#allocation2 + $0xa3] sm:$0xff] }
 0x6a4   : > { %15266 = vmatmul.mubr.msk.f32.gmra.mrb[2].mxu0 %vm1443_vm2, %v19857_v38  ;;  %v8710_v50 = vld [vmem:[#allocation2 + $0xab] sm:$0xff] }
 0x6a5   : > { %15268 = vmatprep.mubr.msk.f32.mxu0 %vm17196_vm0, %v21229_v19 }
 0x6a6   : > { %v4534_v1 = vpop.f32.mrb[238].mxu1 }
 0x6a7   : > { %v14397_v6 = vpop.f32.mrb[239].mxu1  ;;  %v8711_v1 = vld [vmem:[#allocation2 + $0xb3] sm:$0xff] }
 0x6a8   : > { %15269 = vmatmul.mubr.msk.f32.gmra.mrb[4].mxu0 %vm1443_vm2, %v19866_v46  ;;  %v8712_v6 = vld [vmem:[#allocation2 + $0xbb] sm:$0xff] }
 0x6a9   : > { %15271 = vmatprep.mubr.msk.f32.mxu0 %vm17196_vm0, %v21229_v19 }
 0x6aa   : > { %v4539_v45 = vpop.f32.mrb[240].mxu1 }
 0x6ab   : > { %v14400_v61 = vpop.f32.mrb[241].mxu1  ;;  %v8713_v45 = vld [vmem:[#allocation2 + $0xc3] sm:$0xff] }
 0x6ac   : > { %15272 = vmatmul.mubr.msk.f32.gmra.mrb[6].mxu0 %vm1443_vm2, %v19875_v62  ;;  %v9374_v61 = vld [vmem:[%s21163_s1 + $0xe8] sm:$0xff] }
 0x6ad   : > { %15274 = vmatprep.mubr.msk.f32.mxu0 %vm17196_vm0, %v21229_v19 }
 0x6ae   : > { %v4544_v38 = vpop.f32.mrb[242].mxu1 }
 0x6af   : > { %v14403_v39 = vpop.f32.mrb[243].mxu1  ;;  %v9375_v38 = vld [vmem:[%s21163_s1 + $0xf0] sm:$0xff] }
 0x6b0   : > { %15275 = vmatmul.mubr.msk.f32.gmra.mrb[8].mxu0 %vm1443_vm2, %v19884_v0  ;;  %v8714_v39 = vld [vmem:[#allocation2 + $0xcb] sm:$0xff] }
 0x6b1   : > { %15277 = vmatprep.mubr.msk.f32.mxu0 %vm17196_vm0, %v21229_v19 }
 0x6b2   : > { %v4549_v46 = vpop.f32.mrb[244].mxu1 }
 0x6b3   : > { %v14406_v59 = vpop.f32.mrb[245].mxu1  ;;  %v15826_v46 = vpack.c.bf16 %v9375_v38, %v9374_v61 }
 0x6b4   : > { %15278 = vmatmul.mubr.msk.f32.gmra.mrb[10].mxu0 %vm1443_vm2, %v19893_v31  ;;  %v8083_v31 = vld [vmem:[#allocation2 + $0xd1] sm:$0xff] }
 0x6b5   : > { %15280 = vmatprep.mubr.msk.f32.mxu0 %vm17196_vm0, %v21229_v19  ;;  %15827 = vmatpush3.bf16.msra.mxu1 %v15826_v46  ;;  %v8715_v59 = vld [vmem:[#allocation2 + $0xd3] sm:$0xff] }
 0x6b6   : > { %v4554_v62 = vpop.f32.mrb[246].mxu1  ;;  %15828 = vmatprep.subr.bf16.mxu1 %v21324_v5 }
 0x6b7   : > { %v14409_v14 = vpop.f32.mrb[247].mxu1  ;;  %v8716_v62 = vld [vmem:[#allocation2 + $0xdb] sm:$0xff] }
 0x6b8   : > { %15281 = vmatmul.mubr.msk.f32.gmra.mrb[12].mxu0 %vm1443_vm2, %v19905_v58  ;;  %v8084_v58 = vld [vmem:[#allocation2 + $0xd9] sm:$0xff]  ;;  %v8717_v14 = vld [vmem:[#allocation2 + $0xe3] sm:$0xff] }
 0x6b9   : > { %15283 = vmatprep.mubr.msk.f32.mxu0 %vm17196_vm0, %v21229_v19 }
 0x6ba   : > { %v4559_v0 = vpop.f32.mrb[248].mxu1 }
 0x6bb   : > { %v14412_v30 = vpop.f32.mrb[249].mxu1  ;;  %v8718_v0 = vld [vmem:[#allocation2 + $0xeb] sm:$0xff] }
 0x6bc   : > { %15284 = vmatmul.mubr.msk.f32.gmra.mrb[14].mxu0 %vm1443_vm2, %v19915_v53  ;;  %v8085_v53 = vld [vmem:[#allocation2 + $0xe1] sm:$0xff]  ;;  %v8719_v30 = vld [vmem:[#allocation2 + $0xf3] sm:$0xff] }
 0x6bd   : > { %15286 = vmatprep.mubr.msk.f32.mxu0 %vm17196_vm0, %v21229_v19 }
 0x6c0   : > { %15287 = vmatmul.mubr.msk.f32.gmra.mrb[16].mxu0 %vm1443_vm2, %v19924_v63  ;;  %v8086_v63 = vld [vmem:[#allocation2 + $0xe9] sm:$0xff] }
 0x6c1   : > { %15289 = vmatprep.mubr.msk.f32.mxu0 %vm17196_vm0, %v21229_v19 }
 0x6c4   : > { %15290 = vmatmul.mubr.msk.f32.gmra.mrb[18].mxu0 %vm1443_vm2, %v19933_v7  ;;  %v8087_v7 = vld [vmem:[#allocation2 + $0xf1] sm:$0xff] }
 0x6c5   : > { %15292 = vmatprep.mubr.msk.f32.mxu0 %vm17196_vm0, %v21229_v19 }
 0x6c8   : > { %15293 = vmatmul.mubr.msk.f32.gmra.mrb[20].mxu0 %vm1443_vm2, %v19942_v55  ;;  %v8088_v55 = vld [vmem:[#allocation2 + $0xf9] sm:$0xf] }
 0x6c9   : > { %15295 = vmatprep.mubr.msk.f32.mxu0 %vm17196_vm0, %v21229_v19 }
 0x6cc   : > { %15296 = vmatmul.mubr.msk.f32.gmra.mrb[22].mxu0 %vm1443_vm2, %v19951_v27  ;;  %v8721_v27 = vld [vmem:[%s21163_s1 + $0xc8] sm:$0xff] }
 0x6cd   : > { %15298 = vmatprep.mubr.msk.f32.mxu0 %vm17196_vm0, %v21229_v19 }
 0x6d0   : > { %15299 = vmatmul.mubr.msk.f32.gmra.mrb[24].mxu0 %vm1443_vm2, %v19960_v25  ;;  %v8380_v25 = vld [vmem:[#allocation2 + $0x3a] sm:$0xff] }
 0x6d1   : > { %15301 = vmatprep.mubr.msk.f32.mxu0 %vm17196_vm0, %v21229_v19 }
 0x6d4   : > { %15302 = vmatmul.mubr.msk.f32.gmra.mrb[26].mxu0 %vm1443_vm2, %v19969_v37  ;;  %v8381_v37 = vld [vmem:[#allocation2 + $0x42] sm:$0xff] }
 0x6d5   : > { %15304 = vmatprep.mubr.msk.f32.mxu0 %vm17196_vm0, %v21229_v19 }
 0x6d8   : > { %15305 = vmatmul.mubr.msk.f32.gmra.mrb[28].mxu0 %vm1443_vm2, %v19978_v41  ;;  %v8382_v41 = vld [vmem:[#allocation2 + $0x4a] sm:$0xff] }
 0x6d9   : > { %15307 = vmatprep.mubr.msk.f32.mxu0 %vm17196_vm0, %v21229_v19 }
 0x6dc   : > { %15308 = vmatmul.mubr.msk.f32.gmra.mrb[30].mxu0 %vm1443_vm2, %v19987_v23  ;;  %v8383_v23 = vld [vmem:[#allocation2 + $0x52] sm:$0xff] }
 0x6dd   : > { %15310 = vmatprep.mubr.msk.f32.mxu0 %vm17196_vm0, %v21229_v19 }
 0x6e0   : > { %15311 = vmatmul.mubr.msk.f32.gmra.mrb[32].mxu0 %vm1443_vm2, %v19996_v20  ;;  %v8399_v20 = vld [vmem:[#allocation2 + $0xd2] sm:$0xff] }
 0x6e1   : > { %15313 = vmatprep.mubr.msk.f32.mxu0 %vm17196_vm0, %v21229_v19 }
 0x6e4   : > { %15314 = vmatmul.mubr.msk.f32.gmra.mrb[34].mxu0 %vm1443_vm2, %v20005_v29  ;;  %v8400_v29 = vld [vmem:[#allocation2 + $0xda] sm:$0xff] }
 0x6e5   : > { %15316 = vmatprep.mubr.msk.f32.mxu0 %vm17196_vm0, %v21229_v19 }
 0x6e8   : > { %15317 = vmatmul.mubr.msk.f32.gmra.mrb[36].mxu0 %vm1443_vm2, %v20014_v43  ;;  %v8401_v43 = vld [vmem:[#allocation2 + $0xe2] sm:$0xff] }
 0x6e9   : > { %15319 = vmatprep.mubr.msk.f32.mxu0 %vm17196_vm0, %v21229_v19 }
 0x6ec   : > { %15320 = vmatmul.mubr.msk.f32.gmra.mrb[38].mxu0 %vm1443_vm2, %v8083_v31  ;;  %v8720_v31 = vld [vmem:[#allocation2 + $0xfb] sm:$0xf] }
 0x6ed   : > { %15322 = vmatprep.mubr.msk.f32.mxu0 %vm17196_vm0, %v21229_v19 }
 0x6f0   : > { %15323 = vmatmul.mubr.msk.f32.gmra.mrb[40].mxu0 %vm1443_vm2, %v8084_v58  ;;  %v9012_v58 = vld [vmem:[#allocation2 + $0x3c] sm:$0xff] }
 0x6f1   : > { %15325 = vmatprep.mubr.msk.f32.mxu0 %vm17196_vm0, %v21229_v19 }
 0x6f4   : > { %15326 = vmatmul.mubr.msk.f32.gmra.mrb[42].mxu0 %vm1443_vm2, %v8085_v53  ;;  %v9013_v53 = vld [vmem:[#allocation2 + $0x44] sm:$0xff] }
 0x6f5   : > { %15328 = vmatprep.mubr.msk.f32.mxu0 %vm17196_vm0, %v21229_v19 }
 0x6f8   : > { %15329 = vmatmul.mubr.msk.f32.gmra.mrb[44].mxu0 %vm1443_vm2, %v8086_v63  ;;  %v9014_v63 = vld [vmem:[#allocation2 + $0x4c] sm:$0xff] }
 0x6f9   : > { %15331 = vmatprep.mubr.msk.f32.mxu0 %vm17196_vm0, %v21229_v19 }
 0x6fc   : > { %15332 = vmatmul.mubr.msk.f32.gmra.mrb[46].mxu0 %vm1443_vm2, %v8087_v7  ;;  %v9015_v7 = vld [vmem:[#allocation2 + $0x54] sm:$0xff] }
 0x6fd   : > { %15334 = vmatprep.mubr.msk.f32.mxu0 %vm17196_vm0, %v21229_v19 }
 0x700   : > { %15335 = vmatmul.mubr.msk.f32.gmra.mrb[48].mxu0 %vm1443_vm2, %v8088_v55  ;;  %v9016_v55 = vld [vmem:[#allocation2 + $0x5c] sm:$0xff] }
 0x701   : > { %15339 = vmatprep.mubr.msk.f32.mxu0 %vm17196_vm0, %v21229_v19 }
 0x704   : > { %15340 = vmatmul.mubr.msk.f32.vlgmr.msra.gmra.mrb[0].mxu0 %vm1443_vm2, %v8380_v25  ;;  %v9018_v25 = vld [vmem:[#allocation2 + $0x6c] sm:$0xff] }
 0x705   : > { %15415 = vmatpush3.msra.mxu0 %v8721_v27  ;;  %15342 = vmatprep.mubr.msk.f32.mxu0 %vm17196_vm0, %v21229_v19  ;;  %v9017_v27 = vld [vmem:[#allocation2 + $0x64] sm:$0xff] }
 0x706   : > { %15491 = vmatprep.subr.mxu0 %v21229_v19 }
 0x708   : > { %15343 = vmatmul.mubr.msk.f32.gmra.mrb[2].mxu0 %vm1443_vm2, %v8381_v37  ;;  %v9019_v37 = vld [vmem:[#allocation2 + $0x74] sm:$0xff] }
 0x709   : > { %15345 = vmatprep.mubr.msk.f32.mxu0 %vm17196_vm0, %v21229_v19 }
 0x70c   : > { %15346 = vmatmul.mubr.msk.f32.gmra.mrb[4].mxu0 %vm1443_vm2, %v8382_v41  ;;  %v9020_v41 = vld [vmem:[#allocation2 + $0x7c] sm:$0xff] }
 0x70d   : > { %15348 = vmatprep.mubr.msk.f32.mxu0 %vm17196_vm0, %v21229_v19 }
 0x710   : > { %15349 = vmatmul.mubr.msk.f32.gmra.mrb[6].mxu0 %vm1443_vm2, %v8383_v23  ;;  %v9021_v23 = vld [vmem:[#allocation2 + $0x84] sm:$0xff] }
 0x711   : > { %15351 = vmatprep.mubr.msk.f32.mxu0 %vm17196_vm0, %v21229_v19 }
 0x714   : > { %15352 = vmatmul.mubr.msk.f32.gmra.mrb[8].mxu0 %vm1443_vm2, %v20029_v47  ;;  %v8402_v47 = vld [vmem:[#allocation2 + $0xea] sm:$0xff] }
 0x715   : > { %15354 = vmatprep.mubr.msk.f32.mxu0 %vm17196_vm0, %v21229_v19 }
 0x718   : > { %15355 = vmatmul.mubr.msk.f32.gmra.mrb[10].mxu0 %vm1443_vm2, %v20038_v9  ;;  %v8403_v9 = vld [vmem:[#allocation2 + $0xf2] sm:$0xff] }
 0x719   : > { %15357 = vmatprep.mubr.msk.f32.mxu0 %vm17196_vm0, %v21229_v19 }
 0x71c   : > { %15358 = vmatmul.mubr.msk.f32.gmra.mrb[12].mxu0 %vm1443_vm2, %v20047_v2  ;;  %v8404_v2 = vld [vmem:[#allocation2 + $0xfa] sm:$0xf] }
 0x71d   : > { %15360 = vmatprep.mubr.msk.f32.mxu0 %vm17196_vm0, %v21229_v19 }
 0x720   : > { %15361 = vmatmul.mubr.msk.f32.gmra.mrb[14].mxu0 %vm1443_vm2, %v20056_v10  ;;  %v9037_v10 = vld [vmem:[%s21163_s1 + $0xd0] sm:$0xff] }
 0x721   : > { %15363 = vmatprep.mubr.msk.f32.mxu0 %vm17196_vm0, %v21229_v19 }
 0x724   : > { %15364 = vmatmul.mubr.msk.f32.gmra.mrb[16].mxu0 %vm1443_vm2, %v20065_v12  ;;  %v8696_v12 = vld [vmem:[#allocation2 + $0x3b] sm:$0xff] }
 0x725   : > { %15366 = vmatprep.mubr.msk.f32.mxu0 %vm17196_vm0, %v21229_v19 }
 0x728   : > { %15367 = vmatmul.mubr.msk.f32.gmra.mrb[18].mxu0 %vm1443_vm2, %v20074_v15  ;;  %v8697_v15 = vld [vmem:[#allocation2 + $0x43] sm:$0xff] }
 0x729   : > { %15369 = vmatprep.mubr.msk.f32.mxu0 %vm17196_vm0, %v21229_v19 }
 0x72c   : > { %15370 = vmatmul.mubr.msk.f32.gmra.mrb[20].mxu0 %vm1443_vm2, %v20083_v17  ;;  %v8698_v17 = vld [vmem:[#allocation2 + $0x4b] sm:$0xff] }
 0x72d   : > { %15372 = vmatprep.mubr.msk.f32.mxu0 %vm17196_vm0, %v21229_v19 }
 0x730   : > { %15373 = vmatmul.mubr.msk.f32.gmra.mrb[22].mxu0 %vm1443_vm2, %v20092_v3  ;;  %v8699_v3 = vld [vmem:[#allocation2 + $0x53] sm:$0xff] }
 0x731   : > { %15375 = vmatprep.mubr.msk.f32.mxu0 %vm17196_vm0, %v21229_v19 }
 0x734   : > { %15376 = vmatmul.mubr.msk.f32.gmra.mrb[24].mxu0 %vm1443_vm2, %v20101_v26  ;;  %v8700_v26 = vld [vmem:[#allocation2 + $0x5b] sm:$0xff] }
 0x735   : > { %15378 = vmatprep.mubr.msk.f32.mxu0 %vm17196_vm0, %v21229_v19 }
 0x738   : > { %15379 = vmatmul.mubr.msk.f32.gmra.mrb[26].mxu0 %vm1443_vm2, %v20110_v42  ;;  %v8701_v42 = vld [vmem:[#allocation2 + $0x63] sm:$0xff] }
 0x739   : > { %15381 = vmatprep.mubr.msk.f32.mxu0 %vm17196_vm0, %v21229_v19 }
 0x73c   : > { %15382 = vmatmul.mubr.msk.f32.gmra.mrb[28].mxu0 %vm1443_vm2, %v20119_v22  ;;  %v8702_v22 = vld [vmem:[#allocation2 + $0x6b] sm:$0xff] }
 0x73d   : > { %15384 = vmatprep.mubr.msk.f32.mxu0 %vm17196_vm0, %v21229_v19 }
 0x740   : > { %15385 = vmatmul.mubr.msk.f32.gmra.mrb[30].mxu0 %vm1443_vm2, %v20131_v11  ;;  %v8703_v11 = vld [vmem:[#allocation2 + $0x73] sm:$0xff] }
 0x741   : > { %15387 = vmatprep.mubr.msk.f32.mxu0 %vm17196_vm0, %v21229_v19 }
 0x744   : > { %15388 = vmatmul.mubr.msk.f32.gmra.mrb[32].mxu0 %vm1443_vm2, %v20141_v49  ;;  %v8704_v49 = vld [vmem:[#allocation2 + $0x7b] sm:$0xff] }
 0x745   : > { %15390 = vmatprep.mubr.msk.f32.mxu0 %vm17196_vm0, %v21229_v19 }
 0x748   : > { %15391 = vmatmul.mubr.msk.f32.gmra.mrb[34].mxu0 %vm1443_vm2, %v20150_v28  ;;  %v8705_v28 = vld [vmem:[#allocation2 + $0x83] sm:$0xff] }
 0x749   : > { %15393 = vmatprep.mubr.msk.f32.mxu0 %vm17196_vm0, %v21229_v19 }
 0x74c   : > { %15394 = vmatmul.mubr.msk.f32.gmra.mrb[36].mxu0 %vm1443_vm2, %v20159_v8  ;;  %v8706_v8 = vld [vmem:[#allocation2 + $0x8b] sm:$0xff] }
 0x74d   : > { %15396 = vmatprep.mubr.msk.f32.mxu0 %vm17196_vm0, %v21229_v19 }
 0x750   : > { %15397 = vmatmul.mubr.msk.f32.gmra.mrb[38].mxu0 %vm1443_vm2, %v8399_v20  ;;  %v9022_v20 = vld [vmem:[#allocation2 + $0x8c] sm:$0xff] }
 0x751   : > { %15399 = vmatprep.mubr.msk.f32.mxu0 %vm17196_vm0, %v21229_v19 }
 0x754   : > { %15400 = vmatmul.mubr.msk.f32.gmra.mrb[40].mxu0 %vm1443_vm2, %v8400_v29  ;;  %v9023_v29 = vld [vmem:[#allocation2 + $0x94] sm:$0xff] }
 0x755   : > { %15402 = vmatprep.mubr.msk.f32.mxu0 %vm17196_vm0, %v21229_v19 }
 0x758   : > { %15403 = vmatmul.mubr.msk.f32.gmra.mrb[42].mxu0 %vm1443_vm2, %v8401_v43  ;;  %v9024_v43 = vld [vmem:[#allocation2 + $0x9c] sm:$0xff] }
 0x759   : > { %15405 = vmatprep.mubr.msk.f32.mxu0 %vm17196_vm0, %v21229_v19 }
 0x75c   : > { %15406 = vmatmul.mubr.msk.f32.gmra.mrb[44].mxu0 %vm1443_vm2, %v8402_v47  ;;  %v9025_v47 = vld [vmem:[#allocation2 + $0xa4] sm:$0xff] }
 0x75d   : > { %15408 = vmatprep.mubr.msk.f32.mxu0 %vm17196_vm0, %v21229_v19 }
 0x760   : > { %15409 = vmatmul.mubr.msk.f32.gmra.mrb[46].mxu0 %vm1443_vm2, %v8403_v9  ;;  %v9026_v9 = vld [vmem:[#allocation2 + $0xac] sm:$0xff] }
 0x761   : > { %15411 = vmatprep.mubr.msk.f32.mxu0 %vm17196_vm0, %v21229_v19 }
 0x764   : > { %15412 = vmatmul.mubr.msk.f32.gmra.mrb[48].mxu0 %vm1443_vm2, %v8404_v2  ;;  %v9027_v2 = vld [vmem:[#allocation2 + $0xb4] sm:$0xff] }
 0x765   : > { %15416 = vmatprep.mubr.msk.f32.mxu0 %vm17196_vm0, %v21229_v19 }
 0x768   : > { %15417 = vmatmul.mubr.msk.f32.vlgmr.msra.gmra.mrb[0].mxu0 %vm1443_vm2, %v8696_v12  ;;  %v9029_v12 = vld [vmem:[#allocation2 + $0xc4] sm:$0xff] }
 0x769   : > { %15492 = vmatpush3.msra.mxu0 %v9037_v10  ;;  %15419 = vmatprep.mubr.msk.f32.mxu0 %vm17196_vm0, %v21229_v19  ;;  %v9028_v10 = vld [vmem:[#allocation2 + $0xbc] sm:$0xff] }
 0x76c   : > { %15420 = vmatmul.mubr.msk.f32.gmra.mrb[2].mxu0 %vm1443_vm2, %v8697_v15  ;;  %v9030_v15 = vld [vmem:[#allocation2 + $0xcc] sm:$0xff] }
 0x76d   : > { %15422 = vmatprep.mubr.msk.f32.mxu0 %vm17196_vm0, %v21229_v19 }
 0x770   : > { %15423 = vmatmul.mubr.msk.f32.gmra.mrb[4].mxu0 %vm1443_vm2, %v8698_v17  ;;  %v9031_v17 = vld [vmem:[#allocation2 + $0xd4] sm:$0xff] }
 0x771   : > { %15425 = vmatprep.mubr.msk.f32.mxu0 %vm17196_vm0, %v21229_v19 }
 0x774   : > { %15426 = vmatmul.mubr.msk.f32.gmra.mrb[6].mxu0 %vm1443_vm2, %v8699_v3  ;;  %v9032_v3 = vld [vmem:[#allocation2 + $0xdc] sm:$0xff] }
 0x775   : > { %15428 = vmatprep.mubr.msk.f32.mxu0 %vm17196_vm0, %v21229_v19 }
 0x778   : > { %15429 = vmatmul.mubr.msk.f32.gmra.mrb[8].mxu0 %vm1443_vm2, %v8700_v26  ;;  %v9033_v26 = vld [vmem:[#allocation2 + $0xe4] sm:$0xff] }
 0x779   : > { %15431 = vmatprep.mubr.msk.f32.mxu0 %vm17196_vm0, %v21229_v19 }
 0x77c   : > { %15432 = vmatmul.mubr.msk.f32.gmra.mrb[10].mxu0 %vm1443_vm2, %v8701_v42  ;;  %v9034_v42 = vld [vmem:[#allocation2 + $0xec] sm:$0xff] }
 0x77d   : > { %15434 = vmatprep.mubr.msk.f32.mxu0 %vm17196_vm0, %v21229_v19 }
 0x780   : > { %15435 = vmatmul.mubr.msk.f32.gmra.mrb[12].mxu0 %vm1443_vm2, %v8702_v22  ;;  %v9035_v22 = vld [vmem:[#allocation2 + $0xf4] sm:$0xff] }
 0x781   : > { %15437 = vmatprep.mubr.msk.f32.mxu0 %vm17196_vm0, %v21229_v19 }
 0x784   : > { %15438 = vmatmul.mubr.msk.f32.gmra.mrb[14].mxu0 %vm1443_vm2, %v8703_v11  ;;  %v9036_v11 = vld [vmem:[#allocation2 + $0xfc] sm:$0xf] }
 0x785   : > { %15440 = vmatprep.mubr.msk.f32.mxu0 %vm17196_vm0, %v21229_v19 }
 0x788   : > { %15441 = vmatmul.mubr.msk.f32.gmra.mrb[16].mxu0 %vm1443_vm2, %v8704_v49 }
 0x789   : > { %15443 = vmatprep.mubr.msk.f32.mxu0 %vm17196_vm0, %v21229_v19 }
 0x78c   : > { %15444 = vmatmul.mubr.msk.f32.gmra.mrb[18].mxu0 %vm1443_vm2, %v8705_v28 }
 0x78d   : > { %15446 = vmatprep.mubr.msk.f32.mxu0 %vm17196_vm0, %v21229_v19 }
 0x790   : > { %15447 = vmatmul.mubr.msk.f32.gmra.mrb[20].mxu0 %vm1443_vm2, %v8706_v8 }
 0x791   : > { %15449 = vmatprep.mubr.msk.f32.mxu0 %vm17196_vm0, %v21229_v19 }
 0x794   : > { %15450 = vmatmul.mubr.msk.f32.gmra.mrb[22].mxu0 %vm1443_vm2, %v8707_v16 }
 0x795   : > { %15452 = vmatprep.mubr.msk.f32.mxu0 %vm17196_vm0, %v21229_v19 }
 0x798   : > { %15453 = vmatmul.mubr.msk.f32.gmra.mrb[24].mxu0 %vm1443_vm2, %v8708_v44 }
 0x799   : > { %15455 = vmatprep.mubr.msk.f32.mxu0 %vm17196_vm0, %v21229_v19 }
 0x79c   : > { %15456 = vmatmul.mubr.msk.f32.gmra.mrb[26].mxu0 %vm1443_vm2, %v8709_v13 }
 0x79d   : > { %15458 = vmatprep.mubr.msk.f32.mxu0 %vm17196_vm0, %v21229_v19 }
 0x7a0   : > { %15459 = vmatmul.mubr.msk.f32.gmra.mrb[28].mxu0 %vm1443_vm2, %v8710_v50 }
 0x7a1   : > { %15461 = vmatprep.mubr.msk.f32.mxu0 %vm17196_vm0, %v21229_v19 }
 0x7a4   : > { %15462 = vmatmul.mubr.msk.f32.gmra.mrb[30].mxu0 %vm1443_vm2, %v8711_v1 }
 0x7a5   : > { %15464 = vmatprep.mubr.msk.f32.mxu0 %vm17196_vm0, %v21229_v19 }
 0x7a8   : > { %15465 = vmatmul.mubr.msk.f32.gmra.mrb[32].mxu0 %vm1443_vm2, %v8712_v6 }
 0x7a9   : > { %15467 = vmatprep.mubr.msk.f32.mxu0 %vm17196_vm0, %v21229_v19 }
 0x7ac   : > { %15468 = vmatmul.mubr.msk.f32.gmra.mrb[34].mxu0 %vm1443_vm2, %v8713_v45 }
 0x7ad   : > { %15470 = vmatprep.mubr.msk.f32.mxu0 %vm17196_vm0, %v21229_v19 }
 0x7b0   : > { %15471 = vmatmul.mubr.msk.f32.gmra.mrb[36].mxu0 %vm1443_vm2, %v8714_v39 }
 0x7b1   : > { %15473 = vmatprep.mubr.msk.f32.mxu0 %vm17196_vm0, %v21229_v19 }
 0x7b4   : > { %15474 = vmatmul.mubr.msk.f32.gmra.mrb[38].mxu0 %vm1443_vm2, %v8715_v59 }
 0x7b5   : > { %15476 = vmatprep.mubr.msk.f32.mxu0 %vm17196_vm0, %v21229_v19 }
 0x7b8   : > { %15477 = vmatmul.mubr.msk.f32.gmra.mrb[40].mxu0 %vm1443_vm2, %v8716_v62 }
 0x7b9   : > { %15479 = vmatprep.mubr.msk.f32.mxu0 %vm17196_vm0, %v21229_v19 }
 0x7bc   : > { %15480 = vmatmul.mubr.msk.f32.gmra.mrb[42].mxu0 %vm1443_vm2, %v8717_v14 }
 0x7bd   : > { %15482 = vmatprep.mubr.msk.f32.mxu0 %vm17196_vm0, %v21229_v19 }
 0x7c0   : > { %15483 = vmatmul.mubr.msk.f32.gmra.mrb[44].mxu0 %vm1443_vm2, %v8718_v0 }
 0x7c1   : > { %15485 = vmatprep.mubr.msk.f32.mxu0 %vm17196_vm0, %v21229_v19 }
 0x7c4   : > { %15486 = vmatmul.mubr.msk.f32.gmra.mrb[46].mxu0 %vm1443_vm2, %v8719_v30 }
 0x7c5   : > { %15488 = vmatprep.mubr.msk.f32.mxu0 %vm17196_vm0, %v21229_v19 }
 0x7c8   : > { %15489 = vmatmul.mubr.msk.f32.gmra.mrb[48].mxu0 %vm1443_vm2, %v8720_v31 }
 0x7c9   : > { %15493 = vmatprep.mubr.msk.f32.mxu0 %vm17196_vm0, %v21229_v19 }
 0x7cc   : > { %15494 = vmatmul.mubr.msk.f32.vlgmr.msra.gmra.mrb[0].mxu0 %vm1443_vm2, %v9012_v58 }
 0x7cd   : > { %15496 = vmatprep.mubr.msk.f32.mxu0 %vm17196_vm0, %v21229_v19 }
 0x7d0   : > { %15497 = vmatmul.mubr.msk.f32.gmra.mrb[2].mxu0 %vm1443_vm2, %v9013_v53 }
 0x7d1   : > { %15499 = vmatprep.mubr.msk.f32.mxu0 %vm17196_vm0, %v21229_v19 }
 0x7d4   : > { %15500 = vmatmul.mubr.msk.f32.gmra.mrb[4].mxu0 %vm1443_vm2, %v9014_v63 }
 0x7d5   : > { %15502 = vmatprep.mubr.msk.f32.mxu0 %vm17196_vm0, %v21229_v19 }
 0x7d8   : > { %15503 = vmatmul.mubr.msk.f32.gmra.mrb[6].mxu0 %vm1443_vm2, %v9015_v7  ;;  %v9367_v7 = vld [vmem:[%s21163_s1 + $0xd8] sm:$0xff] }
 0x7d9   : > { %15505 = vmatprep.mubr.msk.f32.mxu0 %vm17196_vm0, %v21229_v19 }
 0x7dc   : > { %15506 = vmatmul.mubr.msk.f32.gmra.mrb[8].mxu0 %vm1443_vm2, %v9016_v55 }
 0x7dd   : > { %15508 = vmatprep.mubr.msk.f32.mxu0 %vm17196_vm0, %v21229_v19 }
 0x7e0   : > { %15509 = vmatmul.mubr.msk.f32.gmra.mrb[10].mxu0 %vm1443_vm2, %v9017_v27 }
 0x7e1   : > { %15511 = vmatprep.mubr.msk.f32.mxu0 %vm17196_vm0, %v21229_v19 }
 0x7e4   : > { %15512 = vmatmul.mubr.msk.f32.gmra.mrb[12].mxu0 %vm1443_vm2, %v9018_v25 }
 0x7e5   : > { %15514 = vmatprep.mubr.msk.f32.mxu0 %vm17196_vm0, %v21229_v19 }
 0x7e8   : > { %15515 = vmatmul.mubr.msk.f32.gmra.mrb[14].mxu0 %vm1443_vm2, %v9019_v37 }
 0x7e9   : > { %15517 = vmatprep.mubr.msk.f32.mxu0 %vm17196_vm0, %v21229_v19 }
 0x7ec   : > { %15518 = vmatmul.mubr.msk.f32.gmra.mrb[16].mxu0 %vm1443_vm2, %v9020_v41 }
 0x7ed   : > { %15520 = vmatprep.mubr.msk.f32.mxu0 %vm17196_vm0, %v21229_v19 }
 0x7f0   : > { %15521 = vmatmul.mubr.msk.f32.gmra.mrb[18].mxu0 %vm1443_vm2, %v9021_v23 }
 0x7f1   : > { %15523 = vmatprep.mubr.msk.f32.mxu0 %vm17196_vm0, %v21229_v19 }
 0x7f4   : > { %15524 = vmatmul.mubr.msk.f32.gmra.mrb[20].mxu0 %vm1443_vm2, %v9022_v20 }
 0x7f5   : > { %15526 = vmatprep.mubr.msk.f32.mxu0 %vm17196_vm0, %v21229_v19 }
 0x7f8   : > { %15527 = vmatmul.mubr.msk.f32.gmra.mrb[22].mxu0 %vm1443_vm2, %v9023_v29 }
 0x7f9   : > { %15529 = vmatprep.mubr.msk.f32.mxu0 %vm17196_vm0, %v21229_v19 }
 0x7fc   : > { %15530 = vmatmul.mubr.msk.f32.gmra.mrb[24].mxu0 %vm1443_vm2, %v9024_v43 }
 0x7fd   : > { %15532 = vmatprep.mubr.msk.f32.mxu0 %vm17196_vm0, %v21229_v19 }
 0x800   : > { %15533 = vmatmul.mubr.msk.f32.gmra.mrb[26].mxu0 %vm1443_vm2, %v9025_v47  ;;  %v9528_v47 = vld [vmem:[%s21163_s1 + $0x100] sm:$0xff] }
 0x801   : > { %15535 = vmatprep.mubr.msk.f32.mxu0 %vm17196_vm0, %v21229_v19 }
 0x804   : > { %15536 = vmatmul.mubr.msk.f32.gmra.mrb[28].mxu0 %vm1443_vm2, %v9026_v9 }
 0x805   : > { %15538 = vmatprep.mubr.msk.f32.mxu0 %vm17196_vm0, %v21229_v19 }
 0x808   : > { %15539 = vmatmul.mubr.msk.f32.gmra.mrb[30].mxu0 %vm1443_vm2, %v9027_v2 }
 0x809   : > { %15541 = vmatprep.mubr.msk.f32.mxu0 %vm17196_vm0, %v21229_v19 }
 0x80c   : > { %15542 = vmatmul.mubr.msk.f32.gmra.mrb[32].mxu0 %vm1443_vm2, %v9028_v10 }
 0x80d   : > { %15544 = vmatprep.mubr.msk.f32.mxu0 %vm17196_vm0, %v21229_v19 }
 0x810   : > { %15545 = vmatmul.mubr.msk.f32.gmra.mrb[34].mxu0 %vm1443_vm2, %v9029_v12 }
 0x811   : > { %15547 = vmatprep.mubr.msk.f32.mxu0 %vm17196_vm0, %v21229_v19 }
 0x814   : > { %15548 = vmatmul.mubr.msk.f32.gmra.mrb[36].mxu0 %vm1443_vm2, %v9030_v15 }
 0x815   : > { %15550 = vmatprep.mubr.msk.f32.mxu0 %vm17196_vm0, %v21229_v19 }
 0x818   : > { %15551 = vmatmul.mubr.msk.f32.gmra.mrb[38].mxu0 %vm1443_vm2, %v9031_v17 }
 0x819   : > { %15553 = vmatprep.mubr.msk.f32.mxu0 %vm17196_vm0, %v21229_v19 }
 0x81c   : > { %15554 = vmatmul.mubr.msk.f32.gmra.mrb[40].mxu0 %vm1443_vm2, %v9032_v3 }
 0x81d   : > { %15556 = vmatprep.mubr.msk.f32.mxu0 %vm17196_vm0, %v21229_v19 }
 0x820   : > { %15557 = vmatmul.mubr.msk.f32.gmra.mrb[42].mxu0 %vm1443_vm2, %v9033_v26 }
 0x821   : > { %15559 = vmatprep.mubr.msk.f32.mxu0 %vm17196_vm0, %v21229_v19 }
 0x824   : > { %15560 = vmatmul.mubr.msk.f32.gmra.mrb[44].mxu0 %vm1443_vm2, %v9034_v42 }
 0x825   : > { %15562 = vmatprep.mubr.msk.f32.mxu0 %vm17196_vm0, %v21229_v19 }
 0x828   : > { %15563 = vmatmul.mubr.msk.f32.gmra.mrb[46].mxu0 %vm1443_vm2, %v9035_v22 }
 0x829   : > { %15565 = vmatprep.mubr.msk.f32.mxu0 %vm17196_vm0, %v21229_v19 }
 0x82c   : > { %15566 = vmatmul.mubr.msk.f32.gmra.mrb[48].mxu0 %vm1443_vm2, %v9036_v11  ;;  %v9608_v11 = vld [vmem:[%s21163_s1 + $0x108] sm:$0xff] }
 0x89f   : > { %v9179_v49 = vpop.f32.mrb[0].mxu0 }
 0x8a0   : > { %v15950_v28 = vadd.f32 %v9179_v49, %v20210_v60  ;;  %v15495_v8 = vpop.f32.mrb[1].mxu0  ;;  %v9609_v49 = vld [vmem:[%s21163_s1 + $0x110] sm:$0xff] }
 0x8a3   : > { %v9184_v16 = vpop.f32.mrb[2].mxu0 }
 0x8a4   : > { %v15951_v44 = vadd.f32 %v9184_v16, %v20215_v56  ;;  %v15498_v13 = vpop.f32.mrb[3].mxu0  ;;  %v20711_v56 = vld [vmem:[%s21163_s1 + $0x370] sm:$0x1] }
 0x8a5   : > { %v20739_v9 = vrot.slane %v20711_v56, 4  ;;  %v20747_v26 = vrot.slane %v20711_v56, 2 }
 0x8a6   : > { %9329 = vst [vmem:[#allocation3 + $0x8] sm:$0xff] %v15951_v44  ;;  %v15835_v44 = vpack.c.bf16 %v9609_v49, %v9608_v11 }
 0x8a7   : > { %v9189_v50 = vpop.f32.mrb[4].mxu0 }
 0x8a8   : > { %v15952_v1 = vadd.f32 %v9189_v50, %v20220_v33  ;;  %v15501_v6 = vpop.f32.mrb[5].mxu0 }
 0x8aa   : > { %9330 = vst [vmem:[#allocation3 + $0x10] sm:$0xff] %v15952_v1 }
 0x8ab   : > { %v9194_v45 = vpop.f32.mrb[6].mxu0 }
 0x8ac   : > { %v15953_v61 = vadd.f32 %v9194_v45, %v20225_v35  ;;  %v15504_v38 = vpop.f32.mrb[7].mxu0  ;;  %v20715_v35 = vrot.slane %v20711_v56, 6 }
 0x8ad   : > { %v9356_v8 = vld [vmem:[#allocation3 + $0x8] sm:$0x3] }
 0x8ae   : > { %9331 = vst [vmem:[#allocation3 + $0x18] sm:$0xff] %v15953_v61 }
 0x8af   : > { %v9199_v39 = vpop.f32.mrb[8].mxu0 }
 0x8b0   : > { %v15954_v46 = vadd.f32 %v9199_v39, %v20230_v52  ;;  %v15507_v60 = vpop.f32.mrb[9].mxu0 }
 0x8b1   : > { %v9357_v59 = vld [vmem:[#allocation3 + $0xe] sm:$0xff] }
 0x8b2   : > { %9332 = vst [vmem:[#allocation3 + $0x20] sm:$0xff] %v15954_v46  ;;  %v9359_v62 = vmax.f32 %v15950_v28, %v9357_v59  ;;  %v9358_v28 = vld [vmem:[#allocation3 + $0x16] sm:$0x3] }
 0x8b3   : > { %v9204_v33 = vpop.f32.mrb[10].mxu0 }
 0x8b4   : > { %v15955_v14 = vadd.f32 %v9204_v33, %v20235_v24  ;;  %v15510_v0 = vpop.f32.mrb[11].mxu0  ;;  %v9362_v30 = vrot.slane %v9359_v62, 1  ;;  %v9368_v24 = vld [vmem:[%s21163_s1 + $0xe0] sm:$0xff] }
 0x8b5   : > { %v15829_v25 = vpack.c.bf16 %v9368_v24, %v9367_v7 }
 0x8b6   : > { %9333 = vst [vmem:[#allocation3 + $0x28] sm:$0xff] %v15955_v14  ;;  %v9364_v31 = vmax.f32 %v9359_v62, %v9362_v30  ;;  %v9692_v14 = vld [vmem:[%s21163_s1 + $0x120] sm:$0xff] }
 0x8b7   : > { %v9209_v52 = vpop.f32.mrb[12].mxu0 }
 0x8b8   : > { %v15956_v58 = vadd.f32 %v9209_v52, %v20240_v57  ;;  %v15513_v53 = vpop.f32.mrb[13].mxu0  ;;  %v9372_v63 = vadd.f32 %v20715_v35, %v9364_v31  ;;  %v9365_v43 = vadd.f32 %v9364_v31, %v20711_v56  ;;  %v9525_v17 = vadd.f32 %v20739_v9, %v9364_v31 }
 0x8b9   : > { %v9606_v13 = vadd.f32 %v20747_v26, %v9364_v31  ;;  %v9768_v59 = vld [vmem:[#allocation3 + $0x1c] sm:$0xff] }
 0x8ba   : > { %9334 = vst [vmem:[#allocation3 + $0x30] sm:$0xff] %v15956_v58  ;;  %v9373_v55 = vmax.f32 %v9372_v63, 0.0  ;;  %v9366_v15 = vmax.f32 %v9365_v43, 0.0 }
 0x8bb   : > { %v9214_v27 = vpop.f32.mrb[14].mxu0  ;;  %v9607_v46 = vmax.f32 %v9606_v13, 0.0 }
 0x8bc   : > { %v15957_v37 = vadd.f32 %v9214_v27, %v20245_v48  ;;  %v15516_v41 = vpop.f32.mrb[15].mxu0  ;;  %v9377_v23 = vrot.slane %v9373_v55, 2  ;;  %v9527_v48 = vld [vmem:[%s21163_s1 + $0xf8] sm:$0xff] }
 0x8bd   : > { %v15832_v10 = vpack.c.bf16 %v9528_v47, %v9527_v48  ;;  %v9611_v58 = vrot.slane %v9607_v46, 6 }
 0x8be   : > { %15573 = vmatmul.mubr.msk.f32.vlgmr.msra.gmra.mrb[250].mxu1 %vm175_vm1, %v9377_v23 }
 0x8bf   : > { %15830 = vmatpush3.bf16.msra.mxu1 %v15829_v25  ;;  %v9219_v57 = vpop.f32.mrb[16].mxu0  ;;  %15579 = vmatprep.mubr.msk.f32.mxu1 %vm17196_vm0, %v21229_v19 }
 0x8c0   : > { %v15958_v20 = vadd.f32 %v9219_v57, %v20253_v4  ;;  %v15519_v29 = vpop.f32.mrb[17].mxu0  ;;  %15831 = vmatprep.subr.bf16.mxu1 %v21324_v5  ;;  %v9784_v57 = vld [vmem:[%s21163_s1 + $0x138] sm:$0xff] }
 0x8c1   : > { %v9770_v45 = vld [vmem:[#allocation3 + $0x2a] sm:$0xff] }
 0x8c2   : > { %9336 = vst [vmem:[#allocation3 + $0x40] sm:$0xff] %v15958_v20  ;;  %v9772_v0 = vmax.f32 %v9768_v59, %v9770_v45  ;;  %v9785_v20 = vld [vmem:[%s21163_s1 + $0x140] sm:$0xff]  ;;  %v10014_v59 = vld [vmem:[%s21163_s1 + $0x158] sm:$0xff] }
 0x8c3   : > { %v9224_v2 = vpop.f32.mrb[18].mxu0  ;;  %v15841_v48 = vpack.c.bf16 %v9785_v20, %v9784_v57 }
 0x8c4   : > { %v15959_v4 = vadd.f32 %v9224_v2, %v20313_v51  ;;  %v15522_v12 = vpop.f32.mrb[19].mxu0  ;;  %v9526_v51 = vmax.f32 %v9525_v17, 0.0  ;;  %v9775_v24 = vrot.slane %v9772_v0, 1 }
 0x8c6   : > { %9337 = vst [vmem:[#allocation3 + $0x48] sm:$0xff] %v15959_v4  ;;  %15580 = vmatmul.mubr.msk.f32.vlgmr.msra.gmra.mrb[250].mxu1 %vm175_vm1, %v9366_v15  ;;  %v9530_v6 = vrot.slane %v9526_v51, 4  ;;  %v9777_v29 = vmax.f32 %v9772_v0, %v9775_v24 }
 0x8c7   : > { %15833 = vmatpush3.bf16.msra.mxu1 %v15832_v10  ;;  %v9229_v3 = vpop.f32.mrb[20].mxu0  ;;  %15586 = vmatprep.mubr.msk.f32.mxu1 %vm17196_vm0, %v21229_v19 }
 0x8c8   : > { %v15960_v42 = vadd.f32 %v9229_v3, %v20318_v32  ;;  %v15525_v22 = vpop.f32.mrb[21].mxu0  ;;  %15834 = vmatprep.subr.bf16.mxu1 %v21324_v5  ;;  %v9360_v32 = vmax.f32 %v9356_v8, %v9358_v28  ;;  %v9782_v10 = vadd.f32 %v9777_v29, %v20715_v35  ;;  %v9781_v3 = vld [vmem:[%s21163_s1 + $0x130] sm:$0xff]  ;;  %v9778_v28 = vadd.f32 %v9777_v29, %v20711_v56  ;;  %v9935_v8 = vld [vmem:[%s21163_s1 + $0x148] sm:$0xff] }
 0x8c9   : > { %v9933_v45 = vadd.f32 %v9777_v29, %v20739_v9 }
 0x8ca   : > { %9338 = vst [vmem:[#allocation3 + $0x50] sm:$0xff] %v15960_v42  ;;  %v9686_v60 = vrot.slane %v9360_v32, 1  ;;  %v9783_v17 = vmax.f32 %v9782_v10, 0.0 }
 0x8cb   : > { %v9234_v16 = vpop.f32.mrb[22].mxu0 }
 0x8cc   : > { %v15961_v50 = vadd.f32 %v9234_v16, %v20323_v36  ;;  %v15528_v1 = vpop.f32.mrb[23].mxu0  ;;  %v9691_v36 = vld [vmem:[%s21163_s1 + $0x118] sm:$0xff]  ;;  %v9787_v11 = vrot.slane %v9783_v17, 2  ;;  %v9936_v16 = vld [vmem:[%s21163_s1 + $0x150] sm:$0xff] }
 0x8cd   : > { %v10176_v61 = vld [vmem:[#allocation3 + $0x46] sm:$0xff]  ;;  %v15838_v53 = vpack.c.bf16 %v9692_v14, %v9691_v36  ;;  %v9771_v14 = vld [vmem:[#allocation3 + $0x32] sm:$0x3] }
 0x8ce   : > { %9339 = vst [vmem:[#allocation3 + $0x58] sm:$0xff] %v15961_v50  ;;  %15587 = vmatmul.mubr.msk.f32.vlgmr.msra.gmra.mrb[250].mxu1 %vm175_vm1, %v9530_v6  ;;  %v10178_v38 = vmax.f32 %v15957_v37, %v10176_v61  ;;  %v15847_v50 = vpack.c.bf16 %v9936_v16, %v9935_v8  ;;  %v9779_v6 = vmax.f32 %v9778_v28, 0.0  ;;  %v10420_v8 = vld [vmem:[%s21163_s1 + $0x1a8] sm:$0xff]  ;;  %v10421_v16 = vld [vmem:[%s21163_s1 + $0x1b0] sm:$0xff] }
 0x8cf   : > { %15836 = vmatpush3.bf16.msra.mxu1 %v15835_v44  ;;  %v9239_v39 = vpop.f32.mrb[24].mxu0  ;;  %15593 = vmatprep.mubr.msk.f32.mxu1 %vm17196_vm0, %v21229_v19 }
 0x8d0   : > { %v15962_v62 = vadd.f32 %v9239_v39, %v20328_v40  ;;  %v15531_v33 = vpop.f32.mrb[25].mxu0  ;;  %15837 = vmatprep.subr.bf16.mxu1 %v21324_v5  ;;  %v10181_v30 = vrot.slane %v10178_v38, 1  ;;  %v9688_v40 = vmax.f32 %v9360_v32, %v9686_v60  ;;  %v9934_v60 = vmax.f32 %v9933_v45, 0.0 }
 0x8d2   : > { %9340 = vst [vmem:[#allocation3 + $0x60] sm:$0xff] %v15962_v62  ;;  %v20770_v31 = vmax.f32 %v10178_v38, %v10181_v30  ;;  %v9689_v23 = vadd.f32 %v9688_v40, %v20711_v56  ;;  %v10015_v62 = vld [vmem:[%s21163_s1 + $0x160] sm:$0xff]  ;;  %v9938_v40 = vrot.slane %v9934_v60, 4 }
 0x8d3   : > { %v9244_v52 = vpop.f32.mrb[26].mxu0 }
 0x8d4   : > { %v15963_v63 = vadd.f32 %v9244_v52, %v20333_v34  ;;  %v15534_v7 = vpop.f32.mrb[27].mxu0  ;;  %v20775_v55 = vadd.f32 %v20770_v31, %v20715_v35  ;;  %v20779_v27 = vadd.f32 %v20770_v31, %v20739_v9  ;;  %v20783_v25 = vadd.f32 %v20770_v31, %v20747_v26 }
 0x8d5   : > { %v15850_v52 = vpack.c.bf16 %v10015_v62, %v10014_v59 }
 0x8d6   : > { %9341 = vst [vmem:[#allocation3 + $0x68] sm:$0xff] %v15963_v63  ;;  %15594 = vmatmul.mubr.msk.f32.vlgmr.msra.gmra.mrb[250].mxu1 %vm175_vm1, %v9611_v58  ;;  %v9769_v58 = vld [vmem:[#allocation3 + $0x24] sm:$0x3]  ;;  %v10012_v63 = vadd.f32 %v9777_v29, %v20747_v26  ;;  %v10419_v45 = vmax.f32 %v20783_v25, 0.0 }
 0x8d7   : > { %15839 = vmatpush3.bf16.msra.mxu1 %v15838_v53  ;;  %v9249_v37 = vpop.f32.mrb[28].mxu0  ;;  %15600 = vmatprep.mubr.msk.f32.mxu1 %vm17196_vm0, %v21229_v19  ;;  %v9773_v7 = vmax.f32 %v9769_v58, %v9771_v14  ;;  %v10597_v58 = vld [vmem:[%s21163_s1 + $0x1e0] sm:$0xff] }
 0x8d8   : > { %v15964_v34 = vadd.f32 %v9249_v37, %v20338_v18  ;;  %v15537_v41 = vpop.f32.mrb[29].mxu0  ;;  %15840 = vmatprep.subr.bf16.mxu1 %v21324_v5  ;;  %v9690_v18 = vmax.f32 %v9689_v23, 0.0  ;;  %v10098_v23 = vld [vmem:[%s21163_s1 + $0x170] sm:$0xff]  ;;  %v10423_v62 = vrot.slane %v10419_v45, 6  ;;  %v11232_v45 = vld [vmem:[%s21163_s1 + $0x248] sm:$0xff] }
 0x8d9   : > { %v10097_v41 = vld [vmem:[%s21163_s1 + $0x168] sm:$0xff]  ;;  %v10092_v57 = vrot.slane %v9773_v7, 1 }
 0x8da   : > { %v15853_v29 = vpack.c.bf16 %v10098_v23, %v10097_v41 }
 0x8db   : > { %v9254_v43 = vpop.f32.mrb[30].mxu0 }
 0x8dc   : > { %v15965_v47 = vadd.f32 %v9254_v43, %v20343_v54  ;;  %v15540_v2 = vpop.f32.mrb[31].mxu0  ;;  %v9780_v54 = vld [vmem:[%s21163_s1 + $0x128] sm:$0xff] }
 0x8dd   : > { %v15844_v22 = vpack.c.bf16 %v9781_v3, %v9780_v54  ;;  %v10189_v54 = vmax.f32 %v20775_v55, 0.0  ;;  %v10186_v3 = vld [vmem:[%s21163_s1 + $0x178] sm:$0xff]  ;;  %v10184_v55 = vadd.f32 %v20770_v31, %v20711_v56  ;;  %v10340_v31 = vmax.f32 %v20779_v27, 0.0 }
 0x8de   : > { %9343 = vst [vmem:[#allocation3 + $0x78] sm:$0xff] %v15965_v47  ;;  %15601 = vmatmul.mubr.msk.f32.vlgmr.msra.gmra.mrb[250].mxu1 %vm175_vm1, %v9690_v18  ;;  %v10094_v47 = vmax.f32 %v9773_v7, %v10092_v57  ;;  %v10580_v27 = vld [vmem:[#allocation3 + $0x54] sm:$0xff]  ;;  %v10747_v57 = vld [vmem:[%s21163_s1 + $0x1e8] sm:$0xff] }
 0x8df   : > { %15842 = vmatpush3.bf16.msra.mxu1 %v15841_v48  ;;  %v9259_v4 = vpop.f32.mrb[32].mxu0  ;;  %15607 = vmatprep.mubr.msk.f32.mxu1 %vm17196_vm0, %v21229_v19  ;;  %v10185_v28 = vmax.f32 %v10184_v55, 0.0 }
 0x8e0   : > { %v15966_v12 = vadd.f32 %v9259_v4, %v20348_v21  ;;  %v15543_v15 = vpop.f32.mrb[33].mxu0  ;;  %15843 = vmatprep.subr.bf16.mxu1 %v21324_v5  ;;  %v10095_v10 = vadd.f32 %v10094_v47, %v20711_v56  ;;  %v10190_v4 = vld [vmem:[%s21163_s1 + $0x188] sm:$0xff] }
 0x8e2   : > { %9344 = vst [vmem:[#allocation3 + $0x80] sm:$0xff] %v15966_v12  ;;  %v10191_v12 = vld [vmem:[%s21163_s1 + $0x190] sm:$0xff]  ;;  %v10096_v17 = vmax.f32 %v10095_v10, 0.0  ;;  %v10583_v10 = vld [vmem:[#allocation3 + $0x6a] sm:$0x3] }
 0x8e3   : > { %v9264_v42 = vpop.f32.mrb[34].mxu0  ;;  %v15856_v15 = vpack.c.bf16 %v10191_v12, %v10190_v4 }
 0x8e4   : > { %v15546_v51 = vpop.f32.mrb[35].mxu0  ;;  %v10187_v42 = vld [vmem:[%s21163_s1 + $0x180] sm:$0xff] }
 0x8e5   : > { %v10193_v51 = vrot.slane %v10189_v54, 2 }
 0x8e6   : > { %15608 = vmatmul.mubr.msk.f32.vlgmr.msra.gmra.mrb[250].mxu1 %vm175_vm1, %v9787_v11  ;;  %v10341_v11 = vld [vmem:[%s21163_s1 + $0x198] sm:$0xff] }
 0x8e7   : > { %15845 = vmatpush3.bf16.msra.mxu1 %v15844_v22  ;;  %v9269_v21 = vpop.f32.mrb[36].mxu0  ;;  %15614 = vmatprep.mubr.msk.f32.mxu1 %vm17196_vm0, %v21229_v19  ;;  %v15859_v22 = vpack.c.bf16 %v10187_v42, %v10186_v3  ;;  %v10909_v3 = vld [vmem:[%s21163_s1 + $0x208] sm:$0xff]  ;;  %v10910_v42 = vld [vmem:[%s21163_s1 + $0x210] sm:$0xff] }
 0x8e8   : > { %v15549_v49 = vpop.f32.mrb[37].mxu0  ;;  %15846 = vmatprep.subr.bf16.mxu1 %v21324_v5  ;;  %v10342_v21 = vld [vmem:[%s21163_s1 + $0x1a0] sm:$0xff] }
 0x8e9   : > { %v10988_v44 = vld [vmem:[#allocation3 + $0x7e] sm:$0xff]  ;;  %v15862_v49 = vpack.c.bf16 %v10342_v21, %v10341_v11  ;;  %v11002_v21 = vld [vmem:[%s21163_s1 + $0x228] sm:$0xff] }
 0x8ea   : > { %v10990_v13 = vmax.f32 %v15964_v34, %v10988_v44  ;;  %v10013_v34 = vmax.f32 %v10012_v63, 0.0  ;;  %v10177_v44 = vld [vmem:[#allocation3 + $0x4e] sm:$0x3] }
 0x8eb   : > { %v9274_v32 = vpop.f32.mrb[38].mxu0 }
 0x8ec   : > { %v15552_v1 = vpop.f32.mrb[39].mxu0  ;;  %v10993_v61 = vrot.slane %v10990_v13, 1  ;;  %v10017_v48 = vrot.slane %v10013_v34, 6  ;;  %v10175_v32 = vld [vmem:[#allocation3 + $0x40] sm:$0x3]  ;;  %v10593_v34 = vld [vmem:[%s21163_s1 + $0x1d0] sm:$0xff] }
 0x8ed   : > { %v10179_v1 = vmax.f32 %v10175_v32, %v10177_v44  ;;  %v10999_v44 = vld [vmem:[%s21163_s1 + $0x220] sm:$0xff] }
 0x8ee   : > { %15615 = vmatmul.mubr.msk.f32.vlgmr.msra.gmra.mrb[250].mxu1 %vm175_vm1, %v9779_v6  ;;  %v20823_v38 = vmax.f32 %v10990_v13, %v10993_v61  ;;  %v15865_v13 = vpack.c.bf16 %v10421_v16, %v10420_v8  ;;  %v10582_v6 = vld [vmem:[#allocation3 + $0x62] sm:$0xff]  ;;  %v10503_v61 = vld [vmem:[%s21163_s1 + $0x1b8] sm:$0xff] }
 0x8ef   : > { %15848 = vmatpush3.bf16.msra.mxu1 %v15847_v50  ;;  %v9279_v39 = vpop.f32.mrb[40].mxu0  ;;  %15621 = vmatprep.mubr.msk.f32.mxu1 %vm17196_vm0, %v21229_v19  ;;  %v10344_v50 = vrot.slane %v10340_v31, 4  ;;  %v10584_v60 = vmax.f32 %v10580_v27, %v10582_v6  ;;  %v10998_v16 = vld [vmem:[%s21163_s1 + $0x218] sm:$0xff] }
 0x8f0   : > { %v15555_v46 = vpop.f32.mrb[41].mxu0  ;;  %15849 = vmatprep.subr.bf16.mxu1 %v21324_v5  ;;  %v20836_v33 = vadd.f32 %v20823_v38, %v20715_v35  ;;  %v20840_v36 = vadd.f32 %v20823_v38, %v20739_v9  ;;  %v20844_v0 = vadd.f32 %v20823_v38, %v20747_v26  ;;  %v10504_v39 = vld [vmem:[%s21163_s1 + $0x1c0] sm:$0xff] }
 0x8f1   : > { %v10498_v46 = vrot.slane %v10179_v1, 1  ;;  %v15868_v59 = vpack.c.bf16 %v10504_v39, %v10503_v61  ;;  %v11233_v61 = vld [vmem:[%s21163_s1 + $0x250] sm:$0xff]  ;;  %v10989_v39 = vld [vmem:[#allocation3 + $0x86] sm:$0x3] }
 0x8f2   : > { %v11001_v8 = vmax.f32 %v20836_v33, 0.0  ;;  %v10996_v33 = vadd.f32 %v20823_v38, %v20711_v56  ;;  %v11152_v38 = vmax.f32 %v20840_v36, 0.0  ;;  %v11231_v36 = vmax.f32 %v20844_v0, 0.0 }
 0x8f3   : > { %v9284_v30 = vpop.f32.mrb[42].mxu0  ;;  %v10500_v14 = vmax.f32 %v10179_v1, %v10498_v46  ;;  %v11154_v1 = vld [vmem:[%s21163_s1 + $0x240] sm:$0xff]  ;;  %v15895_v46 = vpack.c.bf16 %v11233_v61, %v11232_v45  ;;  %v11492_v45 = vld [vmem:[%s21163_s1 + $0x350] sm:$0xff] }
 0x8f4   : > { %v15558_v53 = vpop.f32.mrb[43].mxu0  ;;  %v10587_v30 = vrot.slane %v10584_v60, 1  ;;  %v11005_v32 = vrot.slane %v11001_v8, 2  ;;  %v10997_v27 = vmax.f32 %v10996_v33, 0.0  ;;  %v11484_v8 = vld [vmem:[%s21163_s1 + $0x310] sm:$0xff] }
 0x8f5   : > { %v10501_v25 = vadd.f32 %v10500_v14, %v20711_v56  ;;  %v11315_v14 = vld [vmem:[%s21163_s1 + $0x258] sm:$0xff]  ;;  %v11488_v33 = vld [vmem:[%s21163_s1 + $0x330] sm:$0xff] }
 0x8f6   : > { %15622 = vmatmul.mubr.msk.f32.vlgmr.msra.gmra.mrb[250].mxu1 %vm175_vm1, %v9938_v40  ;;  %v10589_v53 = vmax.f32 %v10584_v60, %v10587_v30  ;;  %v10987_v60 = vld [vmem:[#allocation3 + $0x78] sm:$0x3]  ;;  %v11316_v30 = vld [vmem:[%s21163_s1 + $0x260] sm:$0xff] }
 0x8f7   : > { %15851 = vmatpush3.bf16.msra.mxu1 %v15850_v52  ;;  %v9289_v24 = vpop.f32.mrb[44].mxu0  ;;  %15628 = vmatprep.mubr.msk.f32.mxu1 %vm17196_vm0, %v21229_v19  ;;  %v10596_v52 = vld [vmem:[%s21163_s1 + $0x1d8] sm:$0xff]  ;;  %v10502_v63 = vmax.f32 %v10501_v25, 0.0 }
 0x8f8   : > { %v15561_v37 = vpop.f32.mrb[45].mxu0  ;;  %15852 = vmatprep.subr.bf16.mxu1 %v21324_v5  ;;  %v15871_v40 = vpack.c.bf16 %v10597_v58, %v10596_v52  ;;  %v10594_v7 = vadd.f32 %v10589_v53, %v20715_v35  ;;  %v10590_v35 = vadd.f32 %v10589_v53, %v20711_v56  ;;  %v15898_v52 = vpack.c.bf16 %v11316_v30, %v11315_v14 }
 0x8f9   : > { %v10592_v37 = vld [vmem:[%s21163_s1 + $0x1c8] sm:$0xff]  ;;  %v11235_v58 = vrot.slane %v11231_v36, 6 }
 0x8fa   : > { %v10595_v24 = vmax.f32 %v10594_v7, 0.0  ;;  %v15874_v41 = vpack.c.bf16 %v10593_v34, %v10592_v37  ;;  %v11394_v37 = vld [vmem:[%s21163_s1 + $0x278] sm:$0xff] }
 0x8fb   : > { %v9294_v20 = vpop.f32.mrb[46].mxu0 }
 0x8fc   : > { %v15564_v43 = vpop.f32.mrb[47].mxu0  ;;  %v10599_v23 = vrot.slane %v10595_v24, 2  ;;  %v10748_v20 = vld [vmem:[%s21163_s1 + $0x1f0] sm:$0xff] }
 0x8fd   : > { %v10591_v43 = vmax.f32 %v10590_v35, 0.0 }
 0x8fe   : > { %15629 = vmatmul.mubr.msk.f32.vlgmr.msra.gmra.mrb[250].mxu1 %vm175_vm1, %v10017_v48  ;;  %v10745_v48 = vadd.f32 %v10589_v53, %v20739_v9  ;;  %v10581_v9 = vld [vmem:[#allocation3 + $0x5c] sm:$0x3] }
 0x8ff   : > { %15854 = vmatpush3.bf16.msra.mxu1 %v15853_v29  ;;  %v9299_v2 = vpop.f32.mrb[48].mxu0  ;;  %15635 = vmatprep.mubr.msk.f32.mxu1 %vm17196_vm0, %v21229_v19  ;;  %v15877_v29 = vpack.c.bf16 %v10748_v20, %v10747_v57  ;;  %v11398_v57 = vld [vmem:[%s21163_s1 + $0x298] sm:$0xff]  ;;  %v11399_v20 = vld [vmem:[%s21163_s1 + $0x2a0] sm:$0xff] }
 0x900   : > { %v15567_v18 = vpop.f32.mrb[49].mxu0  ;;  %15855 = vmatprep.subr.bf16.mxu1 %v21324_v5  ;;  %v10746_v47 = vmax.f32 %v10745_v48, 0.0  ;;  %v10826_v2 = vld [vmem:[%s21163_s1 + $0x1f8] sm:$0xff]  ;;  %v11401_v48 = vld [vmem:[%s21163_s1 + $0x2b0] sm:$0xff] }
 0x901   : > { %v10827_v18 = vld [vmem:[%s21163_s1 + $0x200] sm:$0xff] }
 0x902   : > { %v15880_v4 = vpack.c.bf16 %v10827_v18, %v10826_v2  ;;  %v10750_v12 = vrot.slane %v10746_v47, 4  ;;  %v11402_v2 = vld [vmem:[%s21163_s1 + $0x2b8] sm:$0xff]  ;;  %v11403_v18 = vld [vmem:[%s21163_s1 + $0x2c0] sm:$0xff] }
 0x906   : > { %15636 = vmatmul.mubr.msk.f32.vlgmr.msra.gmra.mrb[250].mxu1 %vm175_vm1, %v10096_v17  ;;  %v10585_v17 = vmax.f32 %v10581_v9, %v10583_v10  ;;  %v15916_v10 = vpack.c.bf16 %v11403_v18, %v11402_v2  ;;  %v11405_v9 = vld [vmem:[%s21163_s1 + $0x2d0] sm:$0xff] }
 0x907   : > { %15857 = vmatpush3.bf16.msra.mxu1 %v15856_v15  ;;  %15642 = vmatprep.mubr.msk.f32.mxu1 %vm17196_vm0, %v21229_v19  ;;  %v10824_v15 = vadd.f32 %v10589_v53, %v20747_v26  ;;  %v15883_v26 = vpack.c.bf16 %v10910_v42, %v10909_v3  ;;  %v11479_v3 = vld [vmem:[%s21163_s1 + $0x2e8] sm:$0xff]  ;;  %v11480_v42 = vld [vmem:[%s21163_s1 + $0x2f0] sm:$0xff] }
 0x908   : > { %15858 = vmatprep.subr.bf16.mxu1 %v21324_v5 }
 0x909   : > { %v10825_v54 = vmax.f32 %v10824_v15, 0.0  ;;  %v11406_v15 = vld [vmem:[%s21163_s1 + $0x2d8] sm:$0xff] }
 0x90e   : > { %15643 = vmatmul.mubr.msk.f32.vlgmr.msra.gmra.mrb[250].mxu1 %vm175_vm1, %v10193_v51  ;;  %v10829_v51 = vrot.slane %v10825_v54, 6 }
 0x90f   : > { %15860 = vmatpush3.bf16.msra.mxu1 %v15859_v22  ;;  %15649 = vmatprep.mubr.msk.f32.mxu1 %vm17196_vm0, %v21229_v19  ;;  %v10904_v22 = vrot.slane %v10585_v17, 1 }
 0x910   : > { %15861 = vmatprep.subr.bf16.mxu1 %v21324_v5 }
 0x911   : > { %v10906_v55 = vmax.f32 %v10585_v17, %v10904_v22  ;;  %v11407_v17 = vld [vmem:[%s21163_s1 + $0x2e0] sm:$0xff]  ;;  %v9354_v22 = vld [vmem:[%s21163_s1 + $0x378] sm:$0x1] }
 0x912   : > { %v15922_v54 = vpack.c.bf16 %v11407_v17, %v11406_v15 }
 0x913   : > { %v10907_v11 = vadd.f32 %v10906_v55, %v20711_v56 }
 0x915   : > { %v10908_v31 = vmax.f32 %v10907_v11, 0.0 }
 0x916   : > { %15650 = vmatmul.mubr.msk.f32.vlgmr.msra.gmra.mrb[250].mxu1 %vm175_vm1, %v10185_v28 }
 0x917   : > { %15863 = vmatpush3.bf16.msra.mxu1 %v15862_v49  ;;  %15656 = vmatprep.mubr.msk.f32.mxu1 %vm17196_vm0, %v21229_v19  ;;  %v11003_v49 = vld [vmem:[%s21163_s1 + $0x230] sm:$0xff] }
 0x918   : > { %15864 = vmatprep.subr.bf16.mxu1 %v21324_v5  ;;  %v15886_v28 = vpack.c.bf16 %v11003_v49, %v11002_v21  ;;  %v11481_v21 = vld [vmem:[%s21163_s1 + $0x2f8] sm:$0xff]  ;;  %v11482_v49 = vld [vmem:[%s21163_s1 + $0x300] sm:$0xff] }
 0x91e   : > { %15657 = vmatmul.mubr.msk.f32.vlgmr.msra.gmra.mrb[250].mxu1 %vm175_vm1, %v10344_v50  ;;  %v11153_v50 = vld [vmem:[%s21163_s1 + $0x238] sm:$0xff] }
 0x91f   : > { %15866 = vmatpush3.bf16.msra.mxu1 %v15865_v13  ;;  %15663 = vmatprep.mubr.msk.f32.mxu1 %vm17196_vm0, %v21229_v19  ;;  %v15889_v13 = vpack.c.bf16 %v10999_v44, %v10998_v16  ;;  %v15892_v6 = vpack.c.bf16 %v11154_v1, %v11153_v50  ;;  %v11485_v44 = vld [vmem:[%s21163_s1 + $0x318] sm:$0xff] }
 0x920   : > { %15867 = vmatprep.subr.bf16.mxu1 %v21324_v5  ;;  %v11489_v1 = vld [vmem:[%s21163_s1 + $0x338] sm:$0xff] }
 0x926   : > { %15664 = vmatmul.mubr.msk.f32.vlgmr.msra.gmra.mrb[250].mxu1 %vm175_vm1, %v10423_v62  ;;  %v10991_v62 = vmax.f32 %v10987_v60, %v10989_v39  ;;  %v11493_v39 = vld [vmem:[%s21163_s1 + $0x358] sm:$0xff] }
 0x927   : > { %15869 = vmatpush3.bf16.msra.mxu1 %v15868_v59  ;;  %15670 = vmatprep.mubr.msk.f32.mxu1 %vm17196_vm0, %v21229_v19  ;;  %v11156_v59 = vrot.slane %v11152_v38, 4  ;;  %v11491_v38 = vld [vmem:[%s21163_s1 + $0x348] sm:$0xff] }
 0x928   : > { %15870 = vmatprep.subr.bf16.mxu1 %v21324_v5  ;;  %v11310_v25 = vrot.slane %v10991_v62, 1  ;;  %v15943_v61 = vpack.c.bf16 %v11492_v45, %v11491_v38 }
 0x92a   : > { %v11312_v53 = vmax.f32 %v10991_v62, %v11310_v25  ;;  %v11495_v25 = vld [vmem:[%s21163_s1 + $0x388] sm:$0x1] }
 0x92c   : > { %v11313_v0 = vadd.f32 %v11312_v53, %v20711_v56  ;;  %v11395_v56 = vld [vmem:[%s21163_s1 + $0x280] sm:$0xff] }
 0x92d   : > { %v15904_v34 = vpack.c.bf16 %v11395_v56, %v11394_v37 }
 0x92e   : > { %15671 = vmatmul.mubr.msk.f32.vlgmr.msra.gmra.mrb[250].mxu1 %vm175_vm1, %v10502_v63  ;;  %v11393_v63 = vld [vmem:[%s21163_s1 + $0x270] sm:$0xff]  ;;  %v11314_v24 = vmax.f32 %v11313_v0, 0.0 }
 0x92f   : > { %15872 = vmatpush3.bf16.msra.mxu1 %v15871_v40  ;;  %15677 = vmatprep.mubr.msk.f32.mxu1 %vm17196_vm0, %v21229_v19  ;;  %v11392_v40 = vld [vmem:[%s21163_s1 + $0x268] sm:$0xff] }
 0x930   : > { %15873 = vmatprep.subr.bf16.mxu1 %v21324_v5  ;;  %v15901_v7 = vpack.c.bf16 %v11393_v63, %v11392_v40 }
 0x936   : > { %15678 = vmatmul.mubr.msk.f32.vlgmr.msra.gmra.mrb[250].mxu1 %vm175_vm1, %v10599_v23  ;;  %v11397_v23 = vld [vmem:[%s21163_s1 + $0x290] sm:$0xff] }
 0x937   : > { %15875 = vmatpush3.bf16.msra.mxu1 %v15874_v41  ;;  %15684 = vmatprep.mubr.msk.f32.mxu1 %vm17196_vm0, %v21229_v19  ;;  %v11396_v41 = vld [vmem:[%s21163_s1 + $0x288] sm:$0xff] }
 0x938   : > { %15876 = vmatprep.subr.bf16.mxu1 %v21324_v5  ;;  %v15907_v35 = vpack.c.bf16 %v11397_v23, %v11396_v41 }
 0x93e   : > { %15685 = vmatmul.mubr.msk.f32.vlgmr.msra.gmra.mrb[250].mxu1 %vm175_vm1, %v10591_v43  ;;  %v11400_v43 = vld [vmem:[%s21163_s1 + $0x2a8] sm:$0xff] }
 0x93f   : > { %15878 = vmatpush3.bf16.msra.mxu1 %v15877_v29  ;;  %15691 = vmatprep.mubr.msk.f32.mxu1 %vm17196_vm0, %v21229_v19  ;;  %v15910_v29 = vpack.c.bf16 %v11399_v20, %v11398_v57  ;;  %v15913_v47 = vpack.c.bf16 %v11401_v48, %v11400_v43 }
 0x940   : > { %15879 = vmatprep.subr.bf16.mxu1 %v21324_v5 }
 0x946   : > { %15692 = vmatmul.mubr.msk.f32.vlgmr.msra.gmra.mrb[250].mxu1 %vm175_vm1, %v10750_v12 }
 0x947   : > { %15881 = vmatpush3.bf16.msra.mxu1 %v15880_v4  ;;  %15698 = vmatprep.mubr.msk.f32.mxu1 %vm17196_vm0, %v21229_v19  ;;  %v11404_v4 = vld [vmem:[%s21163_s1 + $0x2c8] sm:$0xff] }
 0x948   : > { %15882 = vmatprep.subr.bf16.mxu1 %v21324_v5  ;;  %v15919_v12 = vpack.c.bf16 %v11405_v9, %v11404_v4 }
 0x94e   : > { %15699 = vmatmul.mubr.msk.f32.vlgmr.msra.gmra.mrb[250].mxu1 %vm175_vm1, %v10829_v51  ;;  %v15925_v51 = vpack.c.bf16 %v11480_v42, %v11479_v3 }
 0x94f   : > { %15884 = vmatpush3.bf16.msra.mxu1 %v15883_v26  ;;  %15705 = vmatprep.mubr.msk.f32.mxu1 %vm17196_vm0, %v21229_v19 }
 0x950   : > { %15885 = vmatprep.subr.bf16.mxu1 %v21324_v5 }
 0x956   : > { %15706 = vmatmul.mubr.msk.f32.vlgmr.msra.gmra.mrb[250].mxu1 %vm175_vm1, %v10908_v31  ;;  %v11483_v31 = vld [vmem:[%s21163_s1 + $0x308] sm:$0xff] }
 0x957   : > { %15887 = vmatpush3.bf16.msra.mxu1 %v15886_v28  ;;  %15712 = vmatprep.mubr.msk.f32.mxu1 %vm17196_vm0, %v21229_v19  ;;  %v15928_v28 = vpack.c.bf16 %v11482_v49, %v11481_v21  ;;  %v15931_v16 = vpack.c.bf16 %v11484_v8, %v11483_v31 }
 0x958   : > { %15888 = vmatprep.subr.bf16.mxu1 %v21324_v5 }
 0x95e   : > { %15713 = vmatmul.mubr.msk.f32.vlgmr.msra.gmra.mrb[250].mxu1 %vm175_vm1, %v11005_v32  ;;  %v11487_v32 = vld [vmem:[%s21163_s1 + $0x328] sm:$0xff] }
 0x95f   : > { %15890 = vmatpush3.bf16.msra.mxu1 %v15889_v13  ;;  %15719 = vmatprep.mubr.msk.f32.mxu1 %vm17196_vm0, %v21229_v19  ;;  %v15937_v50 = vpack.c.bf16 %v11488_v33, %v11487_v32 }
 0x960   : > { %15891 = vmatprep.subr.bf16.mxu1 %v21324_v5 }
 0x966   : > { %15720 = vmatmul.mubr.msk.f32.vlgmr.msra.gmra.mrb[250].mxu1 %vm175_vm1, %v10997_v27 }
 0x967   : > { %15893 = vmatpush3.bf16.msra.mxu1 %v15892_v6  ;;  %15726 = vmatprep.mubr.msk.f32.mxu1 %vm17196_vm0, %v21229_v19  ;;  %v11490_v6 = vld [vmem:[%s21163_s1 + $0x340] sm:$0xff] }
 0x968   : > { %15894 = vmatprep.subr.bf16.mxu1 %v21324_v5  ;;  %v15940_v27 = vpack.c.bf16 %v11490_v6, %v11489_v1 }
 0x96e   : > { %15727 = vmatmul.mubr.msk.f32.vlgmr.msra.gmra.mrb[250].mxu1 %vm175_vm1, %v11156_v59  ;;  %v11408_v59 = vld [vmem:[%s21163_s1 + $0x380] sm:$0x1] }
 0x96f   : > { %15896 = vmatpush3.bf16.msra.mxu1 %v15895_v46  ;;  %15733 = vmatprep.mubr.msk.f32.mxu1 %vm17196_vm0, %v21229_v19  ;;  %v11494_v46 = vld [vmem:[%s21163_s1 + $0x360] sm:$0xff] }
 0x970   : > { %15897 = vmatprep.subr.bf16.mxu1 %v21324_v5  ;;  %v15946_v60 = vpack.c.bf16 %v11494_v46, %v11493_v39 }
 0x976   : > { %15734 = vmatmul.mubr.msk.f32.vlgmr.msra.gmra.mrb[250].mxu1 %vm175_vm1, %v11235_v58 }
 0x977   : > { %15899 = vmatpush3.bf16.msra.mxu1 %v15898_v52  ;;  %15740 = vmatprep.mubr.msk.f32.mxu1 %vm17196_vm0, %v21229_v19 }
 0x978   : > { %15900 = vmatprep.subr.bf16.mxu1 %v21324_v5 }
 0x97e   : > { %15741 = vmatmul.mubr.msk.f32.vlgmr.msra.gmra.mrb[250].mxu1 %vm175_vm1, %v11314_v24 }
 0x97f   : > { %15902 = vmatpush3.bf16.msra.mxu1 %v15901_v7  ;;  %15775 = vmatprep.mubr.msk.f32.mxu1 %vm17196_vm0, %v21229_v19 }
 0x980   : > { %15903 = vmatprep.subr.bf16.mxu1 %v21324_v5 }
 0x983   : > { %15905 = vmatpush3.bf16.msra.mxu1 %v15904_v34 }
 0x984   : > { %15906 = vmatprep.subr.bf16.mxu1 %v21324_v5 }
 0x987   : > { %15908 = vmatpush3.bf16.msra.mxu1 %v15907_v35 }
 0x988   : > { %15909 = vmatprep.subr.bf16.mxu1 %v21324_v5 }
 0x98b   : > { %15911 = vmatpush3.bf16.msra.mxu1 %v15910_v29 }
 0x98c   : > { %15912 = vmatprep.subr.bf16.mxu1 %v21324_v5 }
 0x98f   : > { %15914 = vmatpush3.bf16.msra.mxu1 %v15913_v47 }
 0x990   : > { %15915 = vmatprep.subr.bf16.mxu1 %v21324_v5 }
 0x993   : > { %15917 = vmatpush3.bf16.msra.mxu1 %v15916_v10 }
 0x994   : > { %15918 = vmatprep.subr.bf16.mxu1 %v21324_v5 }
 0x997   : > { %15920 = vmatpush3.bf16.msra.mxu1 %v15919_v12 }
 0x998   : > { %15921 = vmatprep.subr.bf16.mxu1 %v21324_v5 }
 0x99b   : > { %15923 = vmatpush3.bf16.msra.mxu1 %v15922_v54 }
 0x99c   : > { %15924 = vmatprep.subr.bf16.mxu1 %v21324_v5 }
 0xa51   : > { %v11386_v26 = vpop.f32.mrb[250].mxu1 }
 0xa52   : > { %v15975_v55 = vadd.f32 %v11386_v26, %v9354_v22  ;;  %v15742_v11 = vpop.f32.mrb[251].mxu1 }
 0xa54   : > { %15776 = vmatmul.mubr.f32.vlgmr.msra.gmra.mrb[252].mxu1 %v15975_v55 }
 0xa55   : > { %15926 = vmatpush3.bf16.msra.mxu1 %v15925_v51  ;;  %15810 = vmatprep.mubr.msk.f32.mxu1 %vm17196_vm0, %v21229_v19  ;;  %v11486_v19 = vld [vmem:[%s21163_s1 + $0x320] sm:$0xff] }
 0xa56   : > { %15927 = vmatprep.subr.bf16.mxu1 %v21324_v5  ;;  %v15934_v13 = vpack.c.bf16 %v11486_v19, %v11485_v44 }
 0xa59   : > { %15929 = vmatpush3.bf16.msra.mxu1 %v15928_v28 }
 0xa5a   : > { %15930 = vmatprep.subr.bf16.mxu1 %v21324_v5 }
 0xa5d   : > { %15932 = vmatpush3.bf16.msra.mxu1 %v15931_v16 }
 0xa5e   : > { %15933 = vmatprep.subr.bf16.mxu1 %v21324_v5 }
 0xa61   : > { %15935 = vmatpush3.bf16.msra.mxu1 %v15934_v13 }
 0xa62   : > { %15936 = vmatprep.subr.bf16.mxu1 %v21324_v5 }
 0xa65   : > { %15938 = vmatpush3.bf16.msra.mxu1 %v15937_v50 }
 0xa66   : > { %15939 = vmatprep.subr.bf16.mxu1 %v21324_v5 }
 0xa69   : > { %15941 = vmatpush3.bf16.msra.mxu1 %v15940_v27 }
 0xa6a   : > { %15942 = vmatprep.subr.bf16.mxu1 %v21324_v5 }
 0xa6d   : > { %15944 = vmatpush3.bf16.msra.mxu1 %v15943_v61 }
 0xa6e   : > { %15945 = vmatprep.subr.bf16.mxu1 %v21324_v5  ;;  %v11566_v5 = vlaneseq }
 0xa70   : > { %v11567_v30 = vshrl.u32 %v11566_v5, 7 }
 0xa71   : > { %15947 = vmatpush3.bf16.msra.mxu1 %v15946_v60 }
 0xa72   : > { %v11568_v52 = vsub.s32 0, %v11567_v30 }
 0xb27   : > { %v11475_v62 = vpop.f32.mrb[252].mxu1 }
 0xb28   : > { %v11476_v36 = vadd.f32 %v11475_v62, %v11408_v59  ;;  %v15777_v14 = vpop.f32.mrb[253].mxu1 }
 0xb2a   : > { %15811 = vmatmul.mubr.f32.vlgmr.msra.gmra.mrb[254].mxu1 %v11476_v36 }
 0xbfd   : > { %v11562_v58 = vpop.f32.mrb[254].mxu1 }
 0xbfe   : > { %v11563_v53 = vadd.f32 %v11562_v58, %v11495_v25  ;;  %v15812_v0 = vpop.f32.mrb[255].mxu1 }
 0xc00   : > { %v11569_v40 = vrot.slane %v11563_v53, %v11568_v52 }
 0xc02   : > { %11570 = vst [vmem:[%s146_s15] sm:$0xff] %v11569_v40 }
 0xc03 PF: > { %s12_s9 = sadd.s32 1, %s17193_s9  }
 0xc04   : > { %p9_p5 = scmp.ge.s32.totalorder %s12_s9, 4  }
 0xc06   :  { %11 = sbr.rel (!%p9_p5) target bundleno = 1 (0x1), region = 61 }

</bundles_post_ra>
